<compile_context>
chip_gen: v7x
topology: tpu7x:2x2x1
jax: 0.10.0
libtpu: 0.0.40
codegen_flags: <defaults>
</compile_context>

<pallas_src>
import jax
import jax.numpy as jnp
from jax import lax
from jax.experimental import pallas as pl
from jax.experimental.pallas import tpu as pltpu


_VMEM_LIMIT = 32 * 1024 * 1024   # fits v5e/v6e/v7x scoped VMEM with headroom
_MASK_VALUE = -1e30              # finite "minus infinity" for padded kv columns


# ----------------------------- Pallas kernels ------------------------------

def _qkv_proj_kernel(x_ref, wq_ref, bq_ref, wkt_ref, bk_ref, wv_ref, bv_ref,
                     q_ref, k_ref, v_ref):
    """Fused 1x1x1 query/key/value convs on one channels-first (C, TN) tile.

    x_ref: (1, C, TN) f32
    wq: (C, Cq) bf16, bq: (1, Cq) f32
    wkt: (Cq, C) bf16 (pre-transposed key weight), bk: (Cq, 1) f32
    wv: (C, C) bf16, bv: (1, C) f32
    q_ref: (1, TN, Cq) bf16   k_ref: (1, Cq, TN) bf16   v_ref: (1, TN, C) bf16
    """
    x_cf32 = x_ref[0]                                      # (C, TN) f32
    x_cf = x_cf32.astype(jnp.bfloat16)                     # MXU operand
    # One f32 transpose per tile (XLU), shared by the q and v matmuls.
    x_cl = jnp.transpose(x_cf32).astype(jnp.bfloat16)      # (TN, C)

    # Key written channels-first / pre-transposed: natural NN matmul and a
    # lane-dense (TN on lanes) store even when Cq < 128.
    k = jnp.dot(wkt_ref[...], x_cf,
                preferred_element_type=jnp.float32) + bk_ref[...]   # (Cq, TN)
    k_ref[0] = k.astype(jnp.bfloat16)

    q = jnp.dot(x_cl, wq_ref[...],
                preferred_element_type=jnp.float32) + bq_ref[...]   # (TN, Cq)
    q_ref[0] = q.astype(jnp.bfloat16)

    v = jnp.dot(x_cl, wv_ref[...],
                preferred_element_type=jnp.float32) + bv_ref[...]   # (TN, C)
    v_ref[0] = v.astype(jnp.bfloat16)


def _make_flash_kernel(n_valid, n_padded):
    """Online-softmax position-attention kernel; grid = (B, N/TQ, N/TK)."""
    needs_mask = n_valid != n_padded

    def kernel(q_ref, k_ref, v_ref, x_ref, gamma_ref, o_ref,
               m_sc, l_sc, acc_sc):
        # q_ref: (1, TQ, Cq) bf16     k_ref: (1, Cq, TK) bf16 (pre-transposed)
        # v_ref: (1, TK, C) bf16      x_ref/o_ref: (1, C, TQ) f32 (channels-first)
        # gamma_ref: (1, 1) f32 in SMEM
        # scratch: m (TQ,1) f32, l (TQ,1) f32, acc (TQ,C) f32
        ki = pl.program_id(2)

        @pl.when(ki == 0)
        def _init():
            m_sc[...] = jnp.full(m_sc.shape, -jnp.inf, m_sc.dtype)
            l_sc[...] = jnp.zeros(l_sc.shape, l_sc.dtype)
            acc_sc[...] = jnp.zeros(acc_sc.shape, acc_sc.dtype)

        # energy tile: natural NN MXU matmul, no K relayout in the hot loop.
        s = jnp.dot(q_ref[0], k_ref[0],
                    preferred_element_type=jnp.float32)            # (TQ, TK)

        if needs_mask:
            tk = s.shape[1]
            col = ki * tk + lax.broadcasted_iota(jnp.int32, s.shape, 1)
            s = jnp.where(col < n_valid, s, _MASK_VALUE)

        m_prev = m_sc[...]
        m_new = jnp.maximum(m_prev, jnp.max(s, axis=-1, keepdims=True))
        alpha = jnp.exp(m_prev - m_new)                              # f32
        # bf16 exp -> bf16 EUP path on v6e/v7x; p feeds the MXU directly.
        p = jnp.exp((s - m_new).astype(jnp.bfloat16))                # (TQ, TK)
        l_sc[...] = alpha * l_sc[...] + jnp.sum(
            p.astype(jnp.float32), axis=-1, keepdims=True)           # f32 row sum
        acc_sc[...] = alpha * acc_sc[...] + jnp.dot(
            p, v_ref[0], preferred_element_type=jnp.float32)
        m_sc[...] = m_new

        @pl.when(ki == pl.num_programs(2) - 1)
        def _finalize():
            # Deferred softmax normalization on the EUP reciprocal path.
            out_cl = acc_sc[...] * pl.reciprocal(l_sc[...], approx=True)  # (TQ, C)
            out_cf = jnp.transpose(out_cl)                                 # (C, TQ)
            g = gamma_ref[0, 0]
            o_ref[0] = (g * out_cf + x_ref[0]).astype(o_ref.dtype)

    return kernel


# ------------------------------- wrappers ----------------------------------

def _pick_tile(n, cap):
    """Largest 128-aligned divisor of n that is <= cap (n is 128-aligned)."""
    cap = min(cap, n)
    t = (cap // 128) * 128
    while t >= 128:
        if n % t == 0:
            return t
        t -= 128
    return n


def pam_qkv_projection(x_cf, wq, bq, wkt, bk, wv, bv, *, tile_n=512):
    """x_cf: (B, C, N) f32 -> q (B,N,Cq) bf16, k (B,Cq,N) bf16, v (B,N,C) bf16."""
    B, C, N = x_cf.shape
    Cq = wq.shape[-1]
    TN = _pick_tile(N, tile_n)
    return pl.pallas_call(
        _qkv_proj_kernel,
        grid=(B, N // TN),
        in_specs=[
            pl.BlockSpec((1, C, TN), lambda b, n: (b, 0, n)),
            pl.BlockSpec((C, Cq), lambda b, n: (0, 0)),
            pl.BlockSpec((1, Cq), lambda b, n: (0, 0)),
            pl.BlockSpec((Cq, C), lambda b, n: (0, 0)),
            pl.BlockSpec((Cq, 1), lambda b, n: (0, 0)),
            pl.BlockSpec((C, C), lambda b, n: (0, 0)),
            pl.BlockSpec((1, C), lambda b, n: (0, 0)),
        ],
        out_specs=[
            pl.BlockSpec((1, TN, Cq), lambda b, n: (b, n, 0)),
            pl.BlockSpec((1, Cq, TN), lambda b, n: (b, 0, n)),
            pl.BlockSpec((1, TN, C), lambda b, n: (b, n, 0)),
        ],
        out_shape=(
            jax.ShapeDtypeStruct((B, N, Cq), jnp.bfloat16),
            jax.ShapeDtypeStruct((B, Cq, N), jnp.bfloat16),
            jax.ShapeDtypeStruct((B, N, C), jnp.bfloat16),
        ),
        compiler_params=pltpu.CompilerParams(
            dimension_semantics=("parallel", "parallel"),
            vmem_limit_bytes=_VMEM_LIMIT),
    )(x_cf, wq, bq, wkt, bk, wv, bv)


def pam_flash_attention(q, k, v, x_cf, gamma, *, n_valid, tile_q=512, tile_k=512):
    """Tiled online-softmax attention + gamma-residual. Returns (B, C, N) f32."""
    B, C, N = x_cf.shape
    Cq = q.shape[-1]
    TQ = _pick_tile(N, tile_q)
    # Keep >= 2 units of "parallel" grid work so v7x's two TensorCores share it.
    if B * (N // TQ) < 2 and N // 128 >= 2:
        TQ = _pick_tile(N, N // 2)
    TK = _pick_tile(N, tile_k)
    kernel = _make_flash_kernel(n_valid, N)
    return pl.pallas_call(
        kernel,
        grid=(B, N // TQ, N // TK),
        in_specs=[
            pl.BlockSpec((1, TQ, Cq), lambda b, qi, ki: (b, qi, 0)),
            pl.BlockSpec((1, Cq, TK), lambda b, qi, ki: (b, 0, ki)),
            pl.BlockSpec((1, TK, C), lambda b, qi, ki: (b, ki, 0)),
            pl.BlockSpec((1, C, TQ), lambda b, qi, ki: (b, 0, qi)),
            pl.BlockSpec(memory_space=pltpu.MemorySpace.SMEM),   # gamma scalar
        ],
        out_specs=pl.BlockSpec((1, C, TQ), lambda b, qi, ki: (b, 0, qi)),
        out_shape=jax.ShapeDtypeStruct((B, C, N), jnp.float32),
        scratch_shapes=[
            pltpu.VMEM((TQ, 1), jnp.float32),   # running max m
            pltpu.VMEM((TQ, 1), jnp.float32),   # running denom l
            pltpu.VMEM((TQ, C), jnp.float32),   # unnormalized output acc
        ],
        compiler_params=pltpu.CompilerParams(
            dimension_semantics=("parallel", "parallel", "arbitrary"),
            vmem_limit_bytes=_VMEM_LIMIT),
    )(q, k, v, x_cf, gamma)


def pam_module_3d_forward(x, params):
    """PAM_Module_3d forward. x: (B, C, H, W, D) float32 (PyTorch layout)."""
    B, C, H, W, D = x.shape
    N = H * W * D
    # Channels-first flattened positions; NO wrapper transpose.
    x_cf = x.reshape(B, C, N).astype(jnp.float32)
    n_pad = ((N + 127) // 128) * 128
    if n_pad != N:
        x_cf = jnp.pad(x_cf, ((0, 0), (0, 0), (0, n_pad - N)))
    q, k, v = pam_qkv_projection(x_cf, params["wq"], params["bq"],
                                 params["wk_t"], params["bk"],
                                 params["wv"], params["bv"])
    out = pam_flash_attention(q, k, v, x_cf, params["gamma"], n_valid=N)
    if n_pad != N:
        out = out[:, :, :N]
    return out.reshape(B, C, H, W, D)


# --------------------------- parameter creation ----------------------------

def init_params(key, C):
    """Matmul weights in bf16; key weight stored pre-transposed (Cq, C)."""
    Cq = max(C // 8, 1)
    kq, kk, kv_, kbq, kbk, kbv = jax.random.split(key, 6)

    def w(k, shape):
        return (0.1 * jax.random.normal(k, shape, jnp.float32)).astype(jnp.bfloat16)

    def b(k, shape):
        return 0.1 * jax.random.normal(k, shape, jnp.float32)

    return {
        "wq": w(kq, (C, Cq)), "bq": b(kbq, (1, Cq)),
        "wk_t": w(kk, (Cq, C)), "bk": b(kbk, (Cq, 1)),
        "wv": w(kv_, (C, C)), "bv": b(kbv, (1, C)),
        # TODO(synk): PyTorch zero-inits gamma (fresh module returns x exactly);
        # a nonzero value is used so the attention path contributes to the test.
        "gamma": jnp.full((1, 1), 0.5, jnp.float32),
    }


# ------------------------- pure-JAX f32 reference --------------------------

def pam_reference(x, params):
    B, C, H, W, D = x.shape
    N = H * W * D
    xf = x.reshape(B, C, N).astype(jnp.float32)                    # (B, C, N)
    x_cl = jnp.transpose(xf, (0, 2, 1))                            # (B, N, C)
    wq = params["wq"].astype(jnp.float32)                          # (C, Cq)
    wk_t = params["wk_t"].astype(jnp.float32)                      # (Cq, C)
    wv = params["wv"].astype(jnp.float32)                          # (C, C)
    q = x_cl @ wq + params["bq"]                                   # (B, N, Cq)
    k = jnp.einsum("qc,bcn->bqn", wk_t, xf) + params["bk"]         # (B, Cq, N)
    v = x_cl @ wv + params["bv"]                                   # (B, N, C)
    energy = jnp.einsum("bic,bcj->bij", q, k)                      # (B, N, N)
    att = jax.nn.softmax(energy, axis=-1)
    out = jnp.einsum("bij,bjc->bic", att, v)                       # (B, N, C)
    out = params["gamma"][0, 0] * out + x_cl
    return jnp.transpose(out, (0, 2, 1)).reshape(B, C, H, W, D)


# ----------------------------------- main -----------------------------------

if __name__ == "__main__":
    # N = 8*8*8 = 512 -> projection grid (2, 1), flash grid (2, 1, 1).
    B, C, H, W, D = 2, 16, 8, 8, 8      # C must be a multiple of 8 (Cq = C // 8)
    key = jax.random.PRNGKey(0)
    kx, kp = jax.random.split(key)
    x = jax.random.normal(kx, (B, C, H, W, D), jnp.float32)
    params = init_params(kp, C)

    out = jax.jit(pam_module_3d_forward)(x, params)
    out = jax.block_until_ready(out)
    assert out.shape == (B, C, H, W, D)

    ref = pam_reference(x, params)
    # bf16 MXU operands / bf16 exp (f32 accumulation) -> loose tolerance vs f32.
    if bool(jnp.allclose(out, ref, rtol=1e-2, atol=1e-2)):
        print("KERNEL_OK")
    else:
        print("MISMATCH max_abs_err =", float(jnp.max(jnp.abs(out - ref))))
</pallas_src>

<mosaic_0001>
module attributes {stable_mosaic.version = 11 : i64} {
  func.func @_qkv_proj_kernel(%arg0: i32, %arg1: i32, %arg2: memref<1x16x512xf32, #tpu.memory_space<vmem>>, %arg3: memref<16x2xbf16, #tpu.memory_space<vmem>>, %arg4: memref<1x2xf32, #tpu.memory_space<vmem>>, %arg5: memref<2x16xbf16, #tpu.memory_space<vmem>>, %arg6: memref<2x1xf32, #tpu.memory_space<vmem>>, %arg7: memref<16x16xbf16, #tpu.memory_space<vmem>>, %arg8: memref<1x16xf32, #tpu.memory_space<vmem>>, %arg9: memref<1x512x2xbf16, #tpu.memory_space<vmem>>, %arg10: memref<1x2x512xbf16, #tpu.memory_space<vmem>>, %arg11: memref<1x512x16xbf16, #tpu.memory_space<vmem>>) attributes {dimension_semantics = [#tpu.dimension_semantics<parallel>, #tpu.dimension_semantics<parallel>], iteration_bounds = array<i64: 2, 1>, scalar_prefetch = 0 : i64, scratch_operands = 0 : i64, tpu.core_type = #tpu.core_type<tc>, window_params = [{transform_indices = @transform_0, window_bounds = array<i64: 1, 16, 512>}, {pipeline_mode = #tpu.pipeline_mode<synchronous>, transform_indices = @transform_1, window_bounds = array<i64: 16, 2>}, {pipeline_mode = #tpu.pipeline_mode<synchronous>, transform_indices = @transform_2, window_bounds = array<i64: 1, 2>}, {pipeline_mode = #tpu.pipeline_mode<synchronous>, transform_indices = @transform_3, window_bounds = array<i64: 2, 16>}, {pipeline_mode = #tpu.pipeline_mode<synchronous>, transform_indices = @transform_4, window_bounds = array<i64: 2, 1>}, {pipeline_mode = #tpu.pipeline_mode<synchronous>, transform_indices = @transform_5, window_bounds = array<i64: 16, 16>}, {pipeline_mode = #tpu.pipeline_mode<synchronous>, transform_indices = @transform_6, window_bounds = array<i64: 1, 16>}, {transform_indices = @transform_7, window_bounds = array<i64: 1, 512, 2>}, {transform_indices = @transform_8, window_bounds = array<i64: 1, 2, 512>}, {transform_indices = @transform_9, window_bounds = array<i64: 1, 512, 16>}]} {
    %c0 = arith.constant 0 : index
    %c0_0 = arith.constant 0 : index
    %c0_1 = arith.constant 0 : index
    %0 = vector.load %arg2[%c0, %c0_0, %c0_1] : memref<1x16x512xf32, #tpu.memory_space<vmem>>, vector<1x16x512xf32>
    %1 = vector.shape_cast %0 : vector<1x16x512xf32> to vector<16x512xf32>
    %2 = arith.truncf %1 : vector<16x512xf32> to vector<16x512xbf16>
    %3 = tpu.transpose %1, [1, 0] : vector<16x512xf32> -> vector<512x16xf32>
    %4 = arith.truncf %3 : vector<512x16xf32> to vector<512x16xbf16>
    %c0_2 = arith.constant 0 : index
    %c0_3 = arith.constant 0 : index
    %5 = vector.load %arg5[%c0_2, %c0_3] : memref<2x16xbf16, #tpu.memory_space<vmem>>, vector<2x16xbf16>
    %cst = arith.constant dense<0.000000e+00> : vector<2x512xf32>
    %6 = tpu.matmul %5, %2, %cst {dimension_numbers = #tpu.dot_dimension_numbers<[1], [0], [0], [1], [0, 0, 1, 1], [], []>} : vector<2x16xbf16>, vector<16x512xbf16>, vector<2x512xf32> -> vector<2x512xf32>
    %c0_4 = arith.constant 0 : index
    %c0_5 = arith.constant 0 : index
    %7 = vector.load %arg6[%c0_4, %c0_5] : memref<2x1xf32, #tpu.memory_space<vmem>>, vector<2x1xf32>
    %8 = vector.broadcast %7 : vector<2x1xf32> to vector<2x512xf32>
    %9 = arith.addf %6, %8 : vector<2x512xf32>
    %10 = arith.truncf %9 : vector<2x512xf32> to vector<2x512xbf16>
    %c0_6 = arith.constant 0 : index
    %c0_7 = arith.constant 0 : index
    %c0_8 = arith.constant 0 : index
    %11 = vector.load %arg10[%c0_6, %c0_7, %c0_8] : memref<1x2x512xbf16, #tpu.memory_space<vmem>>, vector<1x2x512xbf16>
    %12 = vector.shape_cast %11 : vector<1x2x512xbf16> to vector<2x512xbf16>
    %13 = vector.shape_cast %10 : vector<2x512xbf16> to vector<1x2x512xbf16>
    tpu.vector_store %arg10[%c0_6, %c0_7, %c0_8], %13 {strides = array<i32>} : memref<1x2x512xbf16, #tpu.memory_space<vmem>>, vector<1x2x512xbf16>,
    %c0_9 = arith.constant 0 : index
    %c0_10 = arith.constant 0 : index
    %14 = vector.load %arg3[%c0_9, %c0_10] : memref<16x2xbf16, #tpu.memory_space<vmem>>, vector<16x2xbf16>
    %cst_11 = arith.constant dense<0.000000e+00> : vector<512x2xf32>
    %15 = tpu.matmul %4, %14, %cst_11 {dimension_numbers = #tpu.dot_dimension_numbers<[1], [0], [0], [1], [0, 0, 1, 1], [], []>} : vector<512x16xbf16>, vector<16x2xbf16>, vector<512x2xf32> -> vector<512x2xf32>
    %c0_12 = arith.constant 0 : index
    %c0_13 = arith.constant 0 : index
    %16 = vector.load %arg4[%c0_12, %c0_13] : memref<1x2xf32, #tpu.memory_space<vmem>>, vector<1x2xf32>
    %17 = vector.broadcast %16 : vector<1x2xf32> to vector<512x2xf32>
    %18 = arith.addf %15, %17 : vector<512x2xf32>
    %19 = arith.truncf %18 : vector<512x2xf32> to vector<512x2xbf16>
    %c0_14 = arith.constant 0 : index
    %c0_15 = arith.constant 0 : index
    %c0_16 = arith.constant 0 : index
    %20 = vector.load %arg9[%c0_14, %c0_15, %c0_16] : memref<1x512x2xbf16, #tpu.memory_space<vmem>>, vector<1x512x2xbf16>
    %21 = vector.shape_cast %20 : vector<1x512x2xbf16> to vector<512x2xbf16>
    %22 = vector.shape_cast %19 : vector<512x2xbf16> to vector<1x512x2xbf16>
    tpu.vector_store %arg9[%c0_14, %c0_15, %c0_16], %22 {strides = array<i32>} : memref<1x512x2xbf16, #tpu.memory_space<vmem>>, vector<1x512x2xbf16>,
    %c0_17 = arith.constant 0 : index
    %c0_18 = arith.constant 0 : index
    %23 = vector.load %arg7[%c0_17, %c0_18] : memref<16x16xbf16, #tpu.memory_space<vmem>>, vector<16x16xbf16>
    %cst_19 = arith.constant dense<0.000000e+00> : vector<512x16xf32>
    %24 = tpu.matmul %4, %23, %cst_19 {dimension_numbers = #tpu.dot_dimension_numbers<[1], [0], [0], [1], [0, 0, 1, 1], [], []>} : vector<512x16xbf16>, vector<16x16xbf16>, vector<512x16xf32> -> vector<512x16xf32>
    %c0_20 = arith.constant 0 : index
    %c0_21 = arith.constant 0 : index
    %25 = vector.load %arg8[%c0_20, %c0_21] : memref<1x16xf32, #tpu.memory_space<vmem>>, vector<1x16xf32>
    %26 = vector.broadcast %25 : vector<1x16xf32> to vector<512x16xf32>
    %27 = arith.addf %24, %26 : vector<512x16xf32>
    %28 = arith.truncf %27 : vector<512x16xf32> to vector<512x16xbf16>
    %c0_22 = arith.constant 0 : index
    %c0_23 = arith.constant 0 : index
    %c0_24 = arith.constant 0 : index
    %29 = vector.load %arg11[%c0_22, %c0_23, %c0_24] : memref<1x512x16xbf16, #tpu.memory_space<vmem>>, vector<1x512x16xbf16>
    %30 = vector.shape_cast %29 : vector<1x512x16xbf16> to vector<512x16xbf16>
    %31 = vector.shape_cast %28 : vector<512x16xbf16> to vector<1x512x16xbf16>
    tpu.vector_store %arg11[%c0_22, %c0_23, %c0_24], %31 {strides = array<i32>} : memref<1x512x16xbf16, #tpu.memory_space<vmem>>, vector<1x512x16xbf16>,
    return
  }
  func.func @transform_0(%arg0: i32, %arg1: i32) -> (i32, i32, i32) {
    %c0_i32 = arith.constant 0 : i32
    %c0_i32_0 = arith.constant 0 : i32
    return %arg0, %c0_i32, %arg1 : i32, i32, i32
  }
  func.func @transform_1(%arg0: i32, %arg1: i32) -> (i32, i32) {
    %c0_i32 = arith.constant 0 : i32
    %c0_i32_0 = arith.constant 0 : i32
    %c0_i32_1 = arith.constant 0 : i32
    return %c0_i32, %c0_i32_0 : i32, i32
  }
  func.func @transform_2(%arg0: i32, %arg1: i32) -> (i32, i32) {
    %c0_i32 = arith.constant 0 : i32
    %c0_i32_0 = arith.constant 0 : i32
    %c0_i32_1 = arith.constant 0 : i32
    return %c0_i32, %c0_i32_0 : i32, i32
  }
  func.func @transform_3(%arg0: i32, %arg1: i32) -> (i32, i32) {
    %c0_i32 = arith.constant 0 : i32
    %c0_i32_0 = arith.constant 0 : i32
    %c0_i32_1 = arith.constant 0 : i32
    return %c0_i32, %c0_i32_0 : i32, i32
  }
  func.func @transform_4(%arg0: i32, %arg1: i32) -> (i32, i32) {
    %c0_i32 = arith.constant 0 : i32
    %c0_i32_0 = arith.constant 0 : i32
    %c0_i32_1 = arith.constant 0 : i32
    return %c0_i32, %c0_i32_0 : i32, i32
  }
  func.func @transform_5(%arg0: i32, %arg1: i32) -> (i32, i32) {
    %c0_i32 = arith.constant 0 : i32
    %c0_i32_0 = arith.constant 0 : i32
    %c0_i32_1 = arith.constant 0 : i32
    return %c0_i32, %c0_i32_0 : i32, i32
  }
  func.func @transform_6(%arg0: i32, %arg1: i32) -> (i32, i32) {
    %c0_i32 = arith.constant 0 : i32
    %c0_i32_0 = arith.constant 0 : i32
    %c0_i32_1 = arith.constant 0 : i32
    return %c0_i32, %c0_i32_0 : i32, i32
  }
  func.func @transform_7(%arg0: i32, %arg1: i32) -> (i32, i32, i32) {
    %c0_i32 = arith.constant 0 : i32
    %c0_i32_0 = arith.constant 0 : i32
    return %arg0, %arg1, %c0_i32 : i32, i32, i32
  }
  func.func @transform_8(%arg0: i32, %arg1: i32) -> (i32, i32, i32) {
    %c0_i32 = arith.constant 0 : i32
    %c0_i32_0 = arith.constant 0 : i32
    return %arg0, %c0_i32, %arg1 : i32, i32, i32
  }
  func.func @transform_9(%arg0: i32, %arg1: i32) -> (i32, i32, i32) {
    %c0_i32 = arith.constant 0 : i32
    %c0_i32_0 = arith.constant 0 : i32
    return %arg0, %arg1, %c0_i32 : i32, i32, i32
  }
}

module attributes {stable_mosaic.version = 11 : i64} {
  func.func @kernel(%arg0: i32, %arg1: i32, %arg2: i32, %arg3: memref<1x512x2xbf16, #tpu.memory_space<vmem>>, %arg4: memref<1x2x512xbf16, #tpu.memory_space<vmem>>, %arg5: memref<1x512x16xbf16, #tpu.memory_space<vmem>>, %arg6: memref<1x16x512xf32, #tpu.memory_space<vmem>>, %arg7: memref<1x1xf32, #tpu.memory_space<smem>>, %arg8: memref<1x16x512xf32, #tpu.memory_space<vmem>>, %arg9: memref<512x1xf32, #tpu.memory_space<vmem>>, %arg10: memref<512x1xf32, #tpu.memory_space<vmem>>, %arg11: memref<512x16xf32, #tpu.memory_space<vmem>>) attributes {dimension_semantics = [#tpu.dimension_semantics<parallel>, #tpu.dimension_semantics<parallel>, #tpu.dimension_semantics<arbitrary>], iteration_bounds = array<i64: 2, 1, 1>, scalar_prefetch = 0 : i64, scratch_operands = 3 : i64, tpu.core_type = #tpu.core_type<tc>, window_params = [{transform_indices = @transform_0, window_bounds = array<i64: 1, 512, 2>}, {transform_indices = @transform_1, window_bounds = array<i64: 1, 2, 512>}, {transform_indices = @transform_2, window_bounds = array<i64: 1, 512, 16>}, {transform_indices = @transform_3, window_bounds = array<i64: 1, 16, 512>}, {transform_indices = @transform_4, window_bounds = array<i64: 1, 1>}, {transform_indices = @transform_5, window_bounds = array<i64: 1, 16, 512>}]} {
    %c0_i32 = arith.constant 0 : i32
    %0 = arith.cmpi eq, %arg2, %c0_i32 : i32
    %1 = arith.extui %0 : i1 to i32
    %c0_i32_0 = arith.constant 0 : i32
    %2 = arith.cmpi ne, %1, %c0_i32_0 : i32
    scf.if %2 {
      %cst_26 = arith.constant 0xFF800000 : f32
      %37 = vector.broadcast %cst_26 : f32 to vector<512x1xf32>
      %c0_27 = arith.constant 0 : index
      %c0_28 = arith.constant 0 : index
      %38 = vector.load %arg9[%c0_27, %c0_28] : memref<512x1xf32, #tpu.memory_space<vmem>>, vector<512x1xf32>
      tpu.vector_store %arg9[%c0_27, %c0_28], %37 {strides = array<i32>} : memref<512x1xf32, #tpu.memory_space<vmem>>, vector<512x1xf32>,
      %cst_29 = arith.constant 0.000000e+00 : f32
      %39 = vector.broadcast %cst_29 : f32 to vector<512x1xf32>
      %c0_30 = arith.constant 0 : index
      %c0_31 = arith.constant 0 : index
      %40 = vector.load %arg10[%c0_30, %c0_31] : memref<512x1xf32, #tpu.memory_space<vmem>>, vector<512x1xf32>
      tpu.vector_store %arg10[%c0_30, %c0_31], %39 {strides = array<i32>} : memref<512x1xf32, #tpu.memory_space<vmem>>, vector<512x1xf32>,
      %cst_32 = arith.constant 0.000000e+00 : f32
      %41 = vector.broadcast %cst_32 : f32 to vector<512x16xf32>
      %c0_33 = arith.constant 0 : index
      %c0_34 = arith.constant 0 : index
      %42 = vector.load %arg11[%c0_33, %c0_34] : memref<512x16xf32, #tpu.memory_space<vmem>>, vector<512x16xf32>
      tpu.vector_store %arg11[%c0_33, %c0_34], %41 {strides = array<i32>} : memref<512x16xf32, #tpu.memory_space<vmem>>, vector<512x16xf32>,
    } else {
    }
    %c0 = arith.constant 0 : index
    %c0_1 = arith.constant 0 : index
    %c0_2 = arith.constant 0 : index
    %3 = vector.load %arg3[%c0, %c0_1, %c0_2] : memref<1x512x2xbf16, #tpu.memory_space<vmem>>, vector<1x512x2xbf16>
    %4 = vector.shape_cast %3 : vector<1x512x2xbf16> to vector<512x2xbf16>
    %c0_3 = arith.constant 0 : index
    %c0_4 = arith.constant 0 : index
    %c0_5 = arith.constant 0 : index
    %5 = vector.load %arg4[%c0_3, %c0_4, %c0_5] : memref<1x2x512xbf16, #tpu.memory_space<vmem>>, vector<1x2x512xbf16>
    %6 = vector.shape_cast %5 : vector<1x2x512xbf16> to vector<2x512xbf16>
    %cst = arith.constant dense<0.000000e+00> : vector<512x512xf32>
    %7 = tpu.matmul %4, %6, %cst {dimension_numbers = #tpu.dot_dimension_numbers<[1], [0], [0], [1], [0, 0, 1, 1], [], []>} : vector<512x2xbf16>, vector<2x512xbf16>, vector<512x512xf32> -> vector<512x512xf32>
    %c0_6 = arith.constant 0 : index
    %c0_7 = arith.constant 0 : index
    %8 = vector.load %arg9[%c0_6, %c0_7] : memref<512x1xf32, #tpu.memory_space<vmem>>, vector<512x1xf32>
    %cst_8 = arith.constant dense<0xFF800000> : vector<512xf32>
    %9 = vector.multi_reduction <maximumf>, %7, %cst_8 [1] : vector<512x512xf32> to vector<512xf32>
    %10 = vector.shape_cast %9 : vector<512xf32> to vector<512x1xf32>
    %11 = arith.maximumf %8, %10 : vector<512x1xf32>
    %12 = arith.subf %8, %11 : vector<512x1xf32>
    %13 = math.exp %12 : vector<512x1xf32>
    %14 = vector.broadcast %11 : vector<512x1xf32> to vector<512x512xf32>
    %15 = arith.subf %7, %14 : vector<512x512xf32>
    %16 = arith.truncf %15 : vector<512x512xf32> to vector<512x512xbf16>
    %17 = math.exp %16 : vector<512x512xbf16>
    %c0_9 = arith.constant 0 : index
    %c0_10 = arith.constant 0 : index
    %18 = vector.load %arg10[%c0_9, %c0_10] : memref<512x1xf32, #tpu.memory_space<vmem>>, vector<512x1xf32>
    %19 = arith.mulf %13, %18 : vector<512x1xf32>
    %20 = arith.extf %17 : vector<512x512xbf16> to vector<512x512xf32>
    %cst_11 = arith.constant dense<0.000000e+00> : vector<512xf32>
    %21 = vector.multi_reduction <add>, %20, %cst_11 [1] : vector<512x512xf32> to vector<512xf32>
    %22 = vector.shape_cast %21 : vector<512xf32> to vector<512x1xf32>
    %23 = arith.addf %19, %22 : vector<512x1xf32>
    %c0_12 = arith.constant 0 : index
    %c0_13 = arith.constant 0 : index
    %24 = vector.load %arg10[%c0_12, %c0_13] : memref<512x1xf32, #tpu.memory_space<vmem>>, vector<512x1xf32>
    tpu.vector_store %arg10[%c0_12, %c0_13], %23 {strides = array<i32>} : memref<512x1xf32, #tpu.memory_space<vmem>>, vector<512x1xf32>,
    %c0_14 = arith.constant 0 : index
    %c0_15 = arith.constant 0 : index
    %25 = vector.load %arg11[%c0_14, %c0_15] : memref<512x16xf32, #tpu.memory_space<vmem>>, vector<512x16xf32>
    %26 = vector.broadcast %13 : vector<512x1xf32> to vector<512x16xf32>
    %27 = arith.mulf %26, %25 : vector<512x16xf32>
    %c0_16 = arith.constant 0 : index
    %c0_17 = arith.constant 0 : index
    %c0_18 = arith.constant 0 : index
    %28 = vector.load %arg5[%c0_16, %c0_17, %c0_18] : memref<1x512x16xbf16, #tpu.memory_space<vmem>>, vector<1x512x16xbf16>
    %29 = vector.shape_cast %28 : vector<1x512x16xbf16> to vector<512x16xbf16>
    %cst_19 = arith.constant dense<0.000000e+00> : vector<512x16xf32>
    %30 = tpu.matmul %17, %29, %cst_19 {dimension_numbers = #tpu.dot_dimension_numbers<[1], [0], [0], [1], [0, 0, 1, 1], [], []>} : vector<512x512xbf16>, vector<512x16xbf16>, vector<512x16xf32> -> vector<512x16xf32>
    %31 = arith.addf %27, %30 : vector<512x16xf32>
    %c0_20 = arith.constant 0 : index
    %c0_21 = arith.constant 0 : index
    %32 = vector.load %arg11[%c0_20, %c0_21] : memref<512x16xf32, #tpu.memory_space<vmem>>, vector<512x16xf32>
    tpu.vector_store %arg11[%c0_20, %c0_21], %31 {strides = array<i32>} : memref<512x16xf32, #tpu.memory_space<vmem>>, vector<512x16xf32>,
    %c0_22 = arith.constant 0 : index
    %c0_23 = arith.constant 0 : index
    %33 = vector.load %arg9[%c0_22, %c0_23] : memref<512x1xf32, #tpu.memory_space<vmem>>, vector<512x1xf32>
    tpu.vector_store %arg9[%c0_22, %c0_23], %11 {strides = array<i32>} : memref<512x1xf32, #tpu.memory_space<vmem>>, vector<512x1xf32>,
    %c0_i32_24 = arith.constant 0 : i32
    %34 = arith.cmpi eq, %arg2, %c0_i32_24 : i32
    %35 = arith.extui %34 : i1 to i32
    %c0_i32_25 = arith.constant 0 : i32
    %36 = arith.cmpi ne, %35, %c0_i32_25 : i32
    scf.if %36 {
      %c0_26 = arith.constant 0 : index
      %c0_27 = arith.constant 0 : index
      %37 = vector.load %arg11[%c0_26, %c0_27] : memref<512x16xf32, #tpu.memory_space<vmem>>, vector<512x16xf32>
      %c0_28 = arith.constant 0 : index
      %c0_29 = arith.constant 0 : index
      %38 = vector.load %arg10[%c0_28, %c0_29] : memref<512x1xf32, #tpu.memory_space<vmem>>, vector<512x1xf32>
      %39 = tpu.reciprocal %38 {approx = true} : vector<512x1xf32> -> vector<512x1xf32>
      %40 = vector.broadcast %39 : vector<512x1xf32> to vector<512x16xf32>
      %41 = arith.mulf %37, %40 : vector<512x16xf32>
      %42 = tpu.transpose %41, [1, 0] : vector<512x16xf32> -> vector<16x512xf32>
      %c0_30 = arith.constant 0 : index
      %c0_31 = arith.constant 0 : index
      %43 = memref.load %arg7[%c0_30, %c0_31] : memref<1x1xf32, #tpu.memory_space<smem>>
      %44 = vector.broadcast %43 : f32 to vector<16x512xf32>
      %45 = arith.mulf %44, %42 : vector<16x512xf32>
      %c0_32 = arith.constant 0 : index
      %c0_33 = arith.constant 0 : index
      %c0_34 = arith.constant 0 : index
      %46 = vector.load %arg6[%c0_32, %c0_33, %c0_34] : memref<1x16x512xf32, #tpu.memory_space<vmem>>, vector<1x16x512xf32>
      %47 = vector.shape_cast %46 : vector<1x16x512xf32> to vector<16x512xf32>
      %48 = arith.addf %45, %47 : vector<16x512xf32>
      %c0_35 = arith.constant 0 : index
      %c0_36 = arith.constant 0 : index
      %c0_37 = arith.constant 0 : index
      %49 = vector.load %arg8[%c0_35, %c0_36, %c0_37] : memref<1x16x512xf32, #tpu.memory_space<vmem>>, vector<1x16x512xf32>
      %50 = vector.shape_cast %49 : vector<1x16x512xf32> to vector<16x512xf32>
      %51 = vector.shape_cast %48 : vector<16x512xf32> to vector<1x16x512xf32>
      tpu.vector_store %arg8[%c0_35, %c0_36, %c0_37], %51 {strides = array<i32>} : memref<1x16x512xf32, #tpu.memory_space<vmem>>, vector<1x16x512xf32>,
    } else {
    }
    return
  }
  func.func @transform_0(%arg0: i32, %arg1: i32, %arg2: i32) -> (i32, i32, i32) {
    %c0_i32 = arith.constant 0 : i32
    %c0_i32_0 = arith.constant 0 : i32
    return %arg0, %arg1, %c0_i32 : i32, i32, i32
  }
  func.func @transform_1(%arg0: i32, %arg1: i32, %arg2: i32) -> (i32, i32, i32) {
    %c0_i32 = arith.constant 0 : i32
    %c0_i32_0 = arith.constant 0 : i32
    return %arg0, %c0_i32, %arg2 : i32, i32, i32
  }
  func.func @transform_2(%arg0: i32, %arg1: i32, %arg2: i32) -> (i32, i32, i32) {
    %c0_i32 = arith.constant 0 : i32
    %c0_i32_0 = arith.constant 0 : i32
    return %arg0, %arg2, %c0_i32 : i32, i32, i32
  }
  func.func @transform_3(%arg0: i32, %arg1: i32, %arg2: i32) -> (i32, i32, i32) {
    %c0_i32 = arith.constant 0 : i32
    %c0_i32_0 = arith.constant 0 : i32
    return %arg0, %c0_i32, %arg1 : i32, i32, i32
  }
  func.func @transform_4(%arg0: i32, %arg1: i32, %arg2: i32) -> (i32, i32) {
    %c0_i32 = arith.constant 0 : i32
    %c0_i32_0 = arith.constant 0 : i32
    %c0_i32_1 = arith.constant 0 : i32
    return %c0_i32, %c0_i32_0 : i32, i32
  }
  func.func @transform_5(%arg0: i32, %arg1: i32, %arg2: i32) -> (i32, i32, i32) {
    %c0_i32 = arith.constant 0 : i32
    %c0_i32_0 = arith.constant 0 : i32
    return %arg0, %c0_i32, %arg1 : i32, i32, i32
  }
}

</mosaic_0001>

<bundles_post_ra>
// kernel: pam_module_3d_forward.2
= control target key start
LH: loop header
LB: loop body
LE: loop exit
PB: predicated region body
PF: predicated region fallthrough
CT: control target
= control target key end

     0   :  { %s2894_s30 = smov 0   ;;  %s2896_s10 = smov 0   ;;  %s3438_s0 = inlined_call_operand.vmem [shape: f32[2,16,512], index: 0, kind: input, shape index: {}]   ;;  %s3439_s1 = inlined_call_operand.vmem [shape: bf16[16,2], index: 1, kind: input, shape index: {}]   ;;  %s3440_s2 = inlined_call_operand.vmem [shape: f32[1,2], index: 2, kind: input, shape index: {}]   ;;  %s3441_s3 = inlined_call_operand.vmem [shape: bf16[2,16], index: 3, kind: input, shape index: {}]   ;;  %s3442_s4 = inlined_call_operand.vmem [shape: f32[2,1], index: 4, kind: input, shape index: {}]   ;;  %s3443_s5 = inlined_call_operand.vmem [shape: bf16[16,16], index: 5, kind: input, shape index: {}]   ;;  %s3444_s6 = inlined_call_operand.vmem [shape: f32[1,16], index: 6, kind: input, shape index: {}]   ;;  %s3445_s7 = inlined_call_operand.vmem [shape: bf16[2,512,2], index: 7, kind: output, shape index: {0}]   ;;  %s3446_s8 = inlined_call_operand.vmem [shape: bf16[2,2,512], index: 8, kind: output, shape index: {1}]   ;;  %s3447_s9 = inlined_call_operand.vmem [shape: bf16[2,512,16], index: 9, kind: output, shape index: {2}]  }
   0x1   :  { %s2898_s11 = smov 0  }
   0x2 LB: > { %s32_s12 = sadd.s32 1, %s2836_s10  ;;  %p2248_p0 = scmp.ge.s32.totalorder %s2840_s11, 1  ;;  %s2840_s11 = sphi %s2898_s11, %s20_s11   ;;  %s2836_s10 = sphi %s2896_s10, %s3449_s10   ;;  %s2832_s30 = sphi %s2894_s30, %s3448_s30  }
   0x3   : > { %p34_p1 = scmp.ge.s32.totalorder %s32_s12, 2  ;;  %p317_p2 = scmp.lt.s32.totalorder %s2840_s11, 3 }
   0x5   : > { %s3451_s12 = smov (%p34_p1, %s32_s12), 0  ;;  %p318_p3 = pnand %p2248_p0, %p317_p2 }
   0x6   : > { %p379_p4 = scmp.lt.s32.totalorder (!%p318_p3), %s2832_s30, 1  ;;  %v590_v12 = vld [vmem:[%s3441_s3] sm:$0x1] (!%p318_p3)  ;;  %vm597_vm0 = vcmask (!%p318_p3), 130048   ;;  %v2842_v13 = vmov (!%p318_p3), 0   ;;  %vm1373_vm1 = vcmask (!%p318_p3), 11264  }
   0x7   : > { %321 = sbr.rel (%p318_p3) target bundleno = 526 (0x20e), region = 48  ;;  %633 = vmatprep.mubr.bf16.mxu0 (!%p318_p3), %v2842_v13  ;;  %674 = vmatprep.mubr.bf16.mxu1 (!%p318_p3), %v2842_v13  ;;  %v2816_v14 = vld [vmem:[%s3439_s1] sm:$0xff] (!%p318_p3)   ;;  %vm1998_vm2 = vcmask (!%p318_p3), 125952  }
   0x8   : > { %v2817_v15 = vld [vmem:[%s3443_s5] sm:$0xff] (!%p318_p3)  }
   0x9   : > { %v591_v36 = vld [vmem:[%s3442_s4] sm:$0x3] (!%p318_p3) }
   0xe   : > { %s3453_s30 = smov (!%p379_p4, %s2832_s30), 1 }
   0xf   : > { %s2459_s13 = sshll.u32 %s3453_s30, 6  ;;  %s2253_s25 = sshll.u32 %s3453_s30, 2 }
  0x10   : > { %s386_s16 = scalar_lea.vmem %s3438_s0, %s2459_s13  ;;  %s405_s28 = scalar_lea.vmem %s3446_s8, %s2253_s25 }
  0x11   : > { %v418_v0 = vld [vmem:[%s386_s16] sm:$0xff]  ;;  %v419_v1 = vld [vmem:[%s386_s16 + $0x8] sm:$0xff]  ;;  %v420_v4 = vld [vmem:[%s386_s16 + $0x10] sm:$0xff] }
  0x12   : > { %430 = vxpose.xlu0.b32.start [1/2] (short) %v418_v0, 128  ;;  %v422_v2 = vld [vmem:[%s386_s16 + $0x20] sm:$0xff]  ;;  %462 = vxpose.xlu1.b32.start [1/2] (short) %v419_v1, 128  ;;  %v423_v3 = vld [vmem:[%s386_s16 + $0x28] sm:$0xff]  ;;  %v424_v5 = vld [vmem:[%s386_s16 + $0x30] sm:$0xff] }
  0x13   : > { %v421_v6 = vld [vmem:[%s386_s16 + $0x18] sm:$0xff]  ;;  %v427_v8 = vpack.c.bf16 %v423_v3, %v419_v1  ;;  %v426_v9 = vpack.c.bf16 %v422_v2, %v418_v0  ;;  %v428_v11 = vpack.c.bf16 %v424_v5, %v420_v4 }
  0x14   : > { %v425_v7 = vld [vmem:[%s386_s16 + $0x38] sm:$0xff]  ;;  %s2460_s16 = sshll.u32 %s3453_s30, 8 }
  0x15   : > { %v429_v10 = vpack.c.bf16 %v425_v7, %v421_v6  ;;  %601 = vmatprep.subr.bf16.mxu0 %v427_v8  ;;  %s3040_s19 = scalar_lea.vmem %s3445_s7, %s2460_s16  ;;  %s3045_s22 = scalar_lea.vmem %s3447_s9, %s2460_s16 }
  0x16   : > { %431 = vxpose.xlu0.b32.end [2/2] (short) %v422_v2, 128  ;;  %463 = vxpose.xlu1.b32.end [2/2] (short) %v423_v3, 128 }
  0x17   : > { %642 = vmatprep.subr.bf16.mxu1 %v429_v10  ;;  %602 = vmatpush1.bf16.msra.mxu0 %v426_v9 }
  0x18   : > { %643 = vmatpush1.bf16.msra.mxu1 %v428_v11  ;;  %2656 = vmatprep.subr.bf16.mxu0 %v2816_v14 }
  0x19   : > { %2722 = vmatprep.subr.bf16.mxu1 %v2817_v15 }
  0x1a   : > { %2256 = vmatmul.mubr.msk.bf16.vlgmr.msra.gmra.mrb[0].mxu0 %vm597_vm0, %v590_v12 }
  0x1b   : > { %2257 = vmatmul.mubr.msk.bf16.vlgmr.msra.gmra.mrb[0].mxu1 %vm597_vm0, %v590_v12  ;;  %2657 = vmatpush3.bf16.msra.mxu0 %v2816_v14 }
  0x1c   : > { %2723 = vmatpush3.bf16.msra.mxu1 %v2817_v15 }
  0x4f   : > { %494 = vxpose.xlu0.b32.start [1/2] (short) %v420_v4, 128  ;;  %526 = vxpose.xlu1.b32.start [1/2] (short) %v421_v6, 128 }
  0x53   : > { %495 = vxpose.xlu0.b32.end [2/2] (short) %v424_v5, 128  ;;  %527 = vxpose.xlu1.b32.end [2/2] (short) %v425_v7, 128 }
  0x7c   : > { %2815 = vset.pattern.permute.xlu0 %v2842_v13 }
  0x92   : > { %v446_v16 = vpop.trf.xlu0  ;;  %v478_v17 = vpop.trf.xlu1 }
  0x96   : > { %v447_v18 = vpop.trf.xlu0  ;;  %v479_v19 = vpop.trf.xlu1 }
  0x97   : > { %v558_v20 = vpack.c.bf16 %v447_v18, %v446_v16  ;;  %v566_v57 = vpack.c.bf16 %v479_v19, %v478_v17 }
  0x99   : > { %2658 = vmatprep.mubr.msk.bf16.mxu0 %vm597_vm0, %v558_v20  ;;  %2724 = vmatprep.mubr.msk.bf16.mxu1 %vm597_vm0, %v558_v20 }
  0x9a   : > { %v448_v21 = vpop.trf.xlu0  ;;  %v480_v22 = vpop.trf.xlu1 }
  0x9e   : > { %v449_v23 = vpop.trf.xlu0  ;;  %v481_v24 = vpop.trf.xlu1 }
  0x9f   : > { %v559_v25 = vpack.c.bf16 %v449_v23, %v448_v21  ;;  %v567_v62 = vpack.c.bf16 %v481_v24, %v480_v22 }
  0xa1   : > { %2659 = vmatmul.mubr.msk.bf16.vlgmr.msra.gmra.mrb[4].mxu0 %vm597_vm0, %v559_v25  ;;  %2725 = vmatmul.mubr.msk.bf16.vlgmr.msra.gmra.mrb[4].mxu1 %vm597_vm0, %v559_v25 }
  0xa2   : > { %v450_v26 = vpop.trf.xlu0  ;;  %v482_v27 = vpop.trf.xlu1 }
  0xa6   : > { %v451_v28 = vpop.trf.xlu0  ;;  %v483_v29 = vpop.trf.xlu1 }
  0xa7   : > { %v560_v30 = vpack.c.bf16 %v451_v28, %v450_v26  ;;  %v568_v63 = vpack.c.bf16 %v483_v29, %v482_v27 }
  0xa9   : > { %2662 = vmatprep.mubr.msk.bf16.mxu0 %vm597_vm0, %v560_v30  ;;  %2728 = vmatprep.mubr.msk.bf16.mxu1 %vm597_vm0, %v560_v30 }
  0xaa   : > { %v452_v31 = vpop.trf.xlu0  ;;  %v484_v32 = vpop.trf.xlu1 }
  0xae   : > { %v453_v33 = vpop.trf.xlu0  ;;  %v485_v34 = vpop.trf.xlu1 }
  0xaf   : > { %v561_v35 = vpack.c.bf16 %v453_v33, %v452_v31  ;;  %v569_v3 = vpack.c.bf16 %v485_v34, %v484_v32 }
  0xb1   : > { %2663 = vmatmul.mubr.msk.bf16.gmra.mrb[8].mxu0 %vm597_vm0, %v561_v35  ;;  %2729 = vmatmul.mubr.msk.bf16.gmra.mrb[8].mxu1 %vm597_vm0, %v561_v35 }
  0xb2   : > { %v454_v37 = vpop.trf.xlu0  ;;  %v486_v38 = vpop.trf.xlu1 }
  0xb4   : > { %594 = vperm.xlu0 %2815, %v591_v36  }
  0xb6   : > { %v455_v39 = vpop.trf.xlu0  ;;  %v487_v40 = vpop.trf.xlu1 }
  0xb7   : > { %v562_v41 = vpack.c.bf16 %v455_v39, %v454_v37  ;;  %v570_v4 = vpack.c.bf16 %v487_v40, %v486_v38 }
  0xb9   : > { %2666 = vmatprep.mubr.msk.bf16.mxu0 %vm597_vm0, %v562_v41  ;;  %2732 = vmatprep.mubr.msk.bf16.mxu1 %vm597_vm0, %v562_v41 }
  0xba   : > { %v456_v42 = vpop.trf.xlu0  ;;  %v488_v43 = vpop.trf.xlu1 }
  0xbe   : > { %v457_v44 = vpop.trf.xlu0  ;;  %v489_v45 = vpop.trf.xlu1 }
  0xbf   : > { %v563_v46 = vpack.c.bf16 %v457_v44, %v456_v42  ;;  %v571_v8 = vpack.c.bf16 %v489_v45, %v488_v43 }
  0xc1   : > { %2667 = vmatmul.mubr.msk.bf16.gmra.mrb[12].mxu0 %vm597_vm0, %v563_v46  ;;  %2733 = vmatmul.mubr.msk.bf16.gmra.mrb[12].mxu1 %vm597_vm0, %v563_v46 }
  0xc2   : > { %v458_v47 = vpop.trf.xlu0  ;;  %v490_v48 = vpop.trf.xlu1 }
  0xc6   : > { %v459_v49 = vpop.trf.xlu0  ;;  %v491_v50 = vpop.trf.xlu1 }
  0xc7   : > { %v564_v51 = vpack.c.bf16 %v459_v49, %v458_v47  ;;  %v572_v9 = vpack.c.bf16 %v491_v50, %v490_v48 }
  0xc9   : > { %2670 = vmatprep.mubr.msk.bf16.mxu0 %vm597_vm0, %v564_v51  ;;  %2736 = vmatprep.mubr.msk.bf16.mxu1 %vm597_vm0, %v564_v51 }
  0xca   : > { %v460_v52 = vpop.trf.xlu0  ;;  %v492_v53 = vpop.trf.xlu1 }
  0xce   : > { %v461_v54 = vpop.trf.xlu0  ;;  %v493_v55 = vpop.trf.xlu1 }
  0xcf   : > { %v565_v56 = vpack.c.bf16 %v461_v54, %v460_v52  ;;  %v573_v15 = vpack.c.bf16 %v493_v55, %v492_v53  ;;  %v2843_v55 = vmov 1966171168  }
  0xd1   : > { %2671 = vmatmul.mubr.msk.bf16.gmra.mrb[16].mxu0 %vm597_vm0, %v565_v56  ;;  %2737 = vmatmul.mubr.msk.bf16.gmra.mrb[16].mxu1 %vm597_vm0, %v565_v56  ;;  %v694_v56 = vunpack.c.l.s4 %v2843_v55 }
  0xd2   : > { %2740 = vmatprep.mubr.msk.bf16.mxu1 %vm597_vm0, %v566_v57  ;;  %v510_v58 = vpop.trf.xlu0  ;;  %2674 = vmatprep.mubr.msk.bf16.mxu0 %vm597_vm0, %v566_v57  ;;  %v2950_v59 = vpop.trf.xlu1  ;;  %v696_v57 = vlaneseq }
  0xd6   : > { %v511_v60 = vpop.trf.xlu0  ;;  %v2952_v61 = vpop.trf.xlu1 }
  0xd7   : > { %v574_v18 = vpack.c.bf16 %v511_v60, %v510_v58  ;;  %v582_v44 = vpack.c.bf16 %v2952_v61, %v2950_v59  ;;  %v695_v60 = vunpack.c.0.s8 %v694_v56  ;;  %v697_v61 = vshrl.u32 %v696_v57, 7 }
  0xd9   : > { %2675 = vmatmul.mubr.msk.bf16.gmra.mrb[20].mxu0 %vm597_vm0, %v567_v62  ;;  %2741 = vmatmul.mubr.msk.bf16.gmra.mrb[20].mxu1 %vm597_vm0, %v567_v62  ;;  %v698_v62 = vsub.s32 %v695_v60, %v697_v61 }
  0xda   : > { %2744 = vmatprep.mubr.msk.bf16.mxu1 %vm597_vm0, %v568_v63  ;;  %v512_v0 = vpop.trf.xlu0  ;;  %2678 = vmatprep.mubr.msk.bf16.mxu0 %vm597_vm0, %v568_v63  ;;  %v2958_v1 = vpop.trf.xlu1 }
  0xde   : > { %v513_v2 = vpop.trf.xlu0  ;;  %v2964_v6 = vpop.trf.xlu1 }
  0xdf   : > { %v575_v27 = vpack.c.bf16 %v513_v2, %v512_v0  ;;  %v583_v46 = vpack.c.bf16 %v2964_v6, %v2958_v1 }
  0xe1   : > { %2679 = vmatmul.mubr.msk.bf16.gmra.mrb[24].mxu0 %vm597_vm0, %v569_v3  ;;  %2745 = vmatmul.mubr.msk.bf16.gmra.mrb[24].mxu1 %vm597_vm0, %v569_v3 }
  0xe2   : > { %2748 = vmatprep.mubr.msk.bf16.mxu1 %vm597_vm0, %v570_v4  ;;  %v514_v5 = vpop.trf.xlu0  ;;  %2682 = vmatprep.mubr.msk.bf16.mxu0 %vm597_vm0, %v570_v4  ;;  %v546_v10 = vpop.trf.xlu1 }
  0xe6   : > { %v515_v7 = vpop.trf.xlu0  ;;  %v547_v14 = vpop.trf.xlu1 }
  0xe7   : > { %v576_v28 = vpack.c.bf16 %v515_v7, %v514_v5  ;;  %v584_v47 = vpack.c.bf16 %v547_v14, %v546_v10  ;;  %v3032_v10 = vld [vmem:[%s3444_s6] ss:$0 sm:$0xff] }
  0xe9   : > { %2683 = vmatmul.mubr.msk.bf16.gmra.mrb[28].mxu0 %vm597_vm0, %v571_v8  ;;  %2749 = vmatmul.mubr.msk.bf16.gmra.mrb[28].mxu1 %vm597_vm0, %v571_v8 }
  0xea   : > { %2752 = vmatprep.mubr.msk.bf16.mxu1 %vm597_vm0, %v572_v9  ;;  %v516_v11 = vpop.trf.xlu0  ;;  %2686 = vmatprep.mubr.msk.bf16.mxu0 %vm597_vm0, %v572_v9  ;;  %v548_v26 = vpop.trf.xlu1  ;;  %v3027_v9 = vld [vmem:[%s3440_s2] ss:$0 sm:$0xff] }
  0xed   : > { %v2970_v12 = vpop.f32.mrb[0].mxu0 }
  0xee   : > { %v517_v13 = vpop.trf.xlu0  ;;  %v2972_v16 = vpop.f32.mrb[0].mxu1 }
  0xef   : > { %v2974_v17 = vpop.f32.mrb[1].mxu0  ;;  %v2976_v19 = vpop.f32.mrb[1].mxu1  ;;  %v577_v32 = vpack.c.bf16 %v517_v13, %v516_v11 }
  0xf0   : > { %v639_v20 = vpop.f32.mrb[2].mxu0  ;;  %v680_v21 = vpop.f32.mrb[2].mxu1 }
  0xf1   : > { %2687 = vmatmul.mubr.msk.bf16.gmra.mrb[32].mxu0 %vm597_vm0, %v573_v15  ;;  %2753 = vmatmul.mubr.msk.bf16.gmra.mrb[32].mxu1 %vm597_vm0, %v573_v15  ;;  %v640_v22 = vpop.f32.mrb[3].mxu0  ;;  %v681_v24 = vpop.f32.mrb[3].mxu1 }
  0xf2   : > { %2756 = vmatprep.mubr.msk.bf16.mxu1 %vm597_vm0, %v574_v18  ;;  %v518_v23 = vpop.trf.xlu0  ;;  %2690 = vmatprep.mubr.msk.bf16.mxu0 %vm597_vm0, %v574_v18  ;;  %v549_v30 = vpop.trf.xlu1 }
  0xf3   : > { %v585_v49 = vpack.c.bf16 %v549_v30, %v548_v26 }
  0xf6   : > { %v519_v25 = vpop.trf.xlu0  ;;  %v550_v35 = vpop.trf.xlu1 }
  0xf7   : > { %v578_v33 = vpack.c.bf16 %v519_v25, %v518_v23 }
  0xf9   : > { %2691 = vmatmul.mubr.msk.bf16.gmra.mrb[36].mxu0 %vm597_vm0, %v575_v27  ;;  %2757 = vmatmul.mubr.msk.bf16.gmra.mrb[36].mxu1 %vm597_vm0, %v575_v27 }
  0xfa   : > { %2760 = vmatprep.mubr.msk.bf16.mxu1 %vm597_vm0, %v576_v28  ;;  %v520_v29 = vpop.trf.xlu0  ;;  %2694 = vmatprep.mubr.msk.bf16.mxu0 %vm597_vm0, %v576_v28  ;;  %v551_v39 = vpop.trf.xlu1 }
  0xfb   : > { %v586_v50 = vpack.c.bf16 %v551_v39, %v550_v35 }
  0xfe   : > { %v521_v31 = vpop.trf.xlu0  ;;  %v552_v42 = vpop.trf.xlu1 }
  0xff   : > { %v579_v37 = vpack.c.bf16 %v521_v31, %v520_v29 }
 0x101   : > { %2695 = vmatmul.mubr.msk.bf16.gmra.mrb[40].mxu0 %vm597_vm0, %v577_v32  ;;  %2761 = vmatmul.mubr.msk.bf16.gmra.mrb[40].mxu1 %vm597_vm0, %v577_v32 }
 0x102   : > { %2764 = vmatprep.mubr.msk.bf16.mxu1 %vm597_vm0, %v578_v33  ;;  %v522_v34 = vpop.trf.xlu0  ;;  %2698 = vmatprep.mubr.msk.bf16.mxu0 %vm597_vm0, %v578_v33  ;;  %v553_v45 = vpop.trf.xlu1 }
 0x103   : > { %v587_v53 = vpack.c.bf16 %v553_v45, %v552_v42 }
 0x106   : > { %v523_v36 = vpop.trf.xlu0  ;;  %v554_v48 = vpop.trf.xlu1 }
 0x107   : > { %v580_v38 = vpack.c.bf16 %v523_v36, %v522_v34 }
 0x109   : > { %2699 = vmatmul.mubr.msk.bf16.gmra.mrb[44].mxu0 %vm597_vm0, %v579_v37  ;;  %2765 = vmatmul.mubr.msk.bf16.gmra.mrb[44].mxu1 %vm597_vm0, %v579_v37 }
 0x10a   : > { %2768 = vmatprep.mubr.msk.bf16.mxu1 %vm597_vm0, %v580_v38  ;;  %v524_v40 = vpop.trf.xlu0  ;;  %2702 = vmatprep.mubr.msk.bf16.mxu0 %vm597_vm0, %v580_v38  ;;  %v555_v51 = vpop.trf.xlu1 }
 0x10b   : > { %v588_v54 = vpack.c.bf16 %v555_v51, %v554_v48 }
 0x10e   : > { %v525_v41 = vpop.trf.xlu0  ;;  %v556_v52 = vpop.trf.xlu1 }
 0x10f   : > { %v581_v43 = vpack.c.bf16 %v525_v41, %v524_v40 }
 0x111   : > { %2703 = vmatmul.mubr.msk.bf16.gmra.mrb[48].mxu0 %vm597_vm0, %v581_v43  ;;  %2769 = vmatmul.mubr.msk.bf16.gmra.mrb[48].mxu1 %vm597_vm0, %v581_v43 }
 0x112   : > { %2706 = vmatprep.mubr.msk.bf16.mxu0 %vm597_vm0, %v582_v44  ;;  %2772 = vmatprep.mubr.msk.bf16.mxu1 %vm597_vm0, %v582_v44  ;;  %v557_v58 = vpop.trf.xlu1 }
 0x113   : > { %v589_v59 = vpack.c.bf16 %v557_v58, %v556_v52 }
 0x119   : > { %2707 = vmatmul.mubr.msk.bf16.gmra.mrb[52].mxu0 %vm597_vm0, %v583_v46  ;;  %2773 = vmatmul.mubr.msk.bf16.gmra.mrb[52].mxu1 %vm597_vm0, %v583_v46 }
 0x11a   : > { %2710 = vmatprep.mubr.msk.bf16.mxu0 %vm597_vm0, %v584_v47  ;;  %2776 = vmatprep.mubr.msk.bf16.mxu1 %vm597_vm0, %v584_v47 }
 0x121   : > { %2711 = vmatmul.mubr.msk.bf16.gmra.mrb[56].mxu0 %vm597_vm0, %v585_v49  ;;  %2777 = vmatmul.mubr.msk.bf16.gmra.mrb[56].mxu1 %vm597_vm0, %v585_v49 }
 0x122   : > { %2714 = vmatprep.mubr.msk.bf16.mxu0 %vm597_vm0, %v586_v50  ;;  %2780 = vmatprep.mubr.msk.bf16.mxu1 %vm597_vm0, %v586_v50 }
 0x129   : > { %2715 = vmatmul.mubr.msk.bf16.gmra.mrb[60].mxu0 %vm597_vm0, %v587_v53  ;;  %2781 = vmatmul.mubr.msk.bf16.gmra.mrb[60].mxu1 %vm597_vm0, %v587_v53 }
 0x12a   : > { %2718 = vmatprep.mubr.msk.bf16.mxu0 %vm597_vm0, %v588_v54  ;;  %2784 = vmatprep.mubr.msk.bf16.mxu1 %vm597_vm0, %v588_v54 }
 0x131   : > { %2719 = vmatmul.mubr.msk.bf16.gmra.mrb[64].mxu0 %vm597_vm0, %v589_v59  ;;  %2785 = vmatmul.mubr.msk.bf16.gmra.mrb[64].mxu1 %vm597_vm0, %v589_v59 }
 0x133   : > { %v595_v63 = vpop.permute.xlu0 %594 }
 0x134   : > { %v636_v0 = vadd.f32 %v2970_v12, %v595_v63  ;;  %v638_v1 = vadd.f32 %v2974_v17, %v595_v63  ;;  %v677_v2 = vadd.f32 %v2972_v16, %v595_v63  ;;  %v679_v3 = vadd.f32 %v2976_v19, %v595_v63 }
 0x136   : > { %v2258_v4 = vpack.c.bf16 %v638_v1, %v636_v0  ;;  %v2259_v5 = vpack.c.bf16 %v679_v3, %v677_v2 }
 0x138   : > { %v699_v6 = vrot.slane %v2258_v4, %v698_v62  ;;  %v706_v7 = vrot.slane %v2259_v5, %v698_v62 }
 0x13a   : > { %v707_v8 = vcombine.low %v699_v6, %v706_v7 }
 0x13c   : > { %2260 = vst.sshfl [vmem:[%s405_s28] sm:$0x55 pattern:$0x73625140] %v707_v8 }
 0x174   : > { %v2660_v11 = vpop.f32.mrb[4].mxu0  ;;  %v2726_v12 = vpop.f32.mrb[4].mxu1 }
 0x175   : > { %v871_v13 = vadd.f32 %v2660_v11, %v3027_v9  ;;  %v1496_v14 = vadd.f32 %v2726_v12, %v3032_v10  ;;  %v862_v15 = vpop.f32.mrb[5].mxu0  ;;  %v1487_v16 = vpop.f32.mrb[5].mxu1 }
 0x176   : > { %v863_v17 = vadd.f32 %v3027_v9, %v862_v15  ;;  %v1488_v18 = vadd.f32 %v3032_v10, %v1487_v16  ;;  %v2661_v19 = vpop.f32.mrb[6].mxu0  ;;  %v2727_v20 = vpop.f32.mrb[6].mxu1 }
 0x177   : > { %v2464_v21 = vpack.c.bf16 %v871_v13, %v871_v13  ;;  %v2528_v22 = vpack.c.bf16 %v1496_v14, %v1496_v14  ;;  %v874_v23 = vadd.f32 %v2661_v19, %v3027_v9  ;;  %v1499_v24 = vadd.f32 %v2727_v20, %v3032_v10  ;;  %v865_v25 = vpop.f32.mrb[7].mxu0  ;;  %v1490_v26 = vpop.f32.mrb[7].mxu1 }
 0x178   : > { %v2462_v27 = vpack.c.bf16 %v863_v17, %v863_v17  ;;  %v2526_v28 = vpack.c.bf16 %v1488_v18, %v1488_v18  ;;  %v866_v29 = vadd.f32 %v3027_v9, %v865_v25  ;;  %v1491_v30 = vadd.f32 %v3032_v10, %v1490_v26 }
 0x179   : > { %1376 = vst.msk [vmem:[%s3040_s19 + $0x8] sm:$0xf] %vm1373_vm1, %v2464_v21  ;;  %v2465_v31 = vpack.c.bf16 %v874_v23, %v874_v23  ;;  %v2529_v32 = vpack.c.bf16 %v1499_v24, %v1499_v24 }
 0x17a   : > { %2001 = vst.msk [vmem:[%s3045_s22 + $0x8] sm:$0xf] %vm1998_vm2, %v2528_v22  ;;  %1999 = vst.msk [vmem:[%s3045_s22] sm:$0xf] %vm1998_vm2, %v2526_v28  ;;  %v2463_v33 = vpack.c.bf16 %v866_v29, %v866_v29  ;;  %v2527_v34 = vpack.c.bf16 %v1491_v30, %v1491_v30 }
 0x17b   : > { %1374 = vst.msk [vmem:[%s3040_s19] sm:$0xf] %vm1373_vm1, %v2462_v27  ;;  %1377 = vst.msk [vmem:[%s3040_s19 + $0xc] sm:$0xf] %vm1373_vm1, %v2465_v31 }
 0x17c   : > { %2002 = vst.msk [vmem:[%s3045_s22 + $0xc] sm:$0xf] %vm1998_vm2, %v2529_v32  ;;  %2000 = vst.msk [vmem:[%s3045_s22 + $0x4] sm:$0xf] %vm1998_vm2, %v2527_v34 }
 0x17d   : > { %1375 = vst.msk [vmem:[%s3040_s19 + $0x4] sm:$0xf] %vm1373_vm1, %v2463_v33 }
 0x184   : > { %v2730_v35 = vpop.f32.mrb[8].mxu1  ;;  %v2664_v36 = vpop.f32.mrb[8].mxu0 }
 0x185   : > { %v1512_v37 = vadd.f32 %v2730_v35, %v3032_v10  ;;  %v887_v38 = vadd.f32 %v2664_v36, %v3027_v9  ;;  %v878_v39 = vpop.f32.mrb[9].mxu0  ;;  %v1503_v40 = vpop.f32.mrb[9].mxu1 }
 0x186   : > { %v879_v41 = vadd.f32 %v3027_v9, %v878_v39  ;;  %v1504_v42 = vadd.f32 %v3032_v10, %v1503_v40  ;;  %v2665_v43 = vpop.f32.mrb[10].mxu0  ;;  %v2731_v44 = vpop.f32.mrb[10].mxu1 }
 0x187   : > { %v2532_v45 = vpack.c.bf16 %v1512_v37, %v1512_v37  ;;  %v2468_v46 = vpack.c.bf16 %v887_v38, %v887_v38  ;;  %v890_v47 = vadd.f32 %v2665_v43, %v3027_v9  ;;  %v1515_v48 = vadd.f32 %v2731_v44, %v3032_v10  ;;  %v881_v49 = vpop.f32.mrb[11].mxu0  ;;  %v1506_v50 = vpop.f32.mrb[11].mxu1 }
 0x188   : > { %v2466_v51 = vpack.c.bf16 %v879_v41, %v879_v41  ;;  %v2530_v52 = vpack.c.bf16 %v1504_v42, %v1504_v42  ;;  %v882_v53 = vadd.f32 %v3027_v9, %v881_v49  ;;  %v1507_v54 = vadd.f32 %v3032_v10, %v1506_v50 }
 0x189   : > { %2005 = vst.msk [vmem:[%s3045_s22 + $0x18] sm:$0xf] %vm1998_vm2, %v2532_v45  ;;  %v2469_v55 = vpack.c.bf16 %v890_v47, %v890_v47  ;;  %v2533_v56 = vpack.c.bf16 %v1515_v48, %v1515_v48 }
 0x18a   : > { %1380 = vst.msk [vmem:[%s3040_s19 + $0x18] sm:$0xf] %vm1373_vm1, %v2468_v46  ;;  %1378 = vst.msk [vmem:[%s3040_s19 + $0x10] sm:$0xf] %vm1373_vm1, %v2466_v51  ;;  %v2467_v57 = vpack.c.bf16 %v882_v53, %v882_v53  ;;  %v2531_v58 = vpack.c.bf16 %v1507_v54, %v1507_v54 }
 0x18b   : > { %2003 = vst.msk [vmem:[%s3045_s22 + $0x10] sm:$0xf] %vm1998_vm2, %v2530_v52  ;;  %2006 = vst.msk [vmem:[%s3045_s22 + $0x1c] sm:$0xf] %vm1998_vm2, %v2533_v56 }
 0x18c   : > { %1381 = vst.msk [vmem:[%s3040_s19 + $0x1c] sm:$0xf] %vm1373_vm1, %v2469_v55  ;;  %1379 = vst.msk [vmem:[%s3040_s19 + $0x14] sm:$0xf] %vm1373_vm1, %v2467_v57 }
 0x18d   : > { %2004 = vst.msk [vmem:[%s3045_s22 + $0x14] sm:$0xf] %vm1998_vm2, %v2531_v58 }
 0x194   : > { %v2668_v59 = vpop.f32.mrb[12].mxu0  ;;  %v2734_v60 = vpop.f32.mrb[12].mxu1 }
 0x195   : > { %v903_v61 = vadd.f32 %v2668_v59, %v3027_v9  ;;  %v1528_v62 = vadd.f32 %v2734_v60, %v3032_v10  ;;  %v894_v63 = vpop.f32.mrb[13].mxu0  ;;  %v1519_v0 = vpop.f32.mrb[13].mxu1 }
 0x196   : > { %v895_v1 = vadd.f32 %v3027_v9, %v894_v63  ;;  %v1520_v2 = vadd.f32 %v3032_v10, %v1519_v0  ;;  %v2669_v3 = vpop.f32.mrb[14].mxu0  ;;  %v2735_v4 = vpop.f32.mrb[14].mxu1 }
 0x197   : > { %v2472_v5 = vpack.c.bf16 %v903_v61, %v903_v61  ;;  %v2536_v6 = vpack.c.bf16 %v1528_v62, %v1528_v62  ;;  %v906_v7 = vadd.f32 %v2669_v3, %v3027_v9  ;;  %v1531_v8 = vadd.f32 %v2735_v4, %v3032_v10  ;;  %v897_v11 = vpop.f32.mrb[15].mxu0  ;;  %v1522_v12 = vpop.f32.mrb[15].mxu1 }
 0x198   : > { %v2470_v13 = vpack.c.bf16 %v895_v1, %v895_v1  ;;  %v2534_v14 = vpack.c.bf16 %v1520_v2, %v1520_v2  ;;  %v898_v15 = vadd.f32 %v3027_v9, %v897_v11  ;;  %v1523_v16 = vadd.f32 %v3032_v10, %v1522_v12 }
 0x199   : > { %1384 = vst.msk [vmem:[%s3040_s19 + $0x28] sm:$0xf] %vm1373_vm1, %v2472_v5  ;;  %v2473_v17 = vpack.c.bf16 %v906_v7, %v906_v7  ;;  %v2537_v18 = vpack.c.bf16 %v1531_v8, %v1531_v8 }
 0x19a   : > { %2009 = vst.msk [vmem:[%s3045_s22 + $0x28] sm:$0xf] %vm1998_vm2, %v2536_v6  ;;  %2007 = vst.msk [vmem:[%s3045_s22 + $0x20] sm:$0xf] %vm1998_vm2, %v2534_v14  ;;  %v2471_v19 = vpack.c.bf16 %v898_v15, %v898_v15  ;;  %v2535_v20 = vpack.c.bf16 %v1523_v16, %v1523_v16 }
 0x19b   : > { %1382 = vst.msk [vmem:[%s3040_s19 + $0x20] sm:$0xf] %vm1373_vm1, %v2470_v13  ;;  %1385 = vst.msk [vmem:[%s3040_s19 + $0x2c] sm:$0xf] %vm1373_vm1, %v2473_v17 }
 0x19c   : > { %2010 = vst.msk [vmem:[%s3045_s22 + $0x2c] sm:$0xf] %vm1998_vm2, %v2537_v18  ;;  %2008 = vst.msk [vmem:[%s3045_s22 + $0x24] sm:$0xf] %vm1998_vm2, %v2535_v20 }
 0x19d   : > { %1383 = vst.msk [vmem:[%s3040_s19 + $0x24] sm:$0xf] %vm1373_vm1, %v2471_v19 }
 0x1a4   : > { %v2672_v21 = vpop.f32.mrb[16].mxu0  ;;  %v2738_v22 = vpop.f32.mrb[16].mxu1 }
 0x1a5   : > { %v919_v23 = vadd.f32 %v2672_v21, %v3027_v9  ;;  %v1544_v24 = vadd.f32 %v2738_v22, %v3032_v10  ;;  %v910_v25 = vpop.f32.mrb[17].mxu0  ;;  %v1535_v26 = vpop.f32.mrb[17].mxu1 }
 0x1a6   : > { %v911_v27 = vadd.f32 %v3027_v9, %v910_v25  ;;  %v1536_v28 = vadd.f32 %v3032_v10, %v1535_v26  ;;  %v2673_v29 = vpop.f32.mrb[18].mxu0  ;;  %v2739_v30 = vpop.f32.mrb[18].mxu1 }
 0x1a7   : > { %v2476_v31 = vpack.c.bf16 %v919_v23, %v919_v23  ;;  %v2540_v32 = vpack.c.bf16 %v1544_v24, %v1544_v24  ;;  %v922_v33 = vadd.f32 %v2673_v29, %v3027_v9  ;;  %v1547_v34 = vadd.f32 %v2739_v30, %v3032_v10  ;;  %v913_v35 = vpop.f32.mrb[19].mxu0  ;;  %v1538_v36 = vpop.f32.mrb[19].mxu1 }
 0x1a8   : > { %v2474_v37 = vpack.c.bf16 %v911_v27, %v911_v27  ;;  %v2538_v38 = vpack.c.bf16 %v1536_v28, %v1536_v28  ;;  %v914_v39 = vadd.f32 %v3027_v9, %v913_v35  ;;  %v1539_v40 = vadd.f32 %v3032_v10, %v1538_v36 }
 0x1a9   : > { %1388 = vst.msk [vmem:[%s3040_s19 + $0x38] sm:$0xf] %vm1373_vm1, %v2476_v31  ;;  %v2477_v41 = vpack.c.bf16 %v922_v33, %v922_v33  ;;  %v2541_v42 = vpack.c.bf16 %v1547_v34, %v1547_v34 }
 0x1aa   : > { %2013 = vst.msk [vmem:[%s3045_s22 + $0x38] sm:$0xf] %vm1998_vm2, %v2540_v32  ;;  %2011 = vst.msk [vmem:[%s3045_s22 + $0x30] sm:$0xf] %vm1998_vm2, %v2538_v38  ;;  %v2475_v43 = vpack.c.bf16 %v914_v39, %v914_v39  ;;  %v2539_v44 = vpack.c.bf16 %v1539_v40, %v1539_v40 }
 0x1ab   : > { %1386 = vst.msk [vmem:[%s3040_s19 + $0x30] sm:$0xf] %vm1373_vm1, %v2474_v37  ;;  %1389 = vst.msk [vmem:[%s3040_s19 + $0x3c] sm:$0xf] %vm1373_vm1, %v2477_v41 }
 0x1ac   : > { %2014 = vst.msk [vmem:[%s3045_s22 + $0x3c] sm:$0xf] %vm1998_vm2, %v2541_v42  ;;  %2012 = vst.msk [vmem:[%s3045_s22 + $0x34] sm:$0xf] %vm1998_vm2, %v2539_v44  ;;  %v2676_v45 = vpop.f32.mrb[20].mxu0  ;;  %v2742_v46 = vpop.f32.mrb[20].mxu1 }
 0x1ad   : > { %1387 = vst.msk [vmem:[%s3040_s19 + $0x34] sm:$0xf] %vm1373_vm1, %v2475_v43  ;;  %v935_v47 = vadd.f32 %v2676_v45, %v3027_v9  ;;  %v1560_v48 = vadd.f32 %v2742_v46, %v3032_v10  ;;  %v926_v49 = vpop.f32.mrb[21].mxu0  ;;  %v1551_v50 = vpop.f32.mrb[21].mxu1 }
 0x1ae   : > { %v927_v51 = vadd.f32 %v3027_v9, %v926_v49  ;;  %v1552_v52 = vadd.f32 %v3032_v10, %v1551_v50  ;;  %v2677_v53 = vpop.f32.mrb[22].mxu0  ;;  %v2743_v54 = vpop.f32.mrb[22].mxu1 }
 0x1af   : > { %v2480_v55 = vpack.c.bf16 %v935_v47, %v935_v47  ;;  %v2544_v56 = vpack.c.bf16 %v1560_v48, %v1560_v48  ;;  %v938_v57 = vadd.f32 %v2677_v53, %v3027_v9  ;;  %v1563_v58 = vadd.f32 %v2743_v54, %v3032_v10  ;;  %v929_v59 = vpop.f32.mrb[23].mxu0  ;;  %v1554_v60 = vpop.f32.mrb[23].mxu1 }
 0x1b0   : > { %v2478_v61 = vpack.c.bf16 %v927_v51, %v927_v51  ;;  %v2542_v62 = vpack.c.bf16 %v1552_v52, %v1552_v52  ;;  %v930_v63 = vadd.f32 %v3027_v9, %v929_v59  ;;  %v1555_v0 = vadd.f32 %v3032_v10, %v1554_v60 }
 0x1b1   : > { %1392 = vst.msk [vmem:[%s3040_s19 + $0x48] sm:$0xf] %vm1373_vm1, %v2480_v55  ;;  %v2481_v1 = vpack.c.bf16 %v938_v57, %v938_v57  ;;  %v2545_v2 = vpack.c.bf16 %v1563_v58, %v1563_v58 }
 0x1b2   : > { %2017 = vst.msk [vmem:[%s3045_s22 + $0x48] sm:$0xf] %vm1998_vm2, %v2544_v56  ;;  %2015 = vst.msk [vmem:[%s3045_s22 + $0x40] sm:$0xf] %vm1998_vm2, %v2542_v62  ;;  %v2479_v3 = vpack.c.bf16 %v930_v63, %v930_v63  ;;  %v2543_v4 = vpack.c.bf16 %v1555_v0, %v1555_v0 }
 0x1b3   : > { %1390 = vst.msk [vmem:[%s3040_s19 + $0x40] sm:$0xf] %vm1373_vm1, %v2478_v61  ;;  %1393 = vst.msk [vmem:[%s3040_s19 + $0x4c] sm:$0xf] %vm1373_vm1, %v2481_v1 }
 0x1b4   : > { %2018 = vst.msk [vmem:[%s3045_s22 + $0x4c] sm:$0xf] %vm1998_vm2, %v2545_v2  ;;  %2016 = vst.msk [vmem:[%s3045_s22 + $0x44] sm:$0xf] %vm1998_vm2, %v2543_v4  ;;  %v2680_v5 = vpop.f32.mrb[24].mxu0  ;;  %v2746_v6 = vpop.f32.mrb[24].mxu1 }
 0x1b5   : > { %1391 = vst.msk [vmem:[%s3040_s19 + $0x44] sm:$0xf] %vm1373_vm1, %v2479_v3  ;;  %v951_v7 = vadd.f32 %v2680_v5, %v3027_v9  ;;  %v1576_v8 = vadd.f32 %v2746_v6, %v3032_v10  ;;  %v942_v11 = vpop.f32.mrb[25].mxu0  ;;  %v1567_v12 = vpop.f32.mrb[25].mxu1 }
 0x1b6   : > { %v943_v13 = vadd.f32 %v3027_v9, %v942_v11  ;;  %v1568_v14 = vadd.f32 %v3032_v10, %v1567_v12  ;;  %v2681_v15 = vpop.f32.mrb[26].mxu0  ;;  %v2747_v16 = vpop.f32.mrb[26].mxu1 }
 0x1b7   : > { %v2484_v17 = vpack.c.bf16 %v951_v7, %v951_v7  ;;  %v2548_v18 = vpack.c.bf16 %v1576_v8, %v1576_v8  ;;  %v954_v19 = vadd.f32 %v2681_v15, %v3027_v9  ;;  %v1579_v20 = vadd.f32 %v2747_v16, %v3032_v10  ;;  %v945_v21 = vpop.f32.mrb[27].mxu0  ;;  %v1570_v22 = vpop.f32.mrb[27].mxu1 }
 0x1b8   : > { %v2482_v23 = vpack.c.bf16 %v943_v13, %v943_v13  ;;  %v2546_v24 = vpack.c.bf16 %v1568_v14, %v1568_v14  ;;  %v946_v25 = vadd.f32 %v3027_v9, %v945_v21  ;;  %v1571_v26 = vadd.f32 %v3032_v10, %v1570_v22 }
 0x1b9   : > { %1396 = vst.msk [vmem:[%s3040_s19 + $0x58] sm:$0xf] %vm1373_vm1, %v2484_v17  ;;  %v2485_v27 = vpack.c.bf16 %v954_v19, %v954_v19  ;;  %v2549_v28 = vpack.c.bf16 %v1579_v20, %v1579_v20 }
 0x1ba   : > { %2021 = vst.msk [vmem:[%s3045_s22 + $0x58] sm:$0xf] %vm1998_vm2, %v2548_v18  ;;  %2019 = vst.msk [vmem:[%s3045_s22 + $0x50] sm:$0xf] %vm1998_vm2, %v2546_v24  ;;  %v2483_v29 = vpack.c.bf16 %v946_v25, %v946_v25  ;;  %v2547_v30 = vpack.c.bf16 %v1571_v26, %v1571_v26 }
 0x1bb   : > { %1394 = vst.msk [vmem:[%s3040_s19 + $0x50] sm:$0xf] %vm1373_vm1, %v2482_v23  ;;  %1397 = vst.msk [vmem:[%s3040_s19 + $0x5c] sm:$0xf] %vm1373_vm1, %v2485_v27 }
 0x1bc   : > { %2022 = vst.msk [vmem:[%s3045_s22 + $0x5c] sm:$0xf] %vm1998_vm2, %v2549_v28  ;;  %2020 = vst.msk [vmem:[%s3045_s22 + $0x54] sm:$0xf] %vm1998_vm2, %v2547_v30  ;;  %v2684_v31 = vpop.f32.mrb[28].mxu0  ;;  %v2750_v32 = vpop.f32.mrb[28].mxu1 }
 0x1bd   : > { %1395 = vst.msk [vmem:[%s3040_s19 + $0x54] sm:$0xf] %vm1373_vm1, %v2483_v29  ;;  %v967_v33 = vadd.f32 %v2684_v31, %v3027_v9  ;;  %v1592_v34 = vadd.f32 %v2750_v32, %v3032_v10  ;;  %v958_v35 = vpop.f32.mrb[29].mxu0  ;;  %v1583_v36 = vpop.f32.mrb[29].mxu1 }
 0x1be   : > { %v959_v37 = vadd.f32 %v3027_v9, %v958_v35  ;;  %v1584_v38 = vadd.f32 %v3032_v10, %v1583_v36  ;;  %v2685_v39 = vpop.f32.mrb[30].mxu0  ;;  %v2751_v40 = vpop.f32.mrb[30].mxu1 }
 0x1bf   : > { %v2488_v41 = vpack.c.bf16 %v967_v33, %v967_v33  ;;  %v2552_v42 = vpack.c.bf16 %v1592_v34, %v1592_v34  ;;  %v970_v43 = vadd.f32 %v2685_v39, %v3027_v9  ;;  %v1595_v44 = vadd.f32 %v2751_v40, %v3032_v10  ;;  %v961_v45 = vpop.f32.mrb[31].mxu0  ;;  %v1586_v46 = vpop.f32.mrb[31].mxu1 }
 0x1c0   : > { %v2486_v47 = vpack.c.bf16 %v959_v37, %v959_v37  ;;  %v2550_v48 = vpack.c.bf16 %v1584_v38, %v1584_v38  ;;  %v962_v49 = vadd.f32 %v3027_v9, %v961_v45  ;;  %v1587_v50 = vadd.f32 %v3032_v10, %v1586_v46 }
 0x1c1   : > { %1400 = vst.msk [vmem:[%s3040_s19 + $0x68] sm:$0xf] %vm1373_vm1, %v2488_v41  ;;  %v2489_v51 = vpack.c.bf16 %v970_v43, %v970_v43  ;;  %v2553_v52 = vpack.c.bf16 %v1595_v44, %v1595_v44 }
 0x1c2   : > { %2025 = vst.msk [vmem:[%s3045_s22 + $0x68] sm:$0xf] %vm1998_vm2, %v2552_v42  ;;  %2023 = vst.msk [vmem:[%s3045_s22 + $0x60] sm:$0xf] %vm1998_vm2, %v2550_v48  ;;  %v2487_v53 = vpack.c.bf16 %v962_v49, %v962_v49  ;;  %v2551_v54 = vpack.c.bf16 %v1587_v50, %v1587_v50 }
 0x1c3   : > { %1398 = vst.msk [vmem:[%s3040_s19 + $0x60] sm:$0xf] %vm1373_vm1, %v2486_v47  ;;  %1401 = vst.msk [vmem:[%s3040_s19 + $0x6c] sm:$0xf] %vm1373_vm1, %v2489_v51 }
 0x1c4   : > { %2026 = vst.msk [vmem:[%s3045_s22 + $0x6c] sm:$0xf] %vm1998_vm2, %v2553_v52  ;;  %2024 = vst.msk [vmem:[%s3045_s22 + $0x64] sm:$0xf] %vm1998_vm2, %v2551_v54  ;;  %v2688_v55 = vpop.f32.mrb[32].mxu0  ;;  %v2754_v56 = vpop.f32.mrb[32].mxu1 }
 0x1c5   : > { %1399 = vst.msk [vmem:[%s3040_s19 + $0x64] sm:$0xf] %vm1373_vm1, %v2487_v53  ;;  %v983_v57 = vadd.f32 %v2688_v55, %v3027_v9  ;;  %v1608_v58 = vadd.f32 %v2754_v56, %v3032_v10  ;;  %v974_v59 = vpop.f32.mrb[33].mxu0  ;;  %v1599_v60 = vpop.f32.mrb[33].mxu1 }
 0x1c6   : > { %v975_v61 = vadd.f32 %v3027_v9, %v974_v59  ;;  %v1600_v62 = vadd.f32 %v3032_v10, %v1599_v60  ;;  %v2689_v63 = vpop.f32.mrb[34].mxu0  ;;  %v2755_v0 = vpop.f32.mrb[34].mxu1 }
 0x1c7   : > { %v2492_v1 = vpack.c.bf16 %v983_v57, %v983_v57  ;;  %v2556_v2 = vpack.c.bf16 %v1608_v58, %v1608_v58  ;;  %v986_v3 = vadd.f32 %v2689_v63, %v3027_v9  ;;  %v1611_v4 = vadd.f32 %v2755_v0, %v3032_v10  ;;  %v977_v5 = vpop.f32.mrb[35].mxu0  ;;  %v1602_v6 = vpop.f32.mrb[35].mxu1 }
 0x1c8   : > { %v2490_v7 = vpack.c.bf16 %v975_v61, %v975_v61  ;;  %v2554_v8 = vpack.c.bf16 %v1600_v62, %v1600_v62  ;;  %v978_v11 = vadd.f32 %v3027_v9, %v977_v5  ;;  %v1603_v12 = vadd.f32 %v3032_v10, %v1602_v6 }
 0x1c9   : > { %1404 = vst.msk [vmem:[%s3040_s19 + $0x78] sm:$0xf] %vm1373_vm1, %v2492_v1  ;;  %v2493_v13 = vpack.c.bf16 %v986_v3, %v986_v3  ;;  %v2557_v14 = vpack.c.bf16 %v1611_v4, %v1611_v4 }
 0x1ca   : > { %2029 = vst.msk [vmem:[%s3045_s22 + $0x78] sm:$0xf] %vm1998_vm2, %v2556_v2  ;;  %2027 = vst.msk [vmem:[%s3045_s22 + $0x70] sm:$0xf] %vm1998_vm2, %v2554_v8  ;;  %v2491_v15 = vpack.c.bf16 %v978_v11, %v978_v11  ;;  %v2555_v16 = vpack.c.bf16 %v1603_v12, %v1603_v12 }
 0x1cb   : > { %1402 = vst.msk [vmem:[%s3040_s19 + $0x70] sm:$0xf] %vm1373_vm1, %v2490_v7  ;;  %1405 = vst.msk [vmem:[%s3040_s19 + $0x7c] sm:$0xf] %vm1373_vm1, %v2493_v13 }
 0x1cc   : > { %2030 = vst.msk [vmem:[%s3045_s22 + $0x7c] sm:$0xf] %vm1998_vm2, %v2557_v14  ;;  %2028 = vst.msk [vmem:[%s3045_s22 + $0x74] sm:$0xf] %vm1998_vm2, %v2555_v16  ;;  %v2692_v17 = vpop.f32.mrb[36].mxu0  ;;  %v2758_v18 = vpop.f32.mrb[36].mxu1 }
 0x1cd   : > { %1403 = vst.msk [vmem:[%s3040_s19 + $0x74] sm:$0xf] %vm1373_vm1, %v2491_v15  ;;  %v999_v19 = vadd.f32 %v2692_v17, %v3027_v9  ;;  %v1624_v20 = vadd.f32 %v2758_v18, %v3032_v10  ;;  %v990_v21 = vpop.f32.mrb[37].mxu0  ;;  %v1615_v22 = vpop.f32.mrb[37].mxu1 }
 0x1ce   : > { %v991_v23 = vadd.f32 %v3027_v9, %v990_v21  ;;  %v1616_v24 = vadd.f32 %v3032_v10, %v1615_v22  ;;  %v2693_v25 = vpop.f32.mrb[38].mxu0  ;;  %v2759_v26 = vpop.f32.mrb[38].mxu1 }
 0x1cf   : > { %v2496_v27 = vpack.c.bf16 %v999_v19, %v999_v19  ;;  %v2560_v28 = vpack.c.bf16 %v1624_v20, %v1624_v20  ;;  %v1002_v29 = vadd.f32 %v2693_v25, %v3027_v9  ;;  %v1627_v30 = vadd.f32 %v2759_v26, %v3032_v10  ;;  %v993_v31 = vpop.f32.mrb[39].mxu0  ;;  %v1618_v32 = vpop.f32.mrb[39].mxu1 }
 0x1d0   : > { %v2494_v33 = vpack.c.bf16 %v991_v23, %v991_v23  ;;  %v2558_v34 = vpack.c.bf16 %v1616_v24, %v1616_v24  ;;  %v994_v35 = vadd.f32 %v3027_v9, %v993_v31  ;;  %v1619_v36 = vadd.f32 %v3032_v10, %v1618_v32 }
 0x1d1   : > { %1408 = vst.msk [vmem:[%s3040_s19 + $0x88] sm:$0xf] %vm1373_vm1, %v2496_v27  ;;  %v2497_v37 = vpack.c.bf16 %v1002_v29, %v1002_v29  ;;  %v2561_v38 = vpack.c.bf16 %v1627_v30, %v1627_v30 }
 0x1d2   : > { %2033 = vst.msk [vmem:[%s3045_s22 + $0x88] sm:$0xf] %vm1998_vm2, %v2560_v28  ;;  %2031 = vst.msk [vmem:[%s3045_s22 + $0x80] sm:$0xf] %vm1998_vm2, %v2558_v34  ;;  %v2495_v39 = vpack.c.bf16 %v994_v35, %v994_v35  ;;  %v2559_v40 = vpack.c.bf16 %v1619_v36, %v1619_v36 }
 0x1d3   : > { %1406 = vst.msk [vmem:[%s3040_s19 + $0x80] sm:$0xf] %vm1373_vm1, %v2494_v33  ;;  %1409 = vst.msk [vmem:[%s3040_s19 + $0x8c] sm:$0xf] %vm1373_vm1, %v2497_v37 }
 0x1d4   : > { %2034 = vst.msk [vmem:[%s3045_s22 + $0x8c] sm:$0xf] %vm1998_vm2, %v2561_v38  ;;  %2032 = vst.msk [vmem:[%s3045_s22 + $0x84] sm:$0xf] %vm1998_vm2, %v2559_v40  ;;  %v2696_v41 = vpop.f32.mrb[40].mxu0  ;;  %v2762_v42 = vpop.f32.mrb[40].mxu1 }
 0x1d5   : > { %1407 = vst.msk [vmem:[%s3040_s19 + $0x84] sm:$0xf] %vm1373_vm1, %v2495_v39  ;;  %v1015_v43 = vadd.f32 %v2696_v41, %v3027_v9  ;;  %v1640_v44 = vadd.f32 %v2762_v42, %v3032_v10  ;;  %v1006_v45 = vpop.f32.mrb[41].mxu0  ;;  %v1631_v46 = vpop.f32.mrb[41].mxu1 }
 0x1d6   : > { %v1007_v47 = vadd.f32 %v3027_v9, %v1006_v45  ;;  %v1632_v48 = vadd.f32 %v3032_v10, %v1631_v46  ;;  %v2697_v49 = vpop.f32.mrb[42].mxu0  ;;  %v2763_v50 = vpop.f32.mrb[42].mxu1 }
 0x1d7   : > { %v2500_v51 = vpack.c.bf16 %v1015_v43, %v1015_v43  ;;  %v2564_v52 = vpack.c.bf16 %v1640_v44, %v1640_v44  ;;  %v1018_v53 = vadd.f32 %v2697_v49, %v3027_v9  ;;  %v1643_v54 = vadd.f32 %v2763_v50, %v3032_v10  ;;  %v1009_v55 = vpop.f32.mrb[43].mxu0  ;;  %v1634_v56 = vpop.f32.mrb[43].mxu1 }
 0x1d8   : > { %v2498_v57 = vpack.c.bf16 %v1007_v47, %v1007_v47  ;;  %v2562_v58 = vpack.c.bf16 %v1632_v48, %v1632_v48  ;;  %v1010_v59 = vadd.f32 %v3027_v9, %v1009_v55  ;;  %v1635_v60 = vadd.f32 %v3032_v10, %v1634_v56 }
 0x1d9   : > { %1412 = vst.msk [vmem:[%s3040_s19 + $0x98] sm:$0xf] %vm1373_vm1, %v2500_v51  ;;  %v2501_v61 = vpack.c.bf16 %v1018_v53, %v1018_v53  ;;  %v2565_v62 = vpack.c.bf16 %v1643_v54, %v1643_v54 }
 0x1da   : > { %2037 = vst.msk [vmem:[%s3045_s22 + $0x98] sm:$0xf] %vm1998_vm2, %v2564_v52  ;;  %2035 = vst.msk [vmem:[%s3045_s22 + $0x90] sm:$0xf] %vm1998_vm2, %v2562_v58  ;;  %v2499_v63 = vpack.c.bf16 %v1010_v59, %v1010_v59  ;;  %v2563_v0 = vpack.c.bf16 %v1635_v60, %v1635_v60 }
 0x1db   : > { %1410 = vst.msk [vmem:[%s3040_s19 + $0x90] sm:$0xf] %vm1373_vm1, %v2498_v57  ;;  %1413 = vst.msk [vmem:[%s3040_s19 + $0x9c] sm:$0xf] %vm1373_vm1, %v2501_v61 }
 0x1dc   : > { %2038 = vst.msk [vmem:[%s3045_s22 + $0x9c] sm:$0xf] %vm1998_vm2, %v2565_v62  ;;  %2036 = vst.msk [vmem:[%s3045_s22 + $0x94] sm:$0xf] %vm1998_vm2, %v2563_v0  ;;  %v2700_v1 = vpop.f32.mrb[44].mxu0  ;;  %v2766_v2 = vpop.f32.mrb[44].mxu1 }
 0x1dd   : > { %1411 = vst.msk [vmem:[%s3040_s19 + $0x94] sm:$0xf] %vm1373_vm1, %v2499_v63  ;;  %v1031_v3 = vadd.f32 %v2700_v1, %v3027_v9  ;;  %v1656_v4 = vadd.f32 %v2766_v2, %v3032_v10  ;;  %v1022_v5 = vpop.f32.mrb[45].mxu0  ;;  %v1647_v6 = vpop.f32.mrb[45].mxu1 }
 0x1de   : > { %v1023_v7 = vadd.f32 %v3027_v9, %v1022_v5  ;;  %v1648_v8 = vadd.f32 %v3032_v10, %v1647_v6  ;;  %v2701_v11 = vpop.f32.mrb[46].mxu0  ;;  %v2767_v12 = vpop.f32.mrb[46].mxu1 }
 0x1df   : > { %v2504_v13 = vpack.c.bf16 %v1031_v3, %v1031_v3  ;;  %v2568_v14 = vpack.c.bf16 %v1656_v4, %v1656_v4  ;;  %v1034_v15 = vadd.f32 %v2701_v11, %v3027_v9  ;;  %v1659_v16 = vadd.f32 %v2767_v12, %v3032_v10  ;;  %v1025_v17 = vpop.f32.mrb[47].mxu0  ;;  %v1650_v18 = vpop.f32.mrb[47].mxu1 }
 0x1e0   : > { %v2502_v19 = vpack.c.bf16 %v1023_v7, %v1023_v7  ;;  %v2566_v20 = vpack.c.bf16 %v1648_v8, %v1648_v8  ;;  %v1026_v21 = vadd.f32 %v3027_v9, %v1025_v17  ;;  %v1651_v22 = vadd.f32 %v3032_v10, %v1650_v18 }
 0x1e1   : > { %1416 = vst.msk [vmem:[%s3040_s19 + $0xa8] sm:$0xf] %vm1373_vm1, %v2504_v13  ;;  %v2505_v23 = vpack.c.bf16 %v1034_v15, %v1034_v15  ;;  %v2569_v24 = vpack.c.bf16 %v1659_v16, %v1659_v16 }
 0x1e2   : > { %2041 = vst.msk [vmem:[%s3045_s22 + $0xa8] sm:$0xf] %vm1998_vm2, %v2568_v14  ;;  %2039 = vst.msk [vmem:[%s3045_s22 + $0xa0] sm:$0xf] %vm1998_vm2, %v2566_v20  ;;  %v2503_v25 = vpack.c.bf16 %v1026_v21, %v1026_v21  ;;  %v2567_v26 = vpack.c.bf16 %v1651_v22, %v1651_v22 }
 0x1e3   : > { %1414 = vst.msk [vmem:[%s3040_s19 + $0xa0] sm:$0xf] %vm1373_vm1, %v2502_v19  ;;  %1417 = vst.msk [vmem:[%s3040_s19 + $0xac] sm:$0xf] %vm1373_vm1, %v2505_v23 }
 0x1e4   : > { %2042 = vst.msk [vmem:[%s3045_s22 + $0xac] sm:$0xf] %vm1998_vm2, %v2569_v24  ;;  %2040 = vst.msk [vmem:[%s3045_s22 + $0xa4] sm:$0xf] %vm1998_vm2, %v2567_v26  ;;  %v2704_v27 = vpop.f32.mrb[48].mxu0  ;;  %v2770_v28 = vpop.f32.mrb[48].mxu1 }
 0x1e5   : > { %1415 = vst.msk [vmem:[%s3040_s19 + $0xa4] sm:$0xf] %vm1373_vm1, %v2503_v25  ;;  %v1047_v29 = vadd.f32 %v2704_v27, %v3027_v9  ;;  %v1672_v30 = vadd.f32 %v2770_v28, %v3032_v10  ;;  %v1038_v31 = vpop.f32.mrb[49].mxu0  ;;  %v1663_v32 = vpop.f32.mrb[49].mxu1 }
 0x1e6   : > { %v1039_v33 = vadd.f32 %v3027_v9, %v1038_v31  ;;  %v1664_v34 = vadd.f32 %v3032_v10, %v1663_v32  ;;  %v2705_v35 = vpop.f32.mrb[50].mxu0  ;;  %v2771_v36 = vpop.f32.mrb[50].mxu1 }
 0x1e7   : > { %v2508_v37 = vpack.c.bf16 %v1047_v29, %v1047_v29  ;;  %v2572_v38 = vpack.c.bf16 %v1672_v30, %v1672_v30  ;;  %v1050_v39 = vadd.f32 %v2705_v35, %v3027_v9  ;;  %v1675_v40 = vadd.f32 %v2771_v36, %v3032_v10  ;;  %v1041_v41 = vpop.f32.mrb[51].mxu0  ;;  %v1666_v42 = vpop.f32.mrb[51].mxu1 }
 0x1e8   : > { %v2506_v43 = vpack.c.bf16 %v1039_v33, %v1039_v33  ;;  %v2570_v44 = vpack.c.bf16 %v1664_v34, %v1664_v34  ;;  %v1042_v45 = vadd.f32 %v3027_v9, %v1041_v41  ;;  %v1667_v46 = vadd.f32 %v3032_v10, %v1666_v42 }
 0x1e9   : > { %1420 = vst.msk [vmem:[%s3040_s19 + $0xb8] sm:$0xf] %vm1373_vm1, %v2508_v37  ;;  %v2509_v47 = vpack.c.bf16 %v1050_v39, %v1050_v39  ;;  %v2573_v48 = vpack.c.bf16 %v1675_v40, %v1675_v40 }
 0x1ea   : > { %2045 = vst.msk [vmem:[%s3045_s22 + $0xb8] sm:$0xf] %vm1998_vm2, %v2572_v38  ;;  %2043 = vst.msk [vmem:[%s3045_s22 + $0xb0] sm:$0xf] %vm1998_vm2, %v2570_v44  ;;  %v2507_v49 = vpack.c.bf16 %v1042_v45, %v1042_v45  ;;  %v2571_v50 = vpack.c.bf16 %v1667_v46, %v1667_v46 }
 0x1eb   : > { %1418 = vst.msk [vmem:[%s3040_s19 + $0xb0] sm:$0xf] %vm1373_vm1, %v2506_v43  ;;  %1421 = vst.msk [vmem:[%s3040_s19 + $0xbc] sm:$0xf] %vm1373_vm1, %v2509_v47 }
 0x1ec   : > { %2046 = vst.msk [vmem:[%s3045_s22 + $0xbc] sm:$0xf] %vm1998_vm2, %v2573_v48  ;;  %2044 = vst.msk [vmem:[%s3045_s22 + $0xb4] sm:$0xf] %vm1998_vm2, %v2571_v50  ;;  %v2708_v51 = vpop.f32.mrb[52].mxu0  ;;  %v2774_v52 = vpop.f32.mrb[52].mxu1 }
 0x1ed   : > { %1419 = vst.msk [vmem:[%s3040_s19 + $0xb4] sm:$0xf] %vm1373_vm1, %v2507_v49  ;;  %v1063_v53 = vadd.f32 %v2708_v51, %v3027_v9  ;;  %v1688_v54 = vadd.f32 %v2774_v52, %v3032_v10  ;;  %v1054_v55 = vpop.f32.mrb[53].mxu0  ;;  %v1679_v56 = vpop.f32.mrb[53].mxu1 }
 0x1ee   : > { %v1055_v57 = vadd.f32 %v3027_v9, %v1054_v55  ;;  %v1680_v58 = vadd.f32 %v3032_v10, %v1679_v56  ;;  %v2709_v59 = vpop.f32.mrb[54].mxu0  ;;  %v2775_v60 = vpop.f32.mrb[54].mxu1 }
 0x1ef   : > { %v2512_v61 = vpack.c.bf16 %v1063_v53, %v1063_v53  ;;  %v2576_v62 = vpack.c.bf16 %v1688_v54, %v1688_v54  ;;  %v1066_v63 = vadd.f32 %v2709_v59, %v3027_v9  ;;  %v1691_v0 = vadd.f32 %v2775_v60, %v3032_v10  ;;  %v1057_v1 = vpop.f32.mrb[55].mxu0  ;;  %v1682_v2 = vpop.f32.mrb[55].mxu1 }
 0x1f0   : > { %v2510_v3 = vpack.c.bf16 %v1055_v57, %v1055_v57  ;;  %v2574_v4 = vpack.c.bf16 %v1680_v58, %v1680_v58  ;;  %v1058_v5 = vadd.f32 %v3027_v9, %v1057_v1  ;;  %v1683_v6 = vadd.f32 %v3032_v10, %v1682_v2 }
 0x1f1   : > { %1424 = vst.msk [vmem:[%s3040_s19 + $0xc8] sm:$0xf] %vm1373_vm1, %v2512_v61  ;;  %v2513_v7 = vpack.c.bf16 %v1066_v63, %v1066_v63  ;;  %v2577_v8 = vpack.c.bf16 %v1691_v0, %v1691_v0 }
 0x1f2   : > { %2049 = vst.msk [vmem:[%s3045_s22 + $0xc8] sm:$0xf] %vm1998_vm2, %v2576_v62  ;;  %2047 = vst.msk [vmem:[%s3045_s22 + $0xc0] sm:$0xf] %vm1998_vm2, %v2574_v4  ;;  %v2511_v11 = vpack.c.bf16 %v1058_v5, %v1058_v5  ;;  %v2575_v12 = vpack.c.bf16 %v1683_v6, %v1683_v6 }
 0x1f3   : > { %1422 = vst.msk [vmem:[%s3040_s19 + $0xc0] sm:$0xf] %vm1373_vm1, %v2510_v3  ;;  %1425 = vst.msk [vmem:[%s3040_s19 + $0xcc] sm:$0xf] %vm1373_vm1, %v2513_v7 }
 0x1f4   : > { %2050 = vst.msk [vmem:[%s3045_s22 + $0xcc] sm:$0xf] %vm1998_vm2, %v2577_v8  ;;  %2048 = vst.msk [vmem:[%s3045_s22 + $0xc4] sm:$0xf] %vm1998_vm2, %v2575_v12  ;;  %v2712_v13 = vpop.f32.mrb[56].mxu0  ;;  %v2778_v14 = vpop.f32.mrb[56].mxu1 }
 0x1f5   : > { %1423 = vst.msk [vmem:[%s3040_s19 + $0xc4] sm:$0xf] %vm1373_vm1, %v2511_v11  ;;  %v1079_v15 = vadd.f32 %v2712_v13, %v3027_v9  ;;  %v1704_v16 = vadd.f32 %v2778_v14, %v3032_v10  ;;  %v1070_v17 = vpop.f32.mrb[57].mxu0  ;;  %v1695_v18 = vpop.f32.mrb[57].mxu1 }
 0x1f6   : > { %v1071_v19 = vadd.f32 %v3027_v9, %v1070_v17  ;;  %v1696_v20 = vadd.f32 %v3032_v10, %v1695_v18  ;;  %v2713_v21 = vpop.f32.mrb[58].mxu0  ;;  %v2779_v22 = vpop.f32.mrb[58].mxu1 }
 0x1f7   : > { %v2516_v23 = vpack.c.bf16 %v1079_v15, %v1079_v15  ;;  %v2580_v24 = vpack.c.bf16 %v1704_v16, %v1704_v16  ;;  %v1082_v25 = vadd.f32 %v2713_v21, %v3027_v9  ;;  %v1707_v26 = vadd.f32 %v2779_v22, %v3032_v10  ;;  %v1073_v27 = vpop.f32.mrb[59].mxu0  ;;  %v1698_v28 = vpop.f32.mrb[59].mxu1 }
 0x1f8   : > { %v2514_v29 = vpack.c.bf16 %v1071_v19, %v1071_v19  ;;  %v2578_v30 = vpack.c.bf16 %v1696_v20, %v1696_v20  ;;  %v1074_v31 = vadd.f32 %v3027_v9, %v1073_v27  ;;  %v1699_v32 = vadd.f32 %v3032_v10, %v1698_v28 }
 0x1f9   : > { %1428 = vst.msk [vmem:[%s3040_s19 + $0xd8] sm:$0xf] %vm1373_vm1, %v2516_v23  ;;  %v2517_v33 = vpack.c.bf16 %v1082_v25, %v1082_v25  ;;  %v2581_v34 = vpack.c.bf16 %v1707_v26, %v1707_v26 }
 0x1fa   : > { %2053 = vst.msk [vmem:[%s3045_s22 + $0xd8] sm:$0xf] %vm1998_vm2, %v2580_v24  ;;  %2051 = vst.msk [vmem:[%s3045_s22 + $0xd0] sm:$0xf] %vm1998_vm2, %v2578_v30  ;;  %v2515_v35 = vpack.c.bf16 %v1074_v31, %v1074_v31  ;;  %v2579_v36 = vpack.c.bf16 %v1699_v32, %v1699_v32 }
 0x1fb   : > { %1426 = vst.msk [vmem:[%s3040_s19 + $0xd0] sm:$0xf] %vm1373_vm1, %v2514_v29  ;;  %1429 = vst.msk [vmem:[%s3040_s19 + $0xdc] sm:$0xf] %vm1373_vm1, %v2517_v33 }
 0x1fc   : > { %2054 = vst.msk [vmem:[%s3045_s22 + $0xdc] sm:$0xf] %vm1998_vm2, %v2581_v34  ;;  %2052 = vst.msk [vmem:[%s3045_s22 + $0xd4] sm:$0xf] %vm1998_vm2, %v2579_v36  ;;  %v2716_v37 = vpop.f32.mrb[60].mxu0  ;;  %v2782_v38 = vpop.f32.mrb[60].mxu1 }
 0x1fd   : > { %1427 = vst.msk [vmem:[%s3040_s19 + $0xd4] sm:$0xf] %vm1373_vm1, %v2515_v35  ;;  %v1095_v39 = vadd.f32 %v2716_v37, %v3027_v9  ;;  %v1720_v40 = vadd.f32 %v2782_v38, %v3032_v10  ;;  %v1086_v41 = vpop.f32.mrb[61].mxu0  ;;  %v1711_v42 = vpop.f32.mrb[61].mxu1 }
 0x1fe   : > { %v1087_v43 = vadd.f32 %v3027_v9, %v1086_v41  ;;  %v1712_v44 = vadd.f32 %v3032_v10, %v1711_v42  ;;  %v2717_v45 = vpop.f32.mrb[62].mxu0  ;;  %v2783_v46 = vpop.f32.mrb[62].mxu1 }
 0x1ff   : > { %v2520_v47 = vpack.c.bf16 %v1095_v39, %v1095_v39  ;;  %v2584_v48 = vpack.c.bf16 %v1720_v40, %v1720_v40  ;;  %v1098_v49 = vadd.f32 %v2717_v45, %v3027_v9  ;;  %v1723_v50 = vadd.f32 %v2783_v46, %v3032_v10  ;;  %v1089_v51 = vpop.f32.mrb[63].mxu0  ;;  %v1714_v52 = vpop.f32.mrb[63].mxu1 }
 0x200   : > { %v2518_v53 = vpack.c.bf16 %v1087_v43, %v1087_v43  ;;  %v2582_v54 = vpack.c.bf16 %v1712_v44, %v1712_v44  ;;  %v1090_v55 = vadd.f32 %v3027_v9, %v1089_v51  ;;  %v1715_v56 = vadd.f32 %v3032_v10, %v1714_v52 }
 0x201   : > { %1432 = vst.msk [vmem:[%s3040_s19 + $0xe8] sm:$0xf] %vm1373_vm1, %v2520_v47  ;;  %v2521_v57 = vpack.c.bf16 %v1098_v49, %v1098_v49  ;;  %v2585_v58 = vpack.c.bf16 %v1723_v50, %v1723_v50 }
 0x202   : > { %2057 = vst.msk [vmem:[%s3045_s22 + $0xe8] sm:$0xf] %vm1998_vm2, %v2584_v48  ;;  %2055 = vst.msk [vmem:[%s3045_s22 + $0xe0] sm:$0xf] %vm1998_vm2, %v2582_v54  ;;  %v2519_v59 = vpack.c.bf16 %v1090_v55, %v1090_v55  ;;  %v2583_v60 = vpack.c.bf16 %v1715_v56, %v1715_v56 }
 0x203   : > { %1430 = vst.msk [vmem:[%s3040_s19 + $0xe0] sm:$0xf] %vm1373_vm1, %v2518_v53  ;;  %1433 = vst.msk [vmem:[%s3040_s19 + $0xec] sm:$0xf] %vm1373_vm1, %v2521_v57 }
 0x204   : > { %2058 = vst.msk [vmem:[%s3045_s22 + $0xec] sm:$0xf] %vm1998_vm2, %v2585_v58  ;;  %2056 = vst.msk [vmem:[%s3045_s22 + $0xe4] sm:$0xf] %vm1998_vm2, %v2583_v60  ;;  %v2720_v61 = vpop.f32.mrb[64].mxu0  ;;  %v2786_v62 = vpop.f32.mrb[64].mxu1 }
 0x205   : > { %1431 = vst.msk [vmem:[%s3040_s19 + $0xe4] sm:$0xf] %vm1373_vm1, %v2519_v59  ;;  %v1111_v63 = vadd.f32 %v2720_v61, %v3027_v9  ;;  %v1736_v0 = vadd.f32 %v2786_v62, %v3032_v10  ;;  %v1102_v1 = vpop.f32.mrb[65].mxu0  ;;  %v1727_v2 = vpop.f32.mrb[65].mxu1 }
 0x206   : > { %v1103_v3 = vadd.f32 %v3027_v9, %v1102_v1  ;;  %v1728_v4 = vadd.f32 %v3032_v10, %v1727_v2  ;;  %v2721_v5 = vpop.f32.mrb[66].mxu0  ;;  %v2787_v6 = vpop.f32.mrb[66].mxu1 }
 0x207   : > { %v2524_v7 = vpack.c.bf16 %v1111_v63, %v1111_v63  ;;  %v2588_v8 = vpack.c.bf16 %v1736_v0, %v1736_v0  ;;  %v1114_v11 = vadd.f32 %v2721_v5, %v3027_v9  ;;  %v1739_v12 = vadd.f32 %v2787_v6, %v3032_v10  ;;  %v1105_v13 = vpop.f32.mrb[67].mxu0  ;;  %v1730_v14 = vpop.f32.mrb[67].mxu1 }
 0x208   : > { %v2522_v15 = vpack.c.bf16 %v1103_v3, %v1103_v3  ;;  %v2586_v16 = vpack.c.bf16 %v1728_v4, %v1728_v4  ;;  %v1106_v17 = vadd.f32 %v3027_v9, %v1105_v13  ;;  %v1731_v18 = vadd.f32 %v3032_v10, %v1730_v14 }
 0x209   : > { %1436 = vst.msk [vmem:[%s3040_s19 + $0xf8] sm:$0xf] %vm1373_vm1, %v2524_v7  ;;  %v2525_v19 = vpack.c.bf16 %v1114_v11, %v1114_v11  ;;  %v2589_v20 = vpack.c.bf16 %v1739_v12, %v1739_v12 }
 0x20a   : > { %2061 = vst.msk [vmem:[%s3045_s22 + $0xf8] sm:$0xf] %vm1998_vm2, %v2588_v8  ;;  %2059 = vst.msk [vmem:[%s3045_s22 + $0xf0] sm:$0xf] %vm1998_vm2, %v2586_v16  ;;  %v2523_v21 = vpack.c.bf16 %v1106_v17, %v1106_v17  ;;  %v2587_v22 = vpack.c.bf16 %v1731_v18, %v1731_v18 }
 0x20b   : > { %1434 = vst.msk [vmem:[%s3040_s19 + $0xf0] sm:$0xf] %vm1373_vm1, %v2522_v15  ;;  %1437 = vst.msk [vmem:[%s3040_s19 + $0xfc] sm:$0xf] %vm1373_vm1, %v2525_v19 }
 0x20c   : > { %2062 = vst.msk [vmem:[%s3045_s22 + $0xfc] sm:$0xf] %vm1998_vm2, %v2589_v20  ;;  %2060 = vst.msk [vmem:[%s3045_s22 + $0xf4] sm:$0xf] %vm1998_vm2, %v2587_v22 }
 0x20d   : > { %1435 = vst.msk [vmem:[%s3040_s19 + $0xf4] sm:$0xf] %vm1373_vm1, %v2523_v21 }
 0x20e PF: > { %s20_s11 = sadd.s32 1, %s2840_s11   ;;  %s3448_s30 = smov %s2836_s10 }
 0x20f   : > { %p17_p5 = scmp.ge.s32.totalorder %s20_s11, 4   ;;  %s3449_s10 = smov %s3451_s12 }
 0x211   :  { %19 = sbr.rel (!%p17_p5) target bundleno = 2 (0x2), region = 102 }

// kernel: pam_module_3d_forward.3
= control target key start
LH: loop header
LB: loop body
LE: loop exit
PB: predicated region body
PF: predicated region fallthrough
CT: control target
= control target key end

     0   :  { %s7378_s20 = smov 0   ;;  %s7380_s21 = smov 0   ;;  %s10908_s0 = inlined_call_operand.vmem [shape: bf16[2,512,2], index: 0, kind: input, shape index: {}]   ;;  %s10909_s1 = inlined_call_operand.vmem [shape: bf16[2,2,512], index: 1, kind: input, shape index: {}]   ;;  %s10910_s2 = inlined_call_operand.vmem [shape: bf16[2,512,16], index: 2, kind: input, shape index: {}]   ;;  %s10911_s3 = inlined_call_operand.vmem [shape: f32[2,16,512], index: 3, kind: input, shape index: {}]   ;;  %s10912_s4 = inlined_call_operand.<no memory space> [shape: f32[1,1], index: 4, kind: input, shape index: {}]   ;;  %s10913_s5 = inlined_call_operand.vmem [shape: f32[2,16,512], index: 5, kind: output, shape index: {}]  }
   0x1   :  { %10 = sst [smem:[#allocation5]] %s10912_s4  ;;  %s7382_s22 = smov 0  }
   0x2 LB: > { %s35_s4 = sadd.s32 1, %s7335_s21  ;;  %p6564_p0 = scmp.ge.s32.totalorder %s7339_s22, 1  ;;  %s7339_s22 = sphi %s7382_s22, %s16_s22   ;;  %s7335_s21 = sphi %s7380_s21, %s12261_s21   ;;  %s7331_s20 = sphi %s7378_s20, %s12260_s20  }
   0x3   : > { %p37_p1 = scmp.ge.s32.totalorder %s35_s4, 2  ;;  %p266_p2 = scmp.lt.s32.totalorder %s7339_s22, 3 }
   0x5   : > { %s12263_s4 = smov (%p37_p1, %s35_s4), 0  ;;  %p267_p3 = pnand %p6564_p0, %p266_p2 }
   0x7   : > { %270 = sbr.rel (%p267_p3) target bundleno = 3120 (0xc30), region = 40 }
   0xe   : > { %p329_p4 = scmp.lt.s32.totalorder %s7331_s20, 1  ;;  %v813_v0 = vlaneseq  ;;  %v7341_v1 = vmov 1966171168   ;;  %v10916_v3 = vmov 0   ;;  %vm923_vm0 = vcmask 1040384   ;;  %s6385_s9 = sld [smem:[#allocation5]] }
   0xf   : > { %v811_v2 = vunpack.c.l.s4 %v7341_v1  ;;  %968 = vmatprep.mubr.bf16.mxu0 %v10916_v3  ;;  %1321 = vmatprep.mubr.bf16.mxu1 %v10916_v3  ;;  %vm826_vm1 = vcmask 15360   ;;  %vm382_vm2 = vcmask 7168   ;;  %v7343_v1 = vmov -inf  }
  0x10   : > { %s12265_s20 = smov (!%p329_p4, %s7331_s20), 1  ;;  %v814_v4 = vshrl.u32 %v813_v0, 7  ;;  %6740 = vset.pattern.permute.xlu1 %v10916_v3  ;;  %6739 = vset.pattern.permute.xlu0 %v10916_v3  ;;  %383 = vst.msk [vmem:[#allocation2] sm:$0xff] %vm382_vm2, %v7343_v1  ;;  %384 = vst.msk [vmem:[#allocation2 + $0x8] sm:$0xff] %vm382_vm2, %v7343_v1  ;;  %vm511_vm3 = vcmask 130048  }
  0x11   : > { %v812_v5 = vunpack.c.0.s8 %v811_v2  ;;  %s6707_s23 = sshll.u32 %s12265_s20, 8  ;;  %s6567_s24 = sshll.u32 %s12265_s20, 2  ;;  %385 = vst.msk [vmem:[#allocation2 + $0x10] sm:$0xff] %vm382_vm2, %v7343_v1  ;;  %386 = vst.msk [vmem:[#allocation2 + $0x18] sm:$0xff] %vm382_vm2, %v7343_v1 }
  0x12   : > { %s345_s27 = scalar_lea.vmem %s10909_s1, %s6567_s24  ;;  %s7412_s30 = scalar_lea.vmem %s10908_s0, %s6707_s23  ;;  %387 = vst.msk [vmem:[#allocation2 + $0x20] sm:$0xff] %vm382_vm2, %v7343_v1  ;;  %388 = vst.msk [vmem:[#allocation2 + $0x28] sm:$0xff] %vm382_vm2, %v7343_v1 }
  0x13   : > { %v815_v6 = vsub.s32 %v812_v5, %v814_v4  ;;  %v6606_v7 = vld.sshfl [vmem:[%s345_s27] sm:$0x33 pattern:$0x75316420]  ;;  %v6742_v16 = vld [vmem:[%s7412_s30 + $0x8] sm:$0xff]   ;;  %v6743_v17 = vld [vmem:[%s7412_s30 + $0x10] sm:$0xff]   ;;  %s7432_s8 = scalar_lea.vmem %s10910_s2, %s6707_s23 }
  0x14   : > { %v809_v8 = vcombine.high %v6606_v7, %v6606_v7  ;;  %v6741_v15 = vld [vmem:[%s7412_s30] sm:$0xff]   ;;  %v6744_v18 = vld [vmem:[%s7412_s30 + $0x18] sm:$0xff]   ;;  %v6746_v20 = vld [vmem:[%s7412_s30 + $0x28] sm:$0xff]   ;;  %389 = vst.msk [vmem:[#allocation2 + $0x30] sm:$0xff] %vm382_vm2, %v7343_v1  ;;  %s6709_s10 = sshll.u32 %s12265_s20, 6 }
  0x15   : > { %v816_v9 = vrot.slane %v6606_v7, %v815_v6  ;;  %v6745_v19 = vld [vmem:[%s7412_s30 + $0x20] sm:$0xff]   ;;  %v6747_v21 = vld [vmem:[%s7412_s30 + $0x30] sm:$0xff]   ;;  %v6748_v22 = vld [vmem:[%s7412_s30 + $0x38] sm:$0xff]   ;;  %390 = vst.msk [vmem:[#allocation2 + $0x38] sm:$0xff] %vm382_vm2, %v7343_v1  ;;  %s10849_s13 = scalar_lea.vmem %s10911_s3, %s6709_s10  ;;  %s10859_s16 = scalar_lea.vmem %s10913_s5, %s6709_s10 }
  0x16   : > { %v823_v10 = vrot.slane %v809_v8, %v815_v6  ;;  %v6749_v23 = vld [vmem:[%s7412_s30 + $0x40] sm:$0xff]   ;;  %v6750_v24 = vld [vmem:[%s7412_s30 + $0x48] sm:$0xff]   ;;  %v6751_v25 = vld [vmem:[%s7412_s30 + $0x50] sm:$0xff]   ;;  %391 = vst.msk [vmem:[#allocation2 + $0x40] sm:$0xff] %vm382_vm2, %v7343_v1 }
  0x17   : > { %v925_v11 = vsel %vm923_vm0, %v816_v9, 0  ;;  %v824_v12 = vcombine.high %v816_v9, %v816_v9  ;;  %v6752_v26 = vld [vmem:[%s7412_s30 + $0x58] sm:$0xff]   ;;  %v6753_v27 = vld [vmem:[%s7412_s30 + $0x60] sm:$0xff]   ;;  %v6754_v28 = vld [vmem:[%s7412_s30 + $0x68] sm:$0xff]   ;;  %392 = vst.msk [vmem:[#allocation2 + $0x48] sm:$0xff] %vm382_vm2, %v7343_v1 }
  0x18   : > { %6607 = vmatprep.subr.msk.bf16.mxu0 %vm923_vm0, %v823_v10  ;;  %v825_v13 = vcombine.high %v823_v10, %v823_v10  ;;  %v6755_v29 = vld [vmem:[%s7412_s30 + $0x70] sm:$0xff]   ;;  %v6756_v30 = vld [vmem:[%s7412_s30 + $0x78] sm:$0xff]   ;;  %v6757_v31 = vld [vmem:[%s7412_s30 + $0x80] sm:$0xff]   ;;  %393 = vst.msk [vmem:[#allocation2 + $0x50] sm:$0xff] %vm382_vm2, %v7343_v1 }
  0x19   : > { %v931_v14 = vsel %vm923_vm0, %v824_v12, 0  ;;  %937 = vmatpush1.bf16.msra.mxu0 %v925_v11  ;;  %v6758_v32 = vld [vmem:[%s7412_s30 + $0x88] sm:$0xff]   ;;  %v6759_v33 = vld [vmem:[%s7412_s30 + $0x90] sm:$0xff]   ;;  %v6760_v34 = vld [vmem:[%s7412_s30 + $0x98] sm:$0xff]   ;;  %394 = vst.msk [vmem:[#allocation2 + $0x58] sm:$0xff] %vm382_vm2, %v7343_v1 }
  0x1a   : > { %6640 = vmatprep.subr.msk.bf16.mxu1 %vm923_vm0, %v825_v13  ;;  %4907 = vmatprep.subr.bf16.mxu0 %v10916_v3  ;;  %v6761_v35 = vld [vmem:[%s7412_s30 + $0xa0] sm:$0xff]   ;;  %v6762_v36 = vld [vmem:[%s7412_s30 + $0xa8] sm:$0xff]   ;;  %v6763_v37 = vld [vmem:[%s7412_s30 + $0xb0] sm:$0xff]   ;;  %395 = vst.msk [vmem:[#allocation2 + $0x60] sm:$0xff] %vm382_vm2, %v7343_v1 }
  0x1b   : > { %1290 = vmatpush1.bf16.msra.mxu1 %v931_v14  ;;  %396 = vst.msk [vmem:[#allocation2 + $0x68] sm:$0xff] %vm382_vm2, %v7343_v1  ;;  %397 = vst.msk [vmem:[#allocation2 + $0x70] sm:$0xff] %vm382_vm2, %v7343_v1 }
  0x1c   : > { %6608 = vmatmul.mubr.msk.bf16.vlgmr.msra.gmra.mrb[0].mxu0 %vm826_vm1, %v6741_v15  ;;  %5196 = vmatprep.subr.bf16.mxu1 %v10916_v3  ;;  %398 = vst.msk [vmem:[#allocation2 + $0x78] sm:$0xff] %vm382_vm2, %v7343_v1  ;;  %399 = vst.msk [vmem:[#allocation2 + $0x80] sm:$0xff] %vm382_vm2, %v7343_v1 }
  0x1d   : > { %978 = vmatprep.mubr.bf16.mxu0 %v10916_v3  ;;  %400 = vst.msk [vmem:[#allocation2 + $0x88] sm:$0xff] %vm382_vm2, %v7343_v1  ;;  %401 = vst.msk [vmem:[#allocation2 + $0x90] sm:$0xff] %vm382_vm2, %v7343_v1 }
  0x1e   : > { %6641 = vmatmul.mubr.msk.bf16.vlgmr.msra.gmra.mrb[0].mxu1 %vm826_vm1, %v6741_v15  ;;  %402 = vst.msk [vmem:[#allocation2 + $0x98] sm:$0xff] %vm382_vm2, %v7343_v1  ;;  %403 = vst.msk [vmem:[#allocation2 + $0xa0] sm:$0xff] %vm382_vm2, %v7343_v1 }
  0x1f   : > { %1331 = vmatprep.mubr.bf16.mxu1 %v10916_v3  ;;  %404 = vst.msk [vmem:[#allocation2 + $0xa8] sm:$0xff] %vm382_vm2, %v7343_v1  ;;  %405 = vst.msk [vmem:[#allocation2 + $0xb0] sm:$0xff] %vm382_vm2, %v7343_v1 }
  0x20   : > { %406 = vst.msk [vmem:[#allocation2 + $0xb8] sm:$0xff] %vm382_vm2, %v7343_v1  ;;  %407 = vst.msk [vmem:[#allocation2 + $0xc0] sm:$0xff] %vm382_vm2, %v7343_v1 }
  0x21   : > { %408 = vst.msk [vmem:[#allocation2 + $0xc8] sm:$0xff] %vm382_vm2, %v7343_v1  ;;  %409 = vst.msk [vmem:[#allocation2 + $0xd0] sm:$0xff] %vm382_vm2, %v7343_v1 }
  0x22   : > { %410 = vst.msk [vmem:[#allocation2 + $0xd8] sm:$0xff] %vm382_vm2, %v7343_v1  ;;  %411 = vst.msk [vmem:[#allocation2 + $0xe0] sm:$0xff] %vm382_vm2, %v7343_v1 }
  0x23   : > { %412 = vst.msk [vmem:[#allocation2 + $0xe8] sm:$0xff] %vm382_vm2, %v7343_v1  ;;  %413 = vst.msk [vmem:[#allocation2 + $0xf0] sm:$0xff] %vm382_vm2, %v7343_v1 }
  0x24   : > { %6609 = vmatmul.mubr.msk.bf16.gmra.mrb[4].mxu0 %vm826_vm1, %v6742_v16  ;;  %414 = vst.msk [vmem:[#allocation2 + $0xf8] sm:$0xff] %vm382_vm2, %v7343_v1  ;;  %415 = vst.msk [vmem:[#allocation2 + $0x100] sm:$0xff] %vm382_vm2, %v7343_v1 }
  0x25   : > { %988 = vmatprep.mubr.bf16.mxu0 %v10916_v3  ;;  %416 = vst.msk [vmem:[#allocation2 + $0x108] sm:$0xff] %vm382_vm2, %v7343_v1  ;;  %417 = vst.msk [vmem:[#allocation2 + $0x110] sm:$0xff] %vm382_vm2, %v7343_v1 }
  0x26   : > { %6642 = vmatmul.mubr.msk.bf16.gmra.mrb[4].mxu1 %vm826_vm1, %v6742_v16  ;;  %418 = vst.msk [vmem:[#allocation2 + $0x118] sm:$0xff] %vm382_vm2, %v7343_v1  ;;  %419 = vst.msk [vmem:[#allocation2 + $0x120] sm:$0xff] %vm382_vm2, %v7343_v1 }
  0x27   : > { %1341 = vmatprep.mubr.bf16.mxu1 %v10916_v3  ;;  %420 = vst.msk [vmem:[#allocation2 + $0x128] sm:$0xff] %vm382_vm2, %v7343_v1  ;;  %421 = vst.msk [vmem:[#allocation2 + $0x130] sm:$0xff] %vm382_vm2, %v7343_v1 }
  0x28   : > { %422 = vst.msk [vmem:[#allocation2 + $0x138] sm:$0xff] %vm382_vm2, %v7343_v1  ;;  %423 = vst.msk [vmem:[#allocation2 + $0x140] sm:$0xff] %vm382_vm2, %v7343_v1 }
  0x29   : > { %424 = vst.msk [vmem:[#allocation2 + $0x148] sm:$0xff] %vm382_vm2, %v7343_v1  ;;  %425 = vst.msk [vmem:[#allocation2 + $0x150] sm:$0xff] %vm382_vm2, %v7343_v1 }
  0x2a   : > { %426 = vst.msk [vmem:[#allocation2 + $0x158] sm:$0xff] %vm382_vm2, %v7343_v1  ;;  %427 = vst.msk [vmem:[#allocation2 + $0x160] sm:$0xff] %vm382_vm2, %v7343_v1 }
  0x2b   : > { %428 = vst.msk [vmem:[#allocation2 + $0x168] sm:$0xff] %vm382_vm2, %v7343_v1  ;;  %429 = vst.msk [vmem:[#allocation2 + $0x170] sm:$0xff] %vm382_vm2, %v7343_v1 }
  0x2c   : > { %6610 = vmatmul.mubr.msk.bf16.gmra.mrb[8].mxu0 %vm826_vm1, %v6743_v17  ;;  %430 = vst.msk [vmem:[#allocation2 + $0x178] sm:$0xff] %vm382_vm2, %v7343_v1  ;;  %431 = vst.msk [vmem:[#allocation2 + $0x180] sm:$0xff] %vm382_vm2, %v7343_v1 }
  0x2d   : > { %998 = vmatprep.mubr.bf16.mxu0 %v10916_v3  ;;  %432 = vst.msk [vmem:[#allocation2 + $0x188] sm:$0xff] %vm382_vm2, %v7343_v1  ;;  %433 = vst.msk [vmem:[#allocation2 + $0x190] sm:$0xff] %vm382_vm2, %v7343_v1 }
  0x2e   : > { %6643 = vmatmul.mubr.msk.bf16.gmra.mrb[8].mxu1 %vm826_vm1, %v6743_v17  ;;  %434 = vst.msk [vmem:[#allocation2 + $0x198] sm:$0xff] %vm382_vm2, %v7343_v1  ;;  %435 = vst.msk [vmem:[#allocation2 + $0x1a0] sm:$0xff] %vm382_vm2, %v7343_v1  ;;  %v6764_v17 = vld [vmem:[%s7412_s30 + $0xb8] sm:$0xff]  }
  0x2f   : > { %1351 = vmatprep.mubr.bf16.mxu1 %v10916_v3  ;;  %436 = vst.msk [vmem:[#allocation2 + $0x1a8] sm:$0xff] %vm382_vm2, %v7343_v1  ;;  %437 = vst.msk [vmem:[#allocation2 + $0x1b0] sm:$0xff] %vm382_vm2, %v7343_v1 }
  0x30   : > { %438 = vst.msk [vmem:[#allocation2 + $0x1b8] sm:$0xff] %vm382_vm2, %v7343_v1  ;;  %439 = vst.msk [vmem:[#allocation2 + $0x1c0] sm:$0xff] %vm382_vm2, %v7343_v1 }
  0x31   : > { %440 = vst.msk [vmem:[#allocation2 + $0x1c8] sm:$0xff] %vm382_vm2, %v7343_v1  ;;  %441 = vst.msk [vmem:[#allocation2 + $0x1d0] sm:$0xff] %vm382_vm2, %v7343_v1 }
  0x32   : > { %442 = vst.msk [vmem:[#allocation2 + $0x1d8] sm:$0xff] %vm382_vm2, %v7343_v1  ;;  %443 = vst.msk [vmem:[#allocation2 + $0x1e0] sm:$0xff] %vm382_vm2, %v7343_v1 }
  0x33   : > { %444 = vst.msk [vmem:[#allocation2 + $0x1e8] sm:$0xff] %vm382_vm2, %v7343_v1  ;;  %445 = vst.msk [vmem:[#allocation2 + $0x1f0] sm:$0xff] %vm382_vm2, %v7343_v1 }
  0x34   : > { %6611 = vmatmul.mubr.msk.bf16.gmra.mrb[12].mxu0 %vm826_vm1, %v6744_v18  ;;  %446 = vst.msk [vmem:[#allocation2 + $0x1f8] sm:$0xff] %vm382_vm2, %v7343_v1 }
  0x35   : > { %1008 = vmatprep.mubr.bf16.mxu0 %v10916_v3 }
  0x36   : > { %6644 = vmatmul.mubr.msk.bf16.gmra.mrb[12].mxu1 %vm826_vm1, %v6744_v18 }
  0x37   : > { %1361 = vmatprep.mubr.bf16.mxu1 %v10916_v3 }
  0x3c   : > { %6612 = vmatmul.mubr.msk.bf16.gmra.mrb[16].mxu0 %vm826_vm1, %v6745_v19 }
  0x3d   : > { %1018 = vmatprep.mubr.bf16.mxu0 %v10916_v3 }
  0x3e   : > { %6645 = vmatmul.mubr.msk.bf16.gmra.mrb[16].mxu1 %vm826_vm1, %v6745_v19 }
  0x3f   : > { %1371 = vmatprep.mubr.bf16.mxu1 %v10916_v3 }
  0x44   : > { %6613 = vmatmul.mubr.msk.bf16.gmra.mrb[20].mxu0 %vm826_vm1, %v6746_v20 }
  0x45   : > { %1028 = vmatprep.mubr.bf16.mxu0 %v10916_v3 }
  0x46   : > { %6646 = vmatmul.mubr.msk.bf16.gmra.mrb[20].mxu1 %vm826_vm1, %v6746_v20 }
  0x47   : > { %1381 = vmatprep.mubr.bf16.mxu1 %v10916_v3 }
  0x4c   : > { %6614 = vmatmul.mubr.msk.bf16.gmra.mrb[24].mxu0 %vm826_vm1, %v6747_v21 }
  0x4d   : > { %1038 = vmatprep.mubr.bf16.mxu0 %v10916_v3 }
  0x4e   : > { %6647 = vmatmul.mubr.msk.bf16.gmra.mrb[24].mxu1 %vm826_vm1, %v6747_v21 }
  0x4f   : > { %1391 = vmatprep.mubr.bf16.mxu1 %v10916_v3 }
  0x54   : > { %6615 = vmatmul.mubr.msk.bf16.gmra.mrb[28].mxu0 %vm826_vm1, %v6748_v22 }
  0x55   : > { %1048 = vmatprep.mubr.bf16.mxu0 %v10916_v3 }
  0x56   : > { %6648 = vmatmul.mubr.msk.bf16.gmra.mrb[28].mxu1 %vm826_vm1, %v6748_v22 }
  0x57   : > { %1401 = vmatprep.mubr.bf16.mxu1 %v10916_v3 }
  0x5c   : > { %6616 = vmatmul.mubr.msk.bf16.gmra.mrb[32].mxu0 %vm826_vm1, %v6749_v23 }
  0x5d   : > { %1058 = vmatprep.mubr.bf16.mxu0 %v10916_v3 }
  0x5e   : > { %6649 = vmatmul.mubr.msk.bf16.gmra.mrb[32].mxu1 %vm826_vm1, %v6749_v23 }
  0x5f   : > { %1411 = vmatprep.mubr.bf16.mxu1 %v10916_v3 }
  0x64   : > { %6617 = vmatmul.mubr.msk.bf16.gmra.mrb[36].mxu0 %vm826_vm1, %v6750_v24 }
  0x65   : > { %1068 = vmatprep.mubr.bf16.mxu0 %v10916_v3 }
  0x66   : > { %6650 = vmatmul.mubr.msk.bf16.gmra.mrb[36].mxu1 %vm826_vm1, %v6750_v24 }
  0x67   : > { %1421 = vmatprep.mubr.bf16.mxu1 %v10916_v3 }
  0x6c   : > { %6618 = vmatmul.mubr.msk.bf16.gmra.mrb[40].mxu0 %vm826_vm1, %v6751_v25 }
  0x6d   : > { %1078 = vmatprep.mubr.bf16.mxu0 %v10916_v3 }
  0x6e   : > { %6651 = vmatmul.mubr.msk.bf16.gmra.mrb[40].mxu1 %vm826_vm1, %v6751_v25 }
  0x6f   : > { %1431 = vmatprep.mubr.bf16.mxu1 %v10916_v3 }
  0x74   : > { %6619 = vmatmul.mubr.msk.bf16.gmra.mrb[44].mxu0 %vm826_vm1, %v6752_v26 }
  0x75   : > { %1088 = vmatprep.mubr.bf16.mxu0 %v10916_v3 }
  0x76   : > { %6652 = vmatmul.mubr.msk.bf16.gmra.mrb[44].mxu1 %vm826_vm1, %v6752_v26 }
  0x77   : > { %1441 = vmatprep.mubr.bf16.mxu1 %v10916_v3 }
  0x7c   : > { %6620 = vmatmul.mubr.msk.bf16.gmra.mrb[48].mxu0 %vm826_vm1, %v6753_v27 }
  0x7d   : > { %1098 = vmatprep.mubr.bf16.mxu0 %v10916_v3 }
  0x7e   : > { %6653 = vmatmul.mubr.msk.bf16.gmra.mrb[48].mxu1 %vm826_vm1, %v6753_v27 }
  0x7f   : > { %1451 = vmatprep.mubr.bf16.mxu1 %v10916_v3 }
  0x84   : > { %6621 = vmatmul.mubr.msk.bf16.gmra.mrb[52].mxu0 %vm826_vm1, %v6754_v28 }
  0x85   : > { %1108 = vmatprep.mubr.bf16.mxu0 %v10916_v3 }
  0x86   : > { %6654 = vmatmul.mubr.msk.bf16.gmra.mrb[52].mxu1 %vm826_vm1, %v6754_v28 }
  0x87   : > { %1461 = vmatprep.mubr.bf16.mxu1 %v10916_v3 }
  0x8c   : > { %6622 = vmatmul.mubr.msk.bf16.gmra.mrb[56].mxu0 %vm826_vm1, %v6755_v29 }
  0x8d   : > { %1118 = vmatprep.mubr.bf16.mxu0 %v10916_v3 }
  0x8e   : > { %6655 = vmatmul.mubr.msk.bf16.gmra.mrb[56].mxu1 %vm826_vm1, %v6755_v29 }
  0x8f   : > { %1471 = vmatprep.mubr.bf16.mxu1 %v10916_v3 }
  0x94   : > { %6623 = vmatmul.mubr.msk.bf16.gmra.mrb[60].mxu0 %vm826_vm1, %v6756_v30 }
  0x95   : > { %1128 = vmatprep.mubr.bf16.mxu0 %v10916_v3 }
  0x96   : > { %6656 = vmatmul.mubr.msk.bf16.gmra.mrb[60].mxu1 %vm826_vm1, %v6756_v30 }
  0x97   : > { %1481 = vmatprep.mubr.bf16.mxu1 %v10916_v3 }
  0x9c   : > { %6624 = vmatmul.mubr.msk.bf16.gmra.mrb[64].mxu0 %vm826_vm1, %v6757_v31 }
  0x9d   : > { %1138 = vmatprep.mubr.bf16.mxu0 %v10916_v3 }
  0x9e   : > { %6657 = vmatmul.mubr.msk.bf16.gmra.mrb[64].mxu1 %vm826_vm1, %v6757_v31 }
  0x9f   : > { %1491 = vmatprep.mubr.bf16.mxu1 %v10916_v3 }
  0xa4   : > { %6625 = vmatmul.mubr.msk.bf16.gmra.mrb[68].mxu0 %vm826_vm1, %v6758_v32 }
  0xa5   : > { %1148 = vmatprep.mubr.bf16.mxu0 %v10916_v3 }
  0xa6   : > { %6658 = vmatmul.mubr.msk.bf16.gmra.mrb[68].mxu1 %vm826_vm1, %v6758_v32 }
  0xa7   : > { %1501 = vmatprep.mubr.bf16.mxu1 %v10916_v3 }
  0xac   : > { %6626 = vmatmul.mubr.msk.bf16.gmra.mrb[72].mxu0 %vm826_vm1, %v6759_v33 }
  0xad   : > { %1158 = vmatprep.mubr.bf16.mxu0 %v10916_v3 }
  0xae   : > { %6659 = vmatmul.mubr.msk.bf16.gmra.mrb[72].mxu1 %vm826_vm1, %v6759_v33 }
  0xaf   : > { %1511 = vmatprep.mubr.bf16.mxu1 %v10916_v3 }
  0xb4   : > { %6627 = vmatmul.mubr.msk.bf16.gmra.mrb[76].mxu0 %vm826_vm1, %v6760_v34 }
  0xb5   : > { %1168 = vmatprep.mubr.bf16.mxu0 %v10916_v3 }
  0xb6   : > { %6660 = vmatmul.mubr.msk.bf16.gmra.mrb[76].mxu1 %vm826_vm1, %v6760_v34 }
  0xb7   : > { %1521 = vmatprep.mubr.bf16.mxu1 %v10916_v3 }
  0xbc   : > { %6628 = vmatmul.mubr.msk.bf16.gmra.mrb[80].mxu0 %vm826_vm1, %v6761_v35 }
  0xbd   : > { %1178 = vmatprep.mubr.bf16.mxu0 %v10916_v3 }
  0xbe   : > { %6661 = vmatmul.mubr.msk.bf16.gmra.mrb[80].mxu1 %vm826_vm1, %v6761_v35 }
  0xbf   : > { %1531 = vmatprep.mubr.bf16.mxu1 %v10916_v3 }
  0xc4   : > { %6629 = vmatmul.mubr.msk.bf16.gmra.mrb[84].mxu0 %vm826_vm1, %v6762_v36 }
  0xc5   : > { %1188 = vmatprep.mubr.bf16.mxu0 %v10916_v3 }
  0xc6   : > { %6662 = vmatmul.mubr.msk.bf16.gmra.mrb[84].mxu1 %vm826_vm1, %v6762_v36 }
  0xc7   : > { %1541 = vmatprep.mubr.bf16.mxu1 %v10916_v3 }
  0xcc   : > { %6630 = vmatmul.mubr.msk.bf16.gmra.mrb[88].mxu0 %vm826_vm1, %v6763_v37 }
  0xcd   : > { %1198 = vmatprep.mubr.bf16.mxu0 %v10916_v3 }
  0xce   : > { %6663 = vmatmul.mubr.msk.bf16.gmra.mrb[88].mxu1 %vm826_vm1, %v6763_v37 }
  0xcf   : > { %1551 = vmatprep.mubr.bf16.mxu1 %v10916_v3 }
  0xd4   : > { %6631 = vmatmul.mubr.msk.bf16.gmra.mrb[92].mxu0 %vm826_vm1, %v6764_v17 }
  0xd5   : > { %1208 = vmatprep.mubr.bf16.mxu0 %v10916_v3 }
  0xd6   : > { %6664 = vmatmul.mubr.msk.bf16.gmra.mrb[92].mxu1 %vm826_vm1, %v6764_v17 }
  0xd7   : > { %1561 = vmatprep.mubr.bf16.mxu1 %v10916_v3 }
  0xef   : > { %v7538_v38 = vpop.f32.mrb[0].mxu0 }
  0xf0   : > { %v7540_v39 = vpop.f32.mrb[1].mxu0 }
  0xf1   : > { %v1706_v40 = vmax.f32 %v7538_v38, %v7540_v39  ;;  %v7544_v41 = vpop.f32.mrb[2].mxu0  ;;  %v7546_v42 = vpop.f32.mrb[0].mxu1 }
  0xf2   : > { %v7548_v43 = vpop.f32.mrb[3].mxu0  ;;  %v7550_v44 = vpop.f32.mrb[1].mxu1 }
  0xf3   : > { %v1707_v45 = vmax.f32 %v1706_v40, %v7546_v42  ;;  %v1711_v46 = vmax.f32 %v7544_v41, %v7548_v43  ;;  %v7555_v47 = vpop.f32.mrb[2].mxu1  ;;  %v10914_v40 = vmov 0.0  }
  0xf4   : > { %v7557_v48 = vpop.f32.mrb[3].mxu1  ;;  %447 = vst.msk [vmem:[#allocation3] sm:$0xff] %vm382_vm2, %v10914_v40  ;;  %448 = vst.msk [vmem:[#allocation3 + $0x8] sm:$0xff] %vm382_vm2, %v10914_v40 }
  0xf5   : > { %v1712_v49 = vmax.f32 %v1711_v46, %v7555_v47  ;;  %v1708_v50 = vmax.f32 %v1707_v45, %v7550_v44  ;;  %449 = vst.msk [vmem:[#allocation3 + $0x10] sm:$0xff] %vm382_vm2, %v10914_v40  ;;  %450 = vst.msk [vmem:[#allocation3 + $0x18] sm:$0xff] %vm382_vm2, %v10914_v40 }
  0xf6   : > { %451 = vst.msk [vmem:[#allocation3 + $0x20] sm:$0xff] %vm382_vm2, %v10914_v40  ;;  %452 = vst.msk [vmem:[#allocation3 + $0x28] sm:$0xff] %vm382_vm2, %v10914_v40 }
  0xf7   : > { %1709 = vmax.xlane.f32.xlu0 %v1708_v50  ;;  %v7561_v51 = vpop.f32.mrb[4].mxu0  ;;  %v1713_v52 = vmax.f32 %v1712_v49, %v7557_v48  ;;  %453 = vst.msk [vmem:[#allocation3 + $0x30] sm:$0xff] %vm382_vm2, %v10914_v40  ;;  %454 = vst.msk [vmem:[#allocation3 + $0x38] sm:$0xff] %vm382_vm2, %v10914_v40 }
  0xf8   : > { %v7564_v53 = vpop.f32.mrb[5].mxu0  ;;  %455 = vst.msk [vmem:[#allocation3 + $0x40] sm:$0xff] %vm382_vm2, %v10914_v40  ;;  %456 = vst.msk [vmem:[#allocation3 + $0x48] sm:$0xff] %vm382_vm2, %v10914_v40 }
  0xf9   : > { %v1716_v54 = vmax.f32 %v7561_v51, %v7564_v53  ;;  %v7568_v55 = vpop.f32.mrb[6].mxu0  ;;  %v7570_v56 = vpop.f32.mrb[4].mxu1  ;;  %457 = vst.msk [vmem:[#allocation3 + $0x50] sm:$0xff] %vm382_vm2, %v10914_v40  ;;  %458 = vst.msk [vmem:[#allocation3 + $0x58] sm:$0xff] %vm382_vm2, %v10914_v40 }
  0xfa   : > { %v7572_v57 = vpop.f32.mrb[7].mxu0  ;;  %v7574_v58 = vpop.f32.mrb[5].mxu1  ;;  %459 = vst.msk [vmem:[#allocation3 + $0x60] sm:$0xff] %vm382_vm2, %v10914_v40  ;;  %460 = vst.msk [vmem:[#allocation3 + $0x68] sm:$0xff] %vm382_vm2, %v10914_v40 }
  0xfb   : > { %v7577_v59 = vmax.f32 %v1716_v54, %v7570_v56  ;;  %v1721_v60 = vmax.f32 %v7568_v55, %v7572_v57  ;;  %v7581_v61 = vpop.f32.mrb[6].mxu1  ;;  %1714 = vmax.xlane.f32.xlu0 %v1713_v52  ;;  %461 = vst.msk [vmem:[#allocation3 + $0x70] sm:$0xff] %vm382_vm2, %v10914_v40  ;;  %462 = vst.msk [vmem:[#allocation3 + $0x78] sm:$0xff] %vm382_vm2, %v10914_v40 }
  0xfc   : > { %v7583_v62 = vpop.f32.mrb[7].mxu1  ;;  %463 = vst.msk [vmem:[#allocation3 + $0x80] sm:$0xff] %vm382_vm2, %v10914_v40  ;;  %464 = vst.msk [vmem:[#allocation3 + $0x88] sm:$0xff] %vm382_vm2, %v10914_v40 }
  0xfd   : > { %v7586_v63 = vmax.f32 %v1721_v60, %v7581_v61  ;;  %v1718_v0 = vmax.f32 %v7577_v59, %v7574_v58  ;;  %465 = vst.msk [vmem:[#allocation3 + $0x90] sm:$0xff] %vm382_vm2, %v10914_v40  ;;  %466 = vst.msk [vmem:[#allocation3 + $0x98] sm:$0xff] %vm382_vm2, %v10914_v40 }
  0xfe   : > { %467 = vst.msk [vmem:[#allocation3 + $0xa0] sm:$0xff] %vm382_vm2, %v10914_v40  ;;  %468 = vst.msk [vmem:[#allocation3 + $0xa8] sm:$0xff] %vm382_vm2, %v10914_v40 }
  0xff   : > { %1719 = vmax.xlane.f32.xlu1 %v1718_v0  ;;  %v7721_v2 = vpop.f32.mrb[8].mxu0  ;;  %v1723_v4 = vmax.f32 %v7586_v63, %v7583_v62  ;;  %469 = vst.msk [vmem:[#allocation3 + $0xb0] sm:$0xff] %vm382_vm2, %v10914_v40  ;;  %470 = vst.msk [vmem:[#allocation3 + $0xb8] sm:$0xff] %vm382_vm2, %v10914_v40 }
 0x100   : > { %v7725_v5 = vpop.f32.mrb[9].mxu0  ;;  %471 = vst.msk [vmem:[#allocation3 + $0xc0] sm:$0xff] %vm382_vm2, %v10914_v40  ;;  %472 = vst.msk [vmem:[#allocation3 + $0xc8] sm:$0xff] %vm382_vm2, %v10914_v40 }
 0x101   : > { %v1726_v6 = vmax.f32 %v7721_v2, %v7725_v5  ;;  %v7729_v7 = vpop.f32.mrb[10].mxu0  ;;  %v7731_v8 = vpop.f32.mrb[8].mxu1  ;;  %473 = vst.msk [vmem:[#allocation3 + $0xd0] sm:$0xff] %vm382_vm2, %v10914_v40  ;;  %474 = vst.msk [vmem:[#allocation3 + $0xd8] sm:$0xff] %vm382_vm2, %v10914_v40 }
 0x102   : > { %11360 = vst [vmem:[#allocation6_spill] sm:$0xff] %v7729_v7  ;;  %v7733_v9 = vpop.f32.mrb[11].mxu0  ;;  %v7735_v10 = vpop.f32.mrb[9].mxu1  ;;  %475 = vst.msk [vmem:[#allocation3 + $0xe0] sm:$0xff] %vm382_vm2, %v10914_v40 }
 0x103   : > { %11361 = vst [vmem:[#allocation7_spill] sm:$0xff] %v7733_v9  ;;  %11362 = vst [vmem:[#allocation8_spill] sm:$0xff] %v7735_v10  ;;  %v1727_v11 = vmax.f32 %v1726_v6, %v7731_v8  ;;  %v1731_v12 = vmax.f32 %v7729_v7, %v7733_v9  ;;  %v7740_v13 = vpop.f32.mrb[10].mxu1  ;;  %1724 = vmax.xlane.f32.xlu1 %v1723_v4  ;;  %v6804_v9 = vld [vmem:[%s7432_s8 + $0xf8] sm:$0xff]  }
 0x104   : > { %11363 = vst [vmem:[#allocation9_spill] sm:$0xff] %v7740_v13  ;;  %v7742_v14 = vpop.f32.mrb[11].mxu1  ;;  %476 = vst.msk [vmem:[#allocation3 + $0xe8] sm:$0xff] %vm382_vm2, %v10914_v40 }
 0x105   : > { %11364 = vst [vmem:[#allocation10_spill] sm:$0xff] %v7742_v14  ;;  %v1732_v15 = vmax.f32 %v1731_v12, %v7740_v13  ;;  %v1728_v16 = vmax.f32 %v1727_v11, %v7735_v10  ;;  %477 = vst.msk [vmem:[#allocation3 + $0xf0] sm:$0xff] %vm382_vm2, %v10914_v40  ;;  %v6801_v10 = vld [vmem:[%s7432_s8 + $0x70] sm:$0xff]  }
 0x106   : > { %478 = vst.msk [vmem:[#allocation3 + $0xf8] sm:$0xff] %vm382_vm2, %v10914_v40  ;;  %479 = vst.msk [vmem:[#allocation3 + $0x100] sm:$0xff] %vm382_vm2, %v10914_v40  ;;  %v6802_v13 = vld [vmem:[%s7432_s8 + $0xf0] sm:$0xff]  }
 0x107   : > { %1729 = vmax.xlane.f32.xlu0 %v1728_v16  ;;  %v7747_v18 = vpop.f32.mrb[12].mxu0  ;;  %v1733_v19 = vmax.f32 %v1732_v15, %v7742_v14  ;;  %480 = vst.msk [vmem:[#allocation3 + $0x108] sm:$0xff] %vm382_vm2, %v10914_v40  ;;  %481 = vst.msk [vmem:[#allocation3 + $0x110] sm:$0xff] %vm382_vm2, %v10914_v40 }
 0x108   : > { %11365 = vst [vmem:[#allocation11_spill] sm:$0xff] %v7747_v18  ;;  %v7750_v20 = vpop.f32.mrb[13].mxu0  ;;  %482 = vst.msk [vmem:[#allocation3 + $0x118] sm:$0xff] %vm382_vm2, %v10914_v40 }
 0x109   : > { %11366 = vst [vmem:[#allocation12_spill] sm:$0xff] %v7750_v20  ;;  %v1736_v21 = vmax.f32 %v7747_v18, %v7750_v20  ;;  %v7756_v22 = vpop.f32.mrb[12].mxu1  ;;  %1734 = vmax.xlane.f32.xlu1 %v1733_v19  ;;  %v7758_v23 = vpop.f32.mrb[14].mxu0  ;;  %483 = vst.msk [vmem:[#allocation3 + $0x120] sm:$0xff] %vm382_vm2, %v10914_v40 }
 0x10a   : > { %11367 = vst [vmem:[#allocation13_spill] sm:$0xff] %v7756_v22  ;;  %11368 = vst [vmem:[#allocation14_spill] sm:$0xff] %v7758_v23  ;;  %v7761_v24 = vpop.f32.mrb[15].mxu0  ;;  %v7763_v25 = vpop.f32.mrb[13].mxu1 }
 0x10b   : > { %11369 = vst [vmem:[#allocation15_spill] sm:$0xff] %v7761_v24  ;;  %11370 = vst [vmem:[#allocation16_spill] sm:$0xff] %v7763_v25  ;;  %v1737_v26 = vmax.f32 %v1736_v21, %v7756_v22  ;;  %v1741_v27 = vmax.f32 %v7758_v23, %v7761_v24  ;;  %v7769_v28 = vpop.f32.mrb[14].mxu1 }
 0x10c   : > { %11371 = vst [vmem:[#allocation17_spill] sm:$0xff] %v7769_v28  ;;  %v7771_v29 = vpop.f32.mrb[15].mxu1  ;;  %484 = vst.msk [vmem:[#allocation3 + $0x128] sm:$0xff] %vm382_vm2, %v10914_v40 }
 0x10d   : > { %11372 = vst [vmem:[#allocation18_spill] sm:$0xff] %v7771_v29  ;;  %v1742_v30 = vmax.f32 %v1741_v27, %v7769_v28  ;;  %v1738_v31 = vmax.f32 %v1737_v26, %v7763_v25  ;;  %485 = vst.msk [vmem:[#allocation3 + $0x130] sm:$0xff] %vm382_vm2, %v10914_v40  ;;  %v6797_v25 = vld [vmem:[%s7432_s8 + $0xe0] sm:$0xff]  }
 0x10e   : > { %486 = vst.msk [vmem:[#allocation3 + $0x138] sm:$0xff] %vm382_vm2, %v10914_v40  ;;  %487 = vst.msk [vmem:[#allocation3 + $0x140] sm:$0xff] %vm382_vm2, %v10914_v40 }
 0x10f   : > { %1739 = vmax.xlane.f32.xlu0 %v1738_v31  ;;  %v7775_v32 = vpop.f32.mrb[16].mxu0  ;;  %v1743_v33 = vmax.f32 %v1742_v30, %v7771_v29  ;;  %488 = vst.msk [vmem:[#allocation3 + $0x148] sm:$0xff] %vm382_vm2, %v10914_v40  ;;  %489 = vst.msk [vmem:[#allocation3 + $0x150] sm:$0xff] %vm382_vm2, %v10914_v40  ;;  %v6796_v29 = vld [vmem:[%s7432_s8 + $0x60] sm:$0xff]  }
 0x110   : > { %11373 = vst [vmem:[#allocation19_spill] sm:$0xff] %v7775_v32  ;;  %v7778_v34 = vpop.f32.mrb[17].mxu0  ;;  %490 = vst.msk [vmem:[#allocation3 + $0x158] sm:$0xff] %vm382_vm2, %v10914_v40 }
 0x111   : > { %11374 = vst [vmem:[#allocation20_spill] sm:$0xff] %v7778_v34  ;;  %v1746_v35 = vmax.f32 %v7775_v32, %v7778_v34  ;;  %v7782_v36 = vpop.f32.mrb[16].mxu1  ;;  %1744 = vmax.xlane.f32.xlu1 %v1743_v33  ;;  %v7784_v37 = vpop.f32.mrb[18].mxu0  ;;  %491 = vst.msk [vmem:[#allocation3 + $0x160] sm:$0xff] %vm382_vm2, %v10914_v40  ;;  %v6790_v34 = vld [vmem:[%s7412_s30 + $0xe8] sm:$0xff]  }
 0x112   : > { %11375 = vst [vmem:[#allocation21_spill] sm:$0xff] %v7782_v36  ;;  %11376 = vst [vmem:[#allocation22_spill] sm:$0xff] %v7784_v37  ;;  %v7914_v45 = vpop.f32.mrb[19].mxu0  ;;  %v7916_v46 = vpop.f32.mrb[17].mxu1 }
 0x113   : > { %492 = vst.msk [vmem:[#allocation3 + $0x168] sm:$0xff] %vm382_vm2, %v10914_v40  ;;  %493 = vst.msk [vmem:[#allocation3 + $0x170] sm:$0xff] %vm382_vm2, %v10914_v40  ;;  %v1747_v49 = vmax.f32 %v1746_v35, %v7782_v36  ;;  %v1751_v50 = vmax.f32 %v7784_v37, %v7914_v45  ;;  %v7924_v52 = vpop.f32.mrb[18].mxu1 }
 0x114   : > { %494 = vst.msk [vmem:[#allocation3 + $0x178] sm:$0xff] %vm382_vm2, %v10914_v40  ;;  %495 = vst.msk [vmem:[#allocation3 + $0x180] sm:$0xff] %vm382_vm2, %v10914_v40  ;;  %v7926_v54 = vpop.f32.mrb[19].mxu1 }
 0x115   : > { %496 = vst.msk [vmem:[#allocation3 + $0x188] sm:$0xff] %vm382_vm2, %v10914_v40  ;;  %497 = vst.msk [vmem:[#allocation3 + $0x190] sm:$0xff] %vm382_vm2, %v10914_v40  ;;  %v1752_v59 = vmax.f32 %v1751_v50, %v7924_v52  ;;  %v1748_v60 = vmax.f32 %v1747_v49, %v7916_v46 }
 0x116   : > { %498 = vst.msk [vmem:[#allocation3 + $0x198] sm:$0xff] %vm382_vm2, %v10914_v40  ;;  %499 = vst.msk [vmem:[#allocation3 + $0x1a0] sm:$0xff] %vm382_vm2, %v10914_v40 }
 0x117   : > { %500 = vst.msk [vmem:[#allocation3 + $0x1a8] sm:$0xff] %vm382_vm2, %v10914_v40  ;;  %501 = vst.msk [vmem:[#allocation3 + $0x1b0] sm:$0xff] %vm382_vm2, %v10914_v40  ;;  %1749 = vmax.xlane.f32.xlu0 %v1748_v60  ;;  %v7930_v63 = vpop.f32.mrb[20].mxu0  ;;  %v1753_v0 = vmax.f32 %v1752_v59, %v7926_v54 }
 0x118   : > { %502 = vst.msk [vmem:[#allocation3 + $0x1b8] sm:$0xff] %vm382_vm2, %v10914_v40  ;;  %503 = vst.msk [vmem:[#allocation3 + $0x1c0] sm:$0xff] %vm382_vm2, %v10914_v40  ;;  %v7933_v1 = vpop.f32.mrb[21].mxu0 }
 0x119   : > { %504 = vst.msk [vmem:[#allocation3 + $0x1c8] sm:$0xff] %vm382_vm2, %v10914_v40  ;;  %505 = vst.msk [vmem:[#allocation3 + $0x1d0] sm:$0xff] %vm382_vm2, %v10914_v40  ;;  %v1756_v4 = vmax.f32 %v7930_v63, %v7933_v1  ;;  %v7937_v6 = vpop.f32.mrb[20].mxu1  ;;  %1754 = vmax.xlane.f32.xlu1 %v1753_v0  ;;  %v7939_v11 = vpop.f32.mrb[22].mxu0 }
 0x11a   : > { %506 = vst.msk [vmem:[#allocation3 + $0x1d8] sm:$0xff] %vm382_vm2, %v10914_v40  ;;  %507 = vst.msk [vmem:[#allocation3 + $0x1e0] sm:$0xff] %vm382_vm2, %v10914_v40  ;;  %v7941_v12 = vpop.f32.mrb[23].mxu0  ;;  %v7943_v15 = vpop.f32.mrb[21].mxu1 }
 0x11b   : > { %508 = vst.msk [vmem:[#allocation3 + $0x1e8] sm:$0xff] %vm382_vm2, %v10914_v40  ;;  %509 = vst.msk [vmem:[#allocation3 + $0x1f0] sm:$0xff] %vm382_vm2, %v10914_v40  ;;  %v1757_v16 = vmax.f32 %v1756_v4, %v7937_v6  ;;  %v1761_v17 = vmax.f32 %v7939_v11, %v7941_v12  ;;  %v7948_v19 = vpop.f32.mrb[22].mxu1 }
 0x11c   : > { %510 = vst.msk [vmem:[#allocation3 + $0x1f8] sm:$0xff] %vm382_vm2, %v10914_v40  ;;  %11377 = vst [vmem:[#allocation23_spill] sm:$0xff] %v7914_v45  ;;  %v7950_v21 = vpop.f32.mrb[23].mxu1  ;;  %v6794_v45 = vld [vmem:[%s7432_s8 + $0xd8] sm:$0xff]  }
 0x11d   : > { %11378 = vst [vmem:[#allocation24_spill] sm:$0xff] %v7916_v46  ;;  %11379 = vst [vmem:[#allocation25_spill] sm:$0xff] %v7924_v52  ;;  %v1762_v26 = vmax.f32 %v1761_v17, %v7948_v19  ;;  %v1758_v27 = vmax.f32 %v1757_v16, %v7943_v15  ;;  %v6789_v46 = vld [vmem:[%s7432_s8 + $0xc8] sm:$0xff]  }
 0x11e   : > { %11380 = vst [vmem:[#allocation26_spill] sm:$0xff] %v7926_v54  ;;  %11381 = vst [vmem:[#allocation27_spill] sm:$0xff] %v7930_v63 }
 0x11f   : > { %11382 = vst [vmem:[#allocation28_spill] sm:$0xff] %v7933_v1  ;;  %11383 = vst [vmem:[#allocation29_spill] sm:$0xff] %v7937_v6  ;;  %1759 = vmax.xlane.f32.xlu0 %v1758_v27  ;;  %v7954_v30 = vpop.f32.mrb[24].mxu0  ;;  %v1763_v31 = vmax.f32 %v1762_v26, %v7950_v21  ;;  %v6785_v1 = vld [vmem:[%s7412_s30 + $0xe0] sm:$0xff]  }
 0x120   : > { %11384 = vst [vmem:[#allocation30_spill] sm:$0xff] %v7939_v11  ;;  %11385 = vst [vmem:[#allocation31_spill] sm:$0xff] %v7941_v12  ;;  %v7957_v33 = vpop.f32.mrb[25].mxu0  ;;  %v8395_v12 = vld [vmem:[#allocation2 + $0x20] sm:$0xff] }
 0x121   : > { %11386 = vst [vmem:[#allocation32_spill] sm:$0xff] %v7943_v15  ;;  %11387 = vst [vmem:[#allocation33_spill] sm:$0xff] %v7948_v19  ;;  %v1766_v35 = vmax.f32 %v7954_v30, %v7957_v33  ;;  %v7961_v49 = vpop.f32.mrb[24].mxu1  ;;  %1764 = vmax.xlane.f32.xlu1 %v1763_v31  ;;  %v7963_v50 = vpop.f32.mrb[26].mxu0 }
 0x122   : > { %11388 = vst [vmem:[#allocation34_spill] sm:$0xff] %v7950_v21  ;;  %11389 = vst [vmem:[#allocation35_spill] sm:$0xff] %v7954_v30  ;;  %v7965_v59 = vpop.f32.mrb[27].mxu0  ;;  %v7967_v60 = vpop.f32.mrb[25].mxu1 }
 0x123   : > { %11390 = vst [vmem:[#allocation36_spill] sm:$0xff] %v7957_v33  ;;  %11391 = vst [vmem:[#allocation37_spill] sm:$0xff] %v7961_v49  ;;  %v1767_v0 = vmax.f32 %v1766_v35, %v7961_v49  ;;  %v1771_v4 = vmax.f32 %v7963_v50, %v7965_v59  ;;  %v7972_v16 = vpop.f32.mrb[26].mxu1 }
 0x124   : > { %11392 = vst [vmem:[#allocation38_spill] sm:$0xff] %v7963_v50  ;;  %11393 = vst [vmem:[#allocation39_spill] sm:$0xff] %v7965_v59  ;;  %v7974_v17 = vpop.f32.mrb[27].mxu1  ;;  %v6767_v50 = vld [vmem:[%s7432_s8 + $0x80] sm:$0xff]  }
 0x125   : > { %11394 = vst [vmem:[#allocation40_spill] sm:$0xff] %v7967_v60  ;;  %11395 = vst [vmem:[#allocation41_spill] sm:$0xff] %v7972_v16  ;;  %v1772_v26 = vmax.f32 %v1771_v4, %v7972_v16  ;;  %v1768_v27 = vmax.f32 %v1767_v0, %v7967_v60  ;;  %5197 = vmatpush1.bf16.msra.mxu1 %v6767_v50 }
 0x126   : > { %11396 = vst [vmem:[#allocation42_spill] sm:$0xff] %v7974_v17 }
 0x127   : > { %1769 = vmax.xlane.f32.xlu0 %v1768_v27  ;;  %v7978_v31 = vpop.f32.mrb[28].mxu0  ;;  %v1773_v40 = vmax.f32 %v1772_v26, %v7974_v17 }
 0x128   : > { %11397 = vst [vmem:[#allocation43_spill] sm:$0xff] %v7978_v31  ;;  %v7981_v3 = vpop.f32.mrb[29].mxu0 }
 0x129   : > { %11398 = vst [vmem:[#allocation44_spill] sm:$0xff] %v7981_v3  ;;  %v1776_v35 = vmax.f32 %v7978_v31, %v7981_v3  ;;  %v7985_v49 = vpop.f32.mrb[28].mxu1  ;;  %1774 = vmax.xlane.f32.xlu1 %v1773_v40  ;;  %v7987_v33 = vpop.f32.mrb[30].mxu0 }
 0x12a   : > { %11399 = vst [vmem:[#allocation45_spill] sm:$0xff] %v7985_v49  ;;  %11400 = vst [vmem:[#allocation46_spill] sm:$0xff] %v7987_v33  ;;  %v7989_v30 = vpop.f32.mrb[31].mxu0  ;;  %v7991_v4 = vpop.f32.mrb[29].mxu1 }
 0x12b   : > { %11401 = vst [vmem:[#allocation47_spill] sm:$0xff] %v7989_v30  ;;  %11402 = vst [vmem:[#allocation48_spill] sm:$0xff] %v7991_v4  ;;  %v1777_v0 = vmax.f32 %v1776_v35, %v7985_v49  ;;  %v1781_v27 = vmax.f32 %v7987_v33, %v7989_v30  ;;  %v7996_v26 = vpop.f32.mrb[30].mxu1 }
 0x12c   : > { %11403 = vst [vmem:[#allocation49_spill] sm:$0xff] %v7996_v26  ;;  %v7998_v60 = vpop.f32.mrb[31].mxu1 }
 0x12d   : > { %11404 = vst [vmem:[#allocation50_spill] sm:$0xff] %v7998_v60  ;;  %v1782_v3 = vmax.f32 %v1781_v27, %v7996_v26  ;;  %v1778_v31 = vmax.f32 %v1777_v0, %v7991_v4 }
 0x12f   : > { %1779 = vmax.xlane.f32.xlu0 %v1778_v31  ;;  %v8002_v40 = vpop.f32.mrb[32].mxu0  ;;  %v1783_v17 = vmax.f32 %v1782_v3, %v7998_v60 }
 0x130   : > { %11405 = vst [vmem:[#allocation51_spill] sm:$0xff] %v8002_v40  ;;  %v8005_v16 = vpop.f32.mrb[33].mxu0 }
 0x131   : > { %11406 = vst [vmem:[#allocation52_spill] sm:$0xff] %v8005_v16  ;;  %v1786_v35 = vmax.f32 %v8002_v40, %v8005_v16  ;;  %v8009_v49 = vpop.f32.mrb[32].mxu1  ;;  %1784 = vmax.xlane.f32.xlu1 %v1783_v17  ;;  %v8011_v30 = vpop.f32.mrb[34].mxu0 }
 0x132   : > { %11407 = vst [vmem:[#allocation53_spill] sm:$0xff] %v8009_v49  ;;  %11408 = vst [vmem:[#allocation54_spill] sm:$0xff] %v8011_v30  ;;  %v8013_v33 = vpop.f32.mrb[35].mxu0  ;;  %v8015_v27 = vpop.f32.mrb[33].mxu1 }
 0x133   : > { %11409 = vst [vmem:[#allocation55_spill] sm:$0xff] %v8013_v33  ;;  %11410 = vst [vmem:[#allocation56_spill] sm:$0xff] %v8015_v27  ;;  %v1787_v31 = vmax.f32 %v1786_v35, %v8009_v49  ;;  %v1791_v0 = vmax.f32 %v8011_v30, %v8013_v33  ;;  %v8020_v3 = vpop.f32.mrb[34].mxu1 }
 0x134   : > { %11411 = vst [vmem:[#allocation57_spill] sm:$0xff] %v8020_v3  ;;  %v8022_v4 = vpop.f32.mrb[35].mxu1 }
 0x135   : > { %11412 = vst [vmem:[#allocation58_spill] sm:$0xff] %v8022_v4  ;;  %v1792_v16 = vmax.f32 %v1791_v0, %v8020_v3  ;;  %v1788_v40 = vmax.f32 %v1787_v31, %v8015_v27  ;;  %v6765_v3 = vld [vmem:[%s7412_s30 + $0xc0] sm:$0xff]  }
 0x136   : > { %6632 = vmatmul.mubr.msk.bf16.gmra.mrb[96].mxu0 %vm826_vm1, %v6765_v3  ;;  %6665 = vmatmul.mubr.msk.bf16.gmra.mrb[96].mxu1 %vm826_vm1, %v6765_v3 }
 0x137   : > { %1789 = vmax.xlane.f32.xlu0 %v1788_v40  ;;  %v8026_v17 = vpop.f32.mrb[36].mxu0  ;;  %v1793_v60 = vmax.f32 %v1792_v16, %v8022_v4 }
 0x138   : > { %11413 = vst [vmem:[#allocation59_spill] sm:$0xff] %v8026_v17  ;;  %v8029_v26 = vpop.f32.mrb[37].mxu0 }
 0x139   : > { %11414 = vst [vmem:[#allocation60_spill] sm:$0xff] %v8029_v26  ;;  %v1796_v35 = vmax.f32 %v8026_v17, %v8029_v26  ;;  %v8033_v49 = vpop.f32.mrb[36].mxu1  ;;  %1794 = vmax.xlane.f32.xlu1 %v1793_v60  ;;  %v8035_v33 = vpop.f32.mrb[38].mxu0 }
 0x13a   : > { %11415 = vst [vmem:[#allocation61_spill] sm:$0xff] %v8033_v49  ;;  %11416 = vst [vmem:[#allocation62_spill] sm:$0xff] %v8035_v33  ;;  %v8037_v30 = vpop.f32.mrb[39].mxu0  ;;  %v8039_v0 = vpop.f32.mrb[37].mxu1 }
 0x13b   : > { %11417 = vst [vmem:[#allocation63_spill] sm:$0xff] %v8037_v30  ;;  %11418 = vst [vmem:[#allocation64_spill] sm:$0xff] %v8039_v0  ;;  %v1797_v40 = vmax.f32 %v1796_v35, %v8033_v49  ;;  %v1801_v16 = vmax.f32 %v8035_v33, %v8037_v30  ;;  %v8044_v31 = vpop.f32.mrb[38].mxu1 }
 0x13c   : > { %11419 = vst [vmem:[#allocation65_spill] sm:$0xff] %v8044_v31  ;;  %v8046_v27 = vpop.f32.mrb[39].mxu1 }
 0x13d   : > { %11420 = vst [vmem:[#allocation66_spill] sm:$0xff] %v8046_v27  ;;  %v1802_v26 = vmax.f32 %v1801_v16, %v8044_v31  ;;  %v1798_v17 = vmax.f32 %v1797_v40, %v8039_v0 }
 0x13f   : > { %1799 = vmax.xlane.f32.xlu0 %v1798_v17  ;;  %v8050_v60 = vpop.f32.mrb[40].mxu0  ;;  %v1803_v4 = vmax.f32 %v1802_v26, %v8046_v27  ;;  %v11427_v26 = vmov 0  }
 0x140   : > { %11421 = vst [vmem:[#allocation67_spill] sm:$0xff] %v8050_v60  ;;  %v8054_v59 = vpop.f32.mrb[41].mxu0  ;;  %1218 = vmatprep.mubr.bf16.mxu0 %v11427_v26  ;;  %1571 = vmatprep.mubr.bf16.mxu1 %v11427_v26 }
 0x141   : > { %11422 = vst [vmem:[#allocation68_spill] sm:$0xff] %v8054_v59  ;;  %v1806_v35 = vmax.f32 %v8050_v60, %v8054_v59  ;;  %v8058_v49 = vpop.f32.mrb[40].mxu1  ;;  %1804 = vmax.xlane.f32.xlu1 %v1803_v4  ;;  %v8060_v30 = vpop.f32.mrb[42].mxu0  ;;  %5198 = vmatprep.subr.bf16.mxu1 %v11427_v26 }
 0x142   : > { %11423 = vst [vmem:[#allocation69_spill] sm:$0xff] %v8058_v49  ;;  %11424 = vst [vmem:[#allocation70_spill] sm:$0xff] %v8060_v30  ;;  %v8063_v16 = vpop.f32.mrb[43].mxu0  ;;  %v8065_v17 = vpop.f32.mrb[41].mxu1 }
 0x143   : > { %11425 = vst [vmem:[#allocation71_spill] sm:$0xff] %v8063_v16  ;;  %11426 = vst [vmem:[#allocation72_spill] sm:$0xff] %v8065_v17  ;;  %v1807_v40 = vmax.f32 %v1806_v35, %v8058_v49  ;;  %v1811_v59 = vmax.f32 %v8060_v30, %v8063_v16  ;;  %v8072_v60 = vpop.f32.mrb[42].mxu1 }
 0x144   : > { %11428 = vst [vmem:[#allocation73_spill] sm:$0xff] %v8072_v60  ;;  %v8075_v4 = vpop.f32.mrb[43].mxu1 }
 0x145   : > { %11429 = vst [vmem:[#allocation74_spill] sm:$0xff] %v8075_v4  ;;  %v1812_v0 = vmax.f32 %v1811_v59, %v8072_v60  ;;  %v1808_v27 = vmax.f32 %v1807_v40, %v8065_v17 }
 0x147   : > { %1809 = vmax.xlane.f32.xlu0 %v1808_v27  ;;  %v8079_v31 = vpop.f32.mrb[44].mxu0  ;;  %v1813_v3 = vmax.f32 %v1812_v0, %v8075_v4 }
 0x148   : > { %11430 = vst [vmem:[#allocation75_spill] sm:$0xff] %v8079_v31  ;;  %v8082_v33 = vpop.f32.mrb[45].mxu0 }
 0x149   : > { %11431 = vst [vmem:[#allocation76_spill] sm:$0xff] %v8082_v33  ;;  %v1816_v35 = vmax.f32 %v8079_v31, %v8082_v33  ;;  %v8086_v49 = vpop.f32.mrb[44].mxu1  ;;  %1814 = vmax.xlane.f32.xlu1 %v1813_v3  ;;  %v8088_v16 = vpop.f32.mrb[46].mxu0 }
 0x14a   : > { %11432 = vst [vmem:[#allocation77_spill] sm:$0xff] %v8086_v49  ;;  %11433 = vst [vmem:[#allocation78_spill] sm:$0xff] %v8088_v16  ;;  %v8090_v30 = vpop.f32.mrb[47].mxu0  ;;  %v8092_v59 = vpop.f32.mrb[45].mxu1 }
 0x14b   : > { %11434 = vst [vmem:[#allocation79_spill] sm:$0xff] %v8090_v30  ;;  %11435 = vst [vmem:[#allocation80_spill] sm:$0xff] %v8092_v59  ;;  %v1817_v27 = vmax.f32 %v1816_v35, %v8086_v49  ;;  %v1821_v40 = vmax.f32 %v8088_v16, %v8090_v30  ;;  %v8097_v0 = vpop.f32.mrb[46].mxu1 }
 0x14c   : > { %11436 = vst [vmem:[#allocation81_spill] sm:$0xff] %v8097_v0  ;;  %v8099_v17 = vpop.f32.mrb[47].mxu1 }
 0x14d   : > { %11437 = vst [vmem:[#allocation82_spill] sm:$0xff] %v8099_v17  ;;  %v1822_v33 = vmax.f32 %v1821_v40, %v8097_v0  ;;  %v1818_v31 = vmax.f32 %v1817_v27, %v8092_v59 }
 0x14f   : > { %1819 = vmax.xlane.f32.xlu0 %v1818_v31  ;;  %v8103_v3 = vpop.f32.mrb[48].mxu0  ;;  %v1823_v4 = vmax.f32 %v1822_v33, %v8099_v17 }
 0x150   : > { %11438 = vst [vmem:[#allocation83_spill] sm:$0xff] %v8103_v3  ;;  %v8106_v60 = vpop.f32.mrb[49].mxu0 }
 0x151   : > { %11439 = vst [vmem:[#allocation84_spill] sm:$0xff] %v8106_v60  ;;  %v1826_v35 = vmax.f32 %v8103_v3, %v8106_v60  ;;  %v8110_v49 = vpop.f32.mrb[48].mxu1  ;;  %1824 = vmax.xlane.f32.xlu1 %v1823_v4  ;;  %v8112_v30 = vpop.f32.mrb[50].mxu0 }
 0x152   : > { %11440 = vst [vmem:[#allocation85_spill] sm:$0xff] %v8110_v49  ;;  %11441 = vst [vmem:[#allocation86_spill] sm:$0xff] %v8112_v30  ;;  %v8114_v16 = vpop.f32.mrb[51].mxu0  ;;  %v8116_v40 = vpop.f32.mrb[49].mxu1 }
 0x153   : > { %11442 = vst [vmem:[#allocation87_spill] sm:$0xff] %v8114_v16  ;;  %11443 = vst [vmem:[#allocation88_spill] sm:$0xff] %v8116_v40  ;;  %v1827_v31 = vmax.f32 %v1826_v35, %v8110_v49  ;;  %v1831_v27 = vmax.f32 %v8112_v30, %v8114_v16  ;;  %v8121_v33 = vpop.f32.mrb[50].mxu1 }
 0x154   : > { %11444 = vst [vmem:[#allocation89_spill] sm:$0xff] %v8121_v33  ;;  %v8123_v59 = vpop.f32.mrb[51].mxu1 }
 0x155   : > { %11445 = vst [vmem:[#allocation90_spill] sm:$0xff] %v8123_v59  ;;  %v1832_v60 = vmax.f32 %v1831_v27, %v8121_v33  ;;  %v1828_v3 = vmax.f32 %v1827_v31, %v8116_v40 }
 0x157   : > { %1829 = vmax.xlane.f32.xlu0 %v1828_v3  ;;  %v8127_v4 = vpop.f32.mrb[52].mxu0  ;;  %v1833_v17 = vmax.f32 %v1832_v60, %v8123_v59 }
 0x158   : > { %11446 = vst [vmem:[#allocation91_spill] sm:$0xff] %v8127_v4  ;;  %v8130_v0 = vpop.f32.mrb[53].mxu0 }
 0x159   : > { %11447 = vst [vmem:[#allocation92_spill] sm:$0xff] %v8130_v0  ;;  %v1836_v35 = vmax.f32 %v8127_v4, %v8130_v0  ;;  %v8134_v49 = vpop.f32.mrb[52].mxu1  ;;  %1834 = vmax.xlane.f32.xlu1 %v1833_v17  ;;  %v8136_v16 = vpop.f32.mrb[54].mxu0 }
 0x15a   : > { %11448 = vst [vmem:[#allocation93_spill] sm:$0xff] %v8134_v49  ;;  %11449 = vst [vmem:[#allocation94_spill] sm:$0xff] %v8136_v16  ;;  %v8138_v30 = vpop.f32.mrb[55].mxu0  ;;  %v8140_v27 = vpop.f32.mrb[53].mxu1 }
 0x15b   : > { %11450 = vst [vmem:[#allocation95_spill] sm:$0xff] %v8138_v30  ;;  %11451 = vst [vmem:[#allocation96_spill] sm:$0xff] %v8140_v27  ;;  %v1837_v3 = vmax.f32 %v1836_v35, %v8134_v49  ;;  %v1841_v31 = vmax.f32 %v8136_v16, %v8138_v30  ;;  %v8145_v60 = vpop.f32.mrb[54].mxu1 }
 0x15c   : > { %11452 = vst [vmem:[#allocation97_spill] sm:$0xff] %v8145_v60  ;;  %v8147_v40 = vpop.f32.mrb[55].mxu1 }
 0x15d   : > { %11453 = vst [vmem:[#allocation98_spill] sm:$0xff] %v8147_v40  ;;  %v1842_v0 = vmax.f32 %v1841_v31, %v8145_v60  ;;  %v1838_v4 = vmax.f32 %v1837_v3, %v8140_v27 }
 0x15f   : > { %1839 = vmax.xlane.f32.xlu0 %v1838_v4  ;;  %v8151_v17 = vpop.f32.mrb[56].mxu0  ;;  %v1843_v59 = vmax.f32 %v1842_v0, %v8147_v40 }
 0x160   : > { %11454 = vst [vmem:[#allocation99_spill] sm:$0xff] %v8151_v17  ;;  %v8154_v33 = vpop.f32.mrb[57].mxu0 }
 0x161   : > { %11455 = vst [vmem:[#allocation100_spill] sm:$0xff] %v8154_v33  ;;  %v1846_v35 = vmax.f32 %v8151_v17, %v8154_v33  ;;  %v8158_v49 = vpop.f32.mrb[56].mxu1  ;;  %1844 = vmax.xlane.f32.xlu1 %v1843_v59  ;;  %v8160_v30 = vpop.f32.mrb[58].mxu0 }
 0x162   : > { %11456 = vst [vmem:[#allocation101_spill] sm:$0xff] %v8158_v49  ;;  %11457 = vst [vmem:[#allocation102_spill] sm:$0xff] %v8160_v30  ;;  %v8162_v16 = vpop.f32.mrb[59].mxu0  ;;  %v8164_v31 = vpop.f32.mrb[57].mxu1 }
 0x163   : > { %11458 = vst [vmem:[#allocation103_spill] sm:$0xff] %v8162_v16  ;;  %11459 = vst [vmem:[#allocation104_spill] sm:$0xff] %v8164_v31  ;;  %v1847_v4 = vmax.f32 %v1846_v35, %v8158_v49  ;;  %v1851_v3 = vmax.f32 %v8160_v30, %v8162_v16  ;;  %v8169_v0 = vpop.f32.mrb[58].mxu1  ;;  %v6766_v30 = vld [vmem:[%s7432_s8] sm:$0xff]  }
 0x164   : > { %11460 = vst [vmem:[#allocation105_spill] sm:$0xff] %v8169_v0  ;;  %v8171_v27 = vpop.f32.mrb[59].mxu1  ;;  %4908 = vmatpush1.bf16.msra.mxu0 %v6766_v30  ;;  %v6768_v30 = vld [vmem:[%s7432_s8 + $0x8] sm:$0xff]  }
 0x165   : > { %11461 = vst [vmem:[#allocation106_spill] sm:$0xff] %v8171_v27  ;;  %v1852_v33 = vmax.f32 %v1851_v3, %v8169_v0  ;;  %v1848_v17 = vmax.f32 %v1847_v4, %v8164_v31  ;;  %4909 = vmatprep.subr.bf16.mxu0 %v11427_v26 }
 0x167   : > { %1849 = vmax.xlane.f32.xlu0 %v1848_v17  ;;  %v8175_v59 = vpop.f32.mrb[60].mxu0  ;;  %v1853_v40 = vmax.f32 %v1852_v33, %v8171_v27 }
 0x168   : > { %11462 = vst [vmem:[#allocation107_spill] sm:$0xff] %v8175_v59  ;;  %v8178_v60 = vpop.f32.mrb[61].mxu0  ;;  %4910 = vmatpush1.bf16.msra.mxu0 %v6768_v30 }
 0x169   : > { %11463 = vst [vmem:[#allocation108_spill] sm:$0xff] %v8178_v60  ;;  %v1856_v35 = vmax.f32 %v8175_v59, %v8178_v60  ;;  %v8182_v49 = vpop.f32.mrb[60].mxu1  ;;  %1854 = vmax.xlane.f32.xlu1 %v1853_v40  ;;  %v8184_v16 = vpop.f32.mrb[62].mxu0  ;;  %4911 = vmatprep.subr.bf16.mxu0 %v11427_v26 }
 0x16a   : > { %11464 = vst [vmem:[#allocation109_spill] sm:$0xff] %v8182_v49  ;;  %11465 = vst [vmem:[#allocation110_spill] sm:$0xff] %v8184_v16  ;;  %v8186_v3 = vpop.f32.mrb[63].mxu0  ;;  %v8188_v4 = vpop.f32.mrb[61].mxu1 }
 0x16b   : > { %11466 = vst [vmem:[#allocation111_spill] sm:$0xff] %v8186_v3  ;;  %11467 = vst [vmem:[#allocation112_spill] sm:$0xff] %v8188_v4  ;;  %v1857_v17 = vmax.f32 %v1856_v35, %v8182_v49  ;;  %v1861_v33 = vmax.f32 %v8184_v16, %v8186_v3  ;;  %v8193_v31 = vpop.f32.mrb[62].mxu1 }
 0x16c   : > { %11468 = vst [vmem:[#allocation113_spill] sm:$0xff] %v8193_v31  ;;  %v8195_v27 = vpop.f32.mrb[63].mxu1 }
 0x16d   : > { %11469 = vst [vmem:[#allocation114_spill] sm:$0xff] %v8195_v27  ;;  %v1862_v60 = vmax.f32 %v1861_v33, %v8193_v31  ;;  %v1858_v59 = vmax.f32 %v1857_v17, %v8188_v4  ;;  %v6772_v31 = vld [vmem:[%s7432_s8 + $0x90] sm:$0xff]  }
 0x16f   : > { %1859 = vmax.xlane.f32.xlu0 %v1858_v59  ;;  %v8199_v40 = vpop.f32.mrb[64].mxu0  ;;  %v1863_v0 = vmax.f32 %v1862_v60, %v8195_v27 }
 0x170   : > { %11470 = vst [vmem:[#allocation115_spill] sm:$0xff] %v8199_v40  ;;  %v8204_v35 = vpop.f32.mrb[65].mxu0 }
 0x171   : > { %11471 = vst [vmem:[#allocation116_spill] sm:$0xff] %v8204_v35  ;;  %v1866_v49 = vmax.f32 %v8199_v40, %v8204_v35  ;;  %v8208_v3 = vpop.f32.mrb[64].mxu1  ;;  %1864 = vmax.xlane.f32.xlu1 %v1863_v0  ;;  %v8210_v33 = vpop.f32.mrb[66].mxu0  ;;  %v6769_v0 = vld [vmem:[%s7432_s8 + $0x88] sm:$0xff]  }
 0x172   : > { %11472 = vst [vmem:[#allocation117_spill] sm:$0xff] %v8208_v3  ;;  %11473 = vst [vmem:[#allocation118_spill] sm:$0xff] %v8210_v33  ;;  %v8212_v59 = vpop.f32.mrb[67].mxu0  ;;  %v8214_v17 = vpop.f32.mrb[65].mxu1  ;;  %5199 = vmatpush1.bf16.msra.mxu1 %v6769_v0 }
 0x173   : > { %11474 = vst [vmem:[#allocation119_spill] sm:$0xff] %v8212_v59  ;;  %11475 = vst [vmem:[#allocation120_spill] sm:$0xff] %v8214_v17  ;;  %v1867_v60 = vmax.f32 %v1866_v49, %v8208_v3  ;;  %v1871_v4 = vmax.f32 %v8210_v33, %v8212_v59  ;;  %v8220_v35 = vpop.f32.mrb[66].mxu1  ;;  %v6770_v49 = vld [vmem:[%s7412_s30 + $0xc8] sm:$0xff]   ;;  %5200 = vmatprep.subr.bf16.mxu1 %v11427_v26  ;;  %v6771_v33 = vld [vmem:[%s7432_s8 + $0x10] sm:$0xff]  }
 0x174   : > { %11476 = vst [vmem:[#allocation121_spill] sm:$0xff] %v8220_v35  ;;  %v8225_v40 = vpop.f32.mrb[67].mxu1  ;;  %6633 = vmatmul.mubr.msk.bf16.gmra.mrb[100].mxu0 %vm826_vm1, %v6770_v49  ;;  %6666 = vmatmul.mubr.msk.bf16.gmra.mrb[100].mxu1 %vm826_vm1, %v6770_v49 }
 0x175   : > { %11477 = vst [vmem:[#allocation122_spill] sm:$0xff] %v8225_v40  ;;  %v1872_v27 = vmax.f32 %v1871_v4, %v8220_v35  ;;  %v1868_v50 = vmax.f32 %v1867_v60, %v8214_v17  ;;  %4912 = vmatpush1.bf16.msra.mxu0 %v6771_v33  ;;  %v6774_v33 = vld [vmem:[%s7432_s8 + $0x98] sm:$0xff]   ;;  %1228 = vmatprep.mubr.bf16.mxu0 %v11427_v26  ;;  %v6776_v17 = vld [vmem:[%s7432_s8 + $0x20] sm:$0xff]  }
 0x176   : > { %5201 = vmatpush1.bf16.msra.mxu1 %v6772_v31  ;;  %4913 = vmatprep.subr.bf16.mxu0 %v11427_v26 }
 0x177   : > { %1869 = vmax.xlane.f32.xlu0 %v1868_v50  ;;  %v8231_v3 = vpop.f32.mrb[68].mxu0  ;;  %v1873_v59 = vmax.f32 %v1872_v27, %v8225_v40  ;;  %5202 = vmatprep.subr.bf16.mxu1 %v11427_v26  ;;  %v6777_v40 = vld [vmem:[%s7432_s8 + $0xa0] sm:$0xff]  }
 0x178   : > { %11478 = vst [vmem:[#allocation123_spill] sm:$0xff] %v8231_v3  ;;  %v8237_v16 = vpop.f32.mrb[69].mxu0  ;;  %1581 = vmatprep.mubr.bf16.mxu1 %v11427_v26 }
 0x179   : > { %11479 = vst [vmem:[#allocation124_spill] sm:$0xff] %v8237_v16  ;;  %v1876_v4 = vmax.f32 %v8231_v3, %v8237_v16  ;;  %v8243_v60 = vpop.f32.mrb[68].mxu1  ;;  %1874 = vmax.xlane.f32.xlu1 %v1873_v59  ;;  %v8245_v30 = vpop.f32.mrb[70].mxu0  ;;  %v6773_v59 = vld [vmem:[%s7432_s8 + $0x18] sm:$0xff]  }
 0x17a   : > { %11480 = vst [vmem:[#allocation125_spill] sm:$0xff] %v8243_v60  ;;  %11481 = vst [vmem:[#allocation126_spill] sm:$0xff] %v8245_v30  ;;  %v8247_v27 = vpop.f32.mrb[71].mxu0  ;;  %v8249_v0 = vpop.f32.mrb[69].mxu1  ;;  %4914 = vmatpush1.bf16.msra.mxu0 %v6773_v59  ;;  %5203 = vmatpush1.bf16.msra.mxu1 %v6774_v33 }
 0x17b   : > { %11482 = vst [vmem:[#allocation127_spill] sm:$0xff] %v8247_v27  ;;  %11483 = vst [vmem:[#allocation128_spill] sm:$0xff] %v8249_v0  ;;  %v1877_v50 = vmax.f32 %v1876_v4, %v8243_v60  ;;  %v1881_v49 = vmax.f32 %v8245_v30, %v8247_v27  ;;  %v8255_v16 = vpop.f32.mrb[70].mxu1  ;;  %v6775_v60 = vld [vmem:[%s7412_s30 + $0xd0] sm:$0xff]   ;;  %4915 = vmatprep.subr.bf16.mxu0 %v11427_v26  ;;  %5204 = vmatprep.subr.bf16.mxu1 %v11427_v26 }
 0x17c   : > { %11484 = vst [vmem:[#allocation129_spill] sm:$0xff] %v8255_v16  ;;  %v8261_v3 = vpop.f32.mrb[71].mxu1  ;;  %6634 = vmatmul.mubr.msk.bf16.gmra.mrb[104].mxu0 %vm826_vm1, %v6775_v60  ;;  %6667 = vmatmul.mubr.msk.bf16.gmra.mrb[104].mxu1 %vm826_vm1, %v6775_v60 }
 0x17d   : > { %11485 = vst [vmem:[#allocation130_spill] sm:$0xff] %v8261_v3  ;;  %v1882_v31 = vmax.f32 %v1881_v49, %v8255_v16  ;;  %v1878_v4 = vmax.f32 %v1877_v50, %v8249_v0  ;;  %1238 = vmatprep.mubr.bf16.mxu0 %v11427_v26  ;;  %1591 = vmatprep.mubr.bf16.mxu1 %v11427_v26 }
 0x17e   : > { %4916 = vmatpush1.bf16.msra.mxu0 %v6776_v17  ;;  %5205 = vmatpush1.bf16.msra.mxu1 %v6777_v40  ;;  %v6778_v17 = vld [vmem:[%s7432_s8 + $0x28] sm:$0xff]  }
 0x17f   : > { %1879 = vmax.xlane.f32.xlu0 %v1878_v4  ;;  %v8268_v27 = vpop.f32.mrb[72].mxu0  ;;  %v1883_v30 = vmax.f32 %v1882_v31, %v8261_v3  ;;  %v8288_v4 = vld [vmem:[#allocation2] sm:$0xff]  ;;  %4917 = vmatprep.subr.bf16.mxu0 %v11427_v26  ;;  %v6780_v3 = vld [vmem:[%s7412_s30 + $0xd8] sm:$0xff]  }
 0x180   : > { %11486 = vst [vmem:[#allocation131_spill] sm:$0xff] %v8268_v27  ;;  %v8274_v35 = vpop.f32.mrb[73].mxu0  ;;  %5206 = vmatprep.subr.bf16.mxu1 %v11427_v26 }
 0x181   : > { %11487 = vst [vmem:[#allocation132_spill] sm:$0xff] %v8274_v35  ;;  %v1886_v50 = vmax.f32 %v8268_v27, %v8274_v35  ;;  %v8280_v49 = vpop.f32.mrb[72].mxu1  ;;  %1884 = vmax.xlane.f32.xlu1 %v1883_v30  ;;  %v8282_v59 = vpop.f32.mrb[74].mxu0  ;;  %v6779_v30 = vld [vmem:[%s7432_s8 + $0xa8] sm:$0xff]  }
 0x182   : > { %11488 = vst [vmem:[#allocation133_spill] sm:$0xff] %v8280_v49  ;;  %11489 = vst [vmem:[#allocation134_spill] sm:$0xff] %v8282_v59  ;;  %v8284_v33 = vpop.f32.mrb[75].mxu0  ;;  %v8286_v31 = vpop.f32.mrb[73].mxu1  ;;  %4918 = vmatpush1.bf16.msra.mxu0 %v6778_v17  ;;  %5207 = vmatpush1.bf16.msra.mxu1 %v6779_v30 }
 0x183   : > { %11490 = vst [vmem:[#allocation135_spill] sm:$0xff] %v8284_v33  ;;  %11491 = vst [vmem:[#allocation136_spill] sm:$0xff] %v8286_v31  ;;  %v1887_v60 = vmax.f32 %v1886_v50, %v8280_v49  ;;  %v1891_v35 = vmax.f32 %v8282_v59, %v8284_v33  ;;  %v8294_v27 = vpop.f32.mrb[74].mxu1  ;;  %v8308_v59 = vld [vmem:[#allocation2 + $0x8] sm:$0xff]  ;;  %4919 = vmatprep.subr.bf16.mxu0 %v11427_v26  ;;  %5208 = vmatprep.subr.bf16.mxu1 %v11427_v26 }
 0x184   : > { %11492 = vst [vmem:[#allocation137_spill] sm:$0xff] %v8294_v27  ;;  %v8300_v0 = vpop.f32.mrb[75].mxu1  ;;  %v1710_v40 = vpop.xlane.xlu0 %1709  ;;  %6635 = vmatmul.mubr.msk.bf16.gmra.mrb[108].mxu0 %vm826_vm1, %v6780_v3  ;;  %6668 = vmatmul.mubr.msk.bf16.gmra.mrb[108].mxu1 %vm826_vm1, %v6780_v3 }
 0x185   : > { %11493 = vst [vmem:[#allocation138_spill] sm:$0xff] %v8300_v0  ;;  %v1892_v50 = vmax.f32 %v1891_v35, %v8294_v27  ;;  %v8305_v49 = vmax.f32 %v8288_v4, %v1710_v40  ;;  %v1888_v33 = vmax.f32 %v1887_v60, %v8286_v31  ;;  %v6781_v35 = vld [vmem:[%s7432_s8 + $0x30] sm:$0xff]   ;;  %1248 = vmatprep.mubr.bf16.mxu0 %v11427_v26 }
 0x186   : > { %v6782_v40 = vld [vmem:[%s7432_s8 + $0xb0] sm:$0xff]   ;;  %4920 = vmatpush1.bf16.msra.mxu0 %v6781_v35  ;;  %1601 = vmatprep.mubr.bf16.mxu1 %v11427_v26 }
 0x187   : > { %5614 = vst.msk [vmem:[#allocation2] sm:$0xff] %vm382_vm2, %v8305_v49  ;;  %1889 = vmax.xlane.f32.xlu0 %v1888_v33  ;;  %v1893_v16 = vmax.f32 %v1892_v50, %v8300_v0  ;;  %v8315_v15 = vpop.f32.mrb[76].mxu0  ;;  %v8333_v0 = vld [vmem:[#allocation2 + $0x10] sm:$0xff]  ;;  %5209 = vmatpush1.bf16.msra.mxu1 %v6782_v40  ;;  %v6783_v40 = vld [vmem:[%s7432_s8 + $0x38] sm:$0xff]  }
 0x188   : > { %11494 = vst [vmem:[#allocation139_spill] sm:$0xff] %v8315_v15  ;;  %v1715_v60 = vpop.xlane.xlu0 %1714  ;;  %v8320_v17 = vpop.f32.mrb[77].mxu0  ;;  %4921 = vmatprep.subr.bf16.mxu0 %v11427_v26  ;;  %5210 = vmatprep.subr.bf16.mxu1 %v11427_v26 }
 0x189   : > { %11495 = vst [vmem:[#allocation140_spill] sm:$0xff] %v8320_v17  ;;  %v8325_v30 = vmax.f32 %v8308_v59, %v1715_v60  ;;  %1894 = vmax.xlane.f32.xlu1 %v1893_v16  ;;  %v1896_v33 = vmax.f32 %v8315_v15, %v8320_v17  ;;  %v8329_v50 = vpop.f32.mrb[78].mxu0  ;;  %v8331_v31 = vpop.f32.mrb[76].mxu1  ;;  %v6784_v17 = vld [vmem:[%s7432_s8 + $0xb8] sm:$0xff]  }
 0x18a   : > { %11496 = vst [vmem:[#allocation141_spill] sm:$0xff] %v8329_v50  ;;  %11497 = vst [vmem:[#allocation142_spill] sm:$0xff] %v8331_v31  ;;  %v8335_v27 = vpop.f32.mrb[79].mxu0  ;;  %v8337_v6 = vpop.f32.mrb[77].mxu1  ;;  %4922 = vmatpush1.bf16.msra.mxu0 %v6783_v40  ;;  %v6786_v40 = vld [vmem:[%s7432_s8 + $0x40] sm:$0xff]  }
 0x18b   : > { %11498 = vst [vmem:[#allocation143_spill] sm:$0xff] %v8335_v27  ;;  %11499 = vst [vmem:[#allocation144_spill] sm:$0xff] %v8337_v6  ;;  %v1901_v3 = vmax.f32 %v8329_v50, %v8335_v27  ;;  %v8347_v35 = vmax.f32 %v1896_v33, %v8331_v31  ;;  %v8349_v60 = vpop.f32.mrb[78].mxu1  ;;  %v8366_v50 = vld [vmem:[#allocation2 + $0x18] sm:$0xff]  ;;  %5211 = vmatpush1.bf16.msra.mxu1 %v6784_v17  ;;  %4923 = vmatprep.subr.bf16.mxu0 %v11427_v26  ;;  %v6787_v31 = vld [vmem:[%s7432_s8 + $0xc0] sm:$0xff]  }
 0x18c   : > { %5615 = vst.msk [vmem:[#allocation2 + $0x8] sm:$0xff] %vm382_vm2, %v8325_v30  ;;  %11500 = vst [vmem:[#allocation145_spill] sm:$0xff] %v8349_v60  ;;  %v1720_v15 = vpop.xlane.xlu1 %1719  ;;  %v8355_v16 = vpop.f32.mrb[79].mxu1  ;;  %5212 = vmatprep.subr.bf16.mxu1 %v11427_v26  ;;  %6636 = vmatmul.mubr.msk.bf16.gmra.mrb[112].mxu0 %vm826_vm1, %v6785_v1 }
 0x18d   : > { %11501 = vst [vmem:[#allocation146_spill] sm:$0xff] %v8355_v16  ;;  %v8359_v27 = vmax.f32 %v8333_v0, %v1720_v15  ;;  %v8362_v33 = vmax.f32 %v1901_v3, %v8349_v60  ;;  %6669 = vmatmul.mubr.msk.bf16.gmra.mrb[112].mxu1 %vm826_vm1, %v6785_v1  ;;  %1258 = vmatprep.mubr.bf16.mxu0 %v11427_v26 }
 0x18e   : > { %4924 = vmatpush1.bf16.msra.mxu0 %v6786_v40  ;;  %1611 = vmatprep.mubr.bf16.mxu1 %v11427_v26 }
 0x18f   : > { %5616 = vst.msk [vmem:[#allocation2 + $0x10] sm:$0xff] %vm382_vm2, %v8359_v27  ;;  %v8376_v3 = vpop.f32.mrb[80].mxu0  ;;  %5213 = vmatpush1.bf16.msra.mxu1 %v6787_v31  ;;  %4925 = vmatprep.subr.bf16.mxu0 %v11427_v26  ;;  %v6788_v31 = vld [vmem:[%s7432_s8 + $0x48] sm:$0xff]  }
 0x190   : > { %11502 = vst [vmem:[#allocation147_spill] sm:$0xff] %v8376_v3  ;;  %v1725_v60 = vpop.xlane.xlu1 %1724  ;;  %v8381_v17 = vpop.f32.mrb[81].mxu0  ;;  %5214 = vmatprep.subr.bf16.mxu1 %v11427_v26 }
 0x191   : > { %11503 = vst [vmem:[#allocation148_spill] sm:$0xff] %v8381_v17  ;;  %v8386_v63 = vmax.f32 %v8366_v50, %v1725_v60  ;;  %v1906_v21 = vmax.f32 %v8376_v3, %v8381_v17  ;;  %v8390_v15 = vpop.f32.mrb[82].mxu0  ;;  %v8392_v19 = vpop.f32.mrb[80].mxu1  ;;  %v8417_v60 = vld [vmem:[#allocation2 + $0x28] sm:$0xff] }
 0x192   : > { %11504 = vst [vmem:[#allocation149_spill] sm:$0xff] %v8390_v15  ;;  %11505 = vst [vmem:[#allocation150_spill] sm:$0xff] %v8392_v19  ;;  %v8397_v11 = vpop.f32.mrb[83].mxu0  ;;  %v8399_v1 = vpop.f32.mrb[81].mxu1  ;;  %4926 = vmatpush1.bf16.msra.mxu0 %v6788_v31  ;;  %v6792_v31 = vld [vmem:[%s7432_s8 + $0xd0] sm:$0xff]  }
 0x193   : > { %11506 = vst [vmem:[#allocation151_spill] sm:$0xff] %v8397_v11  ;;  %11507 = vst [vmem:[#allocation152_spill] sm:$0xff] %v8399_v1  ;;  %v8407_v17 = vmax.f32 %v1906_v21, %v8392_v19  ;;  %v1911_v40 = vmax.f32 %v8390_v15, %v8397_v11  ;;  %v8411_v3 = vpop.f32.mrb[82].mxu1  ;;  %5215 = vmatpush1.bf16.msra.mxu1 %v6789_v46  ;;  %4927 = vmatprep.subr.bf16.mxu0 %v11427_v26  ;;  %v6791_v46 = vld [vmem:[%s7432_s8 + $0x50] sm:$0xff]  }
 0x194   : > { %5617 = vst.msk [vmem:[#allocation2 + $0x18] sm:$0xff] %vm382_vm2, %v8386_v63  ;;  %11508 = vst [vmem:[#allocation153_spill] sm:$0xff] %v8411_v3  ;;  %v1730_v54 = vpop.xlane.xlu0 %1729  ;;  %v8419_v36 = vpop.f32.mrb[83].mxu1  ;;  %5216 = vmatprep.subr.bf16.mxu1 %v11427_v26  ;;  %6637 = vmatmul.mubr.msk.bf16.gmra.mrb[116].mxu0 %vm826_vm1, %v6790_v34  ;;  %v8457_v11 = vld [vmem:[#allocation2 + $0x30] sm:$0xff] }
 0x195   : > { %11509 = vst [vmem:[#allocation154_spill] sm:$0xff] %v8419_v36  ;;  %v8422_v21 = vmax.f32 %v8395_v12, %v1730_v54  ;;  %v8425_v19 = vmax.f32 %v1911_v40, %v8411_v3  ;;  %6670 = vmatmul.mubr.msk.bf16.gmra.mrb[116].mxu1 %vm826_vm1, %v6790_v34  ;;  %1268 = vmatprep.mubr.bf16.mxu0 %v11427_v26 }
 0x196   : > { %v1735_v15 = vpop.xlane.xlu1 %1734  ;;  %4928 = vmatpush1.bf16.msra.mxu0 %v6791_v46  ;;  %1621 = vmatprep.mubr.bf16.mxu1 %v11427_v26 }
 0x197   : > { %5618 = vst.msk [vmem:[#allocation2 + $0x20] sm:$0xff] %vm382_vm2, %v8422_v21  ;;  %v8436_v54 = vmax.f32 %v8417_v60, %v1735_v15  ;;  %v8438_v40 = vpop.f32.mrb[84].mxu0  ;;  %5217 = vmatpush1.bf16.msra.mxu1 %v6792_v31  ;;  %4929 = vmatprep.subr.bf16.mxu0 %v11427_v26  ;;  %v8488_v31 = vld [vmem:[#allocation2 + $0x40] sm:$0xff] }
 0x198   : > { %11510 = vst [vmem:[#allocation155_spill] sm:$0xff] %v8438_v40  ;;  %v8445_v3 = vpop.f32.mrb[85].mxu0  ;;  %5218 = vmatprep.subr.bf16.mxu1 %v11427_v26  ;;  %11514 = vst [vmem:[#allocation159_spill] sm:$0xff] %v8488_v31 }
 0x199   : > { %11511 = vst [vmem:[#allocation156_spill] sm:$0xff] %v8445_v3  ;;  %5619 = vst.msk [vmem:[#allocation2 + $0x28] sm:$0xff] %vm382_vm2, %v8436_v54  ;;  %v1916_v15 = vmax.f32 %v8438_v40, %v8445_v3  ;;  %v8453_v32 = vpop.f32.mrb[84].mxu1  ;;  %v8466_v3 = vld [vmem:[#allocation2 + $0x38] sm:$0xff]  ;;  %v8492_v28 = vpop.f32.mrb[86].mxu0 }
 0x19a   : > { %11512 = vst [vmem:[#allocation157_spill] sm:$0xff] %v8453_v32  ;;  %2289 = vperm.xlu1 %6740, %v8325_v30   ;;  %v8459_v52 = vpop.f32.mrb[85].mxu1  ;;  %11515 = vst [vmem:[#allocation160_spill] sm:$0xff] %v8492_v28 }
 0x19b   : > { %11513 = vst [vmem:[#allocation158_spill] sm:$0xff] %v8459_v52  ;;  %v8462_v34 = vmax.f32 %v1916_v15, %v8453_v32  ;;  %v6793_v32 = vld [vmem:[%s7432_s8 + $0x58] sm:$0xff]   ;;  %5219 = vmatpush1.bf16.msra.mxu1 %v6794_v45  ;;  %v8496_v45 = vld [vmem:[#allocation2 + $0x48] sm:$0xff] }
 0x19c   : > { %v1740_v46 = vpop.xlane.xlu0 %1739  ;;  %4930 = vmatpush1.bf16.msra.mxu0 %v6793_v32  ;;  %5220 = vmatprep.subr.bf16.mxu1 %v11427_v26  ;;  %11516 = vst [vmem:[#allocation161_spill] sm:$0xff] %v8496_v45 }
 0x19d   : > { %v8470_v40 = vmax.f32 %v8457_v11, %v1740_v46  ;;  %2284 = vperm.xlu0 %6739, %v8305_v49   ;;  %v6795_v46 = vld [vmem:[%s7412_s30 + $0xf0] sm:$0xff]   ;;  %4931 = vmatprep.subr.bf16.mxu0 %v11427_v26 }
 0x19e   : > { %v1745_v15 = vpop.xlane.xlu1 %1744  ;;  %2294 = vperm.xlu1 %6740, %v8359_v27   ;;  %6638 = vmatmul.mubr.msk.bf16.gmra.mrb[120].mxu0 %vm826_vm1, %v6795_v46 }
 0x19f   : > { %5620 = vst.msk [vmem:[#allocation2 + $0x30] sm:$0xff] %vm382_vm2, %v8470_v40  ;;  %v8481_v37 = vmax.f32 %v8466_v3, %v1745_v15  ;;  %6671 = vmatmul.mubr.msk.bf16.gmra.mrb[120].mxu1 %vm826_vm1, %v6795_v46  ;;  %v8498_v15 = vpop.f32.mrb[87].mxu0  ;;  %1278 = vmatprep.mubr.bf16.mxu0 %v11427_v26 }
 0x1a0   : > { %11517 = vst [vmem:[#allocation162_spill] sm:$0xff] %v8498_v15  ;;  %4932 = vmatpush1.bf16.msra.mxu0 %v6796_v29  ;;  %5221 = vmatpush1.bf16.msra.mxu1 %v6797_v25  ;;  %v8503_v23 = vpop.f32.mrb[88].mxu0  ;;  %v1921_v46 = vmax.f32 %v8492_v28, %v8498_v15  ;;  %v6798_v29 = vld [vmem:[%s7432_s8 + $0x68] sm:$0xff]   ;;  %v6800_v15 = vld [vmem:[%s7412_s30 + $0xf8] sm:$0xff]  }
 0x1a1   : > { %5621 = vst.msk [vmem:[#allocation2 + $0x38] sm:$0xff] %vm382_vm2, %v8481_v37  ;;  %11518 = vst [vmem:[#allocation163_spill] sm:$0xff] %v8503_v23  ;;  %4933 = vmatprep.subr.bf16.mxu0 %v11427_v26  ;;  %5222 = vmatprep.subr.bf16.mxu1 %v11427_v26  ;;  %v8509_v20 = vpop.f32.mrb[89].mxu0  ;;  %v6799_v25 = vld [vmem:[%s7432_s8 + $0xe8] sm:$0xff]  }
 0x1a2   : > { %11519 = vst [vmem:[#allocation164_spill] sm:$0xff] %v8509_v20  ;;  %1631 = vmatprep.mubr.bf16.mxu1 %v11427_v26  ;;  %v1926_v18 = vmax.f32 %v8503_v23, %v8509_v20  ;;  %v8538_v20 = vld [vmem:[#allocation2 + $0x50] sm:$0xff]  ;;  %v8547_v23 = vld [vmem:[#allocation2 + $0x58] sm:$0xff] }
 0x1a3   : > { %11523 = vst [vmem:[#allocation168_spill] sm:$0xff] %v8538_v20 }
 0x1a4   : > { %v1750_v32 = vpop.xlane.xlu0 %1749  ;;  %4934 = vmatpush1.bf16.msra.mxu0 %v6798_v29  ;;  %5223 = vmatpush1.bf16.msra.mxu1 %v6799_v25 }
 0x1a5   : > { %v8501_v24 = vmax.f32 %v8488_v31, %v1750_v32  ;;  %v8522_v31 = vpop.f32.mrb[86].mxu1  ;;  %4935 = vmatprep.subr.bf16.mxu0 %v11427_v26  ;;  %5224 = vmatprep.subr.bf16.mxu1 %v11427_v26 }
 0x1a6   : > { %v1755_v22 = vpop.xlane.xlu1 %1754  ;;  %11520 = vst [vmem:[#allocation165_spill] sm:$0xff] %v8522_v31  ;;  %v8526_v28 = vmax.f32 %v1921_v46, %v8522_v31  ;;  %v8528_v14 = vpop.f32.mrb[87].mxu1  ;;  %6639 = vmatmul.mubr.msk.bf16.gmra.mrb[124].mxu0 %vm826_vm1, %v6800_v15  ;;  %v8569_v31 = vld [vmem:[#allocation2 + $0x68] sm:$0xff] }
 0x1a7   : > { %5622 = vst.msk [vmem:[#allocation2 + $0x40] sm:$0xff] %vm382_vm2, %v8501_v24  ;;  %v8518_v32 = vmax.f32 %v8496_v45, %v1755_v22  ;;  %11521 = vst [vmem:[#allocation166_spill] sm:$0xff] %v8528_v14  ;;  %v8534_v22 = vpop.f32.mrb[88].mxu1  ;;  %6672 = vmatmul.mubr.msk.bf16.gmra.mrb[124].mxu1 %vm826_vm1, %v6800_v15  ;;  %v6803_v45 = vld [vmem:[%s7432_s8 + $0x78] sm:$0xff]  }
 0x1a8   : > { %11522 = vst [vmem:[#allocation167_spill] sm:$0xff] %v8534_v22  ;;  %v8541_v46 = vmax.f32 %v1926_v18, %v8534_v22  ;;  %v8543_v29 = vpop.f32.mrb[89].mxu1  ;;  %4936 = vmatpush1.bf16.msra.mxu0 %v6801_v10  ;;  %5225 = vmatpush1.bf16.msra.mxu1 %v6802_v13  ;;  %v8565_v10 = vld [vmem:[#allocation2 + $0x60] sm:$0xff]  ;;  %11526 = vst [vmem:[#allocation171_spill] sm:$0xff] %v8569_v31  ;;  %v11528_v13 = vmax.f32 %v8347_v35, %v8337_v6 }
 0x1a9   : > { %5623 = vst.msk [vmem:[#allocation2 + $0x48] sm:$0xff] %vm382_vm2, %v8518_v32  ;;  %11524 = vst [vmem:[#allocation169_spill] sm:$0xff] %v8543_v29  ;;  %4937 = vmatprep.subr.bf16.mxu0 %v11427_v26  ;;  %5226 = vmatprep.subr.bf16.mxu1 %v11427_v26  ;;  %v11530_v35 = vmax.f32 %v8362_v33, %v8355_v16  ;;  %v8617_v33 = vld [vmem:[#allocation2 + $0x90] sm:$0xff]  ;;  %v8624_v16 = vld [vmem:[#allocation2 + $0x98] sm:$0xff] }
 0x1aa   : > { %11525 = vst [vmem:[#allocation170_spill] sm:$0xff] %v8565_v10  ;;  %11535 = vst [vmem:[#allocation178_spill] sm:$0xff] %v8617_v33 }
 0x1ab   : > { %11537 = vst [vmem:[#allocation179_spill] sm:$0xff] %v8624_v16 }
 0x1ac   : > { %v1760_v25 = vpop.xlane.xlu0 %1759  ;;  %4938 = vmatpush1.bf16.msra.mxu0 %v6803_v45  ;;  %5227 = vmatpush1.bf16.msra.mxu1 %v6804_v9  ;;  %v8581_v45 = vld [vmem:[#allocation2 + $0x70] sm:$0xff] }
 0x1ad   : > { %v8554_v7 = vmax.f32 %v8538_v20, %v1760_v25  ;;  %11527 = vst [vmem:[#allocation172_spill] sm:$0xff] %v8581_v45  ;;  %v8586_v20 = vld [vmem:[#allocation2 + $0x78] sm:$0xff] }
 0x1ae   : > { %v1765_v18 = vpop.xlane.xlu1 %1764  ;;  %11529 = vst [vmem:[#allocation173_spill] sm:$0xff] %v8586_v20 }
 0x1af   : > { %5624 = vst.msk [vmem:[#allocation2 + $0x50] sm:$0xff] %vm382_vm2, %v8554_v7  ;;  %v8561_v15 = vmax.f32 %v8547_v23, %v1765_v18 }
 0x1b1   : > { %5625 = vst.msk [vmem:[#allocation2 + $0x58] sm:$0xff] %vm382_vm2, %v8561_v15 }
 0x1b4   : > { %v1770_v25 = vpop.xlane.xlu0 %1769 }
 0x1b5   : > { %v8572_v26 = vmax.f32 %v8565_v10, %v1770_v25 }
 0x1b6   : > { %v1775_v22 = vpop.xlane.xlu1 %1774 }
 0x1b7   : > { %5626 = vst.msk [vmem:[#allocation2 + $0x60] sm:$0xff] %vm382_vm2, %v8572_v26  ;;  %v8577_v9 = vmax.f32 %v8569_v31, %v1775_v22  ;;  %v2090_v22 = vsub.f32 %v8288_v4, %v8305_v49 }
 0x1b9   : > { %5627 = vst.msk [vmem:[#allocation2 + $0x68] sm:$0xff] %vm382_vm2, %v8577_v9 }
 0x1bc   : > { %v1780_v18 = vpop.xlane.xlu0 %1779  ;;  %1899 = vmax.xlane.f32.xlu0 %v11528_v13  ;;  %v8603_v13 = vld [vmem:[#allocation2 + $0x80] sm:$0xff] }
 0x1bd   : > { %v8589_v25 = vmax.f32 %v8581_v45, %v1780_v18  ;;  %11531 = vst [vmem:[#allocation174_spill] sm:$0xff] %v8603_v13  ;;  %v2154_v18 = vmul.f32 1.442695, %v2090_v22  ;;  %v8605_v45 = vld [vmem:[#allocation2 + $0x88] sm:$0xff]  ;;  %v11536_v22 = vsub.f32 %v8308_v59, %v8325_v30 }
 0x1be   : > { %v1785_v10 = vpop.xlane.xlu1 %1784  ;;  %11532 = vst [vmem:[#allocation175_spill] sm:$0xff] %v8605_v45 }
 0x1bf   : > { %5628 = vst.msk [vmem:[#allocation2 + $0x70] sm:$0xff] %vm382_vm2, %v8589_v25  ;;  %v8596_v31 = vmax.f32 %v8586_v20, %v1785_v10  ;;  %6805 = vpow2.f32 %v2154_v18 }
 0x1c1   : > { %5629 = vst.msk [vmem:[#allocation2 + $0x78] sm:$0xff] %vm382_vm2, %v8596_v31 }
 0x1c2   : > { %1904 = vmax.xlane.f32.xlu1 %v11530_v35  ;;  %v8622_v35 = vmul.f32 1.442695, %v11536_v22  ;;  %v8768_v22 = vld [vmem:[#allocation2 + $0xa0] sm:$0xff] }
 0x1c3   : > { %11542 = vst [vmem:[#allocation183_spill] sm:$0xff] %v8768_v22 }
 0x1c4   : > { %v1790_v6 = vpop.xlane.xlu0 %1789  ;;  %6807 = vpow2.f32 %v8622_v35 }
 0x1c5   : > { %v8608_v49 = vmax.f32 %v8603_v13, %v1790_v6  ;;  %v11539_v13 = vmov 0.0  }
 0x1c6   : > { %v1795_v4 = vpop.xlane.xlu1 %1794  ;;  %512 = vst.msk [vmem:[#allocation4] sm:$0xff] %vm511_vm3, %v11539_v13  ;;  %513 = vst.msk [vmem:[#allocation4 + $0x8] sm:$0xff] %vm511_vm3, %v11539_v13 }
 0x1c7   : > { %11533 = vst [vmem:[#allocation176_spill] sm:$0xff] %v8608_v49  ;;  %5630 = vst.msk [vmem:[#allocation2 + $0x80] sm:$0xff] %vm382_vm2, %v8608_v49  ;;  %v8613_v10 = vmax.f32 %v8605_v45, %v1795_v4  ;;  %v8791_v45 = vpop.f32.mrb[90].mxu0 }
 0x1c8   : > { %514 = vst.msk [vmem:[#allocation4 + $0x10] sm:$0xff] %vm511_vm3, %v11539_v13  ;;  %515 = vst.msk [vmem:[#allocation4 + $0x18] sm:$0xff] %vm511_vm3, %v11539_v13 }
 0x1c9   : > { %11534 = vst [vmem:[#allocation177_spill] sm:$0xff] %v8613_v10  ;;  %5631 = vst.msk [vmem:[#allocation2 + $0x88] sm:$0xff] %vm382_vm2, %v8613_v10  ;;  %v8763_v4 = vpop.eup %6805 }
 0x1ca   : > { %516 = vst.msk [vmem:[#allocation4 + $0x20] sm:$0xff] %vm511_vm3, %v11539_v13  ;;  %517 = vst.msk [vmem:[#allocation4 + $0x28] sm:$0xff] %vm511_vm3, %v11539_v13 }
 0x1cb   : > { %518 = vst.msk [vmem:[#allocation4 + $0x30] sm:$0xff] %vm511_vm3, %v11539_v13  ;;  %519 = vst.msk [vmem:[#allocation4 + $0x38] sm:$0xff] %vm511_vm3, %v11539_v13 }
 0x1cc   : > { %v1800_v6 = vpop.xlane.xlu0 %1799  ;;  %520 = vst.msk [vmem:[#allocation4 + $0x40] sm:$0xff] %vm511_vm3, %v11539_v13  ;;  %521 = vst.msk [vmem:[#allocation4 + $0x48] sm:$0xff] %vm511_vm3, %v11539_v13 }
 0x1cd   : > { %v8627_v18 = vmax.f32 %v8617_v33, %v1800_v6  ;;  %522 = vst.msk [vmem:[#allocation4 + $0x50] sm:$0xff] %vm511_vm3, %v11539_v13  ;;  %523 = vst.msk [vmem:[#allocation4 + $0x58] sm:$0xff] %vm511_vm3, %v11539_v13  ;;  %v8771_v6 = vld [vmem:[#allocation2 + $0xa8] sm:$0xff] }
 0x1ce   : > { %524 = vst.msk [vmem:[#allocation4 + $0x60] sm:$0xff] %vm511_vm3, %v11539_v13  ;;  %525 = vst.msk [vmem:[#allocation4 + $0x68] sm:$0xff] %vm511_vm3, %v11539_v13  ;;  %v1805_v59 = vpop.xlane.xlu1 %1804 }
 0x1cf   : > { %11538 = vst [vmem:[#allocation180_spill] sm:$0xff] %v8627_v18  ;;  %526 = vst.msk [vmem:[#allocation4 + $0x70] sm:$0xff] %vm511_vm3, %v11539_v13  ;;  %v8760_v30 = vmax.f32 %v8624_v16, %v1805_v59  ;;  %v8786_v16 = vld [vmem:[#allocation2 + $0xb0] sm:$0xff] }
 0x1d0   : > { %527 = vst.msk [vmem:[#allocation4 + $0x78] sm:$0xff] %vm511_vm3, %v11539_v13  ;;  %528 = vst.msk [vmem:[#allocation4 + $0x80] sm:$0xff] %vm511_vm3, %v11539_v13 }
 0x1d1   : > { %529 = vst.msk [vmem:[#allocation4 + $0x88] sm:$0xff] %vm511_vm3, %v11539_v13  ;;  %530 = vst.msk [vmem:[#allocation4 + $0x90] sm:$0xff] %vm511_vm3, %v11539_v13 }
 0x1d2   : > { %531 = vst.msk [vmem:[#allocation4 + $0x98] sm:$0xff] %vm511_vm3, %v11539_v13  ;;  %532 = vst.msk [vmem:[#allocation4 + $0xa0] sm:$0xff] %vm511_vm3, %v11539_v13  ;;  %4269 = vperm.xlu0 %6739, %v8763_v4  }
 0x1d3   : > { %533 = vst.msk [vmem:[#allocation4 + $0xa8] sm:$0xff] %vm511_vm3, %v11539_v13  ;;  %534 = vst.msk [vmem:[#allocation4 + $0xb0] sm:$0xff] %vm511_vm3, %v11539_v13  ;;  %2299 = vperm.xlu1 %6740, %v8386_v63  }
 0x1d4   : > { %535 = vst.msk [vmem:[#allocation4 + $0xb8] sm:$0xff] %vm511_vm3, %v11539_v13  ;;  %536 = vst.msk [vmem:[#allocation4 + $0xc0] sm:$0xff] %vm511_vm3, %v11539_v13 }
 0x1d5   : > { %537 = vst.msk [vmem:[#allocation4 + $0xc8] sm:$0xff] %vm511_vm3, %v11539_v13  ;;  %538 = vst.msk [vmem:[#allocation4 + $0xd0] sm:$0xff] %vm511_vm3, %v11539_v13 }
 0x1d6   : > { %539 = vst.msk [vmem:[#allocation4 + $0xd8] sm:$0xff] %vm511_vm3, %v11539_v13  ;;  %540 = vst.msk [vmem:[#allocation4 + $0xe0] sm:$0xff] %vm511_vm3, %v11539_v13  ;;  %v1815_v59 = vpop.xlane.xlu1 %1814 }
 0x1d7   : > { %541 = vst.msk [vmem:[#allocation4 + $0xe8] sm:$0xff] %vm511_vm3, %v11539_v13  ;;  %542 = vst.msk [vmem:[#allocation4 + $0xf0] sm:$0xff] %vm511_vm3, %v11539_v13  ;;  %v8779_v35 = vmax.f32 %v8771_v6, %v1815_v59  ;;  %2304 = vperm.xlu1 %6740, %v8422_v21   ;;  %v8796_v59 = vpop.f32.mrb[91].mxu0 }
 0x1d8   : > { %543 = vst.msk [vmem:[#allocation4 + $0xf8] sm:$0xff] %vm511_vm3, %v11539_v13  ;;  %544 = vst.msk [vmem:[#allocation4 + $0x100] sm:$0xff] %vm511_vm3, %v11539_v13 }
 0x1d9   : > { %545 = vst.msk [vmem:[#allocation4 + $0x108] sm:$0xff] %vm511_vm3, %v11539_v13  ;;  %546 = vst.msk [vmem:[#allocation4 + $0x110] sm:$0xff] %vm511_vm3, %v11539_v13 }
 0x1da   : > { %547 = vst.msk [vmem:[#allocation4 + $0x118] sm:$0xff] %vm511_vm3, %v11539_v13  ;;  %548 = vst.msk [vmem:[#allocation4 + $0x120] sm:$0xff] %vm511_vm3, %v11539_v13 }
 0x1db   : > { %549 = vst.msk [vmem:[#allocation4 + $0x128] sm:$0xff] %vm511_vm3, %v11539_v13  ;;  %550 = vst.msk [vmem:[#allocation4 + $0x130] sm:$0xff] %vm511_vm3, %v11539_v13 }
 0x1dc   : > { %551 = vst.msk [vmem:[#allocation4 + $0x138] sm:$0xff] %vm511_vm3, %v11539_v13  ;;  %552 = vst.msk [vmem:[#allocation4 + $0x140] sm:$0xff] %vm511_vm3, %v11539_v13 }
 0x1dd   : > { %553 = vst.msk [vmem:[#allocation4 + $0x148] sm:$0xff] %vm511_vm3, %v11539_v13  ;;  %554 = vst.msk [vmem:[#allocation4 + $0x150] sm:$0xff] %vm511_vm3, %v11539_v13 }
 0x1de   : > { %555 = vst.msk [vmem:[#allocation4 + $0x158] sm:$0xff] %vm511_vm3, %v11539_v13  ;;  %556 = vst.msk [vmem:[#allocation4 + $0x160] sm:$0xff] %vm511_vm3, %v11539_v13 }
 0x1df   : > { %557 = vst.msk [vmem:[#allocation4 + $0x168] sm:$0xff] %vm511_vm3, %v11539_v13  ;;  %558 = vst.msk [vmem:[#allocation4 + $0x170] sm:$0xff] %vm511_vm3, %v11539_v13 }
 0x1e0   : > { %559 = vst.msk [vmem:[#allocation4 + $0x178] sm:$0xff] %vm511_vm3, %v11539_v13  ;;  %560 = vst.msk [vmem:[#allocation4 + $0x180] sm:$0xff] %vm511_vm3, %v11539_v13 }
 0x1e1   : > { %561 = vst.msk [vmem:[#allocation4 + $0x188] sm:$0xff] %vm511_vm3, %v11539_v13  ;;  %562 = vst.msk [vmem:[#allocation4 + $0x190] sm:$0xff] %vm511_vm3, %v11539_v13 }
 0x1e2   : > { %563 = vst.msk [vmem:[#allocation4 + $0x198] sm:$0xff] %vm511_vm3, %v11539_v13  ;;  %564 = vst.msk [vmem:[#allocation4 + $0x1a0] sm:$0xff] %vm511_vm3, %v11539_v13 }
 0x1e3   : > { %565 = vst.msk [vmem:[#allocation4 + $0x1a8] sm:$0xff] %vm511_vm3, %v11539_v13  ;;  %566 = vst.msk [vmem:[#allocation4 + $0x1b0] sm:$0xff] %vm511_vm3, %v11539_v13 }
 0x1e4   : > { %567 = vst.msk [vmem:[#allocation4 + $0x1b8] sm:$0xff] %vm511_vm3, %v11539_v13  ;;  %568 = vst.msk [vmem:[#allocation4 + $0x1c0] sm:$0xff] %vm511_vm3, %v11539_v13 }
 0x1e5   : > { %569 = vst.msk [vmem:[#allocation4 + $0x1c8] sm:$0xff] %vm511_vm3, %v11539_v13  ;;  %570 = vst.msk [vmem:[#allocation4 + $0x1d0] sm:$0xff] %vm511_vm3, %v11539_v13 }
 0x1e6   : > { %571 = vst.msk [vmem:[#allocation4 + $0x1d8] sm:$0xff] %vm511_vm3, %v11539_v13  ;;  %572 = vst.msk [vmem:[#allocation4 + $0x1e0] sm:$0xff] %vm511_vm3, %v11539_v13 }
 0x1e7   : > { %573 = vst.msk [vmem:[#allocation4 + $0x1e8] sm:$0xff] %vm511_vm3, %v11539_v13  ;;  %574 = vst.msk [vmem:[#allocation4 + $0x1f0] sm:$0xff] %vm511_vm3, %v11539_v13 }
 0x1e8   : > { %575 = vst.msk [vmem:[#allocation4 + $0x1f8] sm:$0xff] %vm511_vm3, %v11539_v13  ;;  %11540 = vst [vmem:[#allocation181_spill] sm:$0xff] %v8760_v30  ;;  %v1810_v13 = vpop.xlane.xlu0 %1809 }
 0x1e9   : > { %5632 = vst.msk [vmem:[#allocation2 + $0x90] sm:$0xff] %vm382_vm2, %v8627_v18  ;;  %11541 = vst [vmem:[#allocation182_spill] sm:$0xff] %v8763_v4  ;;  %v8774_v33 = vmax.f32 %v8768_v22, %v1810_v13  ;;  %v8784_v4 = vpop.eup %6807  ;;  %v8789_v22 = vld [vmem:[#allocation2 + $0xb8] sm:$0xff]  ;;  %v1825_v18 = vpop.xlane.xlu1 %1824 }
 0x1ea   : > { %5633 = vst.msk [vmem:[#allocation2 + $0x98] sm:$0xff] %vm382_vm2, %v8760_v30  ;;  %11543 = vst [vmem:[#allocation184_spill] sm:$0xff] %v8771_v6  ;;  %4274 = vperm.xlu1 %6740, %v8784_v4   ;;  %v8798_v6 = vpop.f32.mrb[90].mxu1  ;;  %v8802_v30 = vpop.f32.mrb[92].mxu0 }
 0x1eb   : > { %11544 = vst [vmem:[#allocation185_spill] sm:$0xff] %v8774_v33  ;;  %5634 = vst.msk [vmem:[#allocation2 + $0xa0] sm:$0xff] %vm382_vm2, %v8774_v33  ;;  %v8809_v20 = vpop.f32.mrb[93].mxu0 }
 0x1ec   : > { %11545 = vst [vmem:[#allocation186_spill] sm:$0xff] %v8779_v35  ;;  %5635 = vst.msk [vmem:[#allocation2 + $0xa8] sm:$0xff] %vm382_vm2, %v8779_v35  ;;  %v1820_v13 = vpop.xlane.xlu0 %1819  ;;  %v1931_v35 = vmax.f32 %v8791_v45, %v8796_v59 }
 0x1ed   : > { %11546 = vst [vmem:[#allocation187_spill] sm:$0xff] %v8784_v4  ;;  %11547 = vst [vmem:[#allocation188_spill] sm:$0xff] %v8786_v16  ;;  %v8794_v33 = vmax.f32 %v8786_v16, %v1820_v13  ;;  %v8807_v4 = vmax.f32 %v8789_v22, %v1825_v18  ;;  %v8811_v13 = vpop.f32.mrb[91].mxu1  ;;  %v1936_v16 = vmax.f32 %v8802_v30, %v8809_v20 }
 0x1ee   : > { %11548 = vst [vmem:[#allocation189_spill] sm:$0xff] %v8789_v22  ;;  %11549 = vst [vmem:[#allocation190_spill] sm:$0xff] %v8791_v45  ;;  %v8816_v49 = vmax.f32 %v1931_v35, %v8798_v6  ;;  %v8818_v10 = vpop.f32.mrb[92].mxu1  ;;  %v8824_v45 = vld [vmem:[#allocation2 + $0xc0] sm:$0xff] }
 0x1ef   : > { %11550 = vst [vmem:[#allocation191_spill] sm:$0xff] %v8794_v33  ;;  %11551 = vst [vmem:[#allocation192_spill] sm:$0xff] %v8796_v59  ;;  %v8822_v59 = vpop.f32.mrb[93].mxu1  ;;  %v8827_v18 = vmax.f32 %v1936_v16, %v8818_v10  ;;  %v8843_v16 = vld [vmem:[#allocation2 + $0xd0] sm:$0xff] }
 0x1f0   : > { %11552 = vst [vmem:[#allocation193_spill] sm:$0xff] %v8798_v6  ;;  %11553 = vst [vmem:[#allocation194_spill] sm:$0xff] %v8802_v30  ;;  %v1830_v22 = vpop.xlane.xlu0 %1829  ;;  %v1835_v30 = vpop.xlane.xlu1 %1834 }
 0x1f1   : > { %5636 = vst.msk [vmem:[#allocation2 + $0xb0] sm:$0xff] %vm382_vm2, %v8794_v33  ;;  %11554 = vst [vmem:[#allocation195_spill] sm:$0xff] %v8807_v4  ;;  %v8829_v33 = vld [vmem:[#allocation2 + $0xc8] sm:$0xff]  ;;  %v8834_v35 = vmax.f32 %v8824_v45, %v1830_v22 }
 0x1f2   : > { %11555 = vst [vmem:[#allocation196_spill] sm:$0xff] %v8809_v20  ;;  %11556 = vst [vmem:[#allocation197_spill] sm:$0xff] %v8811_v13  ;;  %v8839_v6 = vmax.f32 %v8829_v33, %v1835_v30  ;;  %v8847_v20 = vld [vmem:[#allocation2 + $0xd8] sm:$0xff] }
 0x1f3   : > { %11557 = vst [vmem:[#allocation198_spill] sm:$0xff] %v8818_v10  ;;  %5637 = vst.msk [vmem:[#allocation2 + $0xb8] sm:$0xff] %vm382_vm2, %v8807_v4  ;;  %v8862_v10 = vld [vmem:[#allocation2 + $0xe0] sm:$0xff] }
 0x1f4   : > { %11558 = vst [vmem:[#allocation199_spill] sm:$0xff] %v8822_v59  ;;  %11559 = vst [vmem:[#allocation200_spill] sm:$0xff] %v8824_v45  ;;  %v1840_v4 = vpop.xlane.xlu0 %1839  ;;  %v1845_v45 = vpop.xlane.xlu1 %1844 }
 0x1f5   : > { %11560 = vst [vmem:[#allocation201_spill] sm:$0xff] %v8829_v33  ;;  %11561 = vst [vmem:[#allocation202_spill] sm:$0xff] %v8834_v35  ;;  %v8850_v22 = vmax.f32 %v8843_v16, %v1840_v4  ;;  %v8855_v30 = vmax.f32 %v8847_v20, %v1845_v45  ;;  %v11567_v33 = vmax.f32 %v8407_v17, %v8399_v1  ;;  %v8879_v17 = vld [vmem:[#allocation2 + $0xf0] sm:$0xff] }
 0x1f6   : > { %5638 = vst.msk [vmem:[#allocation2 + $0xc0] sm:$0xff] %vm382_vm2, %v8834_v35  ;;  %11562 = vst [vmem:[#allocation203_spill] sm:$0xff] %v8839_v6 }
 0x1f7   : > { %5639 = vst.msk [vmem:[#allocation2 + $0xc8] sm:$0xff] %vm382_vm2, %v8839_v6  ;;  %11563 = vst [vmem:[#allocation204_spill] sm:$0xff] %v8843_v16  ;;  %1909 = vmax.xlane.f32.xlu0 %v11567_v33  ;;  %v8864_v6 = vld [vmem:[#allocation2 + $0xe8] sm:$0xff]  ;;  %v11571_v16 = vmax.f32 %v8462_v34, %v8459_v52  ;;  %v11574_v33 = vsub.f32 %v8366_v50, %v8386_v63  ;;  %v11578_v52 = vmax.f32 %v8425_v19, %v8419_v36  ;;  %v8899_v63 = vld [vmem:[#allocation2 + $0x100] sm:$0xff] }
 0x1f8   : > { %11564 = vst [vmem:[#allocation205_spill] sm:$0xff] %v8847_v20  ;;  %11565 = vst [vmem:[#allocation206_spill] sm:$0xff] %v8850_v22  ;;  %v1850_v35 = vpop.xlane.xlu0 %1849  ;;  %v1855_v45 = vpop.xlane.xlu1 %1854 }
 0x1f9   : > { %5640 = vst.msk [vmem:[#allocation2 + $0xd0] sm:$0xff] %vm382_vm2, %v8850_v22  ;;  %11566 = vst [vmem:[#allocation207_spill] sm:$0xff] %v8855_v30  ;;  %v8867_v4 = vmax.f32 %v8862_v10, %v1850_v35  ;;  %v8875_v22 = vmax.f32 %v8864_v6, %v1855_v45  ;;  %v2160_v35 = vmul.f32 1.442695, %v11574_v33  ;;  %v11581_v33 = vsub.f32 %v8333_v0, %v8359_v27  ;;  %v8921_v0 = vld [vmem:[#allocation2 + $0x118] sm:$0xff] }
 0x1fa   : > { %5641 = vst.msk [vmem:[#allocation2 + $0xd8] sm:$0xff] %vm382_vm2, %v8855_v30  ;;  %11568 = vst [vmem:[#allocation208_spill] sm:$0xff] %v8862_v10  ;;  %v8884_v10 = vld [vmem:[#allocation2 + $0xf8] sm:$0xff] }
 0x1fb   : > { %11569 = vst [vmem:[#allocation209_spill] sm:$0xff] %v8864_v6  ;;  %11570 = vst [vmem:[#allocation210_spill] sm:$0xff] %v8867_v4  ;;  %1919 = vmax.xlane.f32.xlu0 %v11571_v16  ;;  %6809 = vpow2.f32 %v2160_v35  ;;  %v8918_v35 = vld [vmem:[#allocation2 + $0x110] sm:$0xff] }
 0x1fc   : > { %5642 = vst.msk [vmem:[#allocation2 + $0xe0] sm:$0xff] %vm382_vm2, %v8867_v4  ;;  %11572 = vst [vmem:[#allocation211_spill] sm:$0xff] %v8875_v22  ;;  %v1860_v1 = vpop.xlane.xlu0 %1859 }
 0x1fd   : > { %5643 = vst.msk [vmem:[#allocation2 + $0xe8] sm:$0xff] %vm382_vm2, %v8875_v22  ;;  %11573 = vst [vmem:[#allocation212_spill] sm:$0xff] %v8879_v17  ;;  %v8887_v34 = vmax.f32 %v8879_v17, %v1860_v1  ;;  %v8901_v1 = vld [vmem:[#allocation2 + $0x108] sm:$0xff]  ;;  %v2158_v17 = vmul.f32 1.442695, %v11581_v33 }
 0x1fe   : > { %11575 = vst [vmem:[#allocation213_spill] sm:$0xff] %v8884_v10  ;;  %v1865_v16 = vpop.xlane.xlu1 %1864  ;;  %11579 = vst [vmem:[#allocation216_spill] sm:$0xff] %v8899_v63 }
 0x1ff   : > { %11576 = vst [vmem:[#allocation214_spill] sm:$0xff] %v8887_v34  ;;  %5644 = vst.msk [vmem:[#allocation2 + $0xf0] sm:$0xff] %vm382_vm2, %v8887_v34  ;;  %v8892_v45 = vmax.f32 %v8884_v10, %v1865_v16  ;;  %6811 = vpow2.f32 %v2158_v17 }
 0x200   : > { %11580 = vst [vmem:[#allocation217_spill] sm:$0xff] %v8901_v1  ;;  %11585 = vst [vmem:[#allocation221_spill] sm:$0xff] %v8918_v35 }
 0x201   : > { %11577 = vst [vmem:[#allocation215_spill] sm:$0xff] %v8892_v45  ;;  %5645 = vst.msk [vmem:[#allocation2 + $0xf8] sm:$0xff] %vm382_vm2, %v8892_v45 }
 0x202   : > { %11586 = vst [vmem:[#allocation222_spill] sm:$0xff] %v8921_v0 }
 0x204   : > { %v1870_v50 = vpop.xlane.xlu0 %1869 }
 0x205   : > { %v8907_v16 = vmax.f32 %v8899_v63, %v1870_v50  ;;  %v8916_v19 = vpop.eup %6809 }
 0x206   : > { %v1875_v34 = vpop.xlane.xlu1 %1874  ;;  %11584 = vst [vmem:[#allocation220_spill] sm:$0xff] %v8916_v19 }
 0x207   : > { %11582 = vst [vmem:[#allocation218_spill] sm:$0xff] %v8907_v16  ;;  %5646 = vst.msk [vmem:[#allocation2 + $0x100] sm:$0xff] %vm382_vm2, %v8907_v16 }
 0x20c   : > { %v1880_v27 = vpop.xlane.xlu0 %1879 }
 0x20d   : > { %v8924_v50 = vmax.f32 %v8918_v35, %v1880_v27  ;;  %v8939_v27 = vld [vmem:[#allocation2 + $0x128] sm:$0xff] }
 0x20e   : > { %1914 = vmax.xlane.f32.xlu1 %v11578_v52  ;;  %v8912_v52 = vmax.f32 %v8901_v1, %v1875_v34  ;;  %v1885_v33 = vpop.xlane.xlu1 %1884  ;;  %v8934_v34 = vld [vmem:[#allocation2 + $0x120] sm:$0xff]  ;;  %11591 = vst [vmem:[#allocation227_spill] sm:$0xff] %v8939_v27 }
 0x20f   : > { %11587 = vst [vmem:[#allocation223_spill] sm:$0xff] %v8924_v50  ;;  %5648 = vst.msk [vmem:[#allocation2 + $0x110] sm:$0xff] %vm382_vm2, %v8924_v50  ;;  %v8929_v17 = vmax.f32 %v8921_v0, %v1885_v33  ;;  %v8944_v50 = vpop.f32.mrb[94].mxu0  ;;  %v8958_v0 = vpop.f32.mrb[94].mxu1 }
 0x210   : > { %11583 = vst [vmem:[#allocation219_spill] sm:$0xff] %v8912_v52  ;;  %5647 = vst.msk [vmem:[#allocation2 + $0x108] sm:$0xff] %vm382_vm2, %v8912_v52  ;;  %v8946_v63 = vpop.f32.mrb[95].mxu0 }
 0x211   : > { %4284 = vperm.xlu0 %6739, %v8916_v19   ;;  %11588 = vst [vmem:[#allocation224_spill] sm:$0xff] %v8929_v17  ;;  %5649 = vst.msk [vmem:[#allocation2 + $0x118] sm:$0xff] %vm382_vm2, %v8929_v17  ;;  %v8936_v19 = vpop.eup %6811  ;;  %v8953_v4 = vpop.f32.mrb[96].mxu0 }
 0x212   : > { %11589 = vst [vmem:[#allocation225_spill] sm:$0xff] %v8934_v34  ;;  %11590 = vst [vmem:[#allocation226_spill] sm:$0xff] %v8936_v19 }
 0x213   : > { %11593 = vst [vmem:[#allocation229_spill] sm:$0xff] %v8944_v50  ;;  %11594 = vst [vmem:[#allocation230_spill] sm:$0xff] %v8946_v63 }
 0x214   : > { %v1890_v36 = vpop.xlane.xlu0 %1889  ;;  %11596 = vst [vmem:[#allocation232_spill] sm:$0xff] %v8953_v4  ;;  %11598 = vst [vmem:[#allocation234_spill] sm:$0xff] %v8958_v0 }
 0x215   : > { %v8942_v35 = vmax.f32 %v8934_v34, %v1890_v36  ;;  %v8964_v34 = vpop.f32.mrb[95].mxu1 }
 0x216   : > { %v1895_v33 = vpop.xlane.xlu1 %1894  ;;  %11599 = vst [vmem:[#allocation235_spill] sm:$0xff] %v8964_v34 }
 0x217   : > { %11592 = vst [vmem:[#allocation228_spill] sm:$0xff] %v8942_v35  ;;  %5650 = vst.msk [vmem:[#allocation2 + $0x120] sm:$0xff] %vm382_vm2, %v8942_v35  ;;  %v8951_v16 = vmax.f32 %v8939_v27, %v1895_v33  ;;  %v1941_v33 = vmax.f32 %v8944_v50, %v8946_v63  ;;  %v8968_v27 = vpop.f32.mrb[96].mxu1 }
 0x218   : > { %11600 = vst [vmem:[#allocation236_spill] sm:$0xff] %v8968_v27  ;;  %v8970_v17 = vpop.f32.mrb[97].mxu1 }
 0x219   : > { %11595 = vst [vmem:[#allocation231_spill] sm:$0xff] %v8951_v16  ;;  %5651 = vst.msk [vmem:[#allocation2 + $0x128] sm:$0xff] %vm382_vm2, %v8951_v16  ;;  %v8975_v16 = vmax.f32 %v1941_v33, %v8958_v0 }
 0x21a   : > { %v2290_v35 = vpop.permute.xlu1 %2289  ;;  %11601 = vst [vmem:[#allocation237_spill] sm:$0xff] %v8970_v17 }
 0x21b   : > { %v2606_v1 = vsub.f32 %v7544_v41, %v2290_v35  ;;  %v2607_v52 = vsub.f32 %v7548_v43, %v2290_v35  ;;  %v2609_v6 = vsub.f32 %v7557_v48, %v2290_v35 }
 0x21c   : > { %v2285_v10 = vpop.permute.xlu0 %2284 }
 0x21d   : > { %v2602_v45 = vsub.f32 %v7538_v38, %v2285_v10  ;;  %v2603_v63 = vsub.f32 %v7540_v39, %v2285_v10  ;;  %v2604_v50 = vsub.f32 %v7546_v42, %v2285_v10  ;;  %v2605_v41 = vsub.f32 %v7550_v44, %v2285_v10 }
 0x21e   : > { %v11602_v39 = vmax.f32 %v8541_v46, %v8543_v29  ;;  %v2095_v42 = vsub.f32 %v8417_v60, %v8436_v54 }
 0x21f   : > { %2309 = vperm.xlu1 %6740, %v8436_v54   ;;  %v2858_v33 = vpack.c.bf16 %v2606_v1, %v2602_v45  ;;  %v2859_v0 = vpack.c.bf16 %v2607_v52, %v2603_v63 }
 0x221   : > { %v2990_v20 = vmul.bf16 1069105081, %v2859_v0 }
 0x223   : > { %4279 = vperm.xlu1 %6740, %v8936_v19   ;;  %v8956_v19 = vpop.f32.mrb[97].mxu0 }
 0x224   : > { %11597 = vst [vmem:[#allocation233_spill] sm:$0xff] %v8956_v19  ;;  %v1946_v36 = vmax.f32 %v8953_v4, %v8956_v19  ;;  %v2608_v4 = vsub.f32 %v7555_v47, %v2290_v35 }
 0x226   : > { %v8978_v19 = vmax.f32 %v1946_v36, %v8968_v27  ;;  %v2860_v22 = vpack.c.bf16 %v2608_v4, %v2604_v50  ;;  %v2861_v36 = vpack.c.bf16 %v2609_v6, %v2605_v41  ;;  %v2987_v27 = vmul.bf16 1069105081, %v2858_v33 }
 0x227   : > { %2314 = vperm.xlu1 %6740, %v8470_v40   ;;  %v11605_v41 = vmax.f32 %v8526_v28, %v8528_v14  ;;  %v9017_v28 = vld [vmem:[#allocation2 + $0x138] sm:$0xff] }
 0x228   : > { %v2993_v47 = vmul.bf16 1069105081, %v2860_v22  ;;  %v2996_v30 = vmul.bf16 1069105081, %v2861_v36  ;;  %6813 = vpow.bf16 %v2987_v27  ;;  %v11607_v36 = vsub.f32 %v8395_v12, %v8422_v21  ;;  %11610 = vst [vmem:[#allocation243_spill] sm:$0xff] %v9017_v28 }
 0x229   : > { %6815 = vpow.bf16 %v2990_v20 }
 0x22a   : > { %6817 = vpow.bf16 %v2993_v47  ;;  %v2162_v47 = vmul.f32 1.442695, %v11607_v36 }
 0x22b   : > { %6819 = vpow.bf16 %v2996_v30  ;;  %v2164_v30 = vmul.f32 1.442695, %v2095_v42 }
 0x22d   : > { %6821 = vpow2.f32 %v2164_v30 }
 0x22e   : > { %6823 = vpow2.f32 %v2162_v47 }
 0x230   : > { %1929 = vmax.xlane.f32.xlu0 %v11602_v39  ;;  %v9009_v39 = vld [vmem:[#allocation2 + $0x130] sm:$0xff] }
 0x231   : > { %11608 = vst [vmem:[#allocation241_spill] sm:$0xff] %v9009_v39 }
 0x233   : > { %v6814_v44 = vpop.eup %6813 }
 0x234   : > { %v6816_v48 = vpop.eup %6815  ;;  %v3502_v10 = vunpack.c.h.bf16 %v6814_v44  ;;  %v3498_v6 = vunpack.c.l.bf16 %v6814_v44 }
 0x235   : > { %v6818_v22 = vpop.eup %6817  ;;  %4939 = vmatprep.mubr.bf16.mxu0 %v6816_v48  ;;  %v3503_v4 = vunpack.c.h.bf16 %v6816_v48  ;;  %v3499_v20 = vunpack.c.l.bf16 %v6816_v48  ;;  %v2295_v48 = vpop.permute.xlu1 %2294 }
 0x236   : > { %v6820_v45 = vpop.eup %6819  ;;  %4940 = vmatmul.mubr.bf16.vlgmr.msra.gmra.mrb[128].mxu0 %v6814_v44  ;;  %v3504_v63 = vunpack.c.h.bf16 %v6818_v22  ;;  %v3500_v52 = vunpack.c.l.bf16 %v6818_v22  ;;  %v2613_v47 = vsub.f32 %v7574_v58, %v2295_v48 }
 0x237   : > { %5228 = vmatprep.mubr.bf16.mxu1 %v6820_v45  ;;  %v3759_v1 = vadd.f32 %v3503_v4, %v3502_v10  ;;  %v3754_v46 = vadd.f32 %v3499_v20, %v3498_v6  ;;  %v3505_v35 = vunpack.c.h.bf16 %v6820_v45  ;;  %v3501_v60 = vunpack.c.l.bf16 %v6820_v45  ;;  %v9002_v33 = vpop.eup %6821  ;;  %v9019_v10 = vpop.f32.mrb[98].mxu0 }
 0x238   : > { %5229 = vmatmul.mubr.bf16.vlgmr.msra.gmra.mrb[128].mxu1 %v6818_v22  ;;  %11606 = vst [vmem:[#allocation240_spill] sm:$0xff] %v9002_v33  ;;  %11611 = vst [vmem:[#allocation244_spill] sm:$0xff] %v9019_v10  ;;  %v9021_v21 = vpop.f32.mrb[99].mxu0  ;;  %v9023_v6 = vpop.eup %6823 }
 0x239   : > { %v3760_v0 = vadd.f32 %v3759_v1, %v3504_v63  ;;  %v3755_v54 = vadd.f32 %v3754_v46, %v3500_v52  ;;  %11612 = vst [vmem:[#allocation245_spill] sm:$0xff] %v9021_v21  ;;  %11613 = vst [vmem:[#allocation246_spill] sm:$0xff] %v9023_v6  ;;  %v1951_v4 = vmax.f32 %v9019_v10, %v9021_v21  ;;  %v9039_v63 = vpop.f32.mrb[98].mxu1 }
 0x23a   : > { %11617 = vst [vmem:[#allocation250_spill] sm:$0xff] %v9039_v63  ;;  %v2610_v1 = vsub.f32 %v7561_v51, %v2295_v48  ;;  %v2611_v52 = vsub.f32 %v7564_v53, %v2295_v48 }
 0x23b   : > { %v8995_v50 = vadd.f32 %v3760_v0, %v3505_v35  ;;  %v8997_v27 = vadd.f32 %v3755_v54, %v3501_v60  ;;  %v9043_v35 = vpop.f32.mrb[99].mxu1  ;;  %v2612_v0 = vsub.f32 %v7570_v56, %v2295_v48 }
 0x23c   : > { %11618 = vst [vmem:[#allocation251_spill] sm:$0xff] %v9043_v35 }
 0x23d   : > { %11603 = vst [vmem:[#allocation238_spill] sm:$0xff] %v8995_v50  ;;  %11604 = vst [vmem:[#allocation239_spill] sm:$0xff] %v8997_v27 }
 0x246   : > { %4294 = vperm.xlu0 %6739, %v9002_v33  }
 0x247   : > { %v9030_v20 = vpop.f32.mrb[100].mxu0  ;;  %v9049_v36 = vpop.f32.mrb[100].mxu1 }
 0x248   : > { %11615 = vst [vmem:[#allocation248_spill] sm:$0xff] %v9030_v20  ;;  %v9033_v45 = vpop.f32.mrb[101].mxu0  ;;  %11619 = vst [vmem:[#allocation252_spill] sm:$0xff] %v9049_v36  ;;  %v9057_v53 = vpop.f32.mrb[101].mxu1 }
 0x249   : > { %v1900_v42 = vpop.xlane.xlu0 %1899  ;;  %11616 = vst [vmem:[#allocation249_spill] sm:$0xff] %v9033_v45  ;;  %v1956_v30 = vmax.f32 %v9030_v20, %v9033_v45  ;;  %11620 = vst [vmem:[#allocation253_spill] sm:$0xff] %v9057_v53 }
 0x24a   : > { %2329 = vperm.xlu0 %6739, %v8518_v32   ;;  %v9012_v44 = vmax.f32 %v9009_v39, %v1900_v42 }
 0x24b   : > { %1924 = vmax.xlane.f32.xlu1 %v11605_v41  ;;  %v9055_v51 = vmax.f32 %v1956_v30, %v9049_v36  ;;  %v11621_v30 = vmax.f32 %v8827_v18, %v8822_v59 }
 0x24c   : > { %11609 = vst [vmem:[#allocation242_spill] sm:$0xff] %v9012_v44  ;;  %5652 = vst.msk [vmem:[#allocation2 + $0x130] sm:$0xff] %vm382_vm2, %v9012_v44 }
 0x24f   : > { %v1905_v12 = vpop.xlane.xlu1 %1904 }
 0x250   : > { %v9026_v22 = vmax.f32 %v9017_v28, %v1905_v12 }
 0x252   : > { %11614 = vst [vmem:[#allocation247_spill] sm:$0xff] %v9026_v22  ;;  %5653 = vst.msk [vmem:[#allocation2 + $0x138] sm:$0xff] %vm382_vm2, %v9026_v22 }
 0x253   : > { %v2300_v46 = vpop.permute.xlu1 %2299 }
 0x254   : > { %v2614_v60 = vsub.f32 %v7568_v55, %v2300_v46  ;;  %v2615_v54 = vsub.f32 %v7572_v57, %v2300_v46  ;;  %v2616_v41 = vsub.f32 %v7581_v61, %v2300_v46  ;;  %v2617_v42 = vsub.f32 %v7583_v62, %v2300_v46 }
 0x255   : > { %v9060_v57 = vmax.f32 %v1951_v4, %v9039_v63  ;;  %v2097_v4 = vsub.f32 %v8466_v3, %v8481_v37  ;;  %v9075_v3 = vpop.f32.mrb[102].mxu1 }
 0x256   : > { %v2862_v56 = vpack.c.bf16 %v2614_v60, %v2610_v1  ;;  %v2863_v12 = vpack.c.bf16 %v2615_v54, %v2611_v52  ;;  %v2864_v55 = vpack.c.bf16 %v2616_v41, %v2612_v0  ;;  %v2865_v38 = vpack.c.bf16 %v2617_v42, %v2613_v47  ;;  %11623 = vst [vmem:[#allocation255_spill] sm:$0xff] %v9075_v3  ;;  %v9079_v42 = vpop.f32.mrb[103].mxu1 }
 0x257   : > { %11625 = vst [vmem:[#allocation257_spill] sm:$0xff] %v9079_v42  ;;  %v9131_v21 = vpop.permute.xlu1 %2304 }
 0x258   : > { %v2999_v58 = vmul.bf16 1069105081, %v2862_v56  ;;  %v3002_v48 = vmul.bf16 1069105081, %v2863_v12  ;;  %v3005_v62 = vmul.bf16 1069105081, %v2864_v55 }
 0x259   : > { %v3008_v46 = vmul.bf16 1069105081, %v2865_v38 }
 0x25a   : > { %6825 = vpow.bf16 %v2999_v58  ;;  %v2168_v58 = vmul.f32 1.442695, %v2097_v4 }
 0x25b   : > { %6827 = vpow.bf16 %v3002_v48  ;;  %v9071_v48 = vpop.permute.xlu0 %4269 }
 0x25c   : > { %2319 = vperm.xlu1 %6740, %v8481_v37   ;;  %6829 = vpow.bf16 %v3005_v62  ;;  %v9073_v37 = vpop.f32.mrb[102].mxu0 }
 0x25d   : > { %6831 = vpow.bf16 %v3008_v46  ;;  %11622 = vst [vmem:[#allocation254_spill] sm:$0xff] %v9073_v37 }
 0x25e   : > { %6833 = vpow2.f32 %v2168_v58 }
 0x260   : > { %4289 = vperm.xlu1 %6740, %v9023_v6  }
 0x264   : > { %2324 = vperm.xlu1 %6740, %v8501_v24  }
 0x265   : > { %v6826_v1 = vpop.eup %6825 }
 0x266   : > { %v6828_v52 = vpop.eup %6827  ;;  %v3506_v0 = vunpack.c.l.bf16 %v6826_v1  ;;  %v3510_v60 = vunpack.c.h.bf16 %v6826_v1 }
 0x267   : > { %v6830_v54 = vpop.eup %6829  ;;  %4947 = vmatprep.mubr.bf16.mxu0 %v6828_v52  ;;  %v3507_v41 = vunpack.c.l.bf16 %v6828_v52  ;;  %v3511_v47 = vunpack.c.h.bf16 %v6828_v52  ;;  %v9077_v52 = vpop.f32.mrb[103].mxu0 }
 0x268   : > { %v6832_v38 = vpop.eup %6831  ;;  %4948 = vmatmul.mubr.bf16.gmra.mrb[132].mxu0 %v6826_v1  ;;  %v3508_v56 = vunpack.c.l.bf16 %v6830_v54  ;;  %v3512_v12 = vunpack.c.h.bf16 %v6830_v54  ;;  %11624 = vst [vmem:[#allocation256_spill] sm:$0xff] %v9077_v52  ;;  %v9085_v4 = vpop.f32.mrb[104].mxu0 }
 0x269   : > { %1939 = vmax.xlane.f32.xlu0 %v11621_v30  ;;  %5236 = vmatprep.mubr.bf16.mxu1 %v6832_v38  ;;  %v3764_v18 = vadd.f32 %v3507_v41, %v3506_v0  ;;  %v3769_v55 = vadd.f32 %v3511_v47, %v3510_v60  ;;  %v3509_v62 = vunpack.c.l.bf16 %v6832_v38  ;;  %v3513_v30 = vunpack.c.h.bf16 %v6832_v38  ;;  %v9083_v60 = vpop.f32.mrb[104].mxu1  ;;  %11627 = vst [vmem:[#allocation259_spill] sm:$0xff] %v9085_v4  ;;  %v9091_v47 = vpop.f32.mrb[105].mxu0 }
 0x26a   : > { %5237 = vmatmul.mubr.bf16.gmra.mrb[132].mxu1 %v6830_v54  ;;  %11626 = vst [vmem:[#allocation258_spill] sm:$0xff] %v9083_v60  ;;  %11630 = vst [vmem:[#allocation262_spill] sm:$0xff] %v9091_v47  ;;  %v9093_v38 = vpop.f32.mrb[105].mxu1  ;;  %v2096_v0 = vsub.f32 %v8457_v11, %v8470_v40  ;;  %v9141_v33 = vpop.eup %6833 }
 0x26b   : > { %v3765_v46 = vadd.f32 %v3764_v18, %v3508_v56  ;;  %v3770_v1 = vadd.f32 %v3769_v55, %v3512_v12  ;;  %11631 = vst [vmem:[#allocation263_spill] sm:$0xff] %v9093_v38  ;;  %v9097_v18 = vpop.f32.mrb[106].mxu0  ;;  %v9099_v12 = vpop.f32.mrb[106].mxu1  ;;  %11649 = vst [vmem:[#allocation281_spill] sm:$0xff] %v9141_v33 }
 0x26c   : > { %11632 = vst [vmem:[#allocation264_spill] sm:$0xff] %v9097_v18  ;;  %11633 = vst [vmem:[#allocation265_spill] sm:$0xff] %v9099_v12  ;;  %v9101_v55 = vpop.f32.mrb[107].mxu0  ;;  %v9103_v61 = vpop.f32.mrb[107].mxu1  ;;  %v2166_v28 = vmul.f32 1.442695, %v2096_v0 }
 0x26d   : > { %v9087_v54 = vadd.f32 %v3765_v46, %v3509_v62  ;;  %v9089_v41 = vadd.f32 %v3770_v1, %v3513_v30  ;;  %11634 = vst [vmem:[#allocation266_spill] sm:$0xff] %v9101_v55  ;;  %11635 = vst [vmem:[#allocation267_spill] sm:$0xff] %v9103_v61  ;;  %v9107_v46 = vpop.f32.mrb[108].mxu1  ;;  %v9109_v58 = vpop.f32.mrb[108].mxu0 }
 0x26e   : > { %11636 = vst [vmem:[#allocation268_spill] sm:$0xff] %v9107_v46  ;;  %11637 = vst [vmem:[#allocation269_spill] sm:$0xff] %v9109_v58  ;;  %v9111_v30 = vpop.f32.mrb[109].mxu0  ;;  %v9113_v1 = vpop.f32.mrb[109].mxu1  ;;  %6835 = vpow2.f32 %v2166_v28 }
 0x26f   : > { %11628 = vst [vmem:[#allocation260_spill] sm:$0xff] %v9087_v54  ;;  %11629 = vst [vmem:[#allocation261_spill] sm:$0xff] %v9089_v41  ;;  %v9117_v43 = vpop.f32.mrb[110].mxu0  ;;  %v9119_v56 = vpop.f32.mrb[110].mxu1  ;;  %v11652_v41 = vmax.f32 %v8816_v49, %v8811_v13  ;;  %v9167_v49 = vld [vmem:[#allocation2 + $0x140] sm:$0xff] }
 0x270   : > { %11638 = vst [vmem:[#allocation270_spill] sm:$0xff] %v9111_v30  ;;  %11639 = vst [vmem:[#allocation271_spill] sm:$0xff] %v9113_v1  ;;  %v9121_v36 = vpop.f32.mrb[111].mxu0  ;;  %v9123_v45 = vpop.f32.mrb[111].mxu1 }
 0x271   : > { %11640 = vst [vmem:[#allocation272_spill] sm:$0xff] %v9117_v43  ;;  %11641 = vst [vmem:[#allocation273_spill] sm:$0xff] %v9119_v56  ;;  %v9127_v20 = vpop.f32.mrb[112].mxu0  ;;  %v9129_v63 = vpop.f32.mrb[112].mxu1 }
 0x272   : > { %11642 = vst [vmem:[#allocation274_spill] sm:$0xff] %v9121_v36  ;;  %11643 = vst [vmem:[#allocation275_spill] sm:$0xff] %v9123_v45  ;;  %v9133_v10 = vpop.f32.mrb[113].mxu1  ;;  %v9137_v59 = vpop.f32.mrb[113].mxu0 }
 0x273   : > { %11644 = vst [vmem:[#allocation276_spill] sm:$0xff] %v9127_v20  ;;  %11645 = vst [vmem:[#allocation277_spill] sm:$0xff] %v9129_v63  ;;  %v9139_v29 = vpop.f32.mrb[114].mxu1  ;;  %v9145_v14 = vpop.f32.mrb[114].mxu0 }
 0x274   : > { %11646 = vst [vmem:[#allocation278_spill] sm:$0xff] %v9133_v10  ;;  %11647 = vst [vmem:[#allocation279_spill] sm:$0xff] %v9137_v59  ;;  %v9147_v6 = vpop.f32.mrb[115].mxu1  ;;  %v9153_v11 = vpop.f32.mrb[115].mxu0 }
 0x275   : > { %11648 = vst [vmem:[#allocation280_spill] sm:$0xff] %v9139_v29  ;;  %11650 = vst [vmem:[#allocation282_spill] sm:$0xff] %v9145_v14  ;;  %v9155_v40 = vpop.f32.mrb[116].mxu1  ;;  %v1991_v39 = vmax.f32 %v9145_v14, %v9153_v11  ;;  %v9159_v27 = vpop.f32.mrb[116].mxu0 }
 0x276   : > { %11651 = vst [vmem:[#allocation283_spill] sm:$0xff] %v9147_v6  ;;  %11653 = vst [vmem:[#allocation284_spill] sm:$0xff] %v9153_v11  ;;  %v9161_v62 = vpop.f32.mrb[117].mxu1  ;;  %v9163_v54 = vpop.f32.mrb[117].mxu0 }
 0x277   : > { %11654 = vst [vmem:[#allocation285_spill] sm:$0xff] %v9155_v40  ;;  %11655 = vst [vmem:[#allocation286_spill] sm:$0xff] %v9159_v27  ;;  %v9165_v44 = vpop.f32.mrb[118].mxu1  ;;  %v9174_v13 = vpop.f32.mrb[118].mxu0  ;;  %v9196_v27 = vld [vmem:[#allocation2 + $0x150] sm:$0xff] }
 0x278   : > { %11656 = vst [vmem:[#allocation287_spill] sm:$0xff] %v9161_v62  ;;  %11657 = vst [vmem:[#allocation288_spill] sm:$0xff] %v9163_v54  ;;  %v9176_v11 = vpop.f32.mrb[119].mxu1  ;;  %v9179_v14 = vpop.f32.mrb[119].mxu0 }
 0x279   : > { %11658 = vst [vmem:[#allocation289_spill] sm:$0xff] %v9165_v44  ;;  %11659 = vst [vmem:[#allocation290_spill] sm:$0xff] %v9167_v49  ;;  %v9181_v0 = vpop.f32.mrb[120].mxu1 }
 0x27a   : > { %11661 = vst [vmem:[#allocation292_spill] sm:$0xff] %v9174_v13  ;;  %11662 = vst [vmem:[#allocation293_spill] sm:$0xff] %v9176_v11  ;;  %v9192_v62 = vpop.f32.mrb[121].mxu1 }
 0x27b   : > { %11663 = vst [vmem:[#allocation294_spill] sm:$0xff] %v9179_v14  ;;  %11664 = vst [vmem:[#allocation295_spill] sm:$0xff] %v9181_v0 }
 0x27c   : > { %11667 = vst [vmem:[#allocation298_spill] sm:$0xff] %v9192_v62  ;;  %11669 = vst [vmem:[#allocation300_spill] sm:$0xff] %v9196_v27 }
 0x27f   : > { %4304 = vperm.xlu0 %6739, %v9141_v33  }
 0x283   : > { %2339 = vperm.xlu0 %6739, %v8561_v15  }
 0x284   : > { %v1910_v50 = vpop.xlane.xlu0 %1909 }
 0x285   : > { %v9190_v33 = vmax.f32 %v9167_v49, %v1910_v50 }
 0x287   : > { %11666 = vst [vmem:[#allocation297_spill] sm:$0xff] %v9190_v33  ;;  %5654 = vst.msk [vmem:[#allocation2 + $0x140] sm:$0xff] %vm382_vm2, %v9190_v33 }
 0x288   : > { %1934 = vmax.xlane.f32.xlu1 %v11652_v41  ;;  %v9170_v41 = vmax.f32 %v1991_v39, %v9139_v29  ;;  %v2001_v39 = vmax.f32 %v9174_v13, %v9179_v14  ;;  %v9187_v29 = vpop.f32.mrb[120].mxu0  ;;  %v9205_v14 = vpop.f32.mrb[122].mxu1 }
 0x289   : > { %11665 = vst [vmem:[#allocation296_spill] sm:$0xff] %v9187_v29  ;;  %v9194_v54 = vpop.f32.mrb[121].mxu0  ;;  %11672 = vst [vmem:[#allocation303_spill] sm:$0xff] %v9205_v14  ;;  %v9211_v28 = vpop.f32.mrb[123].mxu1 }
 0x28a   : > { %11660 = vst [vmem:[#allocation291_spill] sm:$0xff] %v9170_v41  ;;  %11668 = vst [vmem:[#allocation299_spill] sm:$0xff] %v9194_v54  ;;  %v9199_v40 = vmax.f32 %v2001_v39, %v9165_v44  ;;  %v2006_v22 = vmax.f32 %v9187_v29, %v9194_v54  ;;  %v9203_v6 = vpop.f32.mrb[122].mxu0  ;;  %v1920_v13 = vpop.xlane.xlu0 %1919 }
 0x28b   : > { %11671 = vst [vmem:[#allocation302_spill] sm:$0xff] %v9203_v6  ;;  %v9209_v50 = vpop.f32.mrb[123].mxu0  ;;  %11674 = vst [vmem:[#allocation305_spill] sm:$0xff] %v9211_v28  ;;  %v9223_v44 = vmax.f32 %v9196_v27, %v1920_v13  ;;  %v9225_v33 = vpop.f32.mrb[124].mxu1 }
 0x28c   : > { %11670 = vst [vmem:[#allocation301_spill] sm:$0xff] %v9199_v40  ;;  %11673 = vst [vmem:[#allocation304_spill] sm:$0xff] %v9209_v50  ;;  %v9216_v39 = vmax.f32 %v2006_v22, %v9181_v0  ;;  %v2011_v54 = vmax.f32 %v9203_v6, %v9209_v50  ;;  %v9220_v29 = vpop.f32.mrb[124].mxu0  ;;  %v9232_v45 = vpop.f32.mrb[125].mxu1 }
 0x28d   : > { %11676 = vst [vmem:[#allocation307_spill] sm:$0xff] %v9220_v29  ;;  %11677 = vst [vmem:[#allocation308_spill] sm:$0xff] %v9223_v44  ;;  %v9227_v41 = vpop.f32.mrb[125].mxu0  ;;  %v9240_v0 = vpop.f32.mrb[126].mxu1 }
 0x28e   : > { %11675 = vst [vmem:[#allocation306_spill] sm:$0xff] %v9216_v39  ;;  %11678 = vst [vmem:[#allocation309_spill] sm:$0xff] %v9225_v33  ;;  %v9230_v62 = vmax.f32 %v2011_v54, %v9205_v14  ;;  %v2016_v22 = vmax.f32 %v9220_v29, %v9227_v41  ;;  %v9236_v49 = vpop.f32.mrb[126].mxu0  ;;  %v9251_v6 = vpop.f32.mrb[127].mxu1 }
 0x28f   : > { %11679 = vst [vmem:[#allocation310_spill] sm:$0xff] %v9227_v41  ;;  %11681 = vst [vmem:[#allocation312_spill] sm:$0xff] %v9232_v45  ;;  %v9242_v13 = vpop.f32.mrb[127].mxu0  ;;  %v9253_v41 = vpop.permute.xlu1 %4274 }
 0x290   : > { %11680 = vst [vmem:[#allocation311_spill] sm:$0xff] %v9230_v62  ;;  %11682 = vst [vmem:[#allocation313_spill] sm:$0xff] %v9236_v49  ;;  %v9247_v54 = vmax.f32 %v2016_v22, %v9225_v33  ;;  %v2021_v14 = vmax.f32 %v9236_v49, %v9242_v13  ;;  %v9258_v27 = vpop.eup %6835  ;;  %v2619_v22 = vsub.f32 %v7725_v5, %v9131_v21 }
 0x291   : > { %5656 = vst.msk [vmem:[#allocation2 + $0x150] sm:$0xff] %vm382_vm2, %v9223_v44  ;;  %11683 = vst [vmem:[#allocation314_spill] sm:$0xff] %v9240_v0  ;;  %v9261_v44 = vld [vmem:[#allocation2 + $0x148] sm:$0xff] }
 0x292   : > { %11684 = vst [vmem:[#allocation315_spill] sm:$0xff] %v9242_v13  ;;  %11685 = vst [vmem:[#allocation316_spill] sm:$0xff] %v9247_v54  ;;  %v9256_v29 = vmax.f32 %v2021_v14, %v9240_v0  ;;  %v11691_v14 = vmax.f32 %v9085_v4, %v9091_v47  ;;  %v2618_v13 = vsub.f32 %v7721_v2, %v9131_v21  ;;  %v11694_v4 = vld [vmem:[#allocation9_spill] sm:$0xff]  ;;  %v11696_v2 = vld [vmem:[#allocation10_spill] sm:$0xff] }
 0x293   : > { %11686 = vst [vmem:[#allocation317_spill] sm:$0xff] %v9251_v6  ;;  %11688 = vst [vmem:[#allocation319_spill] sm:$0xff] %v9258_v27 }
 0x294   : > { %11687 = vst [vmem:[#allocation318_spill] sm:$0xff] %v9256_v29  ;;  %11689 = vst [vmem:[#allocation320_spill] sm:$0xff] %v9261_v44  ;;  %v9273_v0 = vmax.f32 %v11691_v14, %v9083_v60  ;;  %v11693_v14 = vld [vmem:[#allocation7_spill] sm:$0xff] }
 0x299   : > { %4299 = vperm.xlu1 %6740, %v9258_v27   ;;  %v2620_v27 = vsub.f32 %v7731_v8, %v9131_v21  ;;  %v11697_v8 = vmax.f32 %v8978_v19, %v8970_v17 }
 0x29b   : > { %v1915_v50 = vpop.xlane.xlu1 %1914 }
 0x29c   : > { %v9266_v33 = vmax.f32 %v9261_v44, %v1915_v50  ;;  %v11692_v44 = vld [vmem:[#allocation6_spill] sm:$0xff] }
 0x29d   : > { %2334 = vperm.xlu1 %6740, %v8554_v7  }
 0x29e   : > { %11690 = vst [vmem:[#allocation321_spill] sm:$0xff] %v9266_v33  ;;  %5655 = vst.msk [vmem:[#allocation2 + $0x148] sm:$0xff] %vm382_vm2, %v9266_v33  ;;  %v11695_v33 = vld [vmem:[#allocation8_spill] sm:$0xff] }
 0x29f   : > { %v2310_v49 = vpop.permute.xlu1 %2309  ;;  %v2621_v29 = vsub.f32 %v11695_v33, %v9131_v21  ;;  %v11698_v33 = vld [vmem:[#allocation161_spill] sm:$0xff] }
 0x2a0   : > { %v2622_v47 = vsub.f32 %v11692_v44, %v2310_v49  ;;  %v2623_v60 = vsub.f32 %v11693_v14, %v2310_v49  ;;  %v2624_v6 = vsub.f32 %v11694_v4, %v2310_v49  ;;  %v2625_v28 = vsub.f32 %v11696_v2, %v2310_v49 }
 0x2a1   : > { %v2099_v44 = vsub.f32 %v11698_v33, %v8518_v32 }
 0x2a2   : > { %v2866_v62 = vpack.c.bf16 %v2622_v47, %v2618_v13  ;;  %v2867_v5 = vpack.c.bf16 %v2623_v60, %v2619_v22  ;;  %v2868_v11 = vpack.c.bf16 %v2624_v6, %v2620_v27  ;;  %v2869_v40 = vpack.c.bf16 %v2625_v28, %v2621_v29  ;;  %1949 = vmax.xlane.f32.xlu0 %v11697_v8 }
 0x2a3   : > { %v11699_v27 = vmax.f32 %v9073_v37, %v9077_v52 }
 0x2a4   : > { %v3011_v54 = vmul.bf16 1069105081, %v2866_v62  ;;  %v3014_v50 = vmul.bf16 1069105081, %v2867_v5  ;;  %v3017_v45 = vmul.bf16 1069105081, %v2868_v11 }
 0x2a5   : > { %v3020_v39 = vmul.bf16 1069105081, %v2869_v40  ;;  %v9300_v29 = vmax.f32 %v11699_v27, %v9075_v3  ;;  %v11700_v5 = vld [vmem:[#allocation159_spill] sm:$0xff]  ;;  %v9316_v27 = vpop.permute.xlu0 %4284 }
 0x2a6   : > { %6837 = vpow.bf16 %v3011_v54  ;;  %v2098_v8 = vsub.f32 %v11700_v5, %v8501_v24  ;;  %v9326_v24 = vpop.permute.xlu1 %4279  ;;  %v11709_v5 = vld [vmem:[#allocation13_spill] sm:$0xff] }
 0x2a7   : > { %6839 = vpow.bf16 %v3014_v50 }
 0x2a8   : > { %6841 = vpow.bf16 %v3017_v45  ;;  %v2172_v45 = vmul.f32 1.442695, %v2099_v44  ;;  %v11702_v44 = vmax.f32 %v8975_v16, %v8964_v34 }
 0x2a9   : > { %6843 = vpow.bf16 %v3020_v39 }
 0x2aa   : > { %6845 = vpow2.f32 %v2172_v45 }
 0x2b1   : > { %v6838_v21 = vpop.eup %6837 }
 0x2b2   : > { %v6840_v60 = vpop.eup %6839  ;;  %v3514_v4 = vunpack.c.l.bf16 %v6838_v21  ;;  %v3518_v47 = vunpack.c.h.bf16 %v6838_v21 }
 0x2b3   : > { %v6842_v62 = vpop.eup %6841  ;;  %4955 = vmatprep.mubr.bf16.mxu0 %v6840_v60  ;;  %v3515_v19 = vunpack.c.l.bf16 %v6840_v60  ;;  %v3519_v11 = vunpack.c.h.bf16 %v6840_v60  ;;  %v9318_v60 = vld [vmem:[#allocation2 + $0x160] sm:$0xff] }
 0x2b4   : > { %v6844_v40 = vpop.eup %6843  ;;  %4956 = vmatmul.mubr.bf16.gmra.mrb[136].mxu0 %v6838_v21  ;;  %v3516_v32 = vunpack.c.l.bf16 %v6842_v62  ;;  %v3520_v28 = vunpack.c.h.bf16 %v6842_v62  ;;  %v2170_v21 = vmul.f32 1.442695, %v2098_v8  ;;  %11703 = vst [vmem:[#allocation7_spill] sm:$0xff] %v9318_v60 }
 0x2b5   : > { %5244 = vmatprep.mubr.bf16.mxu1 %v6844_v40  ;;  %v3774_v49 = vadd.f32 %v3515_v19, %v3514_v4  ;;  %v3779_v39 = vadd.f32 %v3519_v11, %v3518_v47  ;;  %v3517_v13 = vunpack.c.l.bf16 %v6844_v40  ;;  %v3521_v22 = vunpack.c.h.bf16 %v6844_v40  ;;  %v9310_v33 = vpop.eup %6845  ;;  %v2315_v47 = vpop.permute.xlu1 %2314 }
 0x2b6   : > { %5245 = vmatmul.mubr.bf16.gmra.mrb[136].mxu1 %v6842_v62  ;;  %11701 = vst [vmem:[#allocation6_spill] sm:$0xff] %v9310_v33  ;;  %6847 = vpow2.f32 %v2170_v21  ;;  %v9332_v62 = vld [vmem:[#allocation2 + $0x158] sm:$0xff]  ;;  %v11706_v19 = vmax.f32 %v9109_v58, %v9111_v30  ;;  %v2628_v8 = vsub.f32 %v11709_v5, %v2315_v47  ;;  %v11714_v30 = vld [vmem:[#allocation18_spill] sm:$0xff] }
 0x2b7   : > { %v3775_v54 = vadd.f32 %v3774_v49, %v3516_v32  ;;  %v3780_v50 = vadd.f32 %v3779_v39, %v3520_v28  ;;  %v11707_v39 = vld [vmem:[#allocation11_spill] sm:$0xff]  ;;  %v11712_v32 = vld [vmem:[#allocation17_spill] sm:$0xff] }
 0x2b8   : > { %4314 = vperm.xlu0 %6739, %v9310_v33   ;;  %v9338_v11 = vmax.f32 %v11706_v19, %v9107_v46 }
 0x2b9   : > { %v9304_v14 = vadd.f32 %v3775_v54, %v3517_v13  ;;  %v9306_v2 = vadd.f32 %v3780_v50, %v3521_v22  ;;  %v2626_v13 = vsub.f32 %v11707_v39, %v2315_v47  ;;  %v11708_v54 = vld [vmem:[#allocation12_spill] sm:$0xff] }
 0x2ba   : > { %v2627_v22 = vsub.f32 %v11708_v54, %v2315_v47 }
 0x2bc   : > { %2349 = vperm.xlu0 %6739, %v8577_v9  }
 0x2bd   : > { %v1930_v45 = vpop.xlane.xlu0 %1929 }
 0x2be   : > { %v9322_v4 = vmax.f32 %v9318_v60, %v1930_v45  ;;  %v11711_v45 = vld [vmem:[#allocation15_spill] sm:$0xff] }
 0x2bf   : > { %v11716_v60 = vld [vmem:[#allocation23_spill] sm:$0xff] }
 0x2c0   : > { %11704 = vst [vmem:[#allocation9_spill] sm:$0xff] %v9322_v4  ;;  %5658 = vst.msk [vmem:[#allocation2 + $0x160] sm:$0xff] %vm382_vm2, %v9322_v4  ;;  %v9328_v16 = vpop.eup %6847  ;;  %v11717_v4 = vld [vmem:[#allocation25_spill] sm:$0xff] }
 0x2c1   : > { %1944 = vmax.xlane.f32.xlu1 %v11702_v44  ;;  %11705 = vst [vmem:[#allocation8_spill] sm:$0xff] %v9328_v16  ;;  %v11710_v44 = vld [vmem:[#allocation14_spill] sm:$0xff] }
 0x2c5   : > { %v9345_v28 = vpop.permute.xlu0 %4294 }
 0x2c9   : > { %v2330_v54 = vpop.permute.xlu0 %2329 }
 0x2d2   : > { %4309 = vperm.xlu1 %6740, %v9328_v16  }
 0x2d6   : > { %2344 = vperm.xlu1 %6740, %v8572_v26  }
 0x2d8   : > { %v1925_v40 = vpop.xlane.xlu1 %1924 }
 0x2d9   : > { %v9343_v49 = vmax.f32 %v9332_v62, %v1925_v40  ;;  %v11713_v40 = vld [vmem:[#allocation16_spill] sm:$0xff] }
 0x2da   : > { %v2629_v46 = vsub.f32 %v11713_v40, %v2315_v47  ;;  %v2640_v47 = vsub.f32 %v11717_v4, %v2330_v54 }
 0x2db   : > { %5657 = vst.msk [vmem:[#allocation2 + $0x158] sm:$0xff] %vm382_vm2, %v9343_v49 }
 0x2dc   : > { %v2320_v50 = vpop.permute.xlu1 %2319 }
 0x2dd   : > { %v2630_v21 = vsub.f32 %v11710_v44, %v2320_v50  ;;  %v2631_v19 = vsub.f32 %v11711_v45, %v2320_v50  ;;  %v2632_v6 = vsub.f32 %v11712_v32, %v2320_v50  ;;  %v2633_v58 = vsub.f32 %v11714_v30, %v2320_v50  ;;  %v11715_v44 = vld [vmem:[#allocation22_spill] sm:$0xff] }
 0x2de   : > { %v2638_v45 = vsub.f32 %v11715_v44, %v2330_v54  ;;  %v2639_v32 = vsub.f32 %v11716_v60, %v2330_v54 }
 0x2df   : > { %v2870_v3 = vpack.c.bf16 %v2630_v21, %v2626_v13  ;;  %v2871_v52 = vpack.c.bf16 %v2631_v19, %v2627_v22  ;;  %v2872_v37 = vpack.c.bf16 %v2632_v6, %v2628_v8  ;;  %v2873_v17 = vpack.c.bf16 %v2633_v58, %v2629_v46  ;;  %v11719_v46 = vld [vmem:[#allocation19_spill] sm:$0xff]  ;;  %v11723_v22 = vld [vmem:[#allocation24_spill] sm:$0xff] }
 0x2e0   : > { %v9357_v39 = vpop.permute.xlu1 %4289  ;;  %v11718_v6 = vmax.f32 %v9055_v51, %v9057_v53  ;;  %v2101_v8 = vsub.f32 %v8547_v23, %v8561_v15  ;;  %v11724_v21 = vmax.f32 %v9097_v18, %v9101_v55  ;;  %v11761_v55 = vld [vmem:[#allocation40_spill] sm:$0xff] }
 0x2e1   : > { %v3023_v33 = vmul.bf16 1069105081, %v2870_v3  ;;  %v3026_v34 = vmul.bf16 1069105081, %v2871_v52  ;;  %v3029_v5 = vmul.bf16 1069105081, %v2872_v37 }
 0x2e2   : > { %v3032_v16 = vmul.bf16 1069105081, %v2873_v17  ;;  %1959 = vmax.xlane.f32.xlu0 %v11718_v6  ;;  %v11720_v3 = vld [vmem:[#allocation20_spill] sm:$0xff]  ;;  %v11721_v37 = vld [vmem:[#allocation21_spill] sm:$0xff]  ;;  %v9376_v19 = vmax.f32 %v11724_v21, %v9099_v12 }
 0x2e3   : > { %6849 = vpow.bf16 %v3023_v33  ;;  %v11722_v33 = vld [vmem:[#allocation26_spill] sm:$0xff] }
 0x2e4   : > { %6851 = vpow.bf16 %v3026_v34  ;;  %v2325_v30 = vpop.permute.xlu1 %2324  ;;  %v2641_v13 = vsub.f32 %v11722_v33, %v2330_v54 }
 0x2e5   : > { %6853 = vpow.bf16 %v3029_v5  ;;  %v2634_v58 = vsub.f32 %v11719_v46, %v2325_v30  ;;  %v2635_v52 = vsub.f32 %v11720_v3, %v2325_v30  ;;  %v2636_v17 = vsub.f32 %v11721_v37, %v2325_v30 }
 0x2e6   : > { %6855 = vpow.bf16 %v3032_v16  ;;  %v2637_v60 = vsub.f32 %v11723_v22, %v2325_v30 }
 0x2e7   : > { %v2874_v50 = vpack.c.bf16 %v2638_v45, %v2634_v58  ;;  %v2875_v4 = vpack.c.bf16 %v2639_v32, %v2635_v52  ;;  %v2876_v34 = vpack.c.bf16 %v2640_v47, %v2636_v17  ;;  %v2176_v45 = vmul.f32 1.442695, %v2101_v8 }
 0x2e8   : > { %v2877_v51 = vpack.c.bf16 %v2641_v13, %v2637_v60 }
 0x2e9   : > { %v3035_v40 = vmul.bf16 1069105081, %v2874_v50  ;;  %v3038_v5 = vmul.bf16 1069105081, %v2875_v4  ;;  %v3041_v44 = vmul.bf16 1069105081, %v2876_v34 }
 0x2ea   : > { %v3044_v54 = vmul.bf16 1069105081, %v2877_v51  ;;  %v11725_v51 = vld [vmem:[#allocation168_spill] sm:$0xff] }
 0x2eb   : > { %6857 = vpow.bf16 %v3035_v40  ;;  %v2100_v21 = vsub.f32 %v11725_v51, %v8554_v7 }
 0x2ec   : > { %6859 = vpow.bf16 %v3038_v5 }
 0x2ed   : > { %6861 = vpow.bf16 %v3041_v44  ;;  %v2174_v7 = vmul.f32 1.442695, %v2100_v21  ;;  %v4203_v21 = vld [vmem:[#allocation4] sm:$0xff] }
 0x2ee   : > { %v6850_v32 = vpop.eup %6849  ;;  %6863 = vpow.bf16 %v3044_v54 }
 0x2ef   : > { %v6852_v23 = vpop.eup %6851  ;;  %v3522_v15 = vunpack.c.l.bf16 %v6850_v32  ;;  %v3526_v47 = vunpack.c.h.bf16 %v6850_v32  ;;  %6865 = vpow2.f32 %v2176_v45 }
 0x2f0   : > { %v6854_v30 = vpop.eup %6853  ;;  %4963 = vmatprep.mubr.bf16.mxu0 %v6852_v23  ;;  %v3523_v6 = vunpack.c.l.bf16 %v6852_v23  ;;  %v3527_v46 = vunpack.c.h.bf16 %v6852_v23  ;;  %6867 = vpow2.f32 %v2174_v7 }
 0x2f1   : > { %v6856_v58 = vpop.eup %6855  ;;  %4964 = vmatmul.mubr.bf16.gmra.mrb[140].mxu0 %v6850_v32  ;;  %v3524_v3 = vunpack.c.l.bf16 %v6854_v30  ;;  %v3528_v37 = vunpack.c.h.bf16 %v6854_v30 }
 0x2f2   : > { %5252 = vmatprep.mubr.bf16.mxu1 %v6856_v58  ;;  %v3784_v52 = vadd.f32 %v3523_v6, %v3522_v15  ;;  %v3789_v17 = vadd.f32 %v3527_v46, %v3526_v47  ;;  %v3525_v33 = vunpack.c.l.bf16 %v6856_v58  ;;  %v3529_v22 = vunpack.c.h.bf16 %v6856_v58 }
 0x2f3   : > { %5253 = vmatmul.mubr.bf16.gmra.mrb[140].mxu1 %v6854_v30  ;;  %v11727_v15 = vmax.f32 %v9060_v57, %v9043_v35  ;;  %v11779_v35 = vld [vmem:[#allocation43_spill] sm:$0xff] }
 0x2f4   : > { %v3785_v13 = vadd.f32 %v3784_v52, %v3524_v3  ;;  %v3790_v60 = vadd.f32 %v3789_v17, %v3528_v37  ;;  %v9392_v17 = vld [vmem:[#allocation2 + $0x170] sm:$0xff] }
 0x2f6   : > { %v6858_v50 = vpop.eup %6857  ;;  %v9380_v4 = vadd.f32 %v3785_v13, %v3525_v33  ;;  %v9382_v34 = vadd.f32 %v3790_v60, %v3529_v22  ;;  %v1940_v57 = vpop.xlane.xlu0 %1939 }
 0x2f7   : > { %v6860_v8 = vpop.eup %6859  ;;  %v3530_v40 = vunpack.c.l.bf16 %v6858_v50  ;;  %v3534_v5 = vunpack.c.h.bf16 %v6858_v50  ;;  %v9400_v22 = vmax.f32 %v9392_v17, %v1940_v57 }
 0x2f8   : > { %v6862_v44 = vpop.eup %6861  ;;  %4971 = vmatprep.mubr.bf16.mxu0 %v6860_v8  ;;  %v3531_v54 = vunpack.c.l.bf16 %v6860_v8  ;;  %v3535_v45 = vunpack.c.h.bf16 %v6860_v8 }
 0x2f9   : > { %v6864_v32 = vpop.eup %6863  ;;  %4972 = vmatmul.mubr.bf16.gmra.mrb[144].mxu0 %v6858_v50  ;;  %v3532_v47 = vunpack.c.l.bf16 %v6862_v44  ;;  %v3536_v6 = vunpack.c.h.bf16 %v6862_v44  ;;  %5660 = vst.msk [vmem:[#allocation2 + $0x170] sm:$0xff] %vm382_vm2, %v9400_v22  ;;  %v11729_v50 = vmax.f32 %v9127_v20, %v9137_v59 }
 0x2fa   : > { %v9386_v23 = vpop.eup %6865  ;;  %5260 = vmatprep.mubr.bf16.mxu1 %v6864_v32  ;;  %1954 = vmax.xlane.f32.xlu1 %v11727_v15  ;;  %v3794_v30 = vadd.f32 %v3531_v54, %v3530_v40  ;;  %v3799_v46 = vadd.f32 %v3535_v45, %v3534_v5  ;;  %v3533_v58 = vunpack.c.l.bf16 %v6864_v32  ;;  %v3537_v52 = vunpack.c.h.bf16 %v6864_v32  ;;  %v9418_v54 = vld [vmem:[#allocation2 + $0x168] sm:$0xff] }
 0x2fb   : > { %11726 = vst [vmem:[#allocation10_spill] sm:$0xff] %v9386_v23  ;;  %5261 = vmatmul.mubr.bf16.gmra.mrb[144].mxu1 %v6862_v44  ;;  %4324 = vperm.xlu0 %6739, %v9386_v23   ;;  %v9404_v60 = vpop.eup %6867  ;;  %v9412_v8 = vmax.f32 %v11729_v50, %v9129_v63  ;;  %v4204_v45 = vld [vmem:[#allocation4 + $0x8] sm:$0xff] }
 0x2fc   : > { %v3795_v3 = vadd.f32 %v3794_v30, %v3532_v47  ;;  %v3800_v37 = vadd.f32 %v3799_v46, %v3536_v6  ;;  %11728 = vst [vmem:[#allocation161_spill] sm:$0xff] %v9404_v60  ;;  %v4587_v47 = vmul.f32 %v9071_v48, %v4203_v21 }
 0x2fe   : > { %v9394_v33 = vadd.f32 %v3795_v3, %v3533_v58  ;;  %v9396_v13 = vadd.f32 %v3800_v37, %v3537_v52  ;;  %v9416_v5 = vpop.permute.xlu0 %4304  ;;  %v4588_v52 = vmul.f32 %v9253_v41, %v4204_v45  ;;  %v11733_v45 = vld [vmem:[#allocation34_spill] sm:$0xff] }
 0x2ff   : > { %2359 = vperm.xlu0 %6739, %v8596_v31  }
 0x302   : > { %v2340_v21 = vpop.permute.xlu0 %2339 }
 0x309   : > { %v4941_v40 = vpop.f32.mrb[128].mxu0 }
 0x30a   : > { %v4943_v44 = vpop.f32.mrb[129].mxu0 }
 0x30b   : > { %4319 = vperm.xlu1 %6740, %v9404_v60   ;;  %v5230_v32 = vpop.f32.mrb[128].mxu1  ;;  %v4944_v15 = vpop.f32.mrb[130].mxu0 }
 0x30c   : > { %v5231_v30 = vadd.f32 %v5230_v32, %v4941_v40  ;;  %v5232_v6 = vpop.f32.mrb[129].mxu1  ;;  %v4946_v3 = vpop.f32.mrb[131].mxu0  ;;  %v11730_v40 = vld [vmem:[#allocation30_spill] sm:$0xff] }
 0x30d   : > { %v5233_v7 = vpop.f32.mrb[130].mxu1  ;;  %v2646_v32 = vsub.f32 %v11730_v40, %v2340_v21  ;;  %v11731_v6 = vld [vmem:[#allocation31_spill] sm:$0xff]  ;;  %v11732_v3 = vld [vmem:[#allocation33_spill] sm:$0xff] }
 0x30e   : > { %v5485_v37 = vadd.f32 %v5231_v30, %v4587_v47  ;;  %v5234_v57 = vadd.f32 %v5233_v7, %v4944_v15  ;;  %v5235_v50 = vpop.f32.mrb[131].mxu1  ;;  %v2648_v41 = vsub.f32 %v11732_v3, %v2340_v21  ;;  %v2649_v15 = vsub.f32 %v11733_v45, %v2340_v21  ;;  %v11735_v7 = vld [vmem:[#allocation27_spill] sm:$0xff] }
 0x30f   : > { %2354 = vperm.xlu1 %6740, %v8589_v25   ;;  %v11734_v30 = vmax.f32 %v9273_v0, %v9093_v38  ;;  %v11737_v50 = vld [vmem:[#allocation29_spill] sm:$0xff]  ;;  %v11739_v40 = vld [vmem:[#allocation171_spill] sm:$0xff]  ;;  %v11740_v0 = vmax.f32 %v9117_v43, %v9121_v36 }
 0x310   : > { %5550 = vst.msk [vmem:[#allocation4] sm:$0xff] %vm511_vm3, %v5485_v37  ;;  %v5486_v44 = vadd.f32 %v5234_v57, %v4588_v52  ;;  %v11736_v37 = vld [vmem:[#allocation28_spill] sm:$0xff] }
 0x311   : > { %v9448_v45 = vmax.f32 %v11740_v0, %v9119_v56  ;;  %v9460_v0 = vld [vmem:[#allocation2 + $0x180] sm:$0xff] }
 0x312   : > { %5551 = vst.msk [vmem:[#allocation4 + $0x8] sm:$0xff] %vm511_vm3, %v5486_v44  ;;  %v11738_v44 = vld [vmem:[#allocation32_spill] sm:$0xff]  ;;  %11745 = vst [vmem:[#allocation11_spill] sm:$0xff] %v9460_v0 }
 0x315   : > { %v1935_v46 = vpop.xlane.xlu1 %1934 }
 0x316   : > { %v9422_v58 = vmax.f32 %v9418_v54, %v1935_v46  ;;  %v2647_v46 = vsub.f32 %v11731_v6, %v2340_v21  ;;  %v2103_v6 = vsub.f32 %v11739_v40, %v8577_v9  ;;  %v11744_v40 = vmax.f32 %v9300_v29, %v9079_v42 }
 0x318   : > { %5659 = vst.msk [vmem:[#allocation2 + $0x168] sm:$0xff] %vm382_vm2, %v9422_v58 }
 0x319   : > { %v9428_v48 = vpop.permute.xlu1 %4299 }
 0x31d   : > { %v2335_v47 = vpop.permute.xlu1 %2334 }
 0x31e   : > { %1969 = vmax.xlane.f32.xlu0 %v11734_v30  ;;  %v2642_v52 = vsub.f32 %v11735_v7, %v2335_v47  ;;  %v2643_v57 = vsub.f32 %v11736_v37, %v2335_v47  ;;  %v2644_v51 = vsub.f32 %v11737_v50, %v2335_v47  ;;  %v2645_v16 = vsub.f32 %v11738_v44, %v2335_v47  ;;  %v11741_v50 = vld [vmem:[#allocation275_spill] sm:$0xff] }
 0x31f   : > { %v2180_v44 = vmul.f32 1.442695, %v2103_v6 }
 0x320   : > { %v2878_v63 = vpack.c.bf16 %v2646_v32, %v2642_v52  ;;  %v2879_v3 = vpack.c.bf16 %v2647_v46, %v2643_v57  ;;  %v2880_v59 = vpack.c.bf16 %v2648_v41, %v2644_v51  ;;  %v2881_v21 = vpack.c.bf16 %v2649_v15, %v2645_v16  ;;  %v11742_v51 = vld [vmem:[#allocation170_spill] sm:$0xff] }
 0x321   : > { %v2102_v32 = vsub.f32 %v11742_v51, %v8572_v26 }
 0x322   : > { %v3047_v30 = vmul.bf16 1069105081, %v2878_v63  ;;  %v3050_v7 = vmul.bf16 1069105081, %v2879_v3  ;;  %v3053_v37 = vmul.bf16 1069105081, %v2880_v59 }
 0x323   : > { %v3056_v20 = vmul.bf16 1069105081, %v2881_v21  ;;  %v2178_v21 = vmul.f32 1.442695, %v2102_v32 }
 0x324   : > { %6869 = vpow.bf16 %v3047_v30 }
 0x325   : > { %6871 = vpow.bf16 %v3050_v7 }
 0x326   : > { %6873 = vpow.bf16 %v3053_v37 }
 0x327   : > { %6875 = vpow.bf16 %v3056_v20 }
 0x328   : > { %6877 = vpow2.f32 %v2180_v44 }
 0x329   : > { %6879 = vpow2.f32 %v2178_v21 }
 0x32f   : > { %v6870_v9 = vpop.eup %6869 }
 0x330   : > { %v6872_v16 = vpop.eup %6871  ;;  %v3538_v46 = vunpack.c.l.bf16 %v6870_v9  ;;  %v3542_v41 = vunpack.c.h.bf16 %v6870_v9 }
 0x331   : > { %v6874_v63 = vpop.eup %6873  ;;  %4979 = vmatprep.mubr.bf16.mxu0 %v6872_v16  ;;  %v3539_v59 = vunpack.c.l.bf16 %v6872_v16  ;;  %v3543_v15 = vunpack.c.h.bf16 %v6872_v16  ;;  %v1950_v16 = vpop.xlane.xlu0 %1949 }
 0x332   : > { %v6876_v52 = vpop.eup %6875  ;;  %4980 = vmatmul.mubr.bf16.gmra.mrb[148].mxu0 %v6870_v9  ;;  %v3540_v20 = vunpack.c.l.bf16 %v6874_v63  ;;  %v3544_v26 = vunpack.c.h.bf16 %v6874_v63  ;;  %v11746_v9 = vld [vmem:[#allocation177_spill] sm:$0xff] }
 0x333   : > { %v9454_v57 = vpop.eup %6877  ;;  %1964 = vmax.xlane.f32.xlu1 %v11744_v40  ;;  %5268 = vmatprep.mubr.bf16.mxu1 %v6876_v52  ;;  %v3804_v6 = vadd.f32 %v3539_v59, %v3538_v46  ;;  %v3809_v3 = vadd.f32 %v3543_v15, %v3542_v41  ;;  %v3541_v30 = vunpack.c.l.bf16 %v6876_v52  ;;  %v3545_v37 = vunpack.c.h.bf16 %v6876_v52  ;;  %v11748_v41 = vld [vmem:[#allocation176_spill] sm:$0xff]  ;;  %v11750_v59 = vld [vmem:[#allocation286_spill] sm:$0xff] }
 0x334   : > { %11743 = vst [vmem:[#allocation159_spill] sm:$0xff] %v9454_v57  ;;  %4334 = vperm.xlu0 %6739, %v9454_v57   ;;  %5269 = vmatmul.mubr.bf16.gmra.mrb[148].mxu1 %v6874_v63  ;;  %v9468_v46 = vmax.f32 %v9460_v0, %v1950_v16  ;;  %v9472_v32 = vpop.eup %6879  ;;  %v11749_v63 = vld [vmem:[#allocation285_spill] sm:$0xff]  ;;  %v11751_v15 = vld [vmem:[#allocation288_spill] sm:$0xff]  ;;  %v11800_v0 = vld [vmem:[#allocation51_spill] sm:$0xff] }
 0x335   : > { %v3805_v7 = vadd.f32 %v3804_v6, %v3540_v20  ;;  %v3810_v44 = vadd.f32 %v3809_v3, %v3544_v26  ;;  %11747 = vst [vmem:[#allocation12_spill] sm:$0xff] %v9472_v32  ;;  %v11752_v52 = vmax.f32 %v11750_v59, %v11751_v15  ;;  %v4205_v20 = vld [vmem:[#allocation4 + $0x10] sm:$0xff]  ;;  %v11753_v26 = vld [vmem:[#allocation287_spill] sm:$0xff]  ;;  %v9486_v16 = vld [vmem:[#allocation2 + $0x178] sm:$0xff] }
 0x336   : > { %5662 = vst.msk [vmem:[#allocation2 + $0x180] sm:$0xff] %vm382_vm2, %v9468_v46  ;;  %v4589_v47 = vmul.f32 %v9326_v24, %v4205_v20 }
 0x337   : > { %v9463_v29 = vadd.f32 %v3805_v7, %v3541_v30  ;;  %v9465_v51 = vadd.f32 %v3810_v44, %v3545_v37  ;;  %v9480_v40 = vmax.f32 %v11752_v52, %v11749_v63  ;;  %v9484_v21 = vpop.permute.xlu0 %4314  ;;  %v4206_v7 = vld [vmem:[#allocation4 + $0x18] sm:$0xff] }
 0x338   : > { %2369 = vperm.xlu0 %6739, %v11746_v9   ;;  %v4590_v59 = vmul.f32 %v9316_v27, %v4206_v7  ;;  %v11755_v27 = vld [vmem:[#allocation39_spill] sm:$0xff] }
 0x33b   : > { %v4949_v6 = vpop.f32.mrb[132].mxu0 }
 0x33c   : > { %v4951_v30 = vpop.f32.mrb[133].mxu0 }
 0x33d   : > { %v5238_v37 = vpop.f32.mrb[132].mxu1  ;;  %v4952_v44 = vpop.f32.mrb[134].mxu0 }
 0x33e   : > { %v5239_v56 = vadd.f32 %v5238_v37, %v4949_v6  ;;  %v5240_v36 = vpop.f32.mrb[133].mxu1  ;;  %v4954_v15 = vpop.f32.mrb[135].mxu0  ;;  %v11758_v37 = vld [vmem:[#allocation35_spill] sm:$0xff] }
 0x33f   : > { %v5241_v52 = vpop.f32.mrb[134].mxu1  ;;  %v2350_v36 = vpop.permute.xlu0 %2349  ;;  %v11754_v15 = vld [vmem:[#allocation38_spill] sm:$0xff] }
 0x340   : > { %v5487_v43 = vadd.f32 %v5239_v56, %v4589_v47  ;;  %v5242_v38 = vadd.f32 %v5241_v52, %v4952_v44  ;;  %v5243_v3 = vpop.f32.mrb[135].mxu1  ;;  %v2654_v20 = vsub.f32 %v11754_v15, %v2350_v36  ;;  %v2655_v56 = vsub.f32 %v11755_v27, %v2350_v36  ;;  %v11756_v47 = vld [vmem:[#allocation41_spill] sm:$0xff] }
 0x341   : > { %v2656_v6 = vsub.f32 %v11756_v47, %v2350_v36  ;;  %v11757_v3 = vld [vmem:[#allocation42_spill] sm:$0xff]  ;;  %v11760_v44 = vld [vmem:[#allocation37_spill] sm:$0xff] }
 0x342   : > { %5552 = vst.msk [vmem:[#allocation4 + $0x10] sm:$0xff] %vm511_vm3, %v5487_v43  ;;  %v5488_v30 = vadd.f32 %v5242_v38, %v4590_v59  ;;  %v11759_v38 = vld [vmem:[#allocation36_spill] sm:$0xff]  ;;  %v11763_v47 = vld [vmem:[#allocation173_spill] sm:$0xff] }
 0x344   : > { %4329 = vperm.xlu1 %6740, %v9472_v32   ;;  %5553 = vst.msk [vmem:[#allocation4 + $0x18] sm:$0xff] %vm511_vm3, %v5488_v30  ;;  %v11762_v30 = vmax.f32 %v9338_v11, %v9113_v1  ;;  %v11778_v32 = vld [vmem:[#allocation50_spill] sm:$0xff] }
 0x348   : > { %2364 = vperm.xlu1 %6740, %v11748_v41  }
 0x34e   : > { %v1945_v63 = vpop.xlane.xlu1 %1944 }
 0x34f   : > { %v9491_v12 = vmax.f32 %v9486_v16, %v1945_v63  ;;  %v2657_v63 = vsub.f32 %v11757_v3, %v2350_v36  ;;  %v2105_v36 = vsub.f32 %v11763_v47, %v8596_v31  ;;  %v9520_v47 = vld [vmem:[#allocation2 + $0x190] sm:$0xff] }
 0x350   : > { %11767 = vst [vmem:[#allocation14_spill] sm:$0xff] %v9520_v47 }
 0x351   : > { %5661 = vst.msk [vmem:[#allocation2 + $0x178] sm:$0xff] %vm382_vm2, %v9491_v12 }
 0x352   : > { %v9496_v24 = vpop.permute.xlu1 %4309 }
 0x356   : > { %v2345_v7 = vpop.permute.xlu1 %2344 }
 0x357   : > { %v2650_v43 = vsub.f32 %v11758_v37, %v2345_v7  ;;  %v2651_v59 = vsub.f32 %v11759_v38, %v2345_v7  ;;  %v2652_v52 = vsub.f32 %v11760_v44, %v2345_v7  ;;  %v2653_v18 = vsub.f32 %v11761_v55, %v2345_v7  ;;  %1979 = vmax.xlane.f32.xlu0 %v11762_v30 }
 0x358   : > { %v2184_v38 = vmul.f32 1.442695, %v2105_v36 }
 0x359   : > { %v2882_v15 = vpack.c.bf16 %v2654_v20, %v2650_v43  ;;  %v2883_v57 = vpack.c.bf16 %v2655_v56, %v2651_v59  ;;  %v2884_v27 = vpack.c.bf16 %v2656_v6, %v2652_v52  ;;  %v2885_v42 = vpack.c.bf16 %v2657_v63, %v2653_v18  ;;  %v11764_v20 = vld [vmem:[#allocation172_spill] sm:$0xff] }
 0x35a   : > { %v2104_v56 = vsub.f32 %v11764_v20, %v8589_v25  ;;  %v11773_v20 = vld [vmem:[#allocation298_spill] sm:$0xff] }
 0x35b   : > { %v3059_v3 = vmul.bf16 1069105081, %v2882_v15  ;;  %v3062_v53 = vmul.bf16 1069105081, %v2883_v57  ;;  %v3065_v37 = vmul.bf16 1069105081, %v2884_v27 }
 0x35c   : > { %v3068_v23 = vmul.bf16 1069105081, %v2885_v42  ;;  %v2182_v25 = vmul.f32 1.442695, %v2104_v56  ;;  %v11774_v56 = vld [vmem:[#allocation306_spill] sm:$0xff] }
 0x35d   : > { %6881 = vpow.bf16 %v3059_v3 }
 0x35e   : > { %6883 = vpow.bf16 %v3062_v53  ;;  %v11766_v53 = vmax.f32 %v9376_v19, %v9103_v61  ;;  %v11769_v19 = vld [vmem:[#allocation181_spill] sm:$0xff] }
 0x35f   : > { %6885 = vpow.bf16 %v3065_v37 }
 0x360   : > { %6887 = vpow.bf16 %v3068_v23 }
 0x361   : > { %6889 = vpow2.f32 %v2184_v38 }
 0x362   : > { %6891 = vpow2.f32 %v2182_v25 }
 0x368   : > { %v6882_v55 = vpop.eup %6881 }
 0x369   : > { %v6884_v11 = vpop.eup %6883  ;;  %v3546_v6 = vunpack.c.l.bf16 %v6882_v55  ;;  %v3550_v18 = vunpack.c.h.bf16 %v6882_v55 }
 0x36a   : > { %v6886_v63 = vpop.eup %6885  ;;  %4987 = vmatprep.mubr.bf16.mxu0 %v6884_v11  ;;  %v3547_v31 = vunpack.c.l.bf16 %v6884_v11  ;;  %v3551_v7 = vunpack.c.h.bf16 %v6884_v11  ;;  %v11772_v11 = vld [vmem:[#allocation180_spill] sm:$0xff] }
 0x36b   : > { %v6888_v57 = vpop.eup %6887  ;;  %4988 = vmatmul.mubr.bf16.gmra.mrb[152].mxu0 %v6882_v55  ;;  %v3548_v23 = vunpack.c.l.bf16 %v6886_v63  ;;  %v3552_v59 = vunpack.c.h.bf16 %v6886_v63 }
 0x36c   : > { %v9514_v42 = vpop.eup %6889  ;;  %5276 = vmatprep.mubr.bf16.mxu1 %v6888_v57  ;;  %1974 = vmax.xlane.f32.xlu1 %v11766_v53  ;;  %v3814_v43 = vadd.f32 %v3547_v31, %v3546_v6  ;;  %v3819_v44 = vadd.f32 %v3551_v7, %v3550_v18  ;;  %v3549_v52 = vunpack.c.l.bf16 %v6888_v57  ;;  %v3553_v15 = vunpack.c.h.bf16 %v6888_v57  ;;  %v9538_v18 = vld [vmem:[#allocation2 + $0x188] sm:$0xff]  ;;  %v4207_v31 = vld [vmem:[#allocation4 + $0x20] sm:$0xff] }
 0x36d   : > { %11765 = vst [vmem:[#allocation13_spill] sm:$0xff] %v9514_v42  ;;  %5277 = vmatmul.mubr.bf16.gmra.mrb[152].mxu1 %v6886_v63  ;;  %4344 = vperm.xlu0 %6739, %v9514_v42   ;;  %v9532_v55 = vpop.eup %6891  ;;  %v4591_v25 = vmul.f32 %v9357_v39, %v4207_v31  ;;  %v11776_v31 = vld [vmem:[#allocation47_spill] sm:$0xff] }
 0x36e   : > { %v3815_v30 = vadd.f32 %v3814_v43, %v3548_v23  ;;  %v3820_v27 = vadd.f32 %v3819_v44, %v3552_v59  ;;  %11771 = vst [vmem:[#allocation16_spill] sm:$0xff] %v9532_v55  ;;  %v4208_v43 = vld [vmem:[#allocation4 + $0x28] sm:$0xff] }
 0x36f   : > { %v1960_v37 = vpop.xlane.xlu0 %1959  ;;  %v4592_v6 = vmul.f32 %v9345_v28, %v4208_v43  ;;  %v11780_v43 = vld [vmem:[#allocation44_spill] sm:$0xff] }
 0x370   : > { %v9522_v36 = vadd.f32 %v3815_v30, %v3549_v52  ;;  %v9524_v3 = vadd.f32 %v3820_v27, %v3553_v15  ;;  %v9528_v38 = vmax.f32 %v9520_v47, %v1960_v37 }
 0x371   : > { %2379 = vperm.xlu0 %6739, %v11769_v19  }
 0x372   : > { %11768 = vst [vmem:[#allocation15_spill] sm:$0xff] %v9524_v3  ;;  %11770 = vst [vmem:[#allocation17_spill] sm:$0xff] %v9528_v38 }
 0x373   : > { %5664 = vst.msk [vmem:[#allocation2 + $0x190] sm:$0xff] %vm382_vm2, %v9528_v38 }
 0x37a   : > { %v9540_v63 = vpop.permute.xlu0 %4324 }
 0x37d   : > { %4339 = vperm.xlu1 %6740, %v9532_v55   ;;  %v11775_v55 = vld [vmem:[#allocation46_spill] sm:$0xff] }
 0x37e   : > { %v2360_v1 = vpop.permute.xlu0 %2359 }
 0x37f   : > { %v2662_v39 = vsub.f32 %v11775_v55, %v2360_v1 }
 0x381   : > { %2374 = vperm.xlu1 %6740, %v11772_v11  }
 0x387   : > { %v4957_v7 = vpop.f32.mrb[136].mxu0  ;;  %v1955_v57 = vpop.xlane.xlu1 %1954 }
 0x388   : > { %v9543_v53 = vmax.f32 %v9538_v18, %v1955_v57  ;;  %v4959_v23 = vpop.f32.mrb[137].mxu0 }
 0x389   : > { %v5246_v59 = vpop.f32.mrb[136].mxu1  ;;  %v4960_v44 = vpop.f32.mrb[138].mxu0 }
 0x38a   : > { %v5247_v52 = vadd.f32 %v5246_v59, %v4957_v7  ;;  %v5248_v30 = vpop.f32.mrb[137].mxu1  ;;  %5663 = vst.msk [vmem:[#allocation2 + $0x188] sm:$0xff] %vm382_vm2, %v9543_v53  ;;  %v4962_v15 = vpop.f32.mrb[139].mxu0  ;;  %v2663_v7 = vsub.f32 %v11776_v31, %v2360_v1  ;;  %v11777_v59 = vld [vmem:[#allocation49_spill] sm:$0xff] }
 0x38b   : > { %v5249_v27 = vpop.f32.mrb[138].mxu1  ;;  %v9548_v37 = vpop.permute.xlu1 %4319  ;;  %v2664_v30 = vsub.f32 %v11777_v59, %v2360_v1  ;;  %v2665_v15 = vsub.f32 %v11778_v32, %v2360_v1  ;;  %v11784_v1 = vld [vmem:[#allocation175_spill] sm:$0xff] }
 0x38c   : > { %v5489_v57 = vadd.f32 %v5247_v52, %v4591_v25  ;;  %v5250_v42 = vadd.f32 %v5249_v27, %v4960_v44  ;;  %v5251_v23 = vpop.f32.mrb[139].mxu1  ;;  %v11781_v44 = vld [vmem:[#allocation45_spill] sm:$0xff]  ;;  %v11782_v27 = vld [vmem:[#allocation48_spill] sm:$0xff]  ;;  %v2107_v32 = vsub.f32 %v11784_v1, %v11746_v9 }
 0x38e   : > { %5554 = vst.msk [vmem:[#allocation4 + $0x20] sm:$0xff] %vm511_vm3, %v5489_v57  ;;  %v5490_v61 = vadd.f32 %v5250_v42, %v4592_v6  ;;  %v11783_v42 = vmax.f32 %v9412_v8, %v9133_v10 }
 0x38f   : > { %v2355_v47 = vpop.permute.xlu1 %2354 }
 0x390   : > { %5555 = vst.msk [vmem:[#allocation4 + $0x28] sm:$0xff] %vm511_vm3, %v5490_v61  ;;  %v2658_v28 = vsub.f32 %v11779_v35, %v2355_v47  ;;  %v2659_v25 = vsub.f32 %v11780_v43, %v2355_v47  ;;  %v2660_v52 = vsub.f32 %v11781_v44, %v2355_v47  ;;  %v2661_v57 = vsub.f32 %v11782_v27, %v2355_v47 }
 0x391   : > { %1989 = vmax.xlane.f32.xlu0 %v11783_v42  ;;  %v2188_v43 = vmul.f32 1.442695, %v2107_v32  ;;  %v9574_v32 = vld [vmem:[#allocation2 + $0x1a0] sm:$0xff] }
 0x392   : > { %v2886_v55 = vpack.c.bf16 %v2662_v39, %v2658_v28  ;;  %v2887_v6 = vpack.c.bf16 %v2663_v7, %v2659_v25  ;;  %v2888_v23 = vpack.c.bf16 %v2664_v30, %v2660_v52  ;;  %v2889_v31 = vpack.c.bf16 %v2665_v15, %v2661_v57  ;;  %v11785_v39 = vld [vmem:[#allocation174_spill] sm:$0xff]  ;;  %11788 = vst [vmem:[#allocation22_spill] sm:$0xff] %v9574_v32 }
 0x393   : > { %v2106_v7 = vsub.f32 %v11785_v39, %v11748_v41  ;;  %v11795_v39 = vld [vmem:[#allocation312_spill] sm:$0xff] }
 0x394   : > { %v3071_v61 = vmul.bf16 1069105081, %v2886_v55  ;;  %v3074_v59 = vmul.bf16 1069105081, %v2887_v6  ;;  %v3077_v35 = vmul.bf16 1069105081, %v2888_v23 }
 0x395   : > { %v3080_v60 = vmul.bf16 1069105081, %v2889_v31  ;;  %v2186_v41 = vmul.f32 1.442695, %v2106_v7  ;;  %v11796_v7 = vld [vmem:[#allocation316_spill] sm:$0xff] }
 0x396   : > { %6893 = vpow.bf16 %v3071_v61 }
 0x397   : > { %6895 = vpow.bf16 %v3074_v59 }
 0x398   : > { %6897 = vpow.bf16 %v3077_v35 }
 0x399   : > { %6899 = vpow.bf16 %v3080_v60  ;;  %v11787_v60 = vmax.f32 %v9448_v45, %v11741_v50  ;;  %v11791_v45 = vld [vmem:[#allocation186_spill] sm:$0xff] }
 0x39a   : > { %6901 = vpow2.f32 %v2188_v43 }
 0x39b   : > { %6903 = vpow2.f32 %v2186_v41 }
 0x3a1   : > { %v6894_v47 = vpop.eup %6893 }
 0x3a2   : > { %v6896_v8 = vpop.eup %6895  ;;  %v3554_v30 = vunpack.c.l.bf16 %v6894_v47  ;;  %v3558_v15 = vunpack.c.h.bf16 %v6894_v47 }
 0x3a3   : > { %v6898_v28 = vpop.eup %6897  ;;  %4995 = vmatprep.mubr.bf16.mxu0 %v6896_v8  ;;  %v3555_v9 = vunpack.c.l.bf16 %v6896_v8  ;;  %v3559_v25 = vunpack.c.h.bf16 %v6896_v8  ;;  %v11794_v8 = vld [vmem:[#allocation185_spill] sm:$0xff] }
 0x3a4   : > { %v6900_v44 = vpop.eup %6899  ;;  %4996 = vmatmul.mubr.bf16.gmra.mrb[156].mxu0 %v6894_v47  ;;  %v3556_v27 = vunpack.c.l.bf16 %v6898_v28  ;;  %v3560_v42 = vunpack.c.h.bf16 %v6898_v28 }
 0x3a5   : > { %v9568_v52 = vpop.eup %6901  ;;  %5284 = vmatprep.mubr.bf16.mxu1 %v6900_v44  ;;  %1984 = vmax.xlane.f32.xlu1 %v11787_v60  ;;  %v3824_v57 = vadd.f32 %v3555_v9, %v3554_v30  ;;  %v3829_v55 = vadd.f32 %v3559_v25, %v3558_v15  ;;  %v3557_v6 = vunpack.c.l.bf16 %v6900_v44  ;;  %v3561_v31 = vunpack.c.h.bf16 %v6900_v44  ;;  %v9592_v15 = vld [vmem:[#allocation2 + $0x198] sm:$0xff]  ;;  %v4209_v44 = vld [vmem:[#allocation4 + $0x30] sm:$0xff]  ;;  %v11798_v30 = vld [vmem:[#allocation54_spill] sm:$0xff] }
 0x3a6   : > { %11786 = vst [vmem:[#allocation18_spill] sm:$0xff] %v9568_v52  ;;  %5285 = vmatmul.mubr.bf16.gmra.mrb[156].mxu1 %v6898_v28  ;;  %v9586_v47 = vpop.eup %6903  ;;  %11797 = vst [vmem:[#allocation21_spill] sm:$0xff] %v9592_v15 }
 0x3a7   : > { %4354 = vperm.xlu0 %6739, %v9568_v52   ;;  %v3825_v23 = vadd.f32 %v3824_v57, %v3556_v27  ;;  %v3830_v1 = vadd.f32 %v3829_v55, %v3560_v42  ;;  %11793 = vst [vmem:[#allocation20_spill] sm:$0xff] %v9586_v47  ;;  %v4210_v57 = vld [vmem:[#allocation4 + $0x38] sm:$0xff]  ;;  %v11799_v52 = vld [vmem:[#allocation55_spill] sm:$0xff] }
 0x3a9   : > { %v9576_v61 = vadd.f32 %v3825_v23, %v3557_v6  ;;  %v9578_v59 = vadd.f32 %v3830_v1, %v3561_v31  ;;  %v4593_v23 = vmul.f32 %v9428_v48, %v4209_v44  ;;  %v11802_v48 = vmax.f32 %v9480_v40, %v11753_v26  ;;  %v11803_v44 = vld [vmem:[#allocation57_spill] sm:$0xff] }
 0x3aa   : > { %v11830_v26 = vmax.f32 %v11774_v56, %v11773_v20 }
 0x3ab   : > { %11789 = vst [vmem:[#allocation23_spill] sm:$0xff] %v9576_v61  ;;  %11790 = vst [vmem:[#allocation25_spill] sm:$0xff] %v9578_v59  ;;  %2389 = vperm.xlu0 %6739, %v11791_v45   ;;  %v1970_v35 = vpop.xlane.xlu0 %1969 }
 0x3ac   : > { %v9582_v43 = vmax.f32 %v9574_v32, %v1970_v35 }
 0x3ae   : > { %11792 = vst [vmem:[#allocation19_spill] sm:$0xff] %v9582_v43  ;;  %5666 = vst.msk [vmem:[#allocation2 + $0x1a0] sm:$0xff] %vm382_vm2, %v9582_v43 }
 0x3b3   : > { %v9594_v28 = vpop.permute.xlu0 %4334 }
 0x3b6   : > { %4349 = vperm.xlu1 %6740, %v9586_v47  }
 0x3b7   : > { %v2370_v42 = vpop.permute.xlu0 %2369 }
 0x3b8   : > { %v2670_v10 = vsub.f32 %v11798_v30, %v2370_v42  ;;  %v2671_v50 = vsub.f32 %v11799_v52, %v2370_v42  ;;  %v11805_v30 = vld [vmem:[#allocation53_spill] sm:$0xff]  ;;  %v11806_v52 = vld [vmem:[#allocation56_spill] sm:$0xff] }
 0x3ba   : > { %2384 = vperm.xlu1 %6740, %v11794_v8  }
 0x3c0   : > { %v1965_v9 = vpop.xlane.xlu1 %1964 }
 0x3c1   : > { %v9597_v25 = vmax.f32 %v9592_v15, %v1965_v9  ;;  %v4594_v9 = vmul.f32 %v9416_v5, %v4210_v57  ;;  %v11801_v15 = vld [vmem:[#allocation52_spill] sm:$0xff]  ;;  %v11804_v5 = vld [vmem:[#allocation58_spill] sm:$0xff] }
 0x3c2   : > { %v2673_v57 = vsub.f32 %v11804_v5, %v2370_v42 }
 0x3c3   : > { %5665 = vst.msk [vmem:[#allocation2 + $0x198] sm:$0xff] %vm382_vm2, %v9597_v25 }
 0x3c4   : > { %v4965_v60 = vpop.f32.mrb[140].mxu0  ;;  %v9601_v27 = vpop.permute.xlu1 %4329 }
 0x3c5   : > { %v4967_v55 = vpop.f32.mrb[141].mxu0 }
 0x3c6   : > { %v5254_v41 = vpop.f32.mrb[140].mxu1  ;;  %v4968_v6 = vpop.f32.mrb[142].mxu0 }
 0x3c7   : > { %v5255_v31 = vadd.f32 %v5254_v41, %v4965_v60  ;;  %v5256_v1 = vpop.f32.mrb[141].mxu1  ;;  %v4970_v35 = vpop.f32.mrb[143].mxu0  ;;  %v2672_v60 = vsub.f32 %v11803_v44, %v2370_v42 }
 0x3c8   : > { %v5257_v47 = vpop.f32.mrb[142].mxu1  ;;  %v2365_v32 = vpop.permute.xlu1 %2364 }
 0x3c9   : > { %v5491_v59 = vadd.f32 %v5255_v31, %v4593_v23  ;;  %v5258_v43 = vadd.f32 %v5257_v47, %v4968_v6  ;;  %v5259_v3 = vpop.f32.mrb[143].mxu1  ;;  %v2666_v55 = vsub.f32 %v11800_v0, %v2365_v32  ;;  %v2667_v61 = vsub.f32 %v11801_v15, %v2365_v32  ;;  %v11807_v0 = vld [vmem:[#allocation179_spill] sm:$0xff]  ;;  %v4211_v23 = vld [vmem:[#allocation4 + $0x40] sm:$0xff] }
 0x3ca   : > { %1999 = vmax.xlane.f32.xlu0 %v11802_v48  ;;  %v2668_v41 = vsub.f32 %v11805_v30, %v2365_v32  ;;  %v2669_v1 = vsub.f32 %v11806_v52, %v2365_v32  ;;  %v2109_v15 = vsub.f32 %v11807_v0, %v11769_v19  ;;  %v4212_v48 = vld [vmem:[#allocation4 + $0x48] sm:$0xff] }
 0x3cb   : > { %5556 = vst.msk [vmem:[#allocation4 + $0x30] sm:$0xff] %vm511_vm3, %v5491_v59  ;;  %v5492_v47 = vadd.f32 %v5258_v43, %v4594_v9  ;;  %v2890_v3 = vpack.c.bf16 %v2670_v10, %v2666_v55  ;;  %v2891_v6 = vpack.c.bf16 %v2671_v50, %v2667_v61  ;;  %v4595_v10 = vmul.f32 %v9496_v24, %v4211_v23 }
 0x3cc   : > { %v2892_v31 = vpack.c.bf16 %v2672_v60, %v2668_v41  ;;  %v2893_v40 = vpack.c.bf16 %v2673_v57, %v2669_v1  ;;  %v4973_v35 = vpop.f32.mrb[144].mxu0  ;;  %v2192_v43 = vmul.f32 1.442695, %v2109_v15  ;;  %v4596_v55 = vmul.f32 %v9484_v21, %v4212_v48  ;;  %v11810_v48 = vld [vmem:[#allocation291_spill] sm:$0xff] }
 0x3cd   : > { %5557 = vst.msk [vmem:[#allocation4 + $0x38] sm:$0xff] %vm511_vm3, %v5492_v47  ;;  %v3083_v42 = vmul.bf16 1069105081, %v2890_v3  ;;  %v3086_v44 = vmul.bf16 1069105081, %v2891_v6  ;;  %v4975_v5 = vpop.f32.mrb[145].mxu0 }
 0x3ce   : > { %v3089_v30 = vmul.bf16 1069105081, %v2892_v31  ;;  %v3092_v32 = vmul.bf16 1069105081, %v2893_v40  ;;  %v5262_v52 = vpop.f32.mrb[144].mxu1  ;;  %v4976_v59 = vpop.f32.mrb[146].mxu0 }
 0x3cf   : > { %6905 = vpow.bf16 %v3083_v42  ;;  %v5263_v50 = vadd.f32 %v5262_v52, %v4973_v35  ;;  %v5264_v61 = vpop.f32.mrb[145].mxu1  ;;  %v4978_v19 = vpop.f32.mrb[147].mxu0  ;;  %v11808_v3 = vld [vmem:[#allocation178_spill] sm:$0xff]  ;;  %v11811_v42 = vld [vmem:[#allocation283_spill] sm:$0xff] }
 0x3d0   : > { %6907 = vpow.bf16 %v3086_v44  ;;  %v5265_v9 = vpop.f32.mrb[146].mxu1  ;;  %v2108_v6 = vsub.f32 %v11808_v3, %v11772_v11  ;;  %v11812_v44 = vmax.f32 %v11810_v48, %v11811_v42  ;;  %v9632_v19 = vld [vmem:[#allocation2 + $0x1b0] sm:$0xff]  ;;  %v11824_v48 = vld [vmem:[#allocation65_spill] sm:$0xff] }
 0x3d1   : > { %6909 = vpow.bf16 %v3089_v30  ;;  %v5493_v60 = vadd.f32 %v5263_v50, %v4595_v10  ;;  %v5266_v57 = vadd.f32 %v5265_v9, %v4976_v59  ;;  %v5267_v41 = vpop.f32.mrb[147].mxu1  ;;  %11813 = vst [vmem:[#allocation24_spill] sm:$0xff] %v9632_v19 }
 0x3d2   : > { %6911 = vpow.bf16 %v3092_v32  ;;  %v2190_v11 = vmul.f32 1.442695, %v2108_v6 }
 0x3d3   : > { %5558 = vst.msk [vmem:[#allocation4 + $0x40] sm:$0xff] %vm511_vm3, %v5493_v60  ;;  %v5494_v1 = vadd.f32 %v5266_v57, %v4596_v55  ;;  %6913 = vpow2.f32 %v2192_v43  ;;  %v11816_v55 = vld [vmem:[#allocation195_spill] sm:$0xff] }
 0x3d4   : > { %6915 = vpow2.f32 %v2190_v11 }
 0x3d5   : > { %5559 = vst.msk [vmem:[#allocation4 + $0x48] sm:$0xff] %vm511_vm3, %v5494_v1  ;;  %v11819_v1 = vld [vmem:[#allocation191_spill] sm:$0xff] }
 0x3da   : > { %v6906_v24 = vpop.eup %6905 }
 0x3db   : > { %v6908_v47 = vpop.eup %6907  ;;  %v3562_v0 = vunpack.c.l.bf16 %v6906_v24  ;;  %v3566_v15 = vunpack.c.h.bf16 %v6906_v24 }
 0x3dc   : > { %v6910_v23 = vpop.eup %6909  ;;  %5003 = vmatprep.mubr.bf16.mxu0 %v6908_v47  ;;  %v3563_v21 = vunpack.c.l.bf16 %v6908_v47  ;;  %v3567_v31 = vunpack.c.h.bf16 %v6908_v47 }
 0x3dd   : > { %v6912_v40 = vpop.eup %6911  ;;  %5004 = vmatmul.mubr.bf16.gmra.mrb[160].mxu0 %v6906_v24  ;;  %v3564_v5 = vunpack.c.l.bf16 %v6910_v23  ;;  %v3568_v32 = vunpack.c.h.bf16 %v6910_v23  ;;  %v9648_v24 = vld [vmem:[#allocation2 + $0x1a8] sm:$0xff] }
 0x3de   : > { %v9626_v35 = vpop.eup %6913  ;;  %5292 = vmatprep.mubr.bf16.mxu1 %v6912_v40  ;;  %1994 = vmax.xlane.f32.xlu1 %v11812_v44  ;;  %v3834_v30 = vadd.f32 %v3563_v21, %v3562_v0  ;;  %v3839_v52 = vadd.f32 %v3567_v31, %v3566_v15  ;;  %v3565_v59 = vunpack.c.l.bf16 %v6912_v40  ;;  %v3569_v50 = vunpack.c.h.bf16 %v6912_v40  ;;  %11820 = vst [vmem:[#allocation34_spill] sm:$0xff] %v9648_v24  ;;  %v11823_v31 = vld [vmem:[#allocation63_spill] sm:$0xff] }
 0x3df   : > { %11809 = vst [vmem:[#allocation26_spill] sm:$0xff] %v9626_v35  ;;  %5293 = vmatmul.mubr.bf16.gmra.mrb[160].mxu1 %v6910_v23  ;;  %v9644_v41 = vpop.eup %6915  ;;  %v11822_v23 = vld [vmem:[#allocation62_spill] sm:$0xff] }
 0x3e0   : > { %4364 = vperm.xlu0 %6739, %v9626_v35   ;;  %v3835_v10 = vadd.f32 %v3834_v30, %v3564_v5  ;;  %v3840_v61 = vadd.f32 %v3839_v52, %v3568_v32  ;;  %11818 = vst [vmem:[#allocation33_spill] sm:$0xff] %v9644_v41  ;;  %v11825_v5 = vld [vmem:[#allocation66_spill] sm:$0xff]  ;;  %v11826_v52 = vld [vmem:[#allocation59_spill] sm:$0xff] }
 0x3e2   : > { %v9634_v43 = vadd.f32 %v3835_v10, %v3565_v59  ;;  %v9636_v9 = vadd.f32 %v3840_v61, %v3569_v50  ;;  %v11827_v59 = vld [vmem:[#allocation60_spill] sm:$0xff]  ;;  %v11828_v50 = vld [vmem:[#allocation61_spill] sm:$0xff] }
 0x3e4   : > { %11814 = vst [vmem:[#allocation168_spill] sm:$0xff] %v9634_v43  ;;  %11815 = vst [vmem:[#allocation30_spill] sm:$0xff] %v9636_v9  ;;  %2399 = vperm.xlu0 %6739, %v11816_v55   ;;  %v1980_v60 = vpop.xlane.xlu0 %1979 }
 0x3e5   : > { %v9640_v57 = vmax.f32 %v9632_v19, %v1980_v60  ;;  %v11829_v60 = vld [vmem:[#allocation64_spill] sm:$0xff] }
 0x3e7   : > { %11817 = vst [vmem:[#allocation31_spill] sm:$0xff] %v9640_v57  ;;  %5668 = vst.msk [vmem:[#allocation2 + $0x1b0] sm:$0xff] %vm382_vm2, %v9640_v57 }
 0x3ec   : > { %v9650_v47 = vpop.permute.xlu0 %4344 }
 0x3ef   : > { %4359 = vperm.xlu1 %6740, %v9644_v41  }
 0x3f0   : > { %v2380_v15 = vpop.permute.xlu0 %2379 }
 0x3f1   : > { %v2678_v21 = vsub.f32 %v11822_v23, %v2380_v15  ;;  %v2679_v40 = vsub.f32 %v11823_v31, %v2380_v15  ;;  %v2680_v44 = vsub.f32 %v11824_v48, %v2380_v15  ;;  %v2681_v30 = vsub.f32 %v11825_v5, %v2380_v15  ;;  %v11831_v48 = vld [vmem:[#allocation184_spill] sm:$0xff] }
 0x3f2   : > { %v2111_v15 = vsub.f32 %v11831_v48, %v11791_v45  ;;  %v4213_v5 = vld [vmem:[#allocation4 + $0x50] sm:$0xff] }
 0x3f3   : > { %2394 = vperm.xlu1 %6740, %v11819_v1  }
 0x3f4   : > { %v2196_v57 = vmul.f32 1.442695, %v2111_v15 }
 0x3f9   : > { %v1975_v3 = vpop.xlane.xlu1 %1974 }
 0x3fa   : > { %v9653_v6 = vmax.f32 %v9648_v24, %v1975_v3  ;;  %v4223_v24 = vld [vmem:[#allocation4 + $0xa0] sm:$0xff] }
 0x3fc   : > { %11821 = vst [vmem:[#allocation27_spill] sm:$0xff] %v9653_v6  ;;  %5667 = vst.msk [vmem:[#allocation2 + $0x1a8] sm:$0xff] %vm382_vm2, %v9653_v6  ;;  %v12002_v6 = vld [vmem:[#allocation308_spill] sm:$0xff] }
 0x3fd   : > { %v9657_v0 = vpop.permute.xlu1 %4339 }
 0x401   : > { %v2375_v32 = vpop.permute.xlu1 %2374 }
 0x402   : > { %v2674_v11 = vsub.f32 %v11826_v52, %v2375_v32  ;;  %v2675_v10 = vsub.f32 %v11827_v59, %v2375_v32  ;;  %v2676_v61 = vsub.f32 %v11828_v50, %v2375_v32  ;;  %v2677_v3 = vsub.f32 %v11829_v60, %v2375_v32  ;;  %v4214_v50 = vld [vmem:[#allocation4 + $0x58] sm:$0xff] }
 0x403   : > { %2009 = vmax.xlane.f32.xlu0 %v11830_v26  ;;  %v4597_v26 = vmul.f32 %v9548_v37, %v4213_v5  ;;  %v11835_v5 = vld [vmem:[#allocation293_spill] sm:$0xff] }
 0x404   : > { %v2894_v23 = vpack.c.bf16 %v2678_v21, %v2674_v11  ;;  %v2895_v35 = vpack.c.bf16 %v2679_v40, %v2675_v10  ;;  %v2896_v31 = vpack.c.bf16 %v2680_v44, %v2676_v61  ;;  %v2897_v42 = vpack.c.bf16 %v2681_v30, %v2677_v3 }
 0x405   : > { %v4981_v9 = vpop.f32.mrb[148].mxu0  ;;  %v4598_v30 = vmul.f32 %v9540_v63, %v4214_v50 }
 0x406   : > { %v3095_v41 = vmul.bf16 1069105081, %v2894_v23  ;;  %v3098_v52 = vmul.bf16 1069105081, %v2895_v35  ;;  %v3101_v19 = vmul.bf16 1069105081, %v2896_v31 }
 0x407   : > { %v3104_v59 = vmul.bf16 1069105081, %v2897_v42  ;;  %v5270_v32 = vpop.f32.mrb[148].mxu1  ;;  %v4983_v60 = vpop.f32.mrb[149].mxu0 }
 0x408   : > { %6917 = vpow.bf16 %v3095_v41  ;;  %v5271_v56 = vadd.f32 %v5270_v32, %v4981_v9  ;;  %v5272_v21 = vpop.f32.mrb[149].mxu1  ;;  %v4984_v40 = vpop.f32.mrb[150].mxu0  ;;  %v11832_v9 = vld [vmem:[#allocation183_spill] sm:$0xff] }
 0x409   : > { %6919 = vpow.bf16 %v3098_v52  ;;  %v5273_v44 = vpop.f32.mrb[150].mxu1  ;;  %v4986_v45 = vpop.f32.mrb[151].mxu0  ;;  %v2110_v61 = vsub.f32 %v11832_v9, %v11794_v8 }
 0x40a   : > { %6921 = vpow.bf16 %v3101_v19  ;;  %v5495_v35 = vadd.f32 %v5271_v56, %v4597_v26  ;;  %v5274_v42 = vadd.f32 %v5273_v44, %v4984_v40  ;;  %v5275_v11 = vpop.f32.mrb[151].mxu1  ;;  %v9684_v44 = vld [vmem:[#allocation2 + $0x1c0] sm:$0xff] }
 0x40b   : > { %6923 = vpow.bf16 %v3104_v59  ;;  %v2194_v8 = vmul.f32 1.442695, %v2110_v61  ;;  %11837 = vst [vmem:[#allocation29_spill] sm:$0xff] %v9684_v44 }
 0x40c   : > { %6925 = vpow2.f32 %v2196_v57  ;;  %5560 = vst.msk [vmem:[#allocation4 + $0x50] sm:$0xff] %vm511_vm3, %v5495_v35  ;;  %v5496_v41 = vadd.f32 %v5274_v42, %v4598_v30  ;;  %v11834_v57 = vld [vmem:[#allocation301_spill] sm:$0xff]  ;;  %v11840_v35 = vld [vmem:[#allocation203_spill] sm:$0xff] }
 0x40d   : > { %v11836_v52 = vmax.f32 %v11834_v57, %v11835_v5  ;;  %6927 = vpow2.f32 %v2194_v8  ;;  %v11850_v8 = vld [vmem:[#allocation67_spill] sm:$0xff] }
 0x40e   : > { %5561 = vst.msk [vmem:[#allocation4 + $0x58] sm:$0xff] %vm511_vm3, %v5496_v41 }
 0x413   : > { %v6918_v37 = vpop.eup %6917 }
 0x414   : > { %v6920_v10 = vpop.eup %6919  ;;  %v3570_v19 = vunpack.c.l.bf16 %v6918_v37  ;;  %v3574_v3 = vunpack.c.h.bf16 %v6918_v37 }
 0x415   : > { %v6922_v23 = vpop.eup %6921  ;;  %5011 = vmatprep.mubr.bf16.mxu0 %v6920_v10  ;;  %v3571_v63 = vunpack.c.l.bf16 %v6920_v10  ;;  %v3575_v31 = vunpack.c.h.bf16 %v6920_v10  ;;  %v9700_v10 = vld [vmem:[#allocation2 + $0x1b8] sm:$0xff] }
 0x416   : > { %v6924_v48 = vpop.eup %6923  ;;  %5012 = vmatmul.mubr.bf16.gmra.mrb[164].mxu0 %v6918_v37  ;;  %v3572_v59 = vunpack.c.l.bf16 %v6922_v23  ;;  %v3576_v32 = vunpack.c.h.bf16 %v6922_v23  ;;  %v11843_v37 = vld [vmem:[#allocation202_spill] sm:$0xff]  ;;  %11844 = vst [vmem:[#allocation176_spill] sm:$0xff] %v9700_v10 }
 0x417   : > { %v9678_v15 = vpop.eup %6925  ;;  %5300 = vmatprep.mubr.bf16.mxu1 %v6924_v48  ;;  %2004 = vmax.xlane.f32.xlu1 %v11836_v52  ;;  %v3844_v50 = vadd.f32 %v3571_v63, %v3570_v19  ;;  %v3849_v60 = vadd.f32 %v3575_v31, %v3574_v3  ;;  %v3573_v26 = vunpack.c.l.bf16 %v6924_v48  ;;  %v3577_v21 = vunpack.c.h.bf16 %v6924_v48  ;;  %v11846_v63 = vld [vmem:[#allocation70_spill] sm:$0xff]  ;;  %v11847_v48 = vld [vmem:[#allocation71_spill] sm:$0xff]  ;;  %v11848_v52 = vld [vmem:[#allocation73_spill] sm:$0xff] }
 0x418   : > { %11833 = vst [vmem:[#allocation28_spill] sm:$0xff] %v9678_v15  ;;  %5301 = vmatmul.mubr.bf16.gmra.mrb[164].mxu1 %v6922_v23  ;;  %v9696_v41 = vpop.eup %6927 }
 0x419   : > { %4374 = vperm.xlu0 %6739, %v9678_v15   ;;  %v3845_v56 = vadd.f32 %v3844_v50, %v3572_v59  ;;  %v3850_v40 = vadd.f32 %v3849_v60, %v3576_v32  ;;  %11842 = vst [vmem:[#allocation177_spill] sm:$0xff] %v9696_v41  ;;  %v11849_v50 = vld [vmem:[#allocation74_spill] sm:$0xff]  ;;  %v11854_v15 = vmax.f32 %v11796_v7, %v11795_v39 }
 0x41b   : > { %v9686_v45 = vadd.f32 %v3845_v56, %v3573_v26  ;;  %v9688_v30 = vadd.f32 %v3850_v40, %v3577_v21  ;;  %v11851_v56 = vld [vmem:[#allocation68_spill] sm:$0xff]  ;;  %v11852_v40 = vld [vmem:[#allocation69_spill] sm:$0xff] }
 0x41d   : > { %11838 = vst [vmem:[#allocation32_spill] sm:$0xff] %v9686_v45  ;;  %11839 = vst [vmem:[#allocation171_spill] sm:$0xff] %v9688_v30  ;;  %2409 = vperm.xlu0 %6739, %v11840_v35  }
 0x41e   : > { %v1990_v42 = vpop.xlane.xlu0 %1989 }
 0x41f   : > { %v9692_v11 = vmax.f32 %v9684_v44, %v1990_v42 }
 0x421   : > { %11841 = vst [vmem:[#allocation170_spill] sm:$0xff] %v9692_v11  ;;  %5670 = vst.msk [vmem:[#allocation2 + $0x1c0] sm:$0xff] %vm382_vm2, %v9692_v11  ;;  %v4216_v11 = vld [vmem:[#allocation4 + $0x68] sm:$0xff] }
 0x426   : > { %v9702_v9 = vpop.permute.xlu0 %4354 }
 0x428   : > { %4369 = vperm.xlu1 %6740, %v9696_v41  }
 0x42a   : > { %v2390_v23 = vpop.permute.xlu0 %2389 }
 0x42b   : > { %v2686_v31 = vsub.f32 %v11846_v63, %v2390_v23  ;;  %v2687_v57 = vsub.f32 %v11847_v48, %v2390_v23  ;;  %v2688_v59 = vsub.f32 %v11848_v52, %v2390_v23  ;;  %v2689_v32 = vsub.f32 %v11849_v50, %v2390_v23  ;;  %v11855_v52 = vld [vmem:[#allocation189_spill] sm:$0xff]  ;;  %v4215_v50 = vld [vmem:[#allocation4 + $0x60] sm:$0xff] }
 0x42c   : > { %2404 = vperm.xlu1 %6740, %v11843_v37   ;;  %v2113_v23 = vsub.f32 %v11855_v52, %v11816_v55  ;;  %v4600_v55 = vmul.f32 %v9594_v28, %v4216_v11  ;;  %v11858_v11 = vld [vmem:[#allocation207_spill] sm:$0xff] }
 0x432   : > { %v1985_v61 = vpop.xlane.xlu1 %1984 }
 0x433   : > { %v9705_v19 = vmax.f32 %v9700_v10, %v1985_v61  ;;  %v11853_v61 = vld [vmem:[#allocation72_spill] sm:$0xff] }
 0x435   : > { %11845 = vst [vmem:[#allocation38_spill] sm:$0xff] %v9705_v19  ;;  %5669 = vst.msk [vmem:[#allocation2 + $0x1b8] sm:$0xff] %vm382_vm2, %v9705_v19  ;;  %v11974_v19 = vld [vmem:[#allocation261_spill] sm:$0xff] }
 0x436   : > { %v9709_v3 = vpop.permute.xlu1 %4349 }
 0x43a   : > { %v2385_v60 = vpop.permute.xlu1 %2384 }
 0x43b   : > { %v2682_v26 = vsub.f32 %v11850_v8, %v2385_v60  ;;  %v2683_v21 = vsub.f32 %v11851_v56, %v2385_v60  ;;  %v2684_v42 = vsub.f32 %v11852_v40, %v2385_v60  ;;  %v2685_v20 = vsub.f32 %v11853_v61, %v2385_v60 }
 0x43c   : > { %2019 = vmax.xlane.f32.xlu0 %v11854_v15  ;;  %v4599_v61 = vmul.f32 %v9601_v27, %v4215_v50  ;;  %v11856_v27 = vld [vmem:[#allocation201_spill] sm:$0xff] }
 0x43d   : > { %v2898_v63 = vpack.c.bf16 %v2686_v31, %v2682_v26  ;;  %v2899_v5 = vpack.c.bf16 %v2687_v57, %v2683_v21  ;;  %v2900_v48 = vpack.c.bf16 %v2688_v59, %v2684_v42  ;;  %v2901_v41 = vpack.c.bf16 %v2689_v32, %v2685_v20  ;;  %v11857_v42 = vld [vmem:[#allocation188_spill] sm:$0xff] }
 0x43e   : > { %v4989_v44 = vpop.f32.mrb[152].mxu0  ;;  %v2200_v57 = vmul.f32 1.442695, %v2113_v23  ;;  %v2112_v28 = vsub.f32 %v11857_v42, %v11819_v1 }
 0x43f   : > { %v3107_v8 = vmul.bf16 1069105081, %v2898_v63  ;;  %v3110_v30 = vmul.bf16 1069105081, %v2899_v5  ;;  %v3113_v56 = vmul.bf16 1069105081, %v2900_v48 }
 0x440   : > { %v3116_v40 = vmul.bf16 1069105081, %v2901_v41  ;;  %v5278_v10 = vpop.f32.mrb[152].mxu1  ;;  %v4991_v60 = vpop.f32.mrb[153].mxu0  ;;  %v11859_v63 = vld [vmem:[#allocation205_spill] sm:$0xff] }
 0x441   : > { %6929 = vpow.bf16 %v3107_v8  ;;  %v5279_v7 = vadd.f32 %v5278_v10, %v4989_v44  ;;  %v5280_v15 = vpop.f32.mrb[153].mxu1  ;;  %v4992_v31 = vpop.f32.mrb[154].mxu0  ;;  %v2115_v44 = vsub.f32 %v11856_v27, %v11840_v35  ;;  %v2117_v48 = vsub.f32 %v11859_v63, %v11858_v11  ;;  %v11861_v60 = vld [vmem:[#allocation311_spill] sm:$0xff] }
 0x442   : > { %6931 = vpow.bf16 %v3110_v30  ;;  %v5281_v20 = vpop.f32.mrb[154].mxu1  ;;  %v4994_v59 = vpop.f32.mrb[155].mxu0 }
 0x443   : > { %6933 = vpow.bf16 %v3113_v56  ;;  %v5497_v32 = vadd.f32 %v5279_v7, %v4599_v61  ;;  %v5282_v5 = vadd.f32 %v5281_v20, %v4992_v31  ;;  %v5283_v26 = vpop.f32.mrb[155].mxu1  ;;  %v2204_v10 = vmul.f32 1.442695, %v2115_v44  ;;  %v11862_v61 = vld [vmem:[#allocation305_spill] sm:$0xff] }
 0x444   : > { %6935 = vpow.bf16 %v3116_v40  ;;  %v11863_v7 = vmax.f32 %v11861_v60, %v11862_v61  ;;  %v2198_v20 = vmul.f32 1.442695, %v2112_v28  ;;  %v2208_v59 = vmul.f32 1.442695, %v2117_v48  ;;  %v11876_v60 = vld [vmem:[#allocation219_spill] sm:$0xff] }
 0x445   : > { %5562 = vst.msk [vmem:[#allocation4 + $0x60] sm:$0xff] %vm511_vm3, %v5497_v32  ;;  %v5498_v41 = vadd.f32 %v5282_v5, %v4600_v55  ;;  %6937 = vpow2.f32 %v2200_v57 }
 0x446   : > { %6939 = vpow2.f32 %v2204_v10  ;;  %v11867_v10 = vld [vmem:[#allocation211_spill] sm:$0xff] }
 0x447   : > { %5563 = vst.msk [vmem:[#allocation4 + $0x68] sm:$0xff] %vm511_vm3, %v5498_v41  ;;  %v9740_v41 = vld [vmem:[#allocation2 + $0x1d0] sm:$0xff]  ;;  %6941 = vpow2.f32 %v2198_v20 }
 0x448   : > { %11864 = vst [vmem:[#allocation41_spill] sm:$0xff] %v9740_v41  ;;  %6943 = vpow2.f32 %v2208_v59 }
 0x44c   : > { %v6930_v30 = vpop.eup %6929 }
 0x44d   : > { %v6932_v21 = vpop.eup %6931  ;;  %v3578_v52 = vunpack.c.l.bf16 %v6930_v30  ;;  %v3582_v23 = vunpack.c.h.bf16 %v6930_v30 }
 0x44e   : > { %v6934_v50 = vpop.eup %6933  ;;  %5019 = vmatprep.mubr.bf16.mxu0 %v6932_v21  ;;  %v3579_v8 = vunpack.c.l.bf16 %v6932_v21  ;;  %v3583_v56 = vunpack.c.h.bf16 %v6932_v21 }
 0x44f   : > { %v6936_v40 = vpop.eup %6935  ;;  %5020 = vmatmul.mubr.bf16.gmra.mrb[168].mxu0 %v6930_v30  ;;  %v3580_v1 = vunpack.c.l.bf16 %v6934_v50  ;;  %v3584_v31 = vunpack.c.h.bf16 %v6934_v50  ;;  %v11868_v30 = vld [vmem:[#allocation209_spill] sm:$0xff] }
 0x450   : > { %v9734_v35 = vpop.eup %6937  ;;  %5308 = vmatprep.mubr.bf16.mxu1 %v6936_v40  ;;  %2014 = vmax.xlane.f32.xlu1 %v11863_v7  ;;  %v3854_v15 = vadd.f32 %v3579_v8, %v3578_v52  ;;  %v3859_v57 = vadd.f32 %v3583_v56, %v3582_v23  ;;  %v3581_v55 = vunpack.c.l.bf16 %v6936_v40  ;;  %v3585_v5 = vunpack.c.h.bf16 %v6936_v40  ;;  %v11872_v52 = vld [vmem:[#allocation213_spill] sm:$0xff]  ;;  %v11875_v40 = vld [vmem:[#allocation206_spill] sm:$0xff] }
 0x451   : > { %11860 = vst [vmem:[#allocation39_spill] sm:$0xff] %v9734_v35  ;;  %5309 = vmatmul.mubr.bf16.gmra.mrb[168].mxu1 %v6934_v50  ;;  %v2119_v21 = vsub.f32 %v11868_v30, %v11867_v10  ;;  %v9752_v63 = vpop.eup %6939  ;;  %v11877_v7 = vld [vmem:[#allocation217_spill] sm:$0xff] }
 0x452   : > { %4384 = vperm.xlu0 %6739, %v9734_v35   ;;  %v3855_v32 = vadd.f32 %v3854_v15, %v3580_v1  ;;  %v3860_v26 = vadd.f32 %v3859_v57, %v3584_v31  ;;  %11870 = vst [vmem:[#allocation37_spill] sm:$0xff] %v9752_v63  ;;  %v9760_v50 = vpop.eup %6941  ;;  %v2123_v1 = vsub.f32 %v11877_v7, %v11876_v60  ;;  %v9773_v31 = vld [vmem:[#allocation2 + $0x1c8] sm:$0xff]  ;;  %v11891_v35 = vld [vmem:[#allocation80_spill] sm:$0xff] }
 0x453   : > { %v2212_v48 = vmul.f32 1.442695, %v2119_v21  ;;  %11873 = vst [vmem:[#allocation40_spill] sm:$0xff] %v9760_v50  ;;  %v9762_v8 = vpop.eup %6943  ;;  %11879 = vst [vmem:[#allocation181_spill] sm:$0xff] %v9773_v31 }
 0x454   : > { %v9742_v27 = vadd.f32 %v3855_v32, %v3581_v55  ;;  %v9744_v44 = vadd.f32 %v3860_v26, %v3585_v5  ;;  %11874 = vst [vmem:[#allocation173_spill] sm:$0xff] %v9762_v8  ;;  %v2220_v57 = vmul.f32 1.442695, %v2123_v1  ;;  %v11881_v32 = vld [vmem:[#allocation224_spill] sm:$0xff]  ;;  %v11882_v5 = vld [vmem:[#allocation222_spill] sm:$0xff] }
 0x455   : > { %6945 = vpow2.f32 %v2212_v48  ;;  %v2125_v26 = vsub.f32 %v11882_v5, %v11881_v32  ;;  %v11884_v48 = vld [vmem:[#allocation78_spill] sm:$0xff] }
 0x456   : > { %11865 = vst [vmem:[#allocation42_spill] sm:$0xff] %v9742_v27  ;;  %11866 = vst [vmem:[#allocation35_spill] sm:$0xff] %v9744_v44  ;;  %2419 = vperm.xlu0 %6739, %v11858_v11   ;;  %v11871_v11 = vld [vmem:[#allocation215_spill] sm:$0xff]  ;;  %v11887_v1 = vld [vmem:[#allocation82_spill] sm:$0xff] }
 0x457   : > { %v2000_v42 = vpop.xlane.xlu0 %1999  ;;  %v2121_v23 = vsub.f32 %v11872_v52, %v11871_v11  ;;  %v11885_v52 = vld [vmem:[#allocation79_spill] sm:$0xff]  ;;  %v4218_v44 = vld [vmem:[#allocation4 + $0x78] sm:$0xff] }
 0x458   : > { %v9750_v28 = vmax.f32 %v9740_v41, %v2000_v42  ;;  %v2224_v42 = vmul.f32 1.442695, %v2125_v26 }
 0x459   : > { %v2216_v56 = vmul.f32 1.442695, %v2121_v23 }
 0x45a   : > { %11869 = vst [vmem:[#allocation36_spill] sm:$0xff] %v9750_v28  ;;  %4394 = vperm.xlu0 %6739, %v9752_v63   ;;  %5672 = vst.msk [vmem:[#allocation2 + $0x1d0] sm:$0xff] %vm382_vm2, %v9750_v28  ;;  %v11890_v63 = vld [vmem:[#allocation77_spill] sm:$0xff] }
 0x45b   : > { %6947 = vpow2.f32 %v2216_v56  ;;  %v11886_v56 = vld [vmem:[#allocation81_spill] sm:$0xff] }
 0x45c   : > { %6949 = vpow2.f32 %v2220_v57 }
 0x45d   : > { %6951 = vpow2.f32 %v2224_v42 }
 0x45e   : > { %2429 = vperm.xlu0 %6739, %v11867_v10  }
 0x45f   : > { %v9770_v15 = vpop.eup %6945  ;;  %v9775_v20 = vpop.permute.xlu0 %4364 }
 0x460   : > { %11878 = vst [vmem:[#allocation172_spill] sm:$0xff] %v9770_v15 }
 0x461   : > { %4379 = vperm.xlu1 %6740, %v9760_v50   ;;  %v4217_v50 = vld [vmem:[#allocation4 + $0x70] sm:$0xff] }
 0x462   : > { %4404 = vperm.xlu0 %6739, %v9762_v8  }
 0x463   : > { %v2400_v21 = vpop.permute.xlu0 %2399 }
 0x464   : > { %v2695_v23 = vsub.f32 %v11885_v52, %v2400_v21  ;;  %v2696_v7 = vsub.f32 %v11886_v56, %v2400_v21 }
 0x465   : > { %2414 = vperm.xlu1 %6740, %v11875_v40   ;;  %v9787_v30 = vpop.eup %6947 }
 0x466   : > { %2439 = vperm.xlu0 %6739, %v11871_v11   ;;  %11883 = vst [vmem:[#allocation306_spill] sm:$0xff] %v9787_v30  ;;  %v2694_v11 = vsub.f32 %v11884_v48, %v2400_v21  ;;  %v9799_v41 = vpop.eup %6949 }
 0x467   : > { %11892 = vst [vmem:[#allocation46_spill] sm:$0xff] %v9799_v41 }
 0x46a   : > { %4414 = vperm.xlu0 %6739, %v9770_v15   ;;  %v11889_v15 = vld [vmem:[#allocation76_spill] sm:$0xff] }
 0x46b   : > { %v1995_v59 = vpop.xlane.xlu1 %1994 }
 0x46c   : > { %v9778_v55 = vmax.f32 %v9773_v31, %v1995_v59  ;;  %v11888_v59 = vld [vmem:[#allocation75_spill] sm:$0xff] }
 0x46e   : > { %11880 = vst [vmem:[#allocation180_spill] sm:$0xff] %v9778_v55  ;;  %2449 = vperm.xlu0 %6739, %v11876_v60   ;;  %5671 = vst.msk [vmem:[#allocation2 + $0x1c8] sm:$0xff] %vm382_vm2, %v9778_v55  ;;  %v2697_v60 = vsub.f32 %v11887_v1, %v2400_v21  ;;  %v4224_v55 = vld [vmem:[#allocation4 + $0xa8] sm:$0xff] }
 0x46f   : > { %v9785_v10 = vpop.permute.xlu1 %4359 }
 0x472   : > { %4424 = vperm.xlu0 %6739, %v9787_v30  }
 0x473   : > { %v2395_v57 = vpop.permute.xlu1 %2394 }
 0x474   : > { %v2690_v5 = vsub.f32 %v11888_v59, %v2395_v57  ;;  %v2691_v8 = vsub.f32 %v11889_v15, %v2395_v57  ;;  %v2692_v39 = vsub.f32 %v11890_v63, %v2395_v57  ;;  %v2693_v61 = vsub.f32 %v11891_v35, %v2395_v57 }
 0x475   : > { %v4601_v35 = vmul.f32 %v9657_v0, %v4217_v50  ;;  %v9806_v0 = vpop.eup %6951  ;;  %v11895_v50 = vld [vmem:[#allocation247_spill] sm:$0xff] }
 0x476   : > { %2459 = vperm.xlu0 %6739, %v11881_v32   ;;  %v2902_v26 = vpack.c.bf16 %v2694_v11, %v2690_v5  ;;  %v2903_v48 = vpack.c.bf16 %v2695_v23, %v2691_v8  ;;  %v2904_v30 = vpack.c.bf16 %v2696_v7, %v2692_v39  ;;  %v2905_v52 = vpack.c.bf16 %v2697_v60, %v2693_v61  ;;  %v11893_v60 = vld [vmem:[#allocation231_spill] sm:$0xff] }
 0x477   : > { %v4997_v56 = vpop.f32.mrb[156].mxu0  ;;  %v4602_v11 = vmul.f32 %v9650_v47, %v4218_v44  ;;  %11894 = vst [vmem:[#allocation47_spill] sm:$0xff] %v9806_v0  ;;  %v11896_v44 = vld [vmem:[#allocation200_spill] sm:$0xff] }
 0x478   : > { %v3119_v21 = vmul.bf16 1069105081, %v2902_v26  ;;  %v3122_v1 = vmul.bf16 1069105081, %v2903_v48  ;;  %v3125_v59 = vmul.bf16 1069105081, %v2904_v30  ;;  %v2114_v5 = vsub.f32 %v11896_v44, %v11843_v37 }
 0x479   : > { %v3128_v15 = vmul.bf16 1069105081, %v2905_v52  ;;  %v5286_v28 = vpop.f32.mrb[156].mxu1  ;;  %v4999_v63 = vpop.f32.mrb[157].mxu0 }
 0x47a   : > { %4434 = vperm.xlu0 %6739, %v9799_v41   ;;  %6953 = vpow.bf16 %v3119_v21  ;;  %v5287_v32 = vadd.f32 %v5286_v28, %v4997_v56  ;;  %v5288_v8 = vpop.f32.mrb[157].mxu1  ;;  %v5000_v39 = vpop.f32.mrb[158].mxu0  ;;  %v11923_v41 = vld [vmem:[#allocation84_spill] sm:$0xff] }
 0x47b   : > { %6955 = vpow.bf16 %v3122_v1  ;;  %v5289_v61 = vpop.f32.mrb[158].mxu1  ;;  %v5002_v42 = vpop.f32.mrb[159].mxu0 }
 0x47c   : > { %6957 = vpow.bf16 %v3125_v59  ;;  %v5499_v23 = vadd.f32 %v5287_v32, %v4601_v35  ;;  %v5290_v30 = vadd.f32 %v5289_v61, %v5000_v39  ;;  %v5291_v7 = vpop.f32.mrb[159].mxu1  ;;  %v11897_v59 = vld [vmem:[#allocation318_spill] sm:$0xff]  ;;  %v2202_v61 = vmul.f32 1.442695, %v2114_v5 }
 0x47d   : > { %6959 = vpow.bf16 %v3128_v15  ;;  %v11898_v15 = vld [vmem:[#allocation317_spill] sm:$0xff] }
 0x47e   : > { %2469 = vperm.xlu0 %6739, %v11893_v60   ;;  %5564 = vst.msk [vmem:[#allocation4 + $0x70] sm:$0xff] %vm511_vm3, %v5499_v23  ;;  %v5500_v57 = vadd.f32 %v5290_v30, %v4602_v11  ;;  %v11899_v63 = vmax.f32 %v11897_v59, %v11898_v15  ;;  %v9816_v30 = vld [vmem:[#allocation2 + $0x1e0] sm:$0xff]  ;;  %6961 = vpow2.f32 %v2202_v61  ;;  %v11909_v59 = vld [vmem:[#allocation212_spill] sm:$0xff]  ;;  %v11924_v15 = vld [vmem:[#allocation85_spill] sm:$0xff] }
 0x47f   : > { %11900 = vst [vmem:[#allocation49_spill] sm:$0xff] %v9816_v30  ;;  %v11913_v61 = vld [vmem:[#allocation216_spill] sm:$0xff] }
 0x480   : > { %5565 = vst.msk [vmem:[#allocation4 + $0x78] sm:$0xff] %vm511_vm3, %v5500_v57 }
 0x482   : > { %4444 = vperm.xlu0 %6739, %v9806_v0  }
 0x485   : > { %v6954_v28 = vpop.eup %6953 }
 0x486   : > { %2479 = vperm.xlu0 %6739, %v11895_v50   ;;  %v6956_v47 = vpop.eup %6955  ;;  %v3586_v26 = vunpack.c.l.bf16 %v6954_v28  ;;  %v3590_v48 = vunpack.c.h.bf16 %v6954_v28 }
 0x487   : > { %v6958_v52 = vpop.eup %6957  ;;  %5027 = vmatprep.mubr.bf16.mxu0 %v6956_v47  ;;  %v3587_v56 = vunpack.c.l.bf16 %v6956_v47  ;;  %v3591_v21 = vunpack.c.h.bf16 %v6956_v47 }
 0x488   : > { %v6960_v1 = vpop.eup %6959  ;;  %5028 = vmatmul.mubr.bf16.gmra.mrb[172].mxu0 %v6954_v28  ;;  %v3588_v35 = vunpack.c.l.bf16 %v6958_v52  ;;  %v3592_v8 = vunpack.c.h.bf16 %v6958_v52  ;;  %v11903_v28 = vld [vmem:[#allocation204_spill] sm:$0xff] }
 0x489   : > { %5316 = vmatprep.mubr.bf16.mxu1 %v6960_v1  ;;  %2024 = vmax.xlane.f32.xlu1 %v11899_v63  ;;  %v3864_v32 = vadd.f32 %v3587_v56, %v3586_v26  ;;  %v3869_v39 = vadd.f32 %v3591_v21, %v3590_v48  ;;  %v3589_v37 = vunpack.c.l.bf16 %v6960_v1  ;;  %v3593_v11 = vunpack.c.h.bf16 %v6960_v1  ;;  %v11905_v48 = vld [vmem:[#allocation210_spill] sm:$0xff]  ;;  %v9831_v21 = vpop.eup %6961 }
 0x48a   : > { %5317 = vmatmul.mubr.bf16.gmra.mrb[172].mxu1 %v6958_v52  ;;  %v2116_v47 = vsub.f32 %v11903_v28, %v11875_v40  ;;  %v11906_v52 = vld [vmem:[#allocation208_spill] sm:$0xff]  ;;  %11907 = vst [vmem:[#allocation45_spill] sm:$0xff] %v9831_v21  ;;  %v11908_v40 = vld [vmem:[#allocation214_spill] sm:$0xff] }
 0x48b   : > { %v3865_v42 = vadd.f32 %v3864_v32, %v3588_v35  ;;  %v3870_v23 = vadd.f32 %v3869_v39, %v3592_v8  ;;  %v2118_v56 = vsub.f32 %v11906_v52, %v11905_v48  ;;  %v2120_v63 = vsub.f32 %v11909_v59, %v11908_v40  ;;  %v9840_v32 = vld [vmem:[#allocation2 + $0x1d8] sm:$0xff]  ;;  %v11912_v39 = vld [vmem:[#allocation218_spill] sm:$0xff] }
 0x48c   : > { %v2206_v5 = vmul.f32 1.442695, %v2116_v47  ;;  %11911 = vst [vmem:[#allocation175_spill] sm:$0xff] %v9840_v32  ;;  %v11916_v47 = vld [vmem:[#allocation227_spill] sm:$0xff]  ;;  %v11918_v59 = vld [vmem:[#allocation86_spill] sm:$0xff] }
 0x48d   : > { %v9818_v7 = vadd.f32 %v3865_v42, %v3589_v37  ;;  %v9820_v57 = vadd.f32 %v3870_v23, %v3593_v11  ;;  %v2210_v1 = vmul.f32 1.442695, %v2118_v56  ;;  %v2214_v8 = vmul.f32 1.442695, %v2120_v63  ;;  %v11914_v11 = vld [vmem:[#allocation238_spill] sm:$0xff] }
 0x48e   : > { %6963 = vpow2.f32 %v2206_v5  ;;  %v2122_v37 = vsub.f32 %v11913_v61, %v11912_v39  ;;  %v11919_v61 = vld [vmem:[#allocation87_spill] sm:$0xff] }
 0x48f   : > { %11901 = vst [vmem:[#allocation50_spill] sm:$0xff] %v9818_v7  ;;  %11902 = vst [vmem:[#allocation43_spill] sm:$0xff] %v9820_v57  ;;  %6965 = vpow2.f32 %v2210_v1  ;;  %v11926_v57 = vld [vmem:[#allocation223_spill] sm:$0xff] }
 0x490   : > { %v2010_v44 = vpop.xlane.xlu0 %2009  ;;  %6967 = vpow2.f32 %v2214_v8  ;;  %v2218_v5 = vmul.f32 1.442695, %v2122_v37  ;;  %v11921_v8 = vld [vmem:[#allocation90_spill] sm:$0xff] }
 0x491   : > { %v9825_v26 = vmax.f32 %v9816_v30, %v2010_v44  ;;  %v2127_v44 = vsub.f32 %v11916_v47, %v11893_v60  ;;  %v11922_v47 = vld [vmem:[#allocation83_spill] sm:$0xff]  ;;  %v11925_v30 = vld [vmem:[#allocation88_spill] sm:$0xff] }
 0x492   : > { %6969 = vpow2.f32 %v2218_v5 }
 0x493   : > { %11904 = vst [vmem:[#allocation44_spill] sm:$0xff] %v9825_v26  ;;  %5674 = vst.msk [vmem:[#allocation2 + $0x1e0] sm:$0xff] %vm382_vm2, %v9825_v26  ;;  %v2228_v1 = vmul.f32 1.442695, %v2127_v44 }
 0x495   : > { %6971 = vpow2.f32 %v2228_v1 }
 0x498   : > { %v9837_v35 = vpop.eup %6963  ;;  %v9844_v42 = vpop.permute.xlu0 %4374 }
 0x499   : > { %11910 = vst [vmem:[#allocation48_spill] sm:$0xff] %v9837_v35  ;;  %v9857_v52 = vpop.eup %6965 }
 0x49a   : > { %4389 = vperm.xlu1 %6740, %v9831_v21   ;;  %11917 = vst [vmem:[#allocation186_spill] sm:$0xff] %v9857_v52 }
 0x49c   : > { %v2410_v56 = vpop.permute.xlu0 %2409 }
 0x49d   : > { %v2702_v63 = vsub.f32 %v11918_v59, %v2410_v56  ;;  %v2703_v60 = vsub.f32 %v11919_v61, %v2410_v56  ;;  %v2705_v37 = vsub.f32 %v11921_v8, %v2410_v56 }
 0x49e   : > { %2424 = vperm.xlu1 %6740, %v11905_v48  }
 0x4a2   : > { %4399 = vperm.xlu1 %6740, %v9837_v35  }
 0x4a4   : > { %v2005_v23 = vpop.xlane.xlu1 %2004 }
 0x4a5   : > { %3762 = vadd.xlane.f32.xlu0 %v11914_v11  ;;  %v9848_v28 = vmax.f32 %v9840_v32, %v2005_v23  ;;  %v11920_v11 = vld [vmem:[#allocation89_spill] sm:$0xff]  ;;  %v9871_v32 = vpop.eup %6967 }
 0x4a6   : > { %2434 = vperm.xlu1 %6740, %v11908_v40   ;;  %v2704_v40 = vsub.f32 %v11920_v11, %v2410_v56  ;;  %v4219_v56 = vld [vmem:[#allocation4 + $0x80] sm:$0xff]  ;;  %11928 = vst [vmem:[#allocation185_spill] sm:$0xff] %v9871_v32 }
 0x4a7   : > { %11915 = vst [vmem:[#allocation174_spill] sm:$0xff] %v9848_v28  ;;  %5673 = vst.msk [vmem:[#allocation2 + $0x1d8] sm:$0xff] %vm382_vm2, %v9848_v28 }
 0x4a8   : > { %v9855_v48 = vpop.permute.xlu1 %4369 }
 0x4aa   : > { %4409 = vperm.xlu1 %6740, %v9857_v52   ;;  %v11927_v52 = vld [vmem:[#allocation221_spill] sm:$0xff] }
 0x4ab   : > { %v2124_v5 = vsub.f32 %v11927_v52, %v11926_v57 }
 0x4ac   : > { %v2405_v23 = vpop.permute.xlu1 %2404 }
 0x4ad   : > { %v2698_v0 = vsub.f32 %v11922_v47, %v2405_v23  ;;  %v2699_v35 = vsub.f32 %v11923_v41, %v2405_v23  ;;  %v2700_v21 = vsub.f32 %v11924_v15, %v2405_v23  ;;  %v2701_v44 = vsub.f32 %v11925_v30, %v2405_v23  ;;  %v4220_v15 = vld [vmem:[#allocation4 + $0x88] sm:$0xff] }
 0x4ae   : > { %2444 = vperm.xlu1 %6740, %v11912_v39   ;;  %v2222_v52 = vmul.f32 1.442695, %v2124_v5  ;;  %v4603_v39 = vmul.f32 %v9709_v3, %v4219_v56 }
 0x4af   : > { %v2906_v59 = vpack.c.bf16 %v2702_v63, %v2698_v0  ;;  %v2907_v61 = vpack.c.bf16 %v2703_v60, %v2699_v35  ;;  %v2908_v11 = vpack.c.bf16 %v2704_v40, %v2700_v21  ;;  %v2909_v26 = vpack.c.bf16 %v2705_v37, %v2701_v44  ;;  %v9875_v60 = vpop.eup %6969 }
 0x4b0   : > { %v5005_v8 = vpop.f32.mrb[160].mxu0  ;;  %11929 = vst [vmem:[#allocation316_spill] sm:$0xff] %v9875_v60  ;;  %v4604_v40 = vmul.f32 %v9702_v9, %v4220_v15  ;;  %v9880_v5 = vpop.eup %6971 }
 0x4b1   : > { %v3131_v47 = vmul.bf16 1069105081, %v2906_v59  ;;  %v3134_v41 = vmul.bf16 1069105081, %v2907_v61  ;;  %v3137_v7 = vmul.bf16 1069105081, %v2908_v11 }
 0x4b2   : > { %v3140_v31 = vmul.bf16 1069105081, %v2909_v26  ;;  %v5294_v30 = vpop.f32.mrb[160].mxu1  ;;  %v5007_v23 = vpop.f32.mrb[161].mxu0  ;;  %4419 = vperm.xlu1 %6740, %v9871_v32   ;;  %11930 = vst [vmem:[#allocation54_spill] sm:$0xff] %v9880_v5  ;;  %v11932_v59 = vld [vmem:[#allocation228_spill] sm:$0xff] }
 0x4b3   : > { %6973 = vpow.bf16 %v3131_v47  ;;  %v5295_v0 = vadd.f32 %v5294_v30, %v5005_v8  ;;  %v5296_v21 = vpop.f32.mrb[161].mxu1  ;;  %v5008_v35 = vpop.f32.mrb[162].mxu0  ;;  %v11950_v32 = vld [vmem:[#allocation96_spill] sm:$0xff] }
 0x4b4   : > { %6975 = vpow.bf16 %v3134_v41  ;;  %v5297_v1 = vpop.f32.mrb[162].mxu1  ;;  %v5010_v63 = vpop.f32.mrb[163].mxu0 }
 0x4b5   : > { %6977 = vpow.bf16 %v3137_v7  ;;  %v5501_v26 = vadd.f32 %v5295_v0, %v4603_v39  ;;  %v5298_v37 = vadd.f32 %v5297_v1, %v5008_v35  ;;  %v5299_v44 = vpop.f32.mrb[163].mxu1  ;;  %v11931_v7 = vld [vmem:[#allocation321_spill] sm:$0xff]  ;;  %v11934_v1 = vld [vmem:[#allocation242_spill] sm:$0xff]  ;;  %v9891_v63 = vld [vmem:[#allocation2 + $0x1f0] sm:$0xff] }
 0x4b6   : > { %6979 = vpow.bf16 %v3140_v31  ;;  %2454 = vperm.xlu1 %6740, %v11926_v57   ;;  %11935 = vst [vmem:[#allocation51_spill] sm:$0xff] %v9891_v63 }
 0x4b7   : > { %6981 = vpow2.f32 %v2222_v52  ;;  %5566 = vst.msk [vmem:[#allocation4 + $0x80] sm:$0xff] %vm511_vm3, %v5501_v26  ;;  %v5502_v3 = vadd.f32 %v5298_v37, %v4604_v40 }
 0x4b9   : > { %5567 = vst.msk [vmem:[#allocation4 + $0x88] sm:$0xff] %vm511_vm3, %v5502_v3 }
 0x4ba   : > { %4429 = vperm.xlu1 %6740, %v9875_v60  }
 0x4bb   : > { %4454 = vperm.xlu0 %6739, %v9880_v5  }
 0x4be   : > { %v6974_v9 = vpop.eup %6973  ;;  %2464 = vperm.xlu1 %6740, %v11932_v59  }
 0x4bf   : > { %2489 = vperm.xlu0 %6739, %v11931_v7   ;;  %v6976_v31 = vpop.eup %6975  ;;  %v3594_v61 = vunpack.c.l.bf16 %v6974_v9  ;;  %v3598_v57 = vunpack.c.h.bf16 %v6974_v9 }
 0x4c0   : > { %v6978_v11 = vpop.eup %6977  ;;  %5035 = vmatprep.mubr.bf16.mxu0 %v6976_v31  ;;  %v3595_v56 = vunpack.c.l.bf16 %v6976_v31  ;;  %v3599_v8 = vunpack.c.h.bf16 %v6976_v31  ;;  %v11940_v31 = vld [vmem:[#allocation260_spill] sm:$0xff] }
 0x4c1   : > { %v6980_v47 = vpop.eup %6979  ;;  %5036 = vmatmul.mubr.bf16.gmra.mrb[176].mxu0 %v6974_v9  ;;  %v3596_v15 = vunpack.c.l.bf16 %v6978_v11  ;;  %v3600_v23 = vunpack.c.h.bf16 %v6978_v11  ;;  %v9904_v9 = vld [vmem:[#allocation2 + $0x1e8] sm:$0xff] }
 0x4c2   : > { %v9887_v41 = vpop.eup %6981  ;;  %5324 = vmatprep.mubr.bf16.mxu1 %v6980_v47  ;;  %v3874_v30 = vadd.f32 %v3595_v56, %v3594_v61  ;;  %v3879_v52 = vadd.f32 %v3599_v8, %v3598_v57  ;;  %v3597_v39 = vunpack.c.l.bf16 %v6980_v47  ;;  %v3601_v21 = vunpack.c.h.bf16 %v6980_v47  ;;  %11939 = vst [vmem:[#allocation53_spill] sm:$0xff] %v9904_v9 }
 0x4c3   : > { %11933 = vst [vmem:[#allocation55_spill] sm:$0xff] %v9887_v41  ;;  %4439 = vperm.xlu1 %6740, %v9887_v41   ;;  %5325 = vmatmul.mubr.bf16.gmra.mrb[176].mxu1 %v6978_v11  ;;  %v11942_v11 = vld [vmem:[#allocation243_spill] sm:$0xff]  ;;  %v11948_v41 = vld [vmem:[#allocation92_spill] sm:$0xff] }
 0x4c4   : > { %v3875_v0 = vadd.f32 %v3874_v30, %v3596_v15  ;;  %v3880_v35 = vadd.f32 %v3879_v52, %v3600_v23  ;;  %v2129_v56 = vsub.f32 %v11942_v11, %v11895_v50  ;;  %v11943_v30 = vld [vmem:[#allocation94_spill] sm:$0xff]  ;;  %v11944_v52 = vld [vmem:[#allocation95_spill] sm:$0xff]  ;;  %v11949_v11 = vld [vmem:[#allocation93_spill] sm:$0xff] }
 0x4c6   : > { %v9893_v40 = vadd.f32 %v3875_v0, %v3597_v39  ;;  %v9895_v26 = vadd.f32 %v3880_v35, %v3601_v21  ;;  %v2232_v15 = vmul.f32 1.442695, %v2129_v56  ;;  %v11945_v0 = vld [vmem:[#allocation97_spill] sm:$0xff]  ;;  %v11946_v35 = vld [vmem:[#allocation98_spill] sm:$0xff] }
 0x4c7   : > { %2474 = vperm.xlu1 %6740, %v11934_v1  }
 0x4c8   : > { %11936 = vst [vmem:[#allocation52_spill] sm:$0xff] %v9893_v40  ;;  %11937 = vst [vmem:[#allocation57_spill] sm:$0xff] %v9895_v26  ;;  %v11951_v26 = vld [vmem:[#allocation225_spill] sm:$0xff]  ;;  %6983 = vpow2.f32 %v2232_v15 }
 0x4c9   : > { %v2020_v37 = vpop.xlane.xlu0 %2019  ;;  %v2126_v56 = vsub.f32 %v11951_v26, %v11932_v59 }
 0x4ca   : > { %v9898_v44 = vmax.f32 %v9891_v63, %v2020_v37 }
 0x4cb   : > { %v2226_v28 = vmul.f32 1.442695, %v2126_v56 }
 0x4cc   : > { %11938 = vst [vmem:[#allocation58_spill] sm:$0xff] %v9898_v44  ;;  %5676 = vst.msk [vmem:[#allocation2 + $0x1f0] sm:$0xff] %vm382_vm2, %v9898_v44 }
 0x4d1   : > { %v9902_v3 = vpop.permute.xlu0 %4384 }
 0x4d5   : > { %v2420_v8 = vpop.permute.xlu0 %2419 }
 0x4d6   : > { %v2710_v23 = vsub.f32 %v11943_v30, %v2420_v8  ;;  %v2711_v39 = vsub.f32 %v11944_v52, %v2420_v8  ;;  %v2712_v21 = vsub.f32 %v11945_v0, %v2420_v8  ;;  %v2713_v37 = vsub.f32 %v11946_v35, %v2420_v8  ;;  %v4221_v8 = vld [vmem:[#allocation4 + $0x90] sm:$0xff] }
 0x4d7   : > { %v4605_v59 = vmul.f32 %v9785_v10, %v4221_v8 }
 0x4d9   : > { %v9926_v30 = vpop.permute.xlu0 %4394 }
 0x4dd   : > { %v2015_v61 = vpop.xlane.xlu1 %2014 }
 0x4de   : > { %3767 = vadd.xlane.f32.xlu0 %v11940_v31  ;;  %v9908_v57 = vmax.f32 %v9904_v9, %v2015_v61  ;;  %v11947_v61 = vld [vmem:[#allocation91_spill] sm:$0xff] }
 0x4e0   : > { %11941 = vst [vmem:[#allocation56_spill] sm:$0xff] %v9908_v57  ;;  %5675 = vst.msk [vmem:[#allocation2 + $0x1e8] sm:$0xff] %vm382_vm2, %v9908_v57 }
 0x4e1   : > { %v9914_v47 = vpop.permute.xlu1 %4379 }
 0x4e5   : > { %v2415_v31 = vpop.permute.xlu1 %2414 }
 0x4e6   : > { %v2706_v5 = vsub.f32 %v11947_v61, %v2415_v31  ;;  %v2707_v50 = vsub.f32 %v11948_v41, %v2415_v31  ;;  %v2708_v60 = vsub.f32 %v11949_v11, %v2415_v31  ;;  %v2709_v63 = vsub.f32 %v11950_v32, %v2415_v31  ;;  %v11952_v41 = vld [vmem:[#allocation239_spill] sm:$0xff]  ;;  %v4222_v11 = vld [vmem:[#allocation4 + $0x98] sm:$0xff] }
 0x4e8   : > { %v2910_v52 = vpack.c.bf16 %v2710_v23, %v2706_v5  ;;  %v2911_v44 = vpack.c.bf16 %v2711_v39, %v2707_v50  ;;  %v2912_v0 = vpack.c.bf16 %v2712_v21, %v2708_v60  ;;  %v2913_v9 = vpack.c.bf16 %v2713_v37, %v2709_v63  ;;  %v9930_v60 = vpop.permute.xlu0 %2429 }
 0x4e9   : > { %v5013_v35 = vpop.f32.mrb[164].mxu0 }
 0x4ea   : > { %v3143_v40 = vmul.bf16 1069105081, %v2910_v52  ;;  %v3146_v61 = vmul.bf16 1069105081, %v2911_v44  ;;  %v3149_v57 = vmul.bf16 1069105081, %v2912_v0  ;;  %v4606_v44 = vmul.f32 %v9775_v20, %v4222_v11 }
 0x4eb   : > { %3757 = vadd.xlane.f32.xlu1 %v11952_v41  ;;  %v3152_v27 = vmul.bf16 1069105081, %v2913_v9  ;;  %v5302_v32 = vpop.f32.mrb[164].mxu1  ;;  %v5015_v31 = vpop.f32.mrb[165].mxu0 }
 0x4ec   : > { %6985 = vpow.bf16 %v3143_v40  ;;  %v5303_v26 = vadd.f32 %v5302_v32, %v5013_v35  ;;  %v5304_v5 = vpop.f32.mrb[165].mxu1  ;;  %v5016_v15 = vpop.f32.mrb[166].mxu0 }
 0x4ed   : > { %6987 = vpow.bf16 %v3146_v61  ;;  %v5305_v63 = vpop.f32.mrb[166].mxu1  ;;  %v5018_v9 = vpop.f32.mrb[167].mxu0 }
 0x4ee   : > { %6989 = vpow.bf16 %v3149_v57  ;;  %v5503_v23 = vadd.f32 %v5303_v26, %v4605_v59  ;;  %v5306_v39 = vadd.f32 %v5305_v63, %v5016_v15  ;;  %v5307_v21 = vpop.f32.mrb[167].mxu1  ;;  %v9934_v40 = vpop.eup %6983  ;;  %v11956_v63 = vld [vmem:[#allocation297_spill] sm:$0xff] }
 0x4ef   : > { %6991 = vpow.bf16 %v3152_v27  ;;  %11953 = vst [vmem:[#allocation179_spill] sm:$0xff] %v9934_v40  ;;  %v9937_v37 = vpop.permute.xlu0 %4404 }
 0x4f0   : > { %6993 = vpow2.f32 %v2226_v28  ;;  %5568 = vst.msk [vmem:[#allocation4 + $0x90] sm:$0xff] %vm511_vm3, %v5503_v23  ;;  %v5504_v10 = vadd.f32 %v5306_v39, %v4606_v44 }
 0x4f2   : > { %5569 = vst.msk [vmem:[#allocation4 + $0x98] sm:$0xff] %vm511_vm3, %v5504_v10  ;;  %v9959_v10 = vld [vmem:[#allocation2 + $0x1f8] sm:$0xff] }
 0x4f3   : > { %v9941_v27 = vpop.permute.xlu0 %2439  ;;  %11960 = vst [vmem:[#allocation63_spill] sm:$0xff] %v9959_v10 }
 0x4f4   : > { %4464 = vperm.xlu0 %6739, %v9934_v40  }
 0x4f7   : > { %v6986_v50 = vpop.eup %6985  ;;  %v9946_v15 = vpop.permute.xlu0 %4414 }
 0x4f8   : > { %2499 = vperm.xlu0 %6739, %v9343_v49   ;;  %v6988_v20 = vpop.eup %6987  ;;  %v3602_v57 = vunpack.c.l.bf16 %v6986_v50  ;;  %v3606_v56 = vunpack.c.h.bf16 %v6986_v50  ;;  %11955 = vst [vmem:[#allocation291_spill] sm:$0xff] %v9946_v15 }
 0x4f9   : > { %v6990_v52 = vpop.eup %6989  ;;  %5043 = vmatprep.mubr.bf16.mxu0 %v6988_v20  ;;  %v3603_v28 = vunpack.c.l.bf16 %v6988_v20  ;;  %v3607_v0 = vunpack.c.h.bf16 %v6988_v20 }
 0x4fa   : > { %v6992_v8 = vpop.eup %6991  ;;  %5044 = vmatmul.mubr.bf16.gmra.mrb[180].mxu0 %v6986_v50  ;;  %v3604_v61 = vunpack.c.l.bf16 %v6990_v52  ;;  %v3608_v11 = vunpack.c.h.bf16 %v6990_v52 }
 0x4fb   : > { %v9943_v35 = vpop.eup %6993  ;;  %5332 = vmatprep.mubr.bf16.mxu1 %v6992_v8  ;;  %v3884_v41 = vadd.f32 %v3603_v28, %v3602_v57  ;;  %v3889_v32 = vadd.f32 %v3607_v0, %v3606_v56  ;;  %v3605_v31 = vunpack.c.l.bf16 %v6992_v8  ;;  %v3609_v26 = vunpack.c.h.bf16 %v6992_v8  ;;  %v9953_v39 = vpop.permute.xlu0 %2449  ;;  %v11963_v56 = vld [vmem:[#allocation320_spill] sm:$0xff] }
 0x4fc   : > { %11954 = vst [vmem:[#allocation178_spill] sm:$0xff] %v9943_v35  ;;  %4449 = vperm.xlu1 %6740, %v9943_v35   ;;  %5333 = vmatmul.mubr.bf16.gmra.mrb[180].mxu1 %v6990_v52  ;;  %v2131_v52 = vsub.f32 %v11963_v56, %v11931_v7  ;;  %v11969_v56 = vld [vmem:[#allocation100_spill] sm:$0xff] }
 0x4fd   : > { %v3885_v59 = vadd.f32 %v3884_v41, %v3604_v61  ;;  %v3890_v5 = vadd.f32 %v3889_v32, %v3608_v11  ;;  %v11964_v61 = vld [vmem:[#allocation102_spill] sm:$0xff]  ;;  %v11965_v41 = vld [vmem:[#allocation103_spill] sm:$0xff]  ;;  %v11966_v32 = vld [vmem:[#allocation105_spill] sm:$0xff] }
 0x4fe   : > { %v2236_v0 = vmul.f32 1.442695, %v2131_v52  ;;  %v2719_v11 = vsub.f32 %v11965_v41, %v9930_v60  ;;  %v11970_v52 = vld [vmem:[#allocation101_spill] sm:$0xff] }
 0x4ff   : > { %v9949_v44 = vadd.f32 %v3885_v59, %v3605_v31  ;;  %v9951_v23 = vadd.f32 %v3890_v5, %v3609_v26  ;;  %v9955_v21 = vpop.permute.xlu0 %4424  ;;  %v2720_v31 = vsub.f32 %v11966_v32, %v9930_v60  ;;  %v11967_v59 = vld [vmem:[#allocation106_spill] sm:$0xff]  ;;  %v11968_v5 = vld [vmem:[#allocation99_spill] sm:$0xff] }
 0x500   : > { %2484 = vperm.xlu1 %6740, %v11956_v63   ;;  %11959 = vst [vmem:[#allocation62_spill] sm:$0xff] %v9955_v21  ;;  %v2721_v7 = vsub.f32 %v11967_v59, %v9930_v60  ;;  %6995 = vpow2.f32 %v2236_v0 }
 0x501   : > { %11957 = vst [vmem:[#allocation195_spill] sm:$0xff] %v9949_v44  ;;  %11958 = vst [vmem:[#allocation191_spill] sm:$0xff] %v9951_v23  ;;  %v11971_v23 = vld [vmem:[#allocation104_spill] sm:$0xff] }
 0x503   : > { %v9957_v9 = vpop.permute.xlu0 %2459 }
 0x507   : > { %v9962_v20 = vpop.permute.xlu0 %4434 }
 0x508   : > { %11961 = vst [vmem:[#allocation65_spill] sm:$0xff] %v9962_v20 }
 0x50b   : > { %v9973_v8 = vpop.permute.xlu0 %2469 }
 0x516   : > { %v2025_v50 = vpop.xlane.xlu1 %2024 }
 0x517   : > { %3777 = vadd.xlane.f32.xlu0 %v9304_v14  ;;  %v9965_v57 = vmax.f32 %v9959_v10, %v2025_v50  ;;  %v2718_v14 = vsub.f32 %v11964_v61, %v9930_v60  ;;  %v11972_v61 = vld [vmem:[#allocation241_spill] sm:$0xff] }
 0x518   : > { %v2128_v44 = vsub.f32 %v11972_v61, %v11934_v1  ;;  %v11977_v61 = vld [vmem:[#allocation113_spill] sm:$0xff] }
 0x519   : > { %11962 = vst [vmem:[#allocation66_spill] sm:$0xff] %v9965_v57  ;;  %5677 = vst.msk [vmem:[#allocation2 + $0x1f8] sm:$0xff] %vm382_vm2, %v9965_v57 }
 0x51a   : > { %v9971_v28 = vpop.permute.xlu1 %4389  ;;  %v2230_v0 = vmul.f32 1.442695, %v2128_v44  ;;  %v2728_v44 = vsub.f32 %v11977_v61, %v9941_v27  ;;  %v3371_v61 = vld [vmem:[#allocation3 + $0x8] sm:$0xff] }
 0x51e   : > { %v2425_v26 = vpop.permute.xlu1 %2424 }
 0x51f   : > { %v2714_v50 = vsub.f32 %v11968_v5, %v2425_v26  ;;  %v2715_v40 = vsub.f32 %v11969_v56, %v2425_v26  ;;  %v2716_v35 = vsub.f32 %v11970_v52, %v2425_v26  ;;  %v2717_v10 = vsub.f32 %v11971_v23, %v2425_v26  ;;  %v9991_v5 = vpop.permute.xlu0 %4444 }
 0x520   : > { %11973 = vst [vmem:[#allocation59_spill] sm:$0xff] %v9991_v5  ;;  %v11996_v5 = vld [vmem:[#allocation127_spill] sm:$0xff] }
 0x521   : > { %v2914_v41 = vpack.c.bf16 %v2718_v14, %v2714_v50  ;;  %v2915_v57 = vpack.c.bf16 %v2719_v11, %v2715_v40  ;;  %v2916_v45 = vpack.c.bf16 %v2720_v31, %v2716_v35  ;;  %v2917_v32 = vpack.c.bf16 %v2721_v7, %v2717_v10  ;;  %v11975_v31 = vld [vmem:[#allocation110_spill] sm:$0xff] }
 0x522   : > { %v5021_v60 = vpop.f32.mrb[168].mxu0  ;;  %v9989_v59 = vpop.permute.xlu1 %4399  ;;  %v4607_v40 = vmul.f32 %v9855_v48, %v4223_v24  ;;  %v4608_v11 = vmul.f32 %v9844_v42, %v4224_v55  ;;  %v2726_v7 = vsub.f32 %v11975_v31, %v9941_v27  ;;  %v11979_v42 = vld [vmem:[#allocation108_spill] sm:$0xff]  ;;  %v2743_v38 = vsub.f32 %v11996_v5, %v9957_v9 }
 0x523   : > { %v3155_v56 = vmul.bf16 1069105081, %v2914_v41  ;;  %v3158_v43 = vmul.bf16 1069105081, %v2915_v57  ;;  %v3161_v52 = vmul.bf16 1069105081, %v2916_v45 }
 0x524   : > { %3772 = vadd.xlane.f32.xlu1 %v11974_v19  ;;  %v3164_v23 = vmul.bf16 1069105081, %v2917_v32  ;;  %v5310_v26 = vpop.f32.mrb[168].mxu1  ;;  %v5023_v1 = vpop.f32.mrb[169].mxu0  ;;  %v11976_v57 = vld [vmem:[#allocation111_spill] sm:$0xff] }
 0x525   : > { %6997 = vpow.bf16 %v3155_v56  ;;  %v5311_v35 = vadd.f32 %v5310_v26, %v5021_v60  ;;  %v5312_v10 = vpop.f32.mrb[169].mxu1  ;;  %v5024_v14 = vpop.f32.mrb[170].mxu0  ;;  %v2727_v45 = vsub.f32 %v11976_v57, %v9941_v27  ;;  %v11978_v60 = vld [vmem:[#allocation107_spill] sm:$0xff]  ;;  %v11980_v26 = vld [vmem:[#allocation109_spill] sm:$0xff]  ;;  %v11982_v57 = vld [vmem:[#allocation112_spill] sm:$0xff] }
 0x526   : > { %6999 = vpow.bf16 %v3158_v43  ;;  %v5313_v19 = vpop.f32.mrb[170].mxu1  ;;  %v5026_v50 = vpop.f32.mrb[171].mxu0  ;;  %v11981_v43 = vld [vmem:[#allocation114_spill] sm:$0xff] }
 0x527   : > { %7001 = vpow.bf16 %v3161_v52  ;;  %v5505_v24 = vadd.f32 %v5311_v35, %v4607_v40  ;;  %v5314_v48 = vadd.f32 %v5313_v19, %v5024_v14  ;;  %v5315_v41 = vpop.f32.mrb[171].mxu1  ;;  %v2435_v32 = vpop.permute.xlu1 %2434  ;;  %v2729_v10 = vsub.f32 %v11981_v43, %v9941_v27 }
 0x528   : > { %7003 = vpow.bf16 %v3164_v23  ;;  %v2722_v55 = vsub.f32 %v11978_v60, %v2435_v32  ;;  %v2723_v56 = vsub.f32 %v11979_v42, %v2435_v32  ;;  %v2724_v1 = vsub.f32 %v11980_v26, %v2435_v32  ;;  %v10009_v40 = vpop.eup %6995  ;;  %v10015_v27 = vpop.permute.xlu0 %2479 }
 0x529   : > { %7005 = vpow2.f32 %v2230_v0  ;;  %5570 = vst.msk [vmem:[#allocation4 + $0xa0] sm:$0xff] %vm511_vm3, %v5505_v24  ;;  %v5506_v31 = vadd.f32 %v5314_v48, %v4608_v11  ;;  %v2725_v52 = vsub.f32 %v11982_v57, %v2435_v32  ;;  %11983 = vst [vmem:[#allocation60_spill] sm:$0xff] %v10009_v40  ;;  %v11984_v24 = vld [vmem:[#allocation118_spill] sm:$0xff]  ;;  %v11990_v57 = vld [vmem:[#allocation116_spill] sm:$0xff] }
 0x52a   : > { %v2918_v35 = vpack.c.bf16 %v2726_v7, %v2722_v55  ;;  %v2919_v14 = vpack.c.bf16 %v2727_v45, %v2723_v56  ;;  %v2920_v23 = vpack.c.bf16 %v2728_v44, %v2724_v1  ;;  %v2734_v48 = vsub.f32 %v11984_v24, %v9953_v39  ;;  %v11985_v7 = vld [vmem:[#allocation187_spill] sm:$0xff]  ;;  %v11987_v55 = vld [vmem:[#allocation121_spill] sm:$0xff]  ;;  %v11988_v56 = vld [vmem:[#allocation122_spill] sm:$0xff] }
 0x52b   : > { %5571 = vst.msk [vmem:[#allocation4 + $0xa8] sm:$0xff] %vm511_vm3, %v5506_v31  ;;  %v2921_v19 = vpack.c.bf16 %v2729_v10, %v2725_v52  ;;  %v10012_v50 = vpop.permute.xlu1 %4409  ;;  %v3435_v45 = vmul.f32 %v11985_v7, %v3371_v61  ;;  %v11986_v44 = vld [vmem:[#allocation119_spill] sm:$0xff]  ;;  %v2736_v42 = vsub.f32 %v11987_v55, %v9953_v39  ;;  %v2737_v26 = vsub.f32 %v11988_v56, %v9953_v39 }
 0x52c   : > { %v3167_v0 = vmul.bf16 1069105081, %v2918_v35  ;;  %v3170_v41 = vmul.bf16 1069105081, %v2919_v14  ;;  %v3173_v60 = vmul.bf16 1069105081, %v2920_v23  ;;  %v2735_v32 = vsub.f32 %v11986_v44, %v9953_v39 }
 0x52d   : > { %4474 = vperm.xlu0 %6739, %v10009_v40   ;;  %v3176_v11 = vmul.bf16 1069105081, %v2921_v19  ;;  %v11989_v10 = vld [vmem:[#allocation115_spill] sm:$0xff]  ;;  %v11991_v35 = vld [vmem:[#allocation117_spill] sm:$0xff]  ;;  %v11992_v19 = vld [vmem:[#allocation120_spill] sm:$0xff] }
 0x52e   : > { %7007 = vpow.bf16 %v3167_v0 }
 0x52f   : > { %7009 = vpow.bf16 %v3170_v41  ;;  %v2445_v1 = vpop.permute.xlu1 %2444 }
 0x530   : > { %v6998_v43 = vpop.eup %6997  ;;  %7011 = vpow.bf16 %v3173_v60  ;;  %v2730_v31 = vsub.f32 %v11989_v10, %v2445_v1  ;;  %v2731_v52 = vsub.f32 %v11990_v57, %v2445_v1  ;;  %v2732_v14 = vsub.f32 %v11991_v35, %v2445_v1  ;;  %v11994_v57 = vld [vmem:[#allocation126_spill] sm:$0xff] }
 0x531   : > { %2509 = vperm.xlu0 %6739, %v9422_v58   ;;  %v7000_v23 = vpop.eup %6999  ;;  %7013 = vpow.bf16 %v3176_v11  ;;  %v2733_v61 = vsub.f32 %v11992_v19, %v2445_v1  ;;  %v3610_v24 = vunpack.c.l.bf16 %v6998_v43  ;;  %v3614_v7 = vunpack.c.h.bf16 %v6998_v43 }
 0x532   : > { %v3763_v0 = vpop.xlane.xlu0 %3762  ;;  %v7002_v39 = vpop.eup %7001  ;;  %v2922_v41 = vpack.c.bf16 %v2734_v48, %v2730_v31  ;;  %v2923_v44 = vpack.c.bf16 %v2735_v32, %v2731_v52  ;;  %v2924_v55 = vpack.c.bf16 %v2736_v42, %v2732_v14  ;;  %5051 = vmatprep.mubr.bf16.mxu0 %v7000_v23  ;;  %v2742_v35 = vsub.f32 %v11994_v57, %v9957_v9  ;;  %v11998_v14 = vld [vmem:[#allocation130_spill] sm:$0xff] }
 0x533   : > { %v4075_v60 = vadd.f32 %v3763_v0, %v3435_v45  ;;  %v7004_v56 = vpop.eup %7003  ;;  %v2925_v40 = vpack.c.bf16 %v2737_v26, %v2733_v61  ;;  %5052 = vmatmul.mubr.bf16.gmra.mrb[184].mxu0 %v6998_v43  ;;  %v10035_v11 = vpop.permute.xlu1 %4419  ;;  %v3611_v1 = vunpack.c.l.bf16 %v7000_v23  ;;  %v3615_v19 = vunpack.c.h.bf16 %v7000_v23  ;;  %v11997_v45 = vld [vmem:[#allocation129_spill] sm:$0xff] }
 0x534   : > { %v10031_v10 = vpop.eup %7005  ;;  %11995 = vst [vmem:[#allocation64_spill] sm:$0xff] %v10035_v11  ;;  %v3179_v48 = vmul.bf16 1069105081, %v2922_v41  ;;  %v3182_v32 = vmul.bf16 1069105081, %v2923_v44  ;;  %5340 = vmatprep.mubr.bf16.mxu1 %v7004_v56  ;;  %v2744_v31 = vsub.f32 %v11997_v45, %v9957_v9  ;;  %v3612_v43 = vunpack.c.l.bf16 %v7002_v39 }
 0x535   : > { %11993 = vst [vmem:[#allocation61_spill] sm:$0xff] %v10031_v10  ;;  %v3185_v42 = vmul.bf16 1069105081, %v2924_v55  ;;  %4140 = vst.msk [vmem:[#allocation3 + $0x8] sm:$0xff] %vm382_vm2, %v4075_v60  ;;  %4459 = vperm.xlu1 %6740, %v10031_v10   ;;  %v3188_v26 = vmul.bf16 1069105081, %v2925_v40  ;;  %5341 = vmatmul.mubr.bf16.gmra.mrb[184].mxu1 %v7002_v39  ;;  %v3894_v52 = vadd.f32 %v3611_v1, %v3610_v24  ;;  %v3613_v5 = vunpack.c.l.bf16 %v7004_v56 }
 0x536   : > { %v2745_v23 = vsub.f32 %v11998_v14, %v9957_v9  ;;  %7015 = vpow.bf16 %v3179_v48  ;;  %v3899_v61 = vadd.f32 %v3615_v19, %v3614_v7  ;;  %v3616_v44 = vunpack.c.h.bf16 %v7002_v39  ;;  %v11999_v60 = vld [vmem:[#allocation123_spill] sm:$0xff]  ;;  %v12000_v10 = vld [vmem:[#allocation124_spill] sm:$0xff]  ;;  %v12001_v40 = vld [vmem:[#allocation125_spill] sm:$0xff] }
 0x537   : > { %7017 = vpow.bf16 %v3182_v32  ;;  %v2455_v0 = vpop.permute.xlu1 %2454  ;;  %v3895_v41 = vadd.f32 %v3894_v52, %v3612_v43  ;;  %v3617_v55 = vunpack.c.h.bf16 %v7004_v56  ;;  %v12003_v9 = vld [vmem:[#allocation128_spill] sm:$0xff] }
 0x538   : > { %7019 = vpow.bf16 %v3185_v42  ;;  %v2738_v57 = vsub.f32 %v11999_v60, %v2455_v0  ;;  %v2739_v45 = vsub.f32 %v12000_v10, %v2455_v0  ;;  %v2740_v20 = vsub.f32 %v12001_v40, %v2455_v0  ;;  %v12010_v60 = vld [vmem:[#allocation138_spill] sm:$0xff] }
 0x539   : > { %2494 = vperm.xlu1 %6740, %v12002_v6   ;;  %v10049_v24 = vpop.eup %7007  ;;  %7021 = vpow.bf16 %v3188_v26  ;;  %v2741_v1 = vsub.f32 %v12003_v9, %v2455_v0  ;;  %v10052_v7 = vadd.f32 %v3895_v41, %v3613_v5  ;;  %v3900_v19 = vadd.f32 %v3899_v61, %v3616_v44  ;;  %v12007_v61 = vld [vmem:[#allocation134_spill] sm:$0xff]  ;;  %v12009_v41 = vld [vmem:[#allocation137_spill] sm:$0xff]  ;;  %v12012_v9 = vld [vmem:[#allocation143_spill] sm:$0xff] }
 0x53a   : > { %v10054_v48 = vpop.eup %7009  ;;  %v2926_v39 = vpack.c.bf16 %v2742_v35, %v2738_v57  ;;  %v2927_v56 = vpack.c.bf16 %v2743_v38, %v2739_v45  ;;  %v2928_v32 = vpack.c.bf16 %v2744_v31, %v2740_v20  ;;  %v3618_v52 = vunpack.c.l.bf16 %v10049_v24  ;;  %v12011_v45 = vld [vmem:[#allocation141_spill] sm:$0xff] }
 0x53b   : > { %12004 = vst [vmem:[#allocation184_spill] sm:$0xff] %v10052_v7  ;;  %v10056_v42 = vpop.eup %7011  ;;  %v2929_v10 = vpack.c.bf16 %v2745_v23, %v2741_v1  ;;  %5059 = vmatprep.mubr.bf16.mxu0 %v10054_v48  ;;  %v10059_v43 = vpop.permute.xlu1 %4429  ;;  %v3619_v26 = vunpack.c.l.bf16 %v10054_v48  ;;  %v10063_v14 = vadd.f32 %v3900_v19, %v3617_v55  ;;  %v2750_v35 = vsub.f32 %v12007_v61, %v9973_v8  ;;  %v12008_v23 = vld [vmem:[#allocation135_spill] sm:$0xff] }
 0x53c   : > { %12005 = vst [vmem:[#allocation183_spill] sm:$0xff] %v10059_v43  ;;  %v10065_v5 = vpop.eup %7013  ;;  %v3191_v38 = vmul.bf16 1069105081, %v2926_v39  ;;  %v3194_v20 = vmul.bf16 1069105081, %v2927_v56  ;;  %5060 = vmatmul.mubr.bf16.gmra.mrb[188].mxu0 %v10049_v24  ;;  %v2751_v0 = vsub.f32 %v12008_v23, %v9973_v8  ;;  %v2752_v44 = vsub.f32 %v12009_v41, %v9973_v8  ;;  %v12014_v23 = vld [vmem:[#allocation132_spill] sm:$0xff] }
 0x53d   : > { %12006 = vst [vmem:[#allocation301_spill] sm:$0xff] %v10063_v14  ;;  %v3197_v31 = vmul.bf16 1069105081, %v2928_v32  ;;  %v2753_v55 = vsub.f32 %v12010_v60, %v9973_v8  ;;  %v3200_v57 = vmul.bf16 1069105081, %v2929_v10  ;;  %5348 = vmatprep.mubr.bf16.mxu1 %v10065_v5  ;;  %v2758_v40 = vsub.f32 %v12011_v45, %v10015_v27  ;;  %v12013_v10 = vld [vmem:[#allocation131_spill] sm:$0xff] }
 0x53e   : > { %v2759_v1 = vsub.f32 %v12012_v9, %v10015_v27  ;;  %7023 = vpow.bf16 %v3191_v38  ;;  %5349 = vmatmul.mubr.bf16.gmra.mrb[188].mxu1 %v10056_v42  ;;  %v3620_v19 = vunpack.c.l.bf16 %v10056_v42  ;;  %v3621_v56 = vunpack.c.l.bf16 %v10065_v5  ;;  %v12015_v60 = vld [vmem:[#allocation133_spill] sm:$0xff]  ;;  %v12016_v38 = vld [vmem:[#allocation136_spill] sm:$0xff] }
 0x53f   : > { %7025 = vpow.bf16 %v3194_v20  ;;  %v2465_v39 = vpop.permute.xlu1 %2464  ;;  %v3904_v32 = vadd.f32 %v3619_v26, %v3618_v52  ;;  %v3622_v8 = vunpack.c.h.bf16 %v10049_v24  ;;  %v3623_v20 = vunpack.c.h.bf16 %v10054_v48 }
 0x540   : > { %7027 = vpow.bf16 %v3197_v31  ;;  %v2746_v61 = vsub.f32 %v12013_v10, %v2465_v39  ;;  %v2747_v41 = vsub.f32 %v12014_v23, %v2465_v39  ;;  %v2748_v45 = vsub.f32 %v12015_v60, %v2465_v39  ;;  %v12017_v23 = vld [vmem:[#allocation145_spill] sm:$0xff] }
 0x541   : > { %v10088_v9 = vpop.eup %7015  ;;  %7029 = vpow.bf16 %v3200_v57  ;;  %v2749_v14 = vsub.f32 %v12016_v38, %v2465_v39  ;;  %v3905_v7 = vadd.f32 %v3904_v32, %v3620_v19  ;;  %v2760_v60 = vsub.f32 %v12017_v23, %v10015_v27  ;;  %v12022_v23 = vld [vmem:[#allocation140_spill] sm:$0xff] }
 0x542   : > { %v10092_v43 = vpop.eup %7017  ;;  %v2930_v52 = vpack.c.bf16 %v2750_v35, %v2746_v61  ;;  %v2931_v26 = vpack.c.bf16 %v2751_v0, %v2747_v41  ;;  %v2932_v24 = vpack.c.bf16 %v2752_v44, %v2748_v45  ;;  %v3626_v31 = vunpack.c.l.bf16 %v10088_v9  ;;  %v12020_v35 = vld [vmem:[#allocation146_spill] sm:$0xff] }
 0x543   : > { %v10095_v10 = vpop.eup %7019  ;;  %v2933_v21 = vpack.c.bf16 %v2753_v55, %v2749_v14  ;;  %5067 = vmatprep.mubr.bf16.mxu0 %v10092_v43  ;;  %v10100_v57 = vpop.permute.xlu1 %4439  ;;  %v10102_v19 = vadd.f32 %v3905_v7, %v3621_v56  ;;  %v3627_v48 = vunpack.c.l.bf16 %v10092_v43  ;;  %v2761_v0 = vsub.f32 %v12020_v35, %v10015_v27 }
 0x544   : > { %12018 = vst [vmem:[#allocation203_spill] sm:$0xff] %v10100_v57  ;;  %v10105_v39 = vpop.eup %7021  ;;  %v3203_v44 = vmul.bf16 1069105081, %v2930_v52  ;;  %v3206_v32 = vmul.bf16 1069105081, %v2931_v26  ;;  %5068 = vmatmul.mubr.bf16.gmra.mrb[192].mxu0 %v10088_v9  ;;  %v3628_v14 = vunpack.c.l.bf16 %v10095_v10  ;;  %v3624_v7 = vunpack.c.h.bf16 %v10056_v42 }
 0x545   : > { %12019 = vst [vmem:[#allocation202_spill] sm:$0xff] %v10102_v19  ;;  %v3209_v61 = vmul.bf16 1069105081, %v2932_v24  ;;  %v3212_v41 = vmul.bf16 1069105081, %v2933_v21  ;;  %5356 = vmatprep.mubr.bf16.mxu1 %v10105_v39  ;;  %v3914_v55 = vadd.f32 %v3627_v48, %v3626_v31  ;;  %v3629_v56 = vunpack.c.l.bf16 %v10105_v39  ;;  %v12021_v24 = vld [vmem:[#allocation139_spill] sm:$0xff] }
 0x546   : > { %7031 = vpow.bf16 %v3203_v44  ;;  %5357 = vmatmul.mubr.bf16.gmra.mrb[192].mxu1 %v10095_v10  ;;  %v3625_v27 = vunpack.c.h.bf16 %v10065_v5  ;;  %v3909_v45 = vadd.f32 %v3623_v20, %v3622_v8  ;;  %v3630_v21 = vunpack.c.h.bf16 %v10088_v9  ;;  %v12023_v48 = vld [vmem:[#allocation142_spill] sm:$0xff]  ;;  %v12024_v19 = vld [vmem:[#allocation144_spill] sm:$0xff] }
 0x547   : > { %7033 = vpow.bf16 %v3206_v32  ;;  %v2475_v38 = vpop.permute.xlu1 %2474  ;;  %v3915_v52 = vadd.f32 %v3914_v55, %v3628_v14  ;;  %v3631_v26 = vunpack.c.h.bf16 %v10092_v43 }
 0x548   : > { %7035 = vpow.bf16 %v3209_v61  ;;  %v2754_v31 = vsub.f32 %v12021_v24, %v2475_v38  ;;  %v2755_v42 = vsub.f32 %v12022_v23, %v2475_v38  ;;  %v2756_v35 = vsub.f32 %v12023_v48, %v2475_v38 }
 0x549   : > { %v7024_v44 = vpop.eup %7023  ;;  %7037 = vpow.bf16 %v3212_v41  ;;  %v2757_v57 = vsub.f32 %v12024_v19, %v2475_v38  ;;  %v10122_v5 = vadd.f32 %v3915_v52, %v3629_v56  ;;  %v3910_v8 = vadd.f32 %v3909_v45, %v3624_v7 }
 0x54a   : > { %v7026_v20 = vpop.eup %7025  ;;  %v2934_v32 = vpack.c.bf16 %v2758_v40, %v2754_v31  ;;  %v2935_v14 = vpack.c.bf16 %v2759_v1, %v2755_v42  ;;  %v2936_v9 = vpack.c.bf16 %v2760_v60, %v2756_v35  ;;  %v3634_v55 = vunpack.c.l.bf16 %v7024_v44 }
 0x54b   : > { %v7028_v43 = vpop.eup %7027  ;;  %v2937_v61 = vpack.c.bf16 %v2761_v0, %v2757_v57  ;;  %5075 = vmatprep.mubr.bf16.mxu0 %v7026_v20  ;;  %v3635_v24 = vunpack.c.l.bf16 %v7026_v20  ;;  %v10124_v11 = vadd.f32 %v3910_v8, %v3625_v27  ;;  %v3632_v19 = vunpack.c.h.bf16 %v10095_v10 }
 0x54c   : > { %v7030_v23 = vpop.eup %7029  ;;  %v3215_v48 = vmul.bf16 1069105081, %v2934_v32  ;;  %v3218_v15 = vmul.bf16 1069105081, %v2935_v14  ;;  %v3221_v41 = vmul.bf16 1069105081, %v2936_v9  ;;  %5076 = vmatmul.mubr.bf16.gmra.mrb[196].mxu0 %v7024_v44  ;;  %v3636_v7 = vunpack.c.l.bf16 %v7028_v43 }
 0x54d   : > { %v3224_v56 = vmul.bf16 1069105081, %v2937_v61  ;;  %5364 = vmatprep.mubr.bf16.mxu1 %v7030_v23  ;;  %v3924_v40 = vadd.f32 %v3635_v24, %v3634_v55  ;;  %v3919_v1 = vadd.f32 %v3631_v26, %v3630_v21  ;;  %v3633_v60 = vunpack.c.h.bf16 %v10105_v39 }
 0x54e   : > { %7039 = vpow.bf16 %v3215_v48  ;;  %5365 = vmatmul.mubr.bf16.gmra.mrb[196].mxu1 %v7028_v43  ;;  %v3638_v57 = vunpack.c.h.bf16 %v7024_v44  ;;  %v3639_v0 = vunpack.c.h.bf16 %v7026_v20  ;;  %v3637_v27 = vunpack.c.l.bf16 %v7030_v23 }
 0x54f   : > { %7041 = vpow.bf16 %v3218_v15  ;;  %v3925_v45 = vadd.f32 %v3924_v40, %v3636_v7  ;;  %v3920_v38 = vadd.f32 %v3919_v1, %v3632_v19  ;;  %v3640_v52 = vunpack.c.h.bf16 %v7028_v43  ;;  %v12025_v1 = vld [vmem:[#allocation290_spill] sm:$0xff] }
 0x550   : > { %3787 = vadd.xlane.f32.xlu0 %v9380_v4  ;;  %7043 = vpow.bf16 %v3221_v41  ;;  %v3929_v10 = vadd.f32 %v3639_v0, %v3638_v57  ;;  %v2133_v42 = vsub.f32 %v9332_v62, %v9343_v49  ;;  %v3641_v15 = vunpack.c.h.bf16 %v7030_v23 }
 0x551   : > { %v7032_v31 = vpop.eup %7031  ;;  %7045 = vpow.bf16 %v3224_v56  ;;  %v10131_v21 = vadd.f32 %v3925_v45, %v3637_v27  ;;  %v10133_v26 = vadd.f32 %v3920_v38, %v3633_v60  ;;  %v2130_v60 = vsub.f32 %v12025_v1, %v11956_v63  ;;  %v4225_v45 = vld [vmem:[#allocation4 + $0xb0] sm:$0xff] }
 0x552   : > { %v7034_v39 = vpop.eup %7033  ;;  %v3642_v35 = vunpack.c.l.bf16 %v7032_v31  ;;  %v3930_v44 = vadd.f32 %v3929_v10, %v3640_v52  ;;  %v3646_v4 = vunpack.c.h.bf16 %v7032_v31  ;;  %v2240_v61 = vmul.f32 1.442695, %v2133_v42 }
 0x553   : > { %v7036_v8 = vpop.eup %7035  ;;  %5083 = vmatprep.mubr.bf16.mxu0 %v7034_v39  ;;  %v3643_v20 = vunpack.c.l.bf16 %v7034_v39  ;;  %v3647_v32 = vunpack.c.h.bf16 %v7034_v39  ;;  %v4226_v39 = vld [vmem:[#allocation4 + $0xb8] sm:$0xff] }
 0x554   : > { %v7038_v14 = vpop.eup %7037  ;;  %5084 = vmatmul.mubr.bf16.gmra.mrb[200].mxu0 %v7032_v31  ;;  %v10135_v9 = vadd.f32 %v3930_v44, %v3641_v15  ;;  %v3644_v62 = vunpack.c.l.bf16 %v7036_v8  ;;  %v3648_v55 = vunpack.c.h.bf16 %v7036_v8  ;;  %7047 = vpow2.f32 %v2240_v61 }
 0x555   : > { %5372 = vmatprep.mubr.bf16.mxu1 %v7038_v14  ;;  %v3934_v49 = vadd.f32 %v3643_v20, %v3642_v35  ;;  %v3939_v43 = vadd.f32 %v3647_v32, %v3646_v4  ;;  %v3645_v24 = vunpack.c.l.bf16 %v7038_v14  ;;  %v3649_v23 = vunpack.c.h.bf16 %v7038_v14 }
 0x556   : > { %5373 = vmatmul.mubr.bf16.gmra.mrb[200].mxu1 %v7036_v8  ;;  %v2234_v20 = vmul.f32 1.442695, %v2130_v60  ;;  %v4609_v32 = vmul.f32 %v9914_v47, %v4225_v45 }
 0x557   : > { %v3935_v48 = vadd.f32 %v3934_v49, %v3644_v62  ;;  %v3940_v41 = vadd.f32 %v3939_v43, %v3648_v55 }
 0x558   : > { %7049 = vpow2.f32 %v2234_v20  ;;  %v12030_v20 = vld [vmem:[#allocation151_spill] sm:$0xff] }
 0x559   : > { %v7040_v19 = vpop.eup %7039  ;;  %v10137_v56 = vadd.f32 %v3935_v48, %v3645_v24  ;;  %v10139_v7 = vadd.f32 %v3940_v41, %v3649_v23  ;;  %v4610_v48 = vmul.f32 %v9902_v3, %v4226_v39  ;;  %v10146_v23 = vpop.permute.xlu0 %4454  ;;  %v12028_v39 = vld [vmem:[#allocation182_spill] sm:$0xff] }
 0x55a   : > { %v7042_v40 = vpop.eup %7041  ;;  %v3650_v57 = vunpack.c.l.bf16 %v7040_v19  ;;  %v3654_v0 = vunpack.c.h.bf16 %v7040_v19 }
 0x55b   : > { %v7044_v27 = vpop.eup %7043  ;;  %5091 = vmatprep.mubr.bf16.mxu0 %v7042_v40  ;;  %v5029_v38 = vpop.f32.mrb[172].mxu0  ;;  %v3651_v52 = vunpack.c.l.bf16 %v7042_v40  ;;  %v3655_v10 = vunpack.c.h.bf16 %v7042_v40 }
 0x55c   : > { %v7046_v31 = vpop.eup %7045  ;;  %5092 = vmatmul.mubr.bf16.gmra.mrb[204].mxu0 %v7040_v19  ;;  %v5031_v42 = vpop.f32.mrb[173].mxu0  ;;  %v3652_v44 = vunpack.c.l.bf16 %v7044_v27  ;;  %v3656_v4 = vunpack.c.h.bf16 %v7044_v27 }
 0x55d   : > { %3782 = vadd.xlane.f32.xlu1 %v9306_v2  ;;  %5380 = vmatprep.mubr.bf16.mxu1 %v7046_v31  ;;  %v5318_v35 = vpop.f32.mrb[172].mxu1  ;;  %v5032_v15 = vpop.f32.mrb[174].mxu0  ;;  %v3944_v63 = vadd.f32 %v3651_v52, %v3650_v57  ;;  %v3949_v8 = vadd.f32 %v3655_v10, %v3654_v0  ;;  %v3653_v43 = vunpack.c.l.bf16 %v7046_v31  ;;  %v3657_v24 = vunpack.c.h.bf16 %v7046_v31  ;;  %v3372_v0 = vld [vmem:[#allocation3 + $0x10] sm:$0xff]  ;;  %v12027_v31 = vld [vmem:[#allocation9_spill] sm:$0xff]  ;;  %v3370_v42 = vld [vmem:[#allocation3] sm:$0xff] }
 0x55e   : > { %v5319_v14 = vadd.f32 %v5318_v35, %v5029_v38  ;;  %5381 = vmatmul.mubr.bf16.gmra.mrb[204].mxu1 %v7044_v27  ;;  %v5320_v62 = vpop.f32.mrb[173].mxu1  ;;  %v5034_v49 = vpop.f32.mrb[175].mxu0  ;;  %v12026_v27 = vld [vmem:[#allocation226_spill] sm:$0xff]  ;;  %v3434_v35 = vmul.f32 %v12028_v39, %v3370_v42 }
 0x55f   : > { %v5321_v55 = vpop.f32.mrb[174].mxu1  ;;  %v3945_v61 = vadd.f32 %v3944_v63, %v3652_v44  ;;  %v3950_v2 = vadd.f32 %v3949_v8, %v3656_v4  ;;  %v10153_v57 = vpop.eup %7047  ;;  %v3436_v45 = vmul.f32 %v12026_v27, %v3372_v0  ;;  %v12029_v4 = vld [vmem:[#allocation149_spill] sm:$0xff] }
 0x560   : > { %v5507_v41 = vadd.f32 %v5319_v14, %v4609_v32  ;;  %v5322_v19 = vadd.f32 %v5321_v55, %v5032_v15  ;;  %v5323_v40 = vpop.f32.mrb[175].mxu1  ;;  %v2490_v3 = vpop.permute.xlu0 %2489  ;;  %v12031_v14 = vld [vmem:[#allocation153_spill] sm:$0xff]  ;;  %v12032_v55 = vld [vmem:[#allocation147_spill] sm:$0xff] }
 0x561   : > { %v10148_v1 = vadd.f32 %v3945_v61, %v3653_v43  ;;  %v10150_v60 = vadd.f32 %v3950_v2, %v3657_v24  ;;  %v2766_v8 = vsub.f32 %v12029_v4, %v2490_v3  ;;  %v2767_v32 = vsub.f32 %v12030_v20, %v2490_v3  ;;  %v12033_v61 = vld [vmem:[#allocation148_spill] sm:$0xff]  ;;  %v12034_v2 = vld [vmem:[#allocation150_spill] sm:$0xff] }
 0x562   : > { %5572 = vst.msk [vmem:[#allocation4 + $0xb0] sm:$0xff] %vm511_vm3, %v5507_v41  ;;  %v5508_v47 = vadd.f32 %v5322_v19, %v4610_v48  ;;  %v10159_v10 = vpop.eup %7049  ;;  %v2768_v62 = vsub.f32 %v12031_v14, %v2490_v3  ;;  %v12035_v41 = vld [vmem:[#allocation152_spill] sm:$0xff]  ;;  %v12036_v40 = vld [vmem:[#allocation154_spill] sm:$0xff] }
 0x564   : > { %5573 = vst.msk [vmem:[#allocation4 + $0xb8] sm:$0xff] %vm511_vm3, %v5508_v47  ;;  %v2769_v47 = vsub.f32 %v12036_v40, %v2490_v3 }
 0x566   : > { %4484 = vperm.xlu0 %6739, %v10153_v57  }
 0x56a   : > { %2519 = vperm.xlu0 %6739, %v9491_v12  }
 0x56b   : > { %v3768_v38 = vpop.xlane.xlu0 %3767 }
 0x56c   : > { %v4076_v52 = vadd.f32 %v3768_v38, %v3436_v45 }
 0x56e   : > { %4141 = vst.msk [vmem:[#allocation3 + $0x10] sm:$0xff] %vm382_vm2, %v4076_v52  ;;  %4469 = vperm.xlu1 %6740, %v10159_v10  }
 0x572   : > { %2504 = vperm.xlu1 %6740, %v12027_v31  }
 0x578   : > { %v3758_v15 = vpop.xlane.xlu1 %3757 }
 0x579   : > { %v4074_v44 = vadd.f32 %v3758_v15, %v3434_v35  ;;  %v2135_v15 = vsub.f32 %v9418_v54, %v9422_v58 }
 0x57b   : > { %4139 = vst.msk [vmem:[#allocation3] sm:$0xff] %vm382_vm2, %v4074_v44  ;;  %v2244_v44 = vmul.f32 1.442695, %v2135_v15  ;;  %v10184_v15 = vpop.permute.xlu0 %4464 }
 0x57c   : > { %v10166_v63 = vpop.permute.xlu1 %4449 }
 0x580   : > { %v2485_v49 = vpop.permute.xlu1 %2484 }
 0x581   : > { %v2762_v43 = vsub.f32 %v12032_v55, %v2485_v49  ;;  %v2763_v24 = vsub.f32 %v12033_v61, %v2485_v49  ;;  %v2764_v48 = vsub.f32 %v12034_v2, %v2485_v49  ;;  %v2765_v19 = vsub.f32 %v12035_v41, %v2485_v49  ;;  %v4227_v49 = vld [vmem:[#allocation4 + $0xc0] sm:$0xff] }
 0x583   : > { %v2938_v0 = vpack.c.bf16 %v2766_v8, %v2762_v43  ;;  %v2939_v27 = vpack.c.bf16 %v2767_v32, %v2763_v24  ;;  %v2940_v45 = vpack.c.bf16 %v2768_v62, %v2764_v48  ;;  %v2941_v38 = vpack.c.bf16 %v2769_v47, %v2765_v19  ;;  %v12037_v8 = vld [vmem:[#allocation300_spill] sm:$0xff]  ;;  %v4228_v24 = vld [vmem:[#allocation4 + $0xc8] sm:$0xff] }
 0x584   : > { %v2132_v20 = vsub.f32 %v12037_v8, %v12002_v6  ;;  %v4611_v19 = vmul.f32 %v9971_v28, %v4227_v49 }
 0x585   : > { %v3227_v52 = vmul.bf16 1069105081, %v2938_v0  ;;  %v3230_v42 = vmul.bf16 1069105081, %v2939_v27  ;;  %v3233_v39 = vmul.bf16 1069105081, %v2940_v45 }
 0x586   : > { %v3236_v35 = vmul.bf16 1069105081, %v2941_v38  ;;  %v2238_v41 = vmul.f32 1.442695, %v2132_v20 }
 0x587   : > { %7051 = vpow.bf16 %v3227_v52 }
 0x588   : > { %7053 = vpow.bf16 %v3230_v42 }
 0x589   : > { %7055 = vpow.bf16 %v3233_v39  ;;  %3797 = vadd.xlane.f32.xlu0 %v9394_v33 }
 0x58a   : > { %7057 = vpow.bf16 %v3236_v35  ;;  %v4612_v35 = vmul.f32 %v9926_v30, %v4228_v24  ;;  %v2500_v30 = vpop.permute.xlu0 %2499  ;;  %v12039_v24 = vld [vmem:[#allocation220_spill] sm:$0xff] }
 0x58b   : > { %7059 = vpow2.f32 %v2244_v44 }
 0x58c   : > { %7061 = vpow2.f32 %v2238_v41 }
 0x592   : > { %v7052_v4 = vpop.eup %7051 }
 0x593   : > { %v7054_v3 = vpop.eup %7053  ;;  %v3658_v32 = vunpack.c.l.bf16 %v7052_v4  ;;  %v3662_v14 = vunpack.c.h.bf16 %v7052_v4 }
 0x594   : > { %v7056_v62 = vpop.eup %7055  ;;  %5099 = vmatprep.mubr.bf16.mxu0 %v7054_v3  ;;  %v3659_v55 = vunpack.c.l.bf16 %v7054_v3  ;;  %v3663_v43 = vunpack.c.h.bf16 %v7054_v3  ;;  %v5037_v33 = vpop.f32.mrb[176].mxu0 }
 0x595   : > { %v7058_v61 = vpop.eup %7057  ;;  %5100 = vmatmul.mubr.bf16.gmra.mrb[208].mxu0 %v7052_v4  ;;  %v5039_v54 = vpop.f32.mrb[177].mxu0  ;;  %v3660_v58 = vunpack.c.l.bf16 %v7056_v62  ;;  %v3664_v48 = vunpack.c.h.bf16 %v7056_v62 }
 0x596   : > { %5388 = vmatprep.mubr.bf16.mxu1 %v7058_v61  ;;  %3792 = vadd.xlane.f32.xlu1 %v9382_v34  ;;  %v3954_v2 = vadd.f32 %v3659_v55, %v3658_v32  ;;  %v3959_v6 = vadd.f32 %v3663_v43, %v3662_v14  ;;  %v5326_v40 = vpop.f32.mrb[176].mxu1  ;;  %v5040_v47 = vpop.f32.mrb[178].mxu0  ;;  %v3661_v0 = vunpack.c.l.bf16 %v7058_v61  ;;  %v3665_v42 = vunpack.c.h.bf16 %v7058_v61  ;;  %v3374_v14 = vld [vmem:[#allocation3 + $0x20] sm:$0xff] }
 0x597   : > { %5389 = vmatmul.mubr.bf16.gmra.mrb[208].mxu1 %v7056_v62  ;;  %v5327_v27 = vadd.f32 %v5326_v40, %v5037_v33  ;;  %v5328_v45 = vpop.f32.mrb[177].mxu1  ;;  %v5042_v38 = vpop.f32.mrb[179].mxu0  ;;  %v12038_v62 = vld [vmem:[#allocation246_spill] sm:$0xff]  ;;  %v3373_v33 = vld [vmem:[#allocation3 + $0x18] sm:$0xff] }
 0x598   : > { %v3955_v52 = vadd.f32 %v3954_v2, %v3660_v58  ;;  %v3960_v39 = vadd.f32 %v3959_v6, %v3664_v48  ;;  %v5329_v34 = vpop.f32.mrb[178].mxu1  ;;  %v10191_v32 = vpop.eup %7059  ;;  %v3438_v49 = vmul.f32 %v12038_v62, %v3374_v14  ;;  %v3437_v54 = vmul.f32 %v12039_v24, %v3373_v33  ;;  %v12040_v6 = vld [vmem:[#allocation160_spill] sm:$0xff]  ;;  %v12043_v45 = vld [vmem:[#allocation155_spill] sm:$0xff] }
 0x599   : > { %v5509_v44 = vadd.f32 %v5327_v27, %v4611_v19  ;;  %v5330_v4 = vadd.f32 %v5329_v34, %v5040_v47  ;;  %v5331_v3 = vpop.f32.mrb[179].mxu1  ;;  %v10197_v61 = vpop.eup %7061  ;;  %v2774_v41 = vsub.f32 %v12040_v6, %v2500_v30  ;;  %v12041_v19 = vld [vmem:[#allocation162_spill] sm:$0xff]  ;;  %v12042_v47 = vld [vmem:[#allocation165_spill] sm:$0xff]  ;;  %v12048_v6 = vld [vmem:[#allocation7_spill] sm:$0xff] }
 0x59a   : > { %v10186_v8 = vadd.f32 %v3955_v52, %v3661_v0  ;;  %v10188_v28 = vadd.f32 %v3960_v39, %v3665_v42  ;;  %v2775_v40 = vsub.f32 %v12041_v19, %v2500_v30  ;;  %v2776_v0 = vsub.f32 %v12042_v47, %v2500_v30  ;;  %v12044_v52 = vld [vmem:[#allocation156_spill] sm:$0xff]  ;;  %v12045_v39 = vld [vmem:[#allocation157_spill] sm:$0xff]  ;;  %v12046_v34 = vld [vmem:[#allocation158_spill] sm:$0xff] }
 0x59b   : > { %5574 = vst.msk [vmem:[#allocation4 + $0xc0] sm:$0xff] %vm511_vm3, %v5509_v44  ;;  %v5510_v20 = vadd.f32 %v5330_v4, %v4612_v35  ;;  %v12047_v4 = vld [vmem:[#allocation166_spill] sm:$0xff] }
 0x59c   : > { %v2777_v3 = vsub.f32 %v12047_v4, %v2500_v30 }
 0x59d   : > { %5575 = vst.msk [vmem:[#allocation4 + $0xc8] sm:$0xff] %vm511_vm3, %v5510_v20 }
 0x59f   : > { %4494 = vperm.xlu0 %6739, %v10191_v32  }
 0x5a3   : > { %2529 = vperm.xlu0 %6739, %v9543_v53  }
 0x5a4   : > { %v3778_v55 = vpop.xlane.xlu0 %3777 }
 0x5a5   : > { %v4078_v43 = vadd.f32 %v3778_v55, %v3438_v49 }
 0x5a7   : > { %4143 = vst.msk [vmem:[#allocation3 + $0x20] sm:$0xff] %vm382_vm2, %v4078_v43  ;;  %4479 = vperm.xlu1 %6740, %v10197_v61  }
 0x5ab   : > { %2514 = vperm.xlu1 %6740, %v9400_v22  }
 0x5b1   : > { %v3773_v58 = vpop.xlane.xlu1 %3772 }
 0x5b2   : > { %v4077_v2 = vadd.f32 %v3773_v58, %v3437_v54  ;;  %v2137_v54 = vsub.f32 %v9486_v16, %v9491_v12 }
 0x5b4   : > { %4142 = vst.msk [vmem:[#allocation3 + $0x18] sm:$0xff] %vm382_vm2, %v4077_v2  ;;  %v2248_v58 = vmul.f32 1.442695, %v2137_v54 }
 0x5b5   : > { %v10204_v48 = vpop.permute.xlu1 %4459 }
 0x5b9   : > { %v2495_v27 = vpop.permute.xlu1 %2494 }
 0x5ba   : > { %v2770_v38 = vsub.f32 %v12043_v45, %v2495_v27  ;;  %v2771_v42 = vsub.f32 %v12044_v52, %v2495_v27  ;;  %v2772_v35 = vsub.f32 %v12045_v39, %v2495_v27  ;;  %v2773_v44 = vsub.f32 %v12046_v34, %v2495_v27  ;;  %v4230_v52 = vld [vmem:[#allocation4 + $0xd8] sm:$0xff] }
 0x5bc   : > { %v2942_v20 = vpack.c.bf16 %v2774_v41, %v2770_v38  ;;  %v2943_v14 = vpack.c.bf16 %v2775_v40, %v2771_v42  ;;  %v2944_v62 = vpack.c.bf16 %v2776_v0, %v2772_v35  ;;  %v2945_v49 = vpack.c.bf16 %v2777_v3, %v2773_v44  ;;  %v4229_v0 = vld [vmem:[#allocation4 + $0xd0] sm:$0xff] }
 0x5bd   : > { %v2134_v41 = vsub.f32 %v12048_v6, %v12027_v31  ;;  %v4613_v34 = vmul.f32 %v9989_v59, %v4229_v0 }
 0x5be   : > { %v3239_v55 = vmul.bf16 1069105081, %v2942_v20  ;;  %v3242_v43 = vmul.bf16 1069105081, %v2943_v14  ;;  %v3245_v33 = vmul.bf16 1069105081, %v2944_v62 }
 0x5bf   : > { %v3248_v24 = vmul.bf16 1069105081, %v2945_v49  ;;  %v2242_v35 = vmul.f32 1.442695, %v2134_v41 }
 0x5c0   : > { %7063 = vpow.bf16 %v3239_v55 }
 0x5c1   : > { %7065 = vpow.bf16 %v3242_v43 }
 0x5c2   : > { %7067 = vpow.bf16 %v3245_v33  ;;  %3807 = vadd.xlane.f32.xlu0 %v9463_v29  ;;  %v4614_v33 = vmul.f32 %v9937_v37, %v4230_v52 }
 0x5c3   : > { %7069 = vpow.bf16 %v3248_v24  ;;  %v10222_v24 = vpop.permute.xlu0 %4474 }
 0x5c4   : > { %7071 = vpow2.f32 %v2248_v58 }
 0x5c5   : > { %7073 = vpow2.f32 %v2242_v35  ;;  %v12053_v35 = vld [vmem:[#allocation192_spill] sm:$0xff] }
 0x5c7   : > { %v2510_v37 = vpop.permute.xlu0 %2509 }
 0x5cb   : > { %v7064_v2 = vpop.eup %7063 }
 0x5cc   : > { %v7066_v30 = vpop.eup %7065  ;;  %v3666_v19 = vunpack.c.l.bf16 %v7064_v2  ;;  %v3670_v40 = vunpack.c.h.bf16 %v7064_v2 }
 0x5cd   : > { %v7068_v47 = vpop.eup %7067  ;;  %5107 = vmatprep.mubr.bf16.mxu0 %v7066_v30  ;;  %v3667_v27 = vunpack.c.l.bf16 %v7066_v30  ;;  %v3671_v45 = vunpack.c.h.bf16 %v7066_v30  ;;  %v5045_v29 = vpop.f32.mrb[180].mxu0 }
 0x5ce   : > { %v7070_v38 = vpop.eup %7069  ;;  %5108 = vmatmul.mubr.bf16.gmra.mrb[212].mxu0 %v7064_v2  ;;  %v5047_v12 = vpop.f32.mrb[181].mxu0  ;;  %v3668_v16 = vunpack.c.l.bf16 %v7068_v47  ;;  %v3672_v39 = vunpack.c.h.bf16 %v7068_v47 }
 0x5cf   : > { %5396 = vmatprep.mubr.bf16.mxu1 %v7070_v38  ;;  %3802 = vadd.xlane.f32.xlu1 %v9396_v13  ;;  %v3964_v42 = vadd.f32 %v3667_v27, %v3666_v19  ;;  %v3969_v31 = vadd.f32 %v3671_v45, %v3670_v40  ;;  %v5334_v44 = vpop.f32.mrb[180].mxu1  ;;  %v5048_v4 = vpop.f32.mrb[182].mxu0  ;;  %v3669_v3 = vunpack.c.l.bf16 %v7070_v38  ;;  %v3673_v55 = vunpack.c.h.bf16 %v7070_v38  ;;  %v3376_v19 = vld [vmem:[#allocation3 + $0x30] sm:$0xff]  ;;  %v12050_v40 = vld [vmem:[#allocation319_spill] sm:$0xff] }
 0x5d0   : > { %5397 = vmatmul.mubr.bf16.gmra.mrb[212].mxu1 %v7068_v47  ;;  %v5335_v20 = vadd.f32 %v5334_v44, %v5045_v29  ;;  %v5336_v14 = vpop.f32.mrb[181].mxu1  ;;  %v5050_v62 = vpop.f32.mrb[183].mxu0  ;;  %v3440_v47 = vmul.f32 %v12050_v40, %v3376_v19  ;;  %v3375_v38 = vld [vmem:[#allocation3 + $0x28] sm:$0xff]  ;;  %v12051_v29 = vld [vmem:[#allocation240_spill] sm:$0xff]  ;;  %v12054_v44 = vld [vmem:[#allocation193_spill] sm:$0xff] }
 0x5d1   : > { %v3965_v49 = vadd.f32 %v3964_v42, %v3668_v16  ;;  %v3970_v43 = vadd.f32 %v3969_v31, %v3672_v39  ;;  %v5337_v13 = vpop.f32.mrb[182].mxu1  ;;  %v10229_v41 = vpop.eup %7071  ;;  %v3439_v52 = vmul.f32 %v12051_v29, %v3375_v38  ;;  %v12052_v39 = vld [vmem:[#allocation190_spill] sm:$0xff]  ;;  %v12056_v62 = vld [vmem:[#allocation164_spill] sm:$0xff]  ;;  %v2139_v29 = vsub.f32 %v9538_v18, %v9543_v53 }
 0x5d2   : > { %v5511_v54 = vadd.f32 %v5335_v20, %v4613_v34  ;;  %v5338_v58 = vadd.f32 %v5337_v13, %v5048_v4  ;;  %v5339_v2 = vpop.f32.mrb[183].mxu1  ;;  %12049 = vst [vmem:[#allocation70_spill] sm:$0xff] %v10229_v41  ;;  %v10235_v45 = vpop.eup %7073  ;;  %v2782_v31 = vsub.f32 %v12052_v39, %v2510_v37  ;;  %v2783_v34 = vsub.f32 %v12053_v35, %v2510_v37  ;;  %v12055_v20 = vld [vmem:[#allocation163_spill] sm:$0xff] }
 0x5d3   : > { %v10224_v30 = vadd.f32 %v3965_v49, %v3669_v3  ;;  %v10226_v59 = vadd.f32 %v3970_v43, %v3673_v55  ;;  %v2784_v4 = vsub.f32 %v12054_v44, %v2510_v37  ;;  %v12057_v55 = vld [vmem:[#allocation167_spill] sm:$0xff] }
 0x5d4   : > { %5576 = vst.msk [vmem:[#allocation4 + $0xd0] sm:$0xff] %vm511_vm3, %v5511_v54  ;;  %v5512_v6 = vadd.f32 %v5338_v58, %v4614_v33  ;;  %v12058_v33 = vld [vmem:[#allocation169_spill] sm:$0xff] }
 0x5d5   : > { %v12059_v54 = vld [vmem:[#allocation197_spill] sm:$0xff] }
 0x5d6   : > { %5577 = vst.msk [vmem:[#allocation4 + $0xd8] sm:$0xff] %vm511_vm3, %v5512_v6  ;;  %v2785_v58 = vsub.f32 %v12059_v54, %v2510_v37 }
 0x5d8   : > { %4504 = vperm.xlu0 %6739, %v10229_v41  }
 0x5dc   : > { %2539 = vperm.xlu0 %6739, %v9597_v25  }
 0x5dd   : > { %v3788_v0 = vpop.xlane.xlu0 %3787 }
 0x5de   : > { %v4080_v27 = vadd.f32 %v3788_v0, %v3440_v47 }
 0x5e0   : > { %4145 = vst.msk [vmem:[#allocation3 + $0x30] sm:$0xff] %vm382_vm2, %v4080_v27  ;;  %4489 = vperm.xlu1 %6740, %v10235_v45  }
 0x5e4   : > { %2524 = vperm.xlu1 %6740, %v9468_v46  }
 0x5ea   : > { %v3783_v12 = vpop.xlane.xlu1 %3782 }
 0x5eb   : > { %v4079_v16 = vadd.f32 %v3783_v12, %v3439_v52  ;;  %v2252_v52 = vmul.f32 1.442695, %v2139_v29 }
 0x5ed   : > { %4144 = vst.msk [vmem:[#allocation3 + $0x28] sm:$0xff] %vm382_vm2, %v4079_v16  ;;  %v2136_v16 = vsub.f32 %v9392_v17, %v9400_v22 }
 0x5ee   : > { %v10242_v42 = vpop.permute.xlu1 %4469 }
 0x5ef   : > { %v2246_v22 = vmul.f32 1.442695, %v2136_v16  ;;  %v4233_v16 = vld [vmem:[#allocation4 + $0xf0] sm:$0xff] }
 0x5f2   : > { %v2505_v3 = vpop.permute.xlu1 %2504 }
 0x5f3   : > { %v2778_v14 = vsub.f32 %v12055_v20, %v2505_v3  ;;  %v2779_v49 = vsub.f32 %v12056_v62, %v2505_v3  ;;  %v2780_v43 = vsub.f32 %v12057_v55, %v2505_v3  ;;  %v2781_v13 = vsub.f32 %v12058_v33, %v2505_v3  ;;  %v4232_v20 = vld [vmem:[#allocation4 + $0xe8] sm:$0xff] }
 0x5f5   : > { %v2946_v2 = vpack.c.bf16 %v2782_v31, %v2778_v14  ;;  %v2947_v6 = vpack.c.bf16 %v2783_v34, %v2779_v49  ;;  %v2948_v19 = vpack.c.bf16 %v2784_v4, %v2780_v43  ;;  %v2949_v40 = vpack.c.bf16 %v2785_v58, %v2781_v13  ;;  %v4231_v34 = vld [vmem:[#allocation4 + $0xe0] sm:$0xff] }
 0x5f6   : > { %v4615_v49 = vmul.f32 %v10012_v50, %v4231_v34  ;;  %v4234_v34 = vld [vmem:[#allocation4 + $0xf8] sm:$0xff] }
 0x5f7   : > { %v3251_v47 = vmul.bf16 1069105081, %v2946_v2  ;;  %v3254_v0 = vmul.bf16 1069105081, %v2947_v6  ;;  %v3257_v27 = vmul.bf16 1069105081, %v2948_v19 }
 0x5f8   : > { %v3260_v38 = vmul.bf16 1069105081, %v2949_v40  ;;  %v12060_v40 = vld [vmem:[#allocation291_spill] sm:$0xff] }
 0x5f9   : > { %7075 = vpow.bf16 %v3251_v47  ;;  %v4616_v47 = vmul.f32 %v12060_v40, %v4232_v20  ;;  %v4235_v40 = vld [vmem:[#allocation4 + $0x100] sm:$0xff] }
 0x5fa   : > { %7077 = vpow.bf16 %v3254_v0 }
 0x5fb   : > { %7079 = vpow.bf16 %v3257_v27  ;;  %3817 = vadd.xlane.f32.xlu0 %v9522_v36 }
 0x5fc   : > { %7081 = vpow.bf16 %v3260_v38 }
 0x5fd   : > { %7083 = vpow2.f32 %v2252_v52 }
 0x5fe   : > { %7085 = vpow2.f32 %v2246_v22 }
 0x604   : > { %v7076_v12 = vpop.eup %7075 }
 0x605   : > { %v7078_v37 = vpop.eup %7077  ;;  %v3674_v39 = vunpack.c.l.bf16 %v7076_v12  ;;  %v3678_v31 = vunpack.c.h.bf16 %v7076_v12 }
 0x606   : > { %v7080_v35 = vpop.eup %7079  ;;  %5115 = vmatprep.mubr.bf16.mxu0 %v7078_v37  ;;  %v3675_v44 = vunpack.c.l.bf16 %v7078_v37  ;;  %v3679_v4 = vunpack.c.h.bf16 %v7078_v37  ;;  %v5053_v36 = vpop.f32.mrb[184].mxu0 }
 0x607   : > { %v7082_v3 = vpop.eup %7081  ;;  %5116 = vmatmul.mubr.bf16.gmra.mrb[216].mxu0 %v7076_v12  ;;  %v5055_v18 = vpop.f32.mrb[185].mxu0  ;;  %v3676_v53 = vunpack.c.l.bf16 %v7080_v35  ;;  %v3680_v62 = vunpack.c.h.bf16 %v7080_v35 }
 0x608   : > { %5404 = vmatprep.mubr.bf16.mxu1 %v7082_v3  ;;  %3812 = vadd.xlane.f32.xlu1 %v9465_v51  ;;  %v3974_v14 = vadd.f32 %v3675_v44, %v3674_v39  ;;  %v3979_v17 = vadd.f32 %v3679_v4, %v3678_v31  ;;  %v5342_v55 = vpop.f32.mrb[184].mxu1  ;;  %v5056_v43 = vpop.f32.mrb[186].mxu0  ;;  %v3677_v33 = vunpack.c.l.bf16 %v7082_v3  ;;  %v3681_v6 = vunpack.c.h.bf16 %v7082_v3  ;;  %v3378_v3 = vld [vmem:[#allocation3 + $0x40] sm:$0xff] }
 0x609   : > { %5405 = vmatmul.mubr.bf16.gmra.mrb[216].mxu1 %v7080_v35  ;;  %v5343_v13 = vadd.f32 %v5342_v55, %v5053_v36  ;;  %v5344_v54 = vpop.f32.mrb[185].mxu1  ;;  %v5058_v58 = vpop.f32.mrb[187].mxu0  ;;  %v12062_v36 = vld [vmem:[#allocation64_spill] sm:$0xff] }
 0x60a   : > { %v3975_v2 = vadd.f32 %v3974_v14, %v3676_v53  ;;  %v3980_v19 = vadd.f32 %v3979_v17, %v3680_v62  ;;  %v10260_v51 = vpop.permute.xlu0 %4484  ;;  %v5345_v0 = vpop.f32.mrb[186].mxu1  ;;  %v4617_v20 = vmul.f32 %v12062_v36, %v4233_v16  ;;  %v12063_v17 = vld [vmem:[#allocation62_spill] sm:$0xff] }
 0x60b   : > { %v5513_v27 = vadd.f32 %v5343_v13, %v4615_v49  ;;  %v5346_v38 = vadd.f32 %v5345_v0, %v5056_v43  ;;  %v5347_v29 = vpop.f32.mrb[187].mxu1  ;;  %v10267_v37 = vpop.eup %7083  ;;  %v4618_v22 = vmul.f32 %v12063_v17, %v4234_v34  ;;  %v12065_v13 = vld [vmem:[#allocation8_spill] sm:$0xff] }
 0x60c   : > { %v10262_v52 = vadd.f32 %v3975_v2, %v3677_v33  ;;  %v10264_v50 = vadd.f32 %v3980_v19, %v3681_v6  ;;  %12061 = vst [vmem:[#allocation71_spill] sm:$0xff] %v10267_v37  ;;  %v12064_v33 = vld [vmem:[#allocation27_spill] sm:$0xff]  ;;  %v3442_v54 = vmul.f32 %v12065_v13, %v3378_v3  ;;  %v10278_v19 = vpop.eup %7085 }
 0x60d   : > { %5578 = vst.msk [vmem:[#allocation4 + $0xe0] sm:$0xff] %vm511_vm3, %v5513_v27  ;;  %v5514_v12 = vadd.f32 %v5346_v38, %v4616_v47  ;;  %v4236_v27 = vld [vmem:[#allocation4 + $0x108] sm:$0xff] }
 0x60e   : > { %v10270_v31 = vpop.permute.xlu0 %2519 }
 0x60f   : > { %5579 = vst.msk [vmem:[#allocation4 + $0xe8] sm:$0xff] %vm511_vm3, %v5514_v12  ;;  %v5061_v39 = vpop.f32.mrb[188].mxu0  ;;  %v12066_v12 = vld [vmem:[#allocation183_spill] sm:$0xff] }
 0x610   : > { %v5063_v35 = vpop.f32.mrb[189].mxu0  ;;  %v4619_v16 = vmul.f32 %v12066_v12, %v4235_v40 }
 0x611   : > { %4514 = vperm.xlu0 %6739, %v10267_v37   ;;  %v5350_v44 = vpop.f32.mrb[188].mxu1  ;;  %v5064_v4 = vpop.f32.mrb[190].mxu0 }
 0x612   : > { %v5351_v18 = vadd.f32 %v5350_v44, %v5061_v39  ;;  %v5352_v53 = vpop.f32.mrb[189].mxu1  ;;  %v5066_v14 = vpop.f32.mrb[191].mxu0 }
 0x613   : > { %v5353_v62 = vpop.f32.mrb[190].mxu1  ;;  %v12068_v53 = vld [vmem:[#allocation17_spill] sm:$0xff] }
 0x614   : > { %v5515_v49 = vadd.f32 %v5351_v18, %v4617_v20  ;;  %v5354_v55 = vadd.f32 %v5353_v62, %v5064_v4  ;;  %v5355_v43 = vpop.f32.mrb[191].mxu1  ;;  %v12067_v4 = vld [vmem:[#allocation65_spill] sm:$0xff]  ;;  %v4237_v62 = vld [vmem:[#allocation4 + $0x110] sm:$0xff] }
 0x615   : > { %2549 = vperm.xlu0 %6739, %v12064_v33   ;;  %v4620_v3 = vmul.f32 %v12067_v4, %v4236_v27  ;;  %v4239_v4 = vld [vmem:[#allocation4 + $0x120] sm:$0xff] }
 0x616   : > { %v3798_v58 = vpop.xlane.xlu0 %3797  ;;  %5580 = vst.msk [vmem:[#allocation4 + $0xf0] sm:$0xff] %vm511_vm3, %v5515_v49  ;;  %v5516_v2 = vadd.f32 %v5354_v55, %v4618_v22  ;;  %v3377_v49 = vld [vmem:[#allocation3 + $0x38] sm:$0xff] }
 0x617   : > { %v4082_v6 = vadd.f32 %v3798_v58, %v3442_v54  ;;  %v5069_v47 = vpop.f32.mrb[192].mxu0  ;;  %v4238_v55 = vld [vmem:[#allocation4 + $0x118] sm:$0xff]  ;;  %v12069_v54 = vld [vmem:[#allocation203_spill] sm:$0xff] }
 0x618   : > { %5581 = vst.msk [vmem:[#allocation4 + $0xf8] sm:$0xff] %vm511_vm3, %v5516_v2  ;;  %v5071_v0 = vpop.f32.mrb[193].mxu0  ;;  %v4621_v58 = vmul.f32 %v12069_v54, %v4237_v62 }
 0x619   : > { %4147 = vst.msk [vmem:[#allocation3 + $0x40] sm:$0xff] %vm382_vm2, %v4082_v6  ;;  %4499 = vperm.xlu1 %6740, %v10278_v19   ;;  %v5358_v38 = vpop.f32.mrb[192].mxu1  ;;  %v5072_v29 = vpop.f32.mrb[194].mxu0  ;;  %v12070_v0 = vld [vmem:[#allocation281_spill] sm:$0xff] }
 0x61a   : > { %v5359_v39 = vadd.f32 %v5358_v38, %v5069_v47  ;;  %v5360_v35 = vpop.f32.mrb[193].mxu1  ;;  %v5074_v34 = vpop.f32.mrb[195].mxu0  ;;  %v3441_v27 = vmul.f32 %v12070_v0, %v3377_v49  ;;  %v12071_v38 = vld [vmem:[#allocation59_spill] sm:$0xff] }
 0x61b   : > { %v5361_v44 = vpop.f32.mrb[194].mxu1 }
 0x61c   : > { %v5517_v36 = vadd.f32 %v5359_v39, %v4619_v16  ;;  %v5362_v20 = vadd.f32 %v5361_v44, %v5072_v29  ;;  %v5363_v18 = vpop.f32.mrb[195].mxu1  ;;  %v4622_v29 = vmul.f32 %v12071_v38, %v4238_v55 }
 0x61d   : > { %2534 = vperm.xlu1 %6740, %v12068_v53  }
 0x61e   : > { %5582 = vst.msk [vmem:[#allocation4 + $0x100] sm:$0xff] %vm511_vm3, %v5517_v36  ;;  %v5518_v14 = vadd.f32 %v5362_v20, %v4620_v3  ;;  %v4240_v36 = vld [vmem:[#allocation4 + $0x128] sm:$0xff] }
 0x61f   : > { %v5077_v17 = vpop.f32.mrb[196].mxu0 }
 0x620   : > { %5583 = vst.msk [vmem:[#allocation4 + $0x108] sm:$0xff] %vm511_vm3, %v5518_v14  ;;  %v5079_v22 = vpop.f32.mrb[197].mxu0 }
 0x621   : > { %v5366_v43 = vpop.f32.mrb[196].mxu1  ;;  %v5080_v13 = vpop.f32.mrb[198].mxu0 }
 0x622   : > { %v5367_v2 = vadd.f32 %v5366_v43, %v5077_v17  ;;  %v5368_v6 = vpop.f32.mrb[197].mxu1  ;;  %v5082_v47 = vpop.f32.mrb[199].mxu0  ;;  %v4623_v17 = vmul.f32 %v10166_v63, %v4239_v4  ;;  %v4624_v43 = vmul.f32 %v10146_v23, %v4240_v36  ;;  %v12075_v63 = vld [vmem:[#allocation194_spill] sm:$0xff]  ;;  %v12079_v4 = vld [vmem:[#allocation235_spill] sm:$0xff] }
 0x623   : > { %v5369_v40 = vpop.f32.mrb[198].mxu1  ;;  %v3793_v35 = vpop.xlane.xlu1 %3792 }
 0x624   : > { %v5519_v12 = vadd.f32 %v5367_v2, %v4621_v58  ;;  %v5370_v16 = vadd.f32 %v5369_v40, %v5080_v13  ;;  %v5371_v39 = vpop.f32.mrb[199].mxu1  ;;  %v4081_v34 = vadd.f32 %v3793_v35, %v3441_v27  ;;  %v12072_v13 = vld [vmem:[#allocation229_spill] sm:$0xff]  ;;  %v12073_v2 = vld [vmem:[#allocation230_spill] sm:$0xff] }
 0x625   : > { %v2790_v54 = vsub.f32 %v12072_v13, %v10270_v31  ;;  %v2791_v6 = vsub.f32 %v12073_v2, %v10270_v31  ;;  %v12074_v40 = vld [vmem:[#allocation234_spill] sm:$0xff] }
 0x626   : > { %5584 = vst.msk [vmem:[#allocation4 + $0x110] sm:$0xff] %vm511_vm3, %v5519_v12  ;;  %v5520_v44 = vadd.f32 %v5370_v16, %v4622_v29  ;;  %v2792_v47 = vsub.f32 %v12074_v40, %v10270_v31  ;;  %v12076_v16 = vld [vmem:[#allocation196_spill] sm:$0xff]  ;;  %v12077_v35 = vld [vmem:[#allocation198_spill] sm:$0xff]  ;;  %v4242_v40 = vld [vmem:[#allocation4 + $0x138] sm:$0xff] }
 0x627   : > { %4146 = vst.msk [vmem:[#allocation3 + $0x38] sm:$0xff] %vm382_vm2, %v4081_v34  ;;  %v5085_v3 = vpop.f32.mrb[200].mxu0  ;;  %v10294_v18 = vpop.permute.xlu1 %4479  ;;  %v12078_v34 = vld [vmem:[#allocation199_spill] sm:$0xff] }
 0x628   : > { %5585 = vst.msk [vmem:[#allocation4 + $0x118] sm:$0xff] %vm511_vm3, %v5520_v44  ;;  %v5087_v20 = vpop.f32.mrb[201].mxu0 }
 0x629   : > { %v5374_v14 = vpop.f32.mrb[200].mxu1  ;;  %v5088_v62 = vpop.f32.mrb[202].mxu0 }
 0x62a   : > { %v5375_v22 = vadd.f32 %v5374_v14, %v5085_v3  ;;  %v5376_v49 = vpop.f32.mrb[201].mxu1  ;;  %v5090_v55 = vpop.f32.mrb[203].mxu0  ;;  %v2793_v3 = vsub.f32 %v12079_v4, %v10270_v31 }
 0x62b   : > { %v5377_v58 = vpop.f32.mrb[202].mxu1  ;;  %v2515_v29 = vpop.permute.xlu1 %2514 }
 0x62c   : > { %v5521_v0 = vadd.f32 %v5375_v22, %v4623_v17  ;;  %v5378_v27 = vadd.f32 %v5377_v58, %v5088_v62  ;;  %v5379_v38 = vpop.f32.mrb[203].mxu1  ;;  %v2786_v12 = vsub.f32 %v12075_v63, %v2515_v29  ;;  %v2787_v39 = vsub.f32 %v12076_v16, %v2515_v29  ;;  %v4241_v22 = vld [vmem:[#allocation4 + $0x130] sm:$0xff] }
 0x62d   : > { %v2788_v23 = vsub.f32 %v12077_v35, %v2515_v29  ;;  %v2789_v44 = vsub.f32 %v12078_v34, %v2515_v29  ;;  %v4625_v31 = vmul.f32 %v10204_v48, %v4241_v22  ;;  %v12081_v35 = vld [vmem:[#allocation21_spill] sm:$0xff] }
 0x62e   : > { %5586 = vst.msk [vmem:[#allocation4 + $0x120] sm:$0xff] %vm511_vm3, %v5521_v0  ;;  %v5522_v36 = vadd.f32 %v5378_v27, %v4624_v43  ;;  %v2950_v20 = vpack.c.bf16 %v2790_v54, %v2786_v12  ;;  %v2951_v14 = vpack.c.bf16 %v2791_v6, %v2787_v39  ;;  %v4626_v27 = vmul.f32 %v10184_v15, %v4242_v40 }
 0x62f   : > { %v2952_v17 = vpack.c.bf16 %v2792_v47, %v2788_v23  ;;  %v5093_v62 = vpop.f32.mrb[204].mxu0  ;;  %v2953_v49 = vpack.c.bf16 %v2793_v3, %v2789_v44  ;;  %v12080_v47 = vld [vmem:[#allocation23_spill] sm:$0xff]  ;;  %v2141_v23 = vsub.f32 %v12081_v35, %v9597_v25 }
 0x630   : > { %5587 = vst.msk [vmem:[#allocation4 + $0x128] sm:$0xff] %vm511_vm3, %v5522_v36  ;;  %v5095_v55 = vpop.f32.mrb[205].mxu0  ;;  %v3263_v13 = vmul.bf16 1069105081, %v2950_v20  ;;  %v3266_v58 = vmul.bf16 1069105081, %v2951_v14 }
 0x631   : > { %v3269_v2 = vmul.bf16 1069105081, %v2952_v17  ;;  %v3272_v38 = vmul.bf16 1069105081, %v2953_v49  ;;  %v5382_v29 = vpop.f32.mrb[204].mxu1  ;;  %v5096_v63 = vpop.f32.mrb[206].mxu0 }
 0x632   : > { %7087 = vpow.bf16 %v3263_v13  ;;  %v5383_v43 = vadd.f32 %v5382_v29, %v5093_v62  ;;  %v5384_v54 = vpop.f32.mrb[205].mxu1  ;;  %v5098_v6 = vpop.f32.mrb[207].mxu0  ;;  %v2256_v34 = vmul.f32 1.442695, %v2141_v23  ;;  %v12082_v44 = vld [vmem:[#allocation11_spill] sm:$0xff] }
 0x633   : > { %7089 = vpow.bf16 %v3266_v58  ;;  %v5385_v0 = vpop.f32.mrb[206].mxu1  ;;  %v2138_v4 = vsub.f32 %v12082_v44, %v9468_v46  ;;  %v12083_v17 = vld [vmem:[#allocation15_spill] sm:$0xff]  ;;  %v10322_v46 = vpop.permute.xlu0 %4494 }
 0x634   : > { %3827 = vadd.xlane.f32.xlu0 %v12080_v47  ;;  %7091 = vpow.bf16 %v3269_v2  ;;  %v5523_v12 = vadd.f32 %v5383_v43, %v4625_v31  ;;  %v5386_v16 = vadd.f32 %v5385_v0, %v5096_v63  ;;  %v5387_v39 = vpop.f32.mrb[207].mxu1  ;;  %v3380_v47 = vld [vmem:[#allocation3 + $0x50] sm:$0xff]  ;;  %v12085_v0 = vld [vmem:[#allocation38_spill] sm:$0xff]  ;;  %v12088_v23 = vld [vmem:[#allocation19_spill] sm:$0xff] }
 0x635   : > { %7093 = vpow.bf16 %v3272_v38  ;;  %v2250_v49 = vmul.f32 1.442695, %v2138_v4 }
 0x636   : > { %5588 = vst.msk [vmem:[#allocation4 + $0x130] sm:$0xff] %vm511_vm3, %v5523_v12  ;;  %v5524_v48 = vadd.f32 %v5386_v16, %v4626_v27  ;;  %7095 = vpow2.f32 %v2256_v34  ;;  %v12086_v27 = vld [vmem:[#allocation161_spill] sm:$0xff]  ;;  %v12089_v34 = vld [vmem:[#allocation6_spill] sm:$0xff] }
 0x637   : > { %7097 = vpow2.f32 %v2250_v49  ;;  %v2530_v6 = vpop.permute.xlu0 %2529  ;;  %v3444_v12 = vmul.f32 %v12086_v27, %v3380_v47  ;;  %v12093_v49 = vld [vmem:[#allocation232_spill] sm:$0xff] }
 0x638   : > { %5589 = vst.msk [vmem:[#allocation4 + $0x138] sm:$0xff] %vm511_vm3, %v5524_v48  ;;  %v3379_v48 = vld [vmem:[#allocation3 + $0x48] sm:$0xff] }
 0x639   : > { %v3443_v44 = vmul.f32 %v12089_v34, %v3379_v48 }
 0x63d   : > { %v7088_v3 = vpop.eup %7087 }
 0x63e   : > { %v7090_v15 = vpop.eup %7089  ;;  %v3682_v36 = vunpack.c.l.bf16 %v7088_v3  ;;  %v3686_v20 = vunpack.c.h.bf16 %v7088_v3 }
 0x63f   : > { %v7092_v14 = vpop.eup %7091  ;;  %5123 = vmatprep.mubr.bf16.mxu0 %v7090_v15  ;;  %v3683_v25 = vunpack.c.l.bf16 %v7090_v15  ;;  %v3687_v62 = vunpack.c.h.bf16 %v7090_v15 }
 0x640   : > { %v7094_v22 = vpop.eup %7093  ;;  %5124 = vmatmul.mubr.bf16.gmra.mrb[220].mxu0 %v7088_v3  ;;  %v3684_v55 = vunpack.c.l.bf16 %v7092_v14  ;;  %v3688_v58 = vunpack.c.h.bf16 %v7092_v14 }
 0x641   : > { %3822 = vadd.xlane.f32.xlu1 %v12083_v17  ;;  %5412 = vmatprep.mubr.bf16.mxu1 %v7094_v22  ;;  %v3984_v13 = vadd.f32 %v3683_v25, %v3682_v36  ;;  %v3989_v2 = vadd.f32 %v3687_v62, %v3686_v20  ;;  %v3685_v40 = vunpack.c.l.bf16 %v7094_v22  ;;  %v3689_v29 = vunpack.c.h.bf16 %v7094_v22  ;;  %v10328_v54 = vpop.eup %7095  ;;  %v12090_v36 = vld [vmem:[#allocation244_spill] sm:$0xff]  ;;  %v12092_v25 = vld [vmem:[#allocation250_spill] sm:$0xff] }
 0x642   : > { %5413 = vmatmul.mubr.bf16.gmra.mrb[220].mxu1 %v7092_v14  ;;  %12084 = vst [vmem:[#allocation73_spill] sm:$0xff] %v10328_v54  ;;  %v10333_v35 = vpop.eup %7097  ;;  %v2798_v20 = vsub.f32 %v12090_v36, %v2530_v6  ;;  %v12091_v14 = vld [vmem:[#allocation245_spill] sm:$0xff]  ;;  %v2800_v62 = vsub.f32 %v12092_v25, %v2530_v6  ;;  %v4244_v36 = vld [vmem:[#allocation4 + $0x148] sm:$0xff] }
 0x643   : > { %v3985_v38 = vadd.f32 %v3984_v13, %v3684_v55  ;;  %v3990_v63 = vadd.f32 %v3989_v2, %v3688_v58  ;;  %12087 = vst [vmem:[#allocation74_spill] sm:$0xff] %v10333_v35  ;;  %v2799_v17 = vsub.f32 %v12091_v14, %v2530_v6  ;;  %v12094_v13 = vld [vmem:[#allocation233_spill] sm:$0xff]  ;;  %v12095_v2 = vld [vmem:[#allocation236_spill] sm:$0xff] }
 0x645   : > { %v10324_v31 = vadd.f32 %v3985_v38, %v3685_v40  ;;  %v10326_v43 = vadd.f32 %v3990_v63, %v3689_v29  ;;  %v12096_v38 = vld [vmem:[#allocation237_spill] sm:$0xff]  ;;  %v12097_v63 = vld [vmem:[#allocation251_spill] sm:$0xff] }
 0x646   : > { %v2801_v47 = vsub.f32 %v12097_v63, %v2530_v6 }
 0x64a   : > { %4524 = vperm.xlu0 %6739, %v10328_v54   ;;  %v4246_v54 = vld [vmem:[#allocation4 + $0x158] sm:$0xff] }
 0x64e   : > { %2559 = vperm.xlu0 %6739, %v12085_v0  }
 0x64f   : > { %v3808_v16 = vpop.xlane.xlu0 %3807 }
 0x650   : > { %v4084_v39 = vadd.f32 %v3808_v16, %v3444_v12 }
 0x652   : > { %4149 = vst.msk [vmem:[#allocation3 + $0x50] sm:$0xff] %vm382_vm2, %v4084_v39  ;;  %4509 = vperm.xlu1 %6740, %v10333_v35   ;;  %v4243_v39 = vld [vmem:[#allocation4 + $0x140] sm:$0xff] }
 0x656   : > { %2544 = vperm.xlu1 %6740, %v12088_v23  }
 0x65c   : > { %v3803_v4 = vpop.xlane.xlu1 %3802 }
 0x65d   : > { %v4083_v3 = vadd.f32 %v3803_v4, %v3443_v44 }
 0x65f   : > { %4148 = vst.msk [vmem:[#allocation3 + $0x48] sm:$0xff] %vm382_vm2, %v4083_v3 }
 0x660   : > { %v10340_v15 = vpop.permute.xlu1 %4489 }
 0x664   : > { %v2525_v22 = vpop.permute.xlu1 %2524 }
 0x665   : > { %v2794_v55 = vsub.f32 %v12093_v49, %v2525_v22  ;;  %v2795_v58 = vsub.f32 %v12094_v13, %v2525_v22  ;;  %v2796_v40 = vsub.f32 %v12095_v2, %v2525_v22  ;;  %v2797_v29 = vsub.f32 %v12096_v38, %v2525_v22 }
 0x666   : > { %v4627_v13 = vmul.f32 %v10242_v42, %v4243_v39  ;;  %v12099_v42 = vld [vmem:[#allocation34_spill] sm:$0xff] }
 0x667   : > { %v2954_v27 = vpack.c.bf16 %v2798_v20, %v2794_v55  ;;  %v2955_v12 = vpack.c.bf16 %v2799_v17, %v2795_v58  ;;  %v2956_v16 = vpack.c.bf16 %v2800_v62, %v2796_v40  ;;  %v2957_v48 = vpack.c.bf16 %v2801_v47, %v2797_v29  ;;  %v12098_v40 = vld [vmem:[#allocation168_spill] sm:$0xff] }
 0x668   : > { %v5101_v34 = vpop.f32.mrb[208].mxu0  ;;  %v4628_v17 = vmul.f32 %v10222_v24, %v4244_v36  ;;  %v2143_v63 = vsub.f32 %v12099_v42, %v12064_v33  ;;  %v12100_v24 = vld [vmem:[#allocation14_spill] sm:$0xff]  ;;  %v12101_v36 = vld [vmem:[#allocation25_spill] sm:$0xff] }
 0x669   : > { %v3275_v44 = vmul.bf16 1069105081, %v2954_v27  ;;  %v3278_v4 = vmul.bf16 1069105081, %v2955_v12  ;;  %v3281_v3 = vmul.bf16 1069105081, %v2956_v16  ;;  %v2140_v16 = vsub.f32 %v12100_v24, %v12068_v53 }
 0x66a   : > { %v3284_v14 = vmul.bf16 1069105081, %v2957_v48  ;;  %v5390_v25 = vpop.f32.mrb[208].mxu1  ;;  %v5103_v49 = vpop.f32.mrb[209].mxu0  ;;  %v2260_v47 = vmul.f32 1.442695, %v2143_v63 }
 0x66b   : > { %7099 = vpow.bf16 %v3275_v44  ;;  %v5391_v2 = vadd.f32 %v5390_v25, %v5101_v34  ;;  %v5392_v22 = vpop.f32.mrb[209].mxu1  ;;  %v5104_v38 = vpop.f32.mrb[210].mxu0  ;;  %v3381_v24 = vld [vmem:[#allocation3 + $0x58] sm:$0xff] }
 0x66c   : > { %7101 = vpow.bf16 %v3278_v4  ;;  %v5393_v6 = vpop.f32.mrb[210].mxu1  ;;  %v5106_v20 = vpop.f32.mrb[211].mxu0 }
 0x66d   : > { %7103 = vpow.bf16 %v3281_v3  ;;  %v5525_v62 = vadd.f32 %v5391_v2, %v4627_v13  ;;  %v5394_v55 = vadd.f32 %v5393_v6, %v5104_v38  ;;  %v5395_v58 = vpop.f32.mrb[211].mxu1  ;;  %3837 = vadd.xlane.f32.xlu0 %v12098_v40  ;;  %v2254_v13 = vmul.f32 1.442695, %v2140_v16  ;;  %v10360_v6 = vpop.permute.xlu0 %4504  ;;  %v12103_v40 = vld [vmem:[#allocation180_spill] sm:$0xff]  ;;  %v12107_v16 = vld [vmem:[#allocation10_spill] sm:$0xff] }
 0x66e   : > { %7105 = vpow.bf16 %v3284_v14  ;;  %v3382_v58 = vld [vmem:[#allocation3 + $0x60] sm:$0xff] }
 0x66f   : > { %5590 = vst.msk [vmem:[#allocation4 + $0x140] sm:$0xff] %vm511_vm3, %v5525_v62  ;;  %v5526_v29 = vadd.f32 %v5394_v55, %v4628_v17  ;;  %7107 = vpow2.f32 %v2260_v47 }
 0x670   : > { %7109 = vpow2.f32 %v2254_v13  ;;  %v12111_v13 = vld [vmem:[#allocation248_spill] sm:$0xff] }
 0x671   : > { %5591 = vst.msk [vmem:[#allocation4 + $0x148] sm:$0xff] %vm511_vm3, %v5526_v29  ;;  %v2540_v55 = vpop.permute.xlu0 %2539  ;;  %v12104_v29 = vld [vmem:[#allocation12_spill] sm:$0xff] }
 0x672   : > { %v3446_v42 = vmul.f32 %v12104_v29, %v3382_v58  ;;  %v12114_v29 = vld [vmem:[#allocation253_spill] sm:$0xff] }
 0x676   : > { %v7100_v27 = vpop.eup %7099 }
 0x677   : > { %v7102_v12 = vpop.eup %7101  ;;  %v3690_v39 = vunpack.c.l.bf16 %v7100_v27  ;;  %v3694_v48 = vunpack.c.h.bf16 %v7100_v27 }
 0x678   : > { %v7104_v34 = vpop.eup %7103  ;;  %5131 = vmatprep.mubr.bf16.mxu0 %v7102_v12  ;;  %v3691_v44 = vunpack.c.l.bf16 %v7102_v12  ;;  %v3695_v4 = vunpack.c.h.bf16 %v7102_v12  ;;  %v12106_v12 = vld [vmem:[#allocation31_spill] sm:$0xff] }
 0x679   : > { %v7106_v3 = vpop.eup %7105  ;;  %5132 = vmatmul.mubr.bf16.gmra.mrb[224].mxu0 %v7100_v27  ;;  %v3692_v33 = vunpack.c.l.bf16 %v7104_v34  ;;  %v3696_v25 = vunpack.c.h.bf16 %v7104_v34 }
 0x67a   : > { %5420 = vmatprep.mubr.bf16.mxu1 %v7106_v3  ;;  %3832 = vadd.xlane.f32.xlu1 %v12101_v36  ;;  %v3994_v14 = vadd.f32 %v3691_v44, %v3690_v39  ;;  %v3999_v49 = vadd.f32 %v3695_v4, %v3694_v48  ;;  %v3693_v2 = vunpack.c.l.bf16 %v7106_v3  ;;  %v3697_v22 = vunpack.c.h.bf16 %v7106_v3  ;;  %v10366_v62 = vpop.eup %7107  ;;  %v12108_v4 = vld [vmem:[#allocation254_spill] sm:$0xff]  ;;  %v12109_v36 = vld [vmem:[#allocation256_spill] sm:$0xff] }
 0x67b   : > { %5421 = vmatmul.mubr.bf16.gmra.mrb[224].mxu1 %v7104_v34  ;;  %12102 = vst [vmem:[#allocation67_spill] sm:$0xff] %v10366_v62  ;;  %v10371_v27 = vpop.eup %7109  ;;  %v3445_v39 = vmul.f32 %v12107_v16, %v3381_v24  ;;  %v2806_v3 = vsub.f32 %v12108_v4, %v2540_v55 }
 0x67c   : > { %v3995_v53 = vadd.f32 %v3994_v14, %v3692_v33  ;;  %v4000_v38 = vadd.f32 %v3999_v49, %v3696_v25  ;;  %12105 = vst [vmem:[#allocation68_spill] sm:$0xff] %v10371_v27  ;;  %v2807_v33 = vsub.f32 %v12109_v36, %v2540_v55  ;;  %v12110_v14 = vld [vmem:[#allocation255_spill] sm:$0xff] }
 0x67d   : > { %v2808_v25 = vsub.f32 %v12110_v14, %v2540_v55 }
 0x67e   : > { %v10362_v20 = vadd.f32 %v3995_v53, %v3693_v2  ;;  %v10364_v17 = vadd.f32 %v4000_v38, %v3697_v22  ;;  %v12112_v53 = vld [vmem:[#allocation249_spill] sm:$0xff]  ;;  %v12113_v38 = vld [vmem:[#allocation252_spill] sm:$0xff] }
 0x683   : > { %4534 = vperm.xlu0 %6739, %v10366_v62  }
 0x687   : > { %2569 = vperm.xlu0 %6739, %v12103_v40  }
 0x688   : > { %v3818_v63 = vpop.xlane.xlu0 %3817 }
 0x689   : > { %v4086_v47 = vadd.f32 %v3818_v63, %v3446_v42  ;;  %v12115_v63 = vld [vmem:[#allocation257_spill] sm:$0xff] }
 0x68b   : > { %4151 = vst.msk [vmem:[#allocation3 + $0x60] sm:$0xff] %vm382_vm2, %v4086_v47  ;;  %4519 = vperm.xlu1 %6740, %v10371_v27   ;;  %v2809_v47 = vsub.f32 %v12115_v63, %v2540_v55 }
 0x68f   : > { %2554 = vperm.xlu1 %6740, %v12106_v12  }
 0x695   : > { %v3813_v48 = vpop.xlane.xlu1 %3812 }
 0x696   : > { %v4085_v34 = vadd.f32 %v3813_v48, %v3445_v39  ;;  %v4245_v48 = vld [vmem:[#allocation4 + $0x150] sm:$0xff] }
 0x698   : > { %4150 = vst.msk [vmem:[#allocation3 + $0x58] sm:$0xff] %vm382_vm2, %v4085_v34 }
 0x699   : > { %v10378_v44 = vpop.permute.xlu1 %4499 }
 0x69d   : > { %v2535_v49 = vpop.permute.xlu1 %2534 }
 0x69e   : > { %v2802_v2 = vsub.f32 %v12111_v13, %v2535_v49  ;;  %v2803_v22 = vsub.f32 %v12112_v53, %v2535_v49  ;;  %v2804_v58 = vsub.f32 %v12113_v38, %v2535_v49  ;;  %v2805_v42 = vsub.f32 %v12114_v29, %v2535_v49 }
 0x69f   : > { %v4629_v53 = vmul.f32 %v10294_v18, %v4245_v48  ;;  %v12117_v18 = vld [vmem:[#allocation176_spill] sm:$0xff] }
 0x6a0   : > { %v2958_v24 = vpack.c.bf16 %v2806_v3, %v2802_v2  ;;  %v2959_v16 = vpack.c.bf16 %v2807_v33, %v2803_v22  ;;  %v2960_v39 = vpack.c.bf16 %v2808_v25, %v2804_v58  ;;  %v2961_v34 = vpack.c.bf16 %v2809_v47, %v2805_v42  ;;  %v12116_v58 = vld [vmem:[#allocation32_spill] sm:$0xff] }
 0x6a1   : > { %v5109_v4 = vpop.f32.mrb[212].mxu0  ;;  %v4630_v33 = vmul.f32 %v10260_v51, %v4246_v54  ;;  %v2145_v42 = vsub.f32 %v12117_v18, %v12085_v0  ;;  %v12118_v51 = vld [vmem:[#allocation22_spill] sm:$0xff] }
 0x6a2   : > { %v3287_v36 = vmul.bf16 1069105081, %v2958_v24  ;;  %v3290_v62 = vmul.bf16 1069105081, %v2959_v16  ;;  %v3293_v14 = vmul.bf16 1069105081, %v2960_v39  ;;  %v2142_v54 = vsub.f32 %v12118_v51, %v12088_v23 }
 0x6a3   : > { %v3296_v37 = vmul.bf16 1069105081, %v2961_v34  ;;  %v5398_v13 = vpop.f32.mrb[212].mxu1  ;;  %v5111_v27 = vpop.f32.mrb[213].mxu0  ;;  %v3383_v51 = vld [vmem:[#allocation3 + $0x68] sm:$0xff] }
 0x6a4   : > { %7111 = vpow.bf16 %v3287_v36  ;;  %v5399_v38 = vadd.f32 %v5398_v13, %v5109_v4  ;;  %v5400_v49 = vpop.f32.mrb[213].mxu1  ;;  %v5112_v29 = vpop.f32.mrb[214].mxu0  ;;  %v12119_v4 = vld [vmem:[#allocation30_spill] sm:$0xff] }
 0x6a5   : > { %7113 = vpow.bf16 %v3290_v62  ;;  %v5401_v55 = vpop.f32.mrb[214].mxu1  ;;  %v5114_v3 = vpop.f32.mrb[215].mxu0  ;;  %v2264_v62 = vmul.f32 1.442695, %v2145_v42 }
 0x6a6   : > { %7115 = vpow.bf16 %v3293_v14  ;;  %v5527_v25 = vadd.f32 %v5399_v38, %v4629_v53  ;;  %v5402_v2 = vadd.f32 %v5401_v55, %v5112_v29  ;;  %v5403_v22 = vpop.f32.mrb[215].mxu1  ;;  %3847 = vadd.xlane.f32.xlu0 %v12116_v58  ;;  %v2258_v53 = vmul.f32 1.442695, %v2142_v54  ;;  %v10398_v55 = vpop.permute.xlu0 %4514  ;;  %v12122_v58 = vld [vmem:[#allocation174_spill] sm:$0xff]  ;;  %v12126_v54 = vld [vmem:[#allocation159_spill] sm:$0xff] }
 0x6a7   : > { %7117 = vpow.bf16 %v3296_v37  ;;  %v3384_v22 = vld [vmem:[#allocation3 + $0x70] sm:$0xff] }
 0x6a8   : > { %5592 = vst.msk [vmem:[#allocation4 + $0x150] sm:$0xff] %vm511_vm3, %v5527_v25  ;;  %v5528_v27 = vadd.f32 %v5402_v2, %v4630_v33  ;;  %7119 = vpow2.f32 %v2264_v62 }
 0x6a9   : > { %7121 = vpow2.f32 %v2258_v53  ;;  %v12130_v53 = vld [vmem:[#allocation259_spill] sm:$0xff] }
 0x6aa   : > { %5593 = vst.msk [vmem:[#allocation4 + $0x158] sm:$0xff] %vm511_vm3, %v5528_v27  ;;  %v2550_v2 = vpop.permute.xlu0 %2549  ;;  %v12123_v27 = vld [vmem:[#allocation16_spill] sm:$0xff] }
 0x6ab   : > { %v3448_v18 = vmul.f32 %v12123_v27, %v3384_v22  ;;  %v12133_v27 = vld [vmem:[#allocation263_spill] sm:$0xff] }
 0x6af   : > { %v7112_v63 = vpop.eup %7111 }
 0x6b0   : > { %v7114_v47 = vpop.eup %7113  ;;  %v3698_v24 = vunpack.c.l.bf16 %v7112_v63  ;;  %v3702_v16 = vunpack.c.h.bf16 %v7112_v63 }
 0x6b1   : > { %v7116_v39 = vpop.eup %7115  ;;  %5139 = vmatprep.mubr.bf16.mxu0 %v7114_v47  ;;  %v3699_v37 = vunpack.c.l.bf16 %v7114_v47  ;;  %v3703_v48 = vunpack.c.h.bf16 %v7114_v47  ;;  %v12125_v47 = vld [vmem:[#allocation170_spill] sm:$0xff] }
 0x6b2   : > { %v7118_v34 = vpop.eup %7117  ;;  %5140 = vmatmul.mubr.bf16.gmra.mrb[228].mxu0 %v7112_v63  ;;  %v3700_v0 = vunpack.c.l.bf16 %v7116_v39  ;;  %v3704_v14 = vunpack.c.h.bf16 %v7116_v39 }
 0x6b3   : > { %5428 = vmatprep.mubr.bf16.mxu1 %v7118_v34  ;;  %3842 = vadd.xlane.f32.xlu1 %v12119_v4  ;;  %v4004_v36 = vadd.f32 %v3699_v37, %v3698_v24  ;;  %v4009_v13 = vadd.f32 %v3703_v48, %v3702_v16  ;;  %v3701_v38 = vunpack.c.l.bf16 %v7118_v34  ;;  %v3705_v49 = vunpack.c.h.bf16 %v7118_v34  ;;  %v10404_v25 = vpop.eup %7119  ;;  %v12127_v48 = vld [vmem:[#allocation264_spill] sm:$0xff]  ;;  %v12128_v4 = vld [vmem:[#allocation266_spill] sm:$0xff] }
 0x6b4   : > { %5429 = vmatmul.mubr.bf16.gmra.mrb[228].mxu1 %v7116_v39  ;;  %12121 = vst [vmem:[#allocation72_spill] sm:$0xff] %v10404_v25  ;;  %v10409_v63 = vpop.eup %7121  ;;  %v3447_v24 = vmul.f32 %v12126_v54, %v3383_v51  ;;  %v2814_v34 = vsub.f32 %v12127_v48, %v2550_v2 }
 0x6b5   : > { %v4005_v23 = vadd.f32 %v4004_v36, %v3700_v0  ;;  %v4010_v29 = vadd.f32 %v4009_v13, %v3704_v14  ;;  %12124 = vst [vmem:[#allocation189_spill] sm:$0xff] %v10409_v63  ;;  %v2815_v0 = vsub.f32 %v12128_v4, %v2550_v2  ;;  %v12129_v36 = vld [vmem:[#allocation265_spill] sm:$0xff] }
 0x6b6   : > { %v2816_v14 = vsub.f32 %v12129_v36, %v2550_v2 }
 0x6b7   : > { %v10400_v3 = vadd.f32 %v4005_v23, %v3701_v38  ;;  %v10402_v33 = vadd.f32 %v4010_v29, %v3705_v49  ;;  %v12131_v23 = vld [vmem:[#allocation262_spill] sm:$0xff] }
 0x6b8   : > { %v12132_v29 = vld [vmem:[#allocation258_spill] sm:$0xff] }
 0x6b9   : > { %12120 = vst [vmem:[#allocation69_spill] sm:$0xff] %v10402_v33 }
 0x6bc   : > { %4544 = vperm.xlu0 %6739, %v10404_v25  }
 0x6c0   : > { %2579 = vperm.xlu0 %6739, %v12122_v58  }
 0x6c1   : > { %v3828_v42 = vpop.xlane.xlu0 %3827 }
 0x6c2   : > { %v4088_v62 = vadd.f32 %v3828_v42, %v3448_v18  ;;  %v12134_v42 = vld [vmem:[#allocation267_spill] sm:$0xff] }
 0x6c4   : > { %4153 = vst.msk [vmem:[#allocation3 + $0x70] sm:$0xff] %vm382_vm2, %v4088_v62  ;;  %4529 = vperm.xlu1 %6740, %v10409_v63   ;;  %v2817_v62 = vsub.f32 %v12134_v42, %v2550_v2  ;;  %v4248_v63 = vld [vmem:[#allocation4 + $0x168] sm:$0xff] }
 0x6c8   : > { %2564 = vperm.xlu1 %6740, %v12125_v47  }
 0x6ce   : > { %v3823_v16 = vpop.xlane.xlu1 %3822 }
 0x6cf   : > { %v4087_v39 = vadd.f32 %v3823_v16, %v3447_v24  ;;  %v4247_v16 = vld [vmem:[#allocation4 + $0x160] sm:$0xff] }
 0x6d1   : > { %4152 = vst.msk [vmem:[#allocation3 + $0x68] sm:$0xff] %vm382_vm2, %v4087_v39 }
 0x6d2   : > { %v10416_v37 = vpop.permute.xlu1 %4509 }
 0x6d6   : > { %v2545_v13 = vpop.permute.xlu1 %2544 }
 0x6d7   : > { %v2810_v38 = vsub.f32 %v12130_v53, %v2545_v13  ;;  %v2811_v49 = vsub.f32 %v12131_v23, %v2545_v13  ;;  %v2812_v22 = vsub.f32 %v12132_v29, %v2545_v13  ;;  %v2813_v18 = vsub.f32 %v12133_v27, %v2545_v13 }
 0x6d8   : > { %v4631_v23 = vmul.f32 %v10340_v15, %v4247_v16  ;;  %v12136_v15 = vld [vmem:[#allocation181_spill] sm:$0xff] }
 0x6d9   : > { %v2962_v51 = vpack.c.bf16 %v2814_v34, %v2810_v38  ;;  %v2963_v54 = vpack.c.bf16 %v2815_v0, %v2811_v49  ;;  %v2964_v24 = vpack.c.bf16 %v2816_v14, %v2812_v22  ;;  %v2965_v39 = vpack.c.bf16 %v2817_v62, %v2813_v18  ;;  %v12135_v22 = vld [vmem:[#allocation42_spill] sm:$0xff] }
 0x6da   : > { %v5117_v48 = vpop.f32.mrb[216].mxu0  ;;  %v4632_v0 = vmul.f32 %v10322_v46, %v4248_v63  ;;  %v2147_v18 = vsub.f32 %v12136_v15, %v12103_v40  ;;  %v12137_v46 = vld [vmem:[#allocation24_spill] sm:$0xff] }
 0x6db   : > { %v3299_v4 = vmul.bf16 1069105081, %v2962_v51  ;;  %v3302_v25 = vmul.bf16 1069105081, %v2963_v54  ;;  %v3305_v36 = vmul.bf16 1069105081, %v2964_v24  ;;  %v2144_v63 = vsub.f32 %v12137_v46, %v12106_v12 }
 0x6dc   : > { %v3308_v41 = vmul.bf16 1069105081, %v2965_v39  ;;  %v5406_v53 = vpop.f32.mrb[216].mxu1  ;;  %v5119_v35 = vpop.f32.mrb[217].mxu0  ;;  %v3385_v46 = vld [vmem:[#allocation3 + $0x78] sm:$0xff] }
 0x6dd   : > { %7123 = vpow.bf16 %v3299_v4  ;;  %v5407_v29 = vadd.f32 %v5406_v53, %v5117_v48  ;;  %v5408_v13 = vpop.f32.mrb[217].mxu1  ;;  %v5120_v27 = vpop.f32.mrb[218].mxu0  ;;  %v12138_v48 = vld [vmem:[#allocation171_spill] sm:$0xff] }
 0x6de   : > { %7125 = vpow.bf16 %v3302_v25  ;;  %v5409_v2 = vpop.f32.mrb[218].mxu1  ;;  %v5122_v34 = vpop.f32.mrb[219].mxu0  ;;  %v2268_v25 = vmul.f32 1.442695, %v2147_v18 }
 0x6df   : > { %7127 = vpow.bf16 %v3305_v36  ;;  %v5529_v14 = vadd.f32 %v5407_v29, %v4631_v23  ;;  %v5410_v38 = vadd.f32 %v5409_v2, %v5120_v27  ;;  %v5411_v49 = vpop.f32.mrb[219].mxu1  ;;  %3857 = vadd.xlane.f32.xlu0 %v12135_v22  ;;  %v2262_v23 = vmul.f32 1.442695, %v2144_v63  ;;  %v10436_v2 = vpop.permute.xlu0 %4524  ;;  %v12141_v22 = vld [vmem:[#allocation56_spill] sm:$0xff]  ;;  %v12145_v63 = vld [vmem:[#allocation13_spill] sm:$0xff] }
 0x6e0   : > { %7129 = vpow.bf16 %v3308_v41  ;;  %v3386_v49 = vld [vmem:[#allocation3 + $0x80] sm:$0xff] }
 0x6e1   : > { %5594 = vst.msk [vmem:[#allocation4 + $0x160] sm:$0xff] %vm511_vm3, %v5529_v14  ;;  %v5530_v35 = vadd.f32 %v5410_v38, %v4632_v0  ;;  %7131 = vpow2.f32 %v2268_v25 }
 0x6e2   : > { %7133 = vpow2.f32 %v2262_v23  ;;  %v12149_v23 = vld [vmem:[#allocation269_spill] sm:$0xff] }
 0x6e3   : > { %5595 = vst.msk [vmem:[#allocation4 + $0x168] sm:$0xff] %vm511_vm3, %v5530_v35  ;;  %v2560_v38 = vpop.permute.xlu0 %2559  ;;  %v12142_v35 = vld [vmem:[#allocation20_spill] sm:$0xff] }
 0x6e4   : > { %v3450_v15 = vmul.f32 %v12142_v35, %v3386_v49  ;;  %v12152_v35 = vld [vmem:[#allocation271_spill] sm:$0xff] }
 0x6e8   : > { %v7124_v42 = vpop.eup %7123 }
 0x6e9   : > { %v7126_v62 = vpop.eup %7125  ;;  %v3706_v51 = vunpack.c.l.bf16 %v7124_v42  ;;  %v3710_v54 = vunpack.c.h.bf16 %v7124_v42 }
 0x6ea   : > { %v7128_v24 = vpop.eup %7127  ;;  %5147 = vmatprep.mubr.bf16.mxu0 %v7126_v62  ;;  %v3707_v41 = vunpack.c.l.bf16 %v7126_v62  ;;  %v3711_v16 = vunpack.c.h.bf16 %v7126_v62  ;;  %v12144_v62 = vld [vmem:[#allocation36_spill] sm:$0xff] }
 0x6eb   : > { %v7130_v39 = vpop.eup %7129  ;;  %5148 = vmatmul.mubr.bf16.gmra.mrb[232].mxu0 %v7124_v42  ;;  %v3708_v40 = vunpack.c.l.bf16 %v7128_v24  ;;  %v3712_v36 = vunpack.c.h.bf16 %v7128_v24 }
 0x6ec   : > { %5436 = vmatprep.mubr.bf16.mxu1 %v7130_v39  ;;  %3852 = vadd.xlane.f32.xlu1 %v12138_v48  ;;  %v4014_v4 = vadd.f32 %v3707_v41, %v3706_v51  ;;  %v4019_v53 = vadd.f32 %v3711_v16, %v3710_v54  ;;  %v3709_v29 = vunpack.c.l.bf16 %v7130_v39  ;;  %v3713_v13 = vunpack.c.h.bf16 %v7130_v39  ;;  %v10442_v14 = vpop.eup %7131  ;;  %v12146_v16 = vld [vmem:[#allocation272_spill] sm:$0xff]  ;;  %v12147_v48 = vld [vmem:[#allocation274_spill] sm:$0xff] }
 0x6ed   : > { %5437 = vmatmul.mubr.bf16.gmra.mrb[232].mxu1 %v7128_v24  ;;  %12140 = vst [vmem:[#allocation188_spill] sm:$0xff] %v10442_v14  ;;  %v10447_v42 = vpop.eup %7133  ;;  %v3449_v51 = vmul.f32 %v12145_v63, %v3385_v46  ;;  %v2822_v39 = vsub.f32 %v12146_v16, %v2560_v38 }
 0x6ee   : > { %v4015_v12 = vadd.f32 %v4014_v4, %v3708_v40  ;;  %v4020_v27 = vadd.f32 %v4019_v53, %v3712_v36  ;;  %12143 = vst [vmem:[#allocation207_spill] sm:$0xff] %v10447_v42  ;;  %v2823_v40 = vsub.f32 %v12147_v48, %v2560_v38  ;;  %v12148_v4 = vld [vmem:[#allocation273_spill] sm:$0xff] }
 0x6ef   : > { %v2824_v36 = vsub.f32 %v12148_v4, %v2560_v38 }
 0x6f0   : > { %v10438_v34 = vadd.f32 %v4015_v12, %v3709_v29  ;;  %v10440_v0 = vadd.f32 %v4020_v27, %v3713_v13  ;;  %v12150_v12 = vld [vmem:[#allocation270_spill] sm:$0xff]  ;;  %v12151_v27 = vld [vmem:[#allocation268_spill] sm:$0xff] }
 0x6f2   : > { %12139 = vst [vmem:[#allocation201_spill] sm:$0xff] %v10440_v0  ;;  %v4250_v0 = vld [vmem:[#allocation4 + $0x178] sm:$0xff] }
 0x6f5   : > { %4554 = vperm.xlu0 %6739, %v10442_v14   ;;  %v4249_v14 = vld [vmem:[#allocation4 + $0x170] sm:$0xff] }
 0x6f9   : > { %2589 = vperm.xlu0 %6739, %v12141_v22  }
 0x6fa   : > { %v3838_v18 = vpop.xlane.xlu0 %3837 }
 0x6fb   : > { %v4090_v25 = vadd.f32 %v3838_v18, %v3450_v15  ;;  %v12153_v18 = vld [vmem:[#allocation275_spill] sm:$0xff] }
 0x6fd   : > { %4155 = vst.msk [vmem:[#allocation3 + $0x80] sm:$0xff] %vm382_vm2, %v4090_v25  ;;  %4539 = vperm.xlu1 %6740, %v10447_v42   ;;  %v2825_v25 = vsub.f32 %v12153_v18, %v2560_v38  ;;  %v12155_v18 = vld [vmem:[#allocation175_spill] sm:$0xff] }
 0x701   : > { %2574 = vperm.xlu1 %6740, %v12144_v62  }
 0x707   : > { %v3833_v54 = vpop.xlane.xlu1 %3832 }
 0x708   : > { %v4089_v24 = vadd.f32 %v3833_v54, %v3449_v51 }
 0x70a   : > { %4154 = vst.msk [vmem:[#allocation3 + $0x78] sm:$0xff] %vm382_vm2, %v4089_v24 }
 0x70b   : > { %v10454_v41 = vpop.permute.xlu1 %4519 }
 0x70f   : > { %v2555_v53 = vpop.permute.xlu1 %2554 }
 0x710   : > { %v2818_v29 = vsub.f32 %v12149_v23, %v2555_v53  ;;  %v2819_v13 = vsub.f32 %v12150_v12, %v2555_v53  ;;  %v2820_v49 = vsub.f32 %v12151_v27, %v2555_v53  ;;  %v2821_v15 = vsub.f32 %v12152_v35, %v2555_v53 }
 0x711   : > { %v4633_v53 = vmul.f32 %v10378_v44, %v4249_v14 }
 0x712   : > { %v2966_v46 = vpack.c.bf16 %v2822_v39, %v2818_v29  ;;  %v2967_v63 = vpack.c.bf16 %v2823_v40, %v2819_v13  ;;  %v2968_v51 = vpack.c.bf16 %v2824_v36, %v2820_v49  ;;  %v2969_v54 = vpack.c.bf16 %v2825_v25, %v2821_v15  ;;  %v12154_v36 = vld [vmem:[#allocation50_spill] sm:$0xff] }
 0x713   : > { %v5125_v42 = vpop.f32.mrb[220].mxu0  ;;  %v4634_v13 = vmul.f32 %v10360_v6, %v4250_v0  ;;  %v2149_v25 = vsub.f32 %v12155_v18, %v12122_v58  ;;  %v12157_v58 = vld [vmem:[#allocation35_spill] sm:$0xff]  ;;  %v12161_v18 = vld [vmem:[#allocation66_spill] sm:$0xff] }
 0x714   : > { %v3311_v24 = vmul.bf16 1069105081, %v2966_v46  ;;  %v3314_v16 = vmul.bf16 1069105081, %v2967_v63  ;;  %v3317_v48 = vmul.bf16 1069105081, %v2968_v51 }
 0x715   : > { %v3320_v4 = vmul.bf16 1069105081, %v2969_v54  ;;  %v5127_v23 = vpop.f32.mrb[221].mxu0  ;;  %v5414_v12 = vpop.f32.mrb[220].mxu1  ;;  %v2272_v44 = vmul.f32 1.442695, %v2149_v25 }
 0x716   : > { %7135 = vpow.bf16 %v3311_v24  ;;  %v5128_v27 = vpop.f32.mrb[222].mxu0  ;;  %v5415_v38 = vadd.f32 %v5414_v12, %v5125_v42  ;;  %v5416_v39 = vpop.f32.mrb[221].mxu1  ;;  %v12156_v63 = vld [vmem:[#allocation29_spill] sm:$0xff] }
 0x717   : > { %7137 = vpow.bf16 %v3314_v16  ;;  %v5130_v40 = vpop.f32.mrb[223].mxu0  ;;  %v5417_v29 = vpop.f32.mrb[222].mxu1  ;;  %v2146_v51 = vsub.f32 %v12156_v63, %v12125_v47  ;;  %v12162_v25 = vld [vmem:[#allocation33_spill] sm:$0xff]  ;;  %v12164_v63 = vld [vmem:[#allocation44_spill] sm:$0xff] }
 0x718   : > { %7139 = vpow.bf16 %v3317_v48  ;;  %3867 = vadd.xlane.f32.xlu0 %v12154_v36  ;;  %v5531_v49 = vadd.f32 %v5415_v38, %v4633_v53  ;;  %v5418_v35 = vadd.f32 %v5417_v29, %v5128_v27  ;;  %v5419_v15 = vpop.f32.mrb[223].mxu1  ;;  %v10474_v36 = vpop.permute.xlu0 %4534 }
 0x719   : > { %7141 = vpow.bf16 %v3320_v4  ;;  %v2266_v53 = vmul.f32 1.442695, %v2146_v51  ;;  %v3388_v15 = vld [vmem:[#allocation3 + $0x90] sm:$0xff]  ;;  %v3387_v51 = vld [vmem:[#allocation3 + $0x88] sm:$0xff] }
 0x71a   : > { %5596 = vst.msk [vmem:[#allocation4 + $0x170] sm:$0xff] %vm511_vm3, %v5531_v49  ;;  %v5532_v46 = vadd.f32 %v5418_v35, %v4634_v13  ;;  %7143 = vpow2.f32 %v2272_v44 }
 0x71b   : > { %7145 = vpow2.f32 %v2266_v53 }
 0x71c   : > { %5597 = vst.msk [vmem:[#allocation4 + $0x178] sm:$0xff] %vm511_vm3, %v5532_v46  ;;  %v2570_v35 = vpop.permute.xlu0 %2569  ;;  %v3452_v46 = vmul.f32 %v12162_v25, %v3388_v15  ;;  %v12171_v15 = vld [vmem:[#allocation277_spill] sm:$0xff] }
 0x721   : > { %v7136_v14 = vpop.eup %7135 }
 0x722   : > { %v7138_v42 = vpop.eup %7137  ;;  %v3714_v54 = vunpack.c.l.bf16 %v7136_v14  ;;  %v3718_v24 = vunpack.c.h.bf16 %v7136_v14 }
 0x723   : > { %v7140_v6 = vpop.eup %7139  ;;  %5155 = vmatprep.mubr.bf16.mxu0 %v7138_v42  ;;  %v3715_v0 = vunpack.c.l.bf16 %v7138_v42  ;;  %v3719_v16 = vunpack.c.h.bf16 %v7138_v42 }
 0x724   : > { %v7142_v48 = vpop.eup %7141  ;;  %5156 = vmatmul.mubr.bf16.gmra.mrb[236].mxu0 %v7136_v14  ;;  %v3716_v4 = vunpack.c.l.bf16 %v7140_v6  ;;  %v3720_v12 = vunpack.c.h.bf16 %v7140_v6 }
 0x725   : > { %5444 = vmatprep.mubr.bf16.mxu1 %v7142_v48  ;;  %3862 = vadd.xlane.f32.xlu1 %v12157_v58  ;;  %v4024_v23 = vadd.f32 %v3715_v0, %v3714_v54  ;;  %v4029_v27 = vadd.f32 %v3719_v16, %v3718_v24  ;;  %v3717_v38 = vunpack.c.l.bf16 %v7142_v48  ;;  %v3721_v39 = vunpack.c.h.bf16 %v7142_v48  ;;  %v10480_v49 = vpop.eup %7143  ;;  %v12165_v54 = vld [vmem:[#allocation18_spill] sm:$0xff] }
 0x726   : > { %5445 = vmatmul.mubr.bf16.gmra.mrb[236].mxu1 %v7140_v6  ;;  %12160 = vst [vmem:[#allocation211_spill] sm:$0xff] %v10480_v49  ;;  %v10485_v42 = vpop.eup %7145  ;;  %v3451_v24 = vmul.f32 %v12165_v54, %v3387_v51  ;;  %v12166_v48 = vld [vmem:[#allocation282_spill] sm:$0xff] }
 0x727   : > { %v4025_v47 = vadd.f32 %v4024_v23, %v3716_v4  ;;  %v4030_v40 = vadd.f32 %v4029_v27, %v3720_v12  ;;  %12163 = vst [vmem:[#allocation209_spill] sm:$0xff] %v10485_v42  ;;  %v2830_v58 = vsub.f32 %v12166_v48, %v2570_v35  ;;  %v12167_v4 = vld [vmem:[#allocation284_spill] sm:$0xff] }
 0x728   : > { %v2831_v23 = vsub.f32 %v12167_v4, %v2570_v35  ;;  %v12168_v12 = vld [vmem:[#allocation280_spill] sm:$0xff] }
 0x729   : > { %v10476_v29 = vadd.f32 %v4025_v47, %v3717_v38  ;;  %v10478_v13 = vadd.f32 %v4030_v40, %v3721_v39  ;;  %v2832_v27 = vsub.f32 %v12168_v12, %v2570_v35  ;;  %v12169_v38 = vld [vmem:[#allocation276_spill] sm:$0xff]  ;;  %v12170_v39 = vld [vmem:[#allocation279_spill] sm:$0xff] }
 0x72b   : > { %12158 = vst [vmem:[#allocation205_spill] sm:$0xff] %v10476_v29  ;;  %12159 = vst [vmem:[#allocation311_spill] sm:$0xff] %v10478_v13  ;;  %v4252_v13 = vld [vmem:[#allocation4 + $0x188] sm:$0xff] }
 0x72e   : > { %4564 = vperm.xlu0 %6739, %v10480_v49  }
 0x732   : > { %2599 = vperm.xlu0 %6739, %v12161_v18  }
 0x733   : > { %v3848_v44 = vpop.xlane.xlu0 %3847 }
 0x734   : > { %v4092_v14 = vadd.f32 %v3848_v44, %v3452_v46  ;;  %v12172_v46 = vld [vmem:[#allocation278_spill] sm:$0xff] }
 0x736   : > { %4157 = vst.msk [vmem:[#allocation3 + $0x90] sm:$0xff] %vm382_vm2, %v4092_v14  ;;  %4549 = vperm.xlu1 %6740, %v10485_v42   ;;  %v12173_v14 = vld [vmem:[#allocation283_spill] sm:$0xff] }
 0x737   : > { %v2833_v51 = vsub.f32 %v12173_v14, %v2570_v35 }
 0x73a   : > { %2584 = vperm.xlu1 %6740, %v12164_v63  }
 0x740   : > { %v3843_v6 = vpop.xlane.xlu1 %3842 }
 0x741   : > { %v4091_v0 = vadd.f32 %v3843_v6, %v3451_v24 }
 0x743   : > { %4156 = vst.msk [vmem:[#allocation3 + $0x88] sm:$0xff] %vm382_vm2, %v4091_v0  ;;  %v4251_v0 = vld [vmem:[#allocation4 + $0x180] sm:$0xff] }
 0x744   : > { %v10492_v16 = vpop.permute.xlu1 %4529 }
 0x748   : > { %v2565_v53 = vpop.permute.xlu1 %2564 }
 0x749   : > { %v2826_v47 = vsub.f32 %v12169_v38, %v2565_v53  ;;  %v2827_v40 = vsub.f32 %v12170_v39, %v2565_v53  ;;  %v2828_v25 = vsub.f32 %v12171_v15, %v2565_v53  ;;  %v2829_v44 = vsub.f32 %v12172_v46, %v2565_v53 }
 0x74a   : > { %v4635_v39 = vmul.f32 %v10416_v37, %v4251_v0  ;;  %v12175_v37 = vld [vmem:[#allocation53_spill] sm:$0xff] }
 0x74b   : > { %v2970_v54 = vpack.c.bf16 %v2830_v58, %v2826_v47  ;;  %v2971_v24 = vpack.c.bf16 %v2831_v23, %v2827_v40  ;;  %v2972_v6 = vpack.c.bf16 %v2832_v27, %v2828_v25  ;;  %v2973_v48 = vpack.c.bf16 %v2833_v51, %v2829_v44  ;;  %v12174_v25 = vld [vmem:[#allocation52_spill] sm:$0xff] }
 0x74c   : > { %v5133_v49 = vpop.f32.mrb[224].mxu0  ;;  %v4636_v23 = vmul.f32 %v10398_v55, %v4252_v13  ;;  %v12176_v55 = vld [vmem:[#allocation41_spill] sm:$0xff] }
 0x74d   : > { %v3323_v4 = vmul.bf16 1069105081, %v2970_v54  ;;  %v3326_v42 = vmul.bf16 1069105081, %v2971_v24  ;;  %v3329_v12 = vmul.bf16 1069105081, %v2972_v6  ;;  %v2148_v13 = vsub.f32 %v12176_v55, %v12144_v62 }
 0x74e   : > { %v3332_v29 = vmul.bf16 1069105081, %v2973_v48  ;;  %v5422_v38 = vpop.f32.mrb[224].mxu1  ;;  %v5135_v33 = vpop.f32.mrb[225].mxu0  ;;  %v12177_v48 = vld [vmem:[#allocation43_spill] sm:$0xff]  ;;  %v12183_v55 = vld [vmem:[#allocation26_spill] sm:$0xff] }
 0x74f   : > { %7147 = vpow.bf16 %v3323_v4  ;;  %v5423_v15 = vadd.f32 %v5422_v38, %v5133_v49  ;;  %v5424_v53 = vpop.f32.mrb[225].mxu1  ;;  %v5136_v46 = vpop.f32.mrb[226].mxu0  ;;  %v2151_v49 = vsub.f32 %v12175_v37, %v12141_v22 }
 0x750   : > { %7149 = vpow.bf16 %v3326_v42  ;;  %v5425_v35 = vpop.f32.mrb[226].mxu1  ;;  %v5138_v58 = vpop.f32.mrb[227].mxu0 }
 0x751   : > { %7151 = vpow.bf16 %v3329_v12  ;;  %v5533_v27 = vadd.f32 %v5423_v15, %v4635_v39  ;;  %v5426_v47 = vadd.f32 %v5425_v35, %v5136_v46  ;;  %v5427_v40 = vpop.f32.mrb[227].mxu1  ;;  %3877 = vadd.xlane.f32.xlu0 %v12174_v25  ;;  %v2276_v42 = vmul.f32 1.442695, %v2151_v49  ;;  %v10512_v35 = vpop.permute.xlu0 %4544  ;;  %v12180_v25 = vld [vmem:[#allocation177_spill] sm:$0xff] }
 0x752   : > { %7153 = vpow.bf16 %v3332_v29  ;;  %v2270_v39 = vmul.f32 1.442695, %v2148_v13  ;;  %v3390_v40 = vld [vmem:[#allocation3 + $0xa0] sm:$0xff] }
 0x753   : > { %5598 = vst.msk [vmem:[#allocation4 + $0x180] sm:$0xff] %vm511_vm3, %v5533_v27  ;;  %v5534_v33 = vadd.f32 %v5426_v47, %v4636_v23  ;;  %7155 = vpow2.f32 %v2276_v42 }
 0x754   : > { %7157 = vpow2.f32 %v2270_v39 }
 0x755   : > { %5599 = vst.msk [vmem:[#allocation4 + $0x188] sm:$0xff] %vm511_vm3, %v5534_v33  ;;  %v2580_v47 = vpop.permute.xlu0 %2579  ;;  %v3454_v33 = vmul.f32 %v12180_v25, %v3390_v40  ;;  %v12190_v40 = vld [vmem:[#allocation287_spill] sm:$0xff] }
 0x75a   : > { %v7148_v44 = vpop.eup %7147 }
 0x75b   : > { %v7150_v14 = vpop.eup %7149  ;;  %v3722_v51 = vunpack.c.l.bf16 %v7148_v44  ;;  %v3726_v54 = vunpack.c.h.bf16 %v7148_v44 }
 0x75c   : > { %v7152_v24 = vpop.eup %7151  ;;  %5163 = vmatprep.mubr.bf16.mxu0 %v7150_v14  ;;  %v3723_v29 = vunpack.c.l.bf16 %v7150_v14  ;;  %v3727_v6 = vunpack.c.h.bf16 %v7150_v14  ;;  %v3389_v14 = vld [vmem:[#allocation3 + $0x98] sm:$0xff] }
 0x75d   : > { %v7154_v0 = vpop.eup %7153  ;;  %5164 = vmatmul.mubr.bf16.gmra.mrb[240].mxu0 %v7148_v44  ;;  %v3724_v22 = vunpack.c.l.bf16 %v7152_v24  ;;  %v3728_v12 = vunpack.c.h.bf16 %v7152_v24  ;;  %v12182_v44 = vld [vmem:[#allocation58_spill] sm:$0xff]  ;;  %v3453_v13 = vmul.f32 %v12183_v55, %v3389_v14 }
 0x75e   : > { %5452 = vmatprep.mubr.bf16.mxu1 %v7154_v0  ;;  %3872 = vadd.xlane.f32.xlu1 %v12177_v48  ;;  %v4034_v4 = vadd.f32 %v3723_v29, %v3722_v51  ;;  %v4039_v38 = vadd.f32 %v3727_v6, %v3726_v54  ;;  %v3725_v15 = vunpack.c.l.bf16 %v7154_v0  ;;  %v3729_v53 = vunpack.c.h.bf16 %v7154_v0  ;;  %v10518_v27 = vpop.eup %7155  ;;  %v12184_v29 = vld [vmem:[#allocation292_spill] sm:$0xff]  ;;  %v12185_v0 = vld [vmem:[#allocation294_spill] sm:$0xff] }
 0x75f   : > { %5453 = vmatmul.mubr.bf16.gmra.mrb[240].mxu1 %v7152_v24  ;;  %12179 = vst [vmem:[#allocation213_spill] sm:$0xff] %v10518_v27  ;;  %v10522_v42 = vpop.eup %7157  ;;  %v2838_v6 = vsub.f32 %v12184_v29, %v2580_v47  ;;  %v2839_v48 = vsub.f32 %v12185_v0, %v2580_v47 }
 0x760   : > { %v4035_v62 = vadd.f32 %v4034_v4, %v3724_v22  ;;  %v4040_v46 = vadd.f32 %v4039_v38, %v3728_v12  ;;  %12181 = vst [vmem:[#allocation206_spill] sm:$0xff] %v10522_v42  ;;  %v12186_v22 = vld [vmem:[#allocation289_spill] sm:$0xff]  ;;  %v12187_v38 = vld [vmem:[#allocation286_spill] sm:$0xff] }
 0x761   : > { %v2840_v4 = vsub.f32 %v12186_v22, %v2580_v47 }
 0x762   : > { %v10514_v58 = vadd.f32 %v4035_v62, %v3725_v15  ;;  %v10516_v23 = vadd.f32 %v4040_v46, %v3729_v53  ;;  %v12188_v15 = vld [vmem:[#allocation288_spill] sm:$0xff]  ;;  %v12189_v53 = vld [vmem:[#allocation285_spill] sm:$0xff] }
 0x764   : > { %12178 = vst [vmem:[#allocation215_spill] sm:$0xff] %v10516_v23 }
 0x767   : > { %4574 = vperm.xlu0 %6739, %v10518_v27   ;;  %v12192_v27 = vld [vmem:[#allocation195_spill] sm:$0xff] }
 0x76c   : > { %v3858_v37 = vpop.xlane.xlu0 %3857 }
 0x76d   : > { %v4094_v49 = vadd.f32 %v3858_v37, %v3454_v33  ;;  %v12191_v33 = vld [vmem:[#allocation293_spill] sm:$0xff] }
 0x76e   : > { %v2841_v37 = vsub.f32 %v12191_v33, %v2580_v47 }
 0x76f   : > { %4159 = vst.msk [vmem:[#allocation3 + $0xa0] sm:$0xff] %vm382_vm2, %v4094_v49  ;;  %4559 = vperm.xlu1 %6740, %v10522_v42  }
 0x773   : > { %2594 = vperm.xlu1 %6740, %v12182_v44  }
 0x779   : > { %v3853_v51 = vpop.xlane.xlu1 %3852 }
 0x77a   : > { %v4093_v54 = vadd.f32 %v3853_v51, %v3453_v13  ;;  %v4253_v13 = vld [vmem:[#allocation4 + $0x190] sm:$0xff] }
 0x77c   : > { %4158 = vst.msk [vmem:[#allocation3 + $0x98] sm:$0xff] %vm382_vm2, %v4093_v54 }
 0x77d   : > { %v10529_v24 = vpop.permute.xlu1 %4539 }
 0x781   : > { %v2575_v12 = vpop.permute.xlu1 %2574 }
 0x782   : > { %v2834_v39 = vsub.f32 %v12187_v38, %v2575_v12  ;;  %v2835_v62 = vsub.f32 %v12188_v15, %v2575_v12  ;;  %v2836_v46 = vsub.f32 %v12189_v53, %v2575_v12  ;;  %v2837_v25 = vsub.f32 %v12190_v40, %v2575_v12  ;;  %v4254_v38 = vld [vmem:[#allocation4 + $0x198] sm:$0xff] }
 0x783   : > { %v4637_v53 = vmul.f32 %v10454_v41, %v4253_v13 }
 0x784   : > { %v2974_v49 = vpack.c.bf16 %v2838_v6, %v2834_v39  ;;  %v2975_v14 = vpack.c.bf16 %v2839_v48, %v2835_v62  ;;  %v2976_v55 = vpack.c.bf16 %v2840_v4, %v2836_v46  ;;  %v2977_v51 = vpack.c.bf16 %v2841_v37, %v2837_v25  ;;  %v12193_v48 = vld [vmem:[#allocation63_spill] sm:$0xff] }
 0x785   : > { %v5141_v54 = vpop.f32.mrb[228].mxu0  ;;  %v2153_v4 = vsub.f32 %v12193_v48, %v12161_v18  ;;  %v4638_v46 = vmul.f32 %v10436_v2, %v4254_v38  ;;  %v12194_v18 = vld [vmem:[#allocation49_spill] sm:$0xff]  ;;  %v10551_v48 = vpop.permute.xlu0 %4554 }
 0x786   : > { %v3335_v29 = vmul.bf16 1069105081, %v2974_v49  ;;  %v3338_v0 = vmul.bf16 1069105081, %v2975_v14  ;;  %v3341_v22 = vmul.bf16 1069105081, %v2976_v55  ;;  %3887 = vadd.xlane.f32.xlu0 %v12192_v27  ;;  %v2150_v49 = vsub.f32 %v12194_v18, %v12164_v63 }
 0x787   : > { %v3344_v42 = vmul.bf16 1069105081, %v2977_v51  ;;  %v5430_v15 = vpop.f32.mrb[228].mxu1  ;;  %v5143_v23 = vpop.f32.mrb[229].mxu0 }
 0x788   : > { %7159 = vpow.bf16 %v3335_v29  ;;  %v5431_v12 = vadd.f32 %v5430_v15, %v5141_v54  ;;  %v5432_v47 = vpop.f32.mrb[229].mxu1  ;;  %v5144_v6 = vpop.f32.mrb[230].mxu0  ;;  %v2280_v23 = vmul.f32 1.442695, %v2153_v4  ;;  %v2274_v15 = vmul.f32 1.442695, %v2150_v49 }
 0x789   : > { %7161 = vpow.bf16 %v3338_v0  ;;  %v5433_v39 = vpop.f32.mrb[230].mxu1  ;;  %v5146_v62 = vpop.f32.mrb[231].mxu0 }
 0x78a   : > { %7163 = vpow.bf16 %v3341_v22  ;;  %v5535_v27 = vadd.f32 %v5431_v12, %v4637_v53  ;;  %v5434_v40 = vadd.f32 %v5433_v39, %v5144_v6  ;;  %v5435_v25 = vpop.f32.mrb[231].mxu1  ;;  %v2590_v62 = vpop.permute.xlu0 %2589 }
 0x78b   : > { %7165 = vpow.bf16 %v3344_v42  ;;  %v12195_v42 = vld [vmem:[#allocation57_spill] sm:$0xff] }
 0x78c   : > { %5600 = vst.msk [vmem:[#allocation4 + $0x190] sm:$0xff] %vm511_vm3, %v5535_v27  ;;  %v5536_v41 = vadd.f32 %v5434_v40, %v4638_v46  ;;  %7167 = vpow2.f32 %v2280_v23  ;;  %v3392_v46 = vld [vmem:[#allocation3 + $0xb0] sm:$0xff] }
 0x78d   : > { %7169 = vpow2.f32 %v2274_v15  ;;  %v12197_v27 = vld [vmem:[#allocation40_spill] sm:$0xff] }
 0x78e   : > { %5601 = vst.msk [vmem:[#allocation4 + $0x198] sm:$0xff] %vm511_vm3, %v5536_v41  ;;  %v3456_v40 = vmul.f32 %v12197_v27, %v3392_v46  ;;  %v12207_v46 = vld [vmem:[#allocation298_spill] sm:$0xff] }
 0x793   : > { %v7160_v33 = vpop.eup %7159 }
 0x794   : > { %v7162_v37 = vpop.eup %7161  ;;  %v3730_v14 = vunpack.c.l.bf16 %v7160_v33  ;;  %v3734_v55 = vunpack.c.h.bf16 %v7160_v33 }
 0x795   : > { %v7164_v2 = vpop.eup %7163  ;;  %5171 = vmatprep.mubr.bf16.mxu0 %v7162_v37  ;;  %v3731_v13 = vunpack.c.l.bf16 %v7162_v37  ;;  %v3735_v51 = vunpack.c.h.bf16 %v7162_v37  ;;  %v12199_v37 = vld [vmem:[#allocation28_spill] sm:$0xff] }
 0x796   : > { %v7166_v54 = vpop.eup %7165  ;;  %5172 = vmatmul.mubr.bf16.gmra.mrb[244].mxu0 %v7160_v33  ;;  %v3732_v29 = vunpack.c.l.bf16 %v7164_v2  ;;  %v3736_v22 = vunpack.c.h.bf16 %v7164_v2  ;;  %v3391_v33 = vld [vmem:[#allocation3 + $0xa8] sm:$0xff] }
 0x797   : > { %5460 = vmatprep.mubr.bf16.mxu1 %v7166_v54  ;;  %3882 = vadd.xlane.f32.xlu1 %v12195_v42  ;;  %v4044_v0 = vadd.f32 %v3731_v13, %v3730_v14  ;;  %v4049_v38 = vadd.f32 %v3735_v51, %v3734_v55  ;;  %v3733_v53 = vunpack.c.l.bf16 %v7166_v54  ;;  %v3737_v63 = vunpack.c.h.bf16 %v7166_v54  ;;  %v10549_v6 = vpop.eup %7167  ;;  %v12201_v51 = vld [vmem:[#allocation304_spill] sm:$0xff]  ;;  %v12202_v42 = vld [vmem:[#allocation303_spill] sm:$0xff] }
 0x798   : > { %5461 = vmatmul.mubr.bf16.gmra.mrb[244].mxu1 %v7164_v2  ;;  %12196 = vst [vmem:[#allocation219_spill] sm:$0xff] %v10549_v6  ;;  %v10559_v23 = vpop.eup %7169  ;;  %v3455_v18 = vmul.f32 %v12199_v37, %v3391_v33  ;;  %v12200_v2 = vld [vmem:[#allocation302_spill] sm:$0xff]  ;;  %v2847_v54 = vsub.f32 %v12201_v51, %v2590_v62 }
 0x799   : > { %v4045_v12 = vadd.f32 %v4044_v0, %v3732_v29  ;;  %v4050_v47 = vadd.f32 %v4049_v38, %v3736_v22  ;;  %12198 = vst [vmem:[#allocation217_spill] sm:$0xff] %v10559_v23  ;;  %v2846_v13 = vsub.f32 %v12200_v2, %v2590_v62  ;;  %v2848_v29 = vsub.f32 %v12202_v42, %v2590_v62  ;;  %v12203_v22 = vld [vmem:[#allocation184_spill] sm:$0xff] }
 0x79a   : > { %v12204_v38 = vld [vmem:[#allocation296_spill] sm:$0xff] }
 0x79b   : > { %v10553_v4 = vadd.f32 %v4045_v12, %v3733_v53  ;;  %v10555_v39 = vadd.f32 %v4050_v47, %v3737_v63  ;;  %v12205_v53 = vld [vmem:[#allocation299_spill] sm:$0xff] }
 0x79c   : > { %4584 = vperm.xlu0 %6739, %v10549_v6   ;;  %v12206_v63 = vld [vmem:[#allocation295_spill] sm:$0xff] }
 0x7a5   : > { %v3868_v25 = vpop.xlane.xlu0 %3867 }
 0x7a6   : > { %v4096_v41 = vadd.f32 %v3868_v25, %v3456_v40  ;;  %v12208_v40 = vld [vmem:[#allocation305_spill] sm:$0xff] }
 0x7a7   : > { %v2849_v25 = vsub.f32 %v12208_v40, %v2590_v62  ;;  %v12211_v40 = vld [vmem:[#allocation191_spill] sm:$0xff] }
 0x7a8   : > { %4161 = vst.msk [vmem:[#allocation3 + $0xb0] sm:$0xff] %vm382_vm2, %v4096_v41  ;;  %4569 = vperm.xlu1 %6740, %v10559_v23  }
 0x7b2   : > { %v3863_v49 = vpop.xlane.xlu1 %3862 }
 0x7b3   : > { %v4095_v14 = vadd.f32 %v3863_v49, %v3455_v18  ;;  %v4255_v18 = vld [vmem:[#allocation4 + $0x1a0] sm:$0xff] }
 0x7b5   : > { %4160 = vst.msk [vmem:[#allocation3 + $0xa8] sm:$0xff] %vm382_vm2, %v4095_v14 }
 0x7b6   : > { %v10565_v55 = vpop.permute.xlu1 %4549 }
 0x7ba   : > { %v2585_v0 = vpop.permute.xlu1 %2584 }
 0x7bb   : > { %3897 = vadd.xlane.f32.xlu0 %v12203_v22  ;;  %v2842_v15 = vsub.f32 %v12204_v38, %v2585_v0  ;;  %v2843_v12 = vsub.f32 %v12205_v53, %v2585_v0  ;;  %v2844_v47 = vsub.f32 %v12206_v63, %v2585_v0  ;;  %v2845_v27 = vsub.f32 %v12207_v46, %v2585_v0  ;;  %v12209_v22 = vld [vmem:[#allocation202_spill] sm:$0xff]  ;;  %v4256_v38 = vld [vmem:[#allocation4 + $0x1a8] sm:$0xff] }
 0x7bc   : > { %v4639_v63 = vmul.f32 %v10492_v16, %v4255_v18  ;;  %v12210_v16 = vld [vmem:[#allocation51_spill] sm:$0xff] }
 0x7bd   : > { %v2978_v41 = vpack.c.bf16 %v2846_v13, %v2842_v15  ;;  %v2979_v33 = vpack.c.bf16 %v2847_v54, %v2843_v12  ;;  %v2980_v37 = vpack.c.bf16 %v2848_v29, %v2844_v47  ;;  %v2981_v49 = vpack.c.bf16 %v2849_v25, %v2845_v27 }
 0x7be   : > { %v5149_v14 = vpop.f32.mrb[232].mxu0  ;;  %v4640_v15 = vmul.f32 %v10474_v36, %v4256_v38  ;;  %v2152_v27 = vsub.f32 %v12210_v16, %v12182_v44  ;;  %v10589_v38 = vpop.permute.xlu0 %4564 }
 0x7bf   : > { %v3347_v2 = vmul.bf16 1069105081, %v2978_v41  ;;  %v3350_v51 = vmul.bf16 1069105081, %v2979_v33  ;;  %v3353_v42 = vmul.bf16 1069105081, %v2980_v37  ;;  %3907 = vadd.xlane.f32.xlu0 %v12209_v22 }
 0x7c0   : > { %v3356_v6 = vmul.bf16 1069105081, %v2981_v49  ;;  %v5438_v53 = vpop.f32.mrb[232].mxu1  ;;  %v5151_v23 = vpop.f32.mrb[233].mxu0  ;;  %v2278_v41 = vmul.f32 1.442695, %v2152_v27 }
 0x7c1   : > { %7171 = vpow.bf16 %v3347_v2  ;;  %v5439_v0 = vadd.f32 %v5438_v53, %v5149_v14  ;;  %v5440_v62 = vpop.f32.mrb[233].mxu1  ;;  %v5152_v13 = vpop.f32.mrb[234].mxu0 }
 0x7c2   : > { %7173 = vpow.bf16 %v3350_v51  ;;  %v5441_v54 = vpop.f32.mrb[234].mxu1  ;;  %v5154_v29 = vpop.f32.mrb[235].mxu0 }
 0x7c3   : > { %7175 = vpow.bf16 %v3353_v42  ;;  %v5537_v12 = vadd.f32 %v5439_v0, %v4639_v63  ;;  %v5442_v47 = vadd.f32 %v5441_v54, %v5152_v13  ;;  %v5443_v46 = vpop.f32.mrb[235].mxu1  ;;  %3917 = vadd.xlane.f32.xlu0 %v10122_v5  ;;  %v3394_v0 = vld [vmem:[#allocation3 + $0xc0] sm:$0xff]  ;;  %v5746_v13 = vld [vmem:[#allocation3 + $0x8] sm:$0xff]  ;;  %v12212_v54 = vld [vmem:[#allocation45_spill] sm:$0xff] }
 0x7c4   : > { %7177 = vpow.bf16 %v3356_v6  ;;  %v3458_v29 = vmul.f32 %v12212_v54, %v3394_v0  ;;  %v12213_v46 = vld [vmem:[#allocation39_spill] sm:$0xff] }
 0x7c5   : > { %5602 = vst.msk [vmem:[#allocation4 + $0x1a0] sm:$0xff] %vm511_vm3, %v5537_v12  ;;  %v5538_v23 = vadd.f32 %v5442_v47, %v4640_v15  ;;  %7179 = vpow2.f32 %v2278_v41  ;;  %v12215_v41 = vld [vmem:[#allocation315_spill] sm:$0xff] }
 0x7c6   : > { %7181 = vrcp.f32 %v5746_v13 }
 0x7c7   : > { %5603 = vst.msk [vmem:[#allocation4 + $0x1a8] sm:$0xff] %vm511_vm3, %v5538_v23  ;;  %3927 = vadd.xlane.f32.xlu0 %v10131_v21 }
 0x7cb   : > { %3937 = vadd.xlane.f32.xlu0 %v10137_v56 }
 0x7cc   : > { %v7172_v36 = vpop.eup %7171  ;;  %3892 = vadd.xlane.f32.xlu1 %v12211_v40  ;;  %v12214_v40 = vld [vmem:[#allocation313_spill] sm:$0xff] }
 0x7cd   : > { %v7174_v25 = vpop.eup %7173  ;;  %v3738_v33 = vunpack.c.l.bf16 %v7172_v36  ;;  %v3742_v5 = vunpack.c.h.bf16 %v7172_v36 }
 0x7ce   : > { %v7176_v6 = vpop.eup %7175  ;;  %5179 = vmatprep.mubr.bf16.mxu0 %v7174_v25  ;;  %v3739_v37 = vunpack.c.l.bf16 %v7174_v25  ;;  %v3743_v18 = vunpack.c.h.bf16 %v7174_v25 }
 0x7cf   : > { %v7178_v49 = vpop.eup %7177  ;;  %3947 = vadd.xlane.f32.xlu0 %v10148_v1  ;;  %5180 = vmatmul.mubr.bf16.gmra.mrb[248].mxu0 %v7172_v36  ;;  %v3740_v21 = vunpack.c.l.bf16 %v7176_v6  ;;  %v3744_v14 = vunpack.c.h.bf16 %v7176_v6  ;;  %v2600_v1 = vpop.permute.xlu0 %2599 }
 0x7d0   : > { %5468 = vmatprep.mubr.bf16.mxu1 %v7178_v49  ;;  %v4054_v44 = vadd.f32 %v3739_v37, %v3738_v33  ;;  %v4059_v56 = vadd.f32 %v3743_v18, %v3742_v5  ;;  %v3741_v2 = vunpack.c.l.bf16 %v7178_v49  ;;  %v3745_v42 = vunpack.c.h.bf16 %v7178_v49  ;;  %v10595_v62 = vpop.eup %7179  ;;  %v12216_v5 = vld [vmem:[#allocation314_spill] sm:$0xff]  ;;  %v12217_v18 = vld [vmem:[#allocation307_spill] sm:$0xff] }
 0x7d1   : > { %5469 = vmatmul.mubr.bf16.gmra.mrb[248].mxu1 %v7176_v6  ;;  %v7182_v47 = vpop.eup %7181  ;;  %v2854_v25 = vsub.f32 %v12214_v40, %v2600_v1  ;;  %v2855_v33 = vsub.f32 %v12215_v41, %v2600_v1  ;;  %v2856_v6 = vsub.f32 %v12216_v5, %v2600_v1 }
 0x7d2   : > { %v4055_v51 = vadd.f32 %v4054_v44, %v3740_v21  ;;  %v4060_v22 = vadd.f32 %v4059_v56, %v3744_v14  ;;  %v12218_v21 = vld [vmem:[#allocation310_spill] sm:$0xff]  ;;  %v12219_v14 = vld [vmem:[#allocation309_spill] sm:$0xff] }
 0x7d3   : > { %3957 = vadd.xlane.f32.xlu0 %v10186_v8  ;;  %v3393_v8 = vld [vmem:[#allocation3 + $0xb8] sm:$0xff] }
 0x7d4   : > { %v10591_v53 = vadd.f32 %v4055_v51, %v3741_v2  ;;  %v10593_v63 = vadd.f32 %v4060_v22, %v3745_v42  ;;  %v3457_v23 = vmul.f32 %v12213_v46, %v3393_v8  ;;  %v12220_v2 = vld [vmem:[#allocation312_spill] sm:$0xff]  ;;  %v12221_v42 = vld [vmem:[#allocation317_spill] sm:$0xff] }
 0x7d5   : > { %v2857_v22 = vsub.f32 %v12221_v42, %v2600_v1 }
 0x7dd   : > { %4579 = vperm.xlu1 %6740, %v10595_v62  }
 0x7de   : > { %v3878_v15 = vpop.xlane.xlu0 %3877 }
 0x7df   : > { %v4098_v12 = vadd.f32 %v3878_v15, %v3458_v29  ;;  %v4257_v29 = vld [vmem:[#allocation4 + $0x1b0] sm:$0xff] }
 0x7e0   : > { %v4641_v41 = vmul.f32 %v10529_v24, %v4257_v29  ;;  %v12222_v24 = vld [vmem:[#allocation301_spill] sm:$0xff] }
 0x7e1   : > { %4163 = vst.msk [vmem:[#allocation3 + $0xc0] sm:$0xff] %vm382_vm2, %v4098_v12 }
 0x7e9   : > { %5880 = vperm.xlu0 %6739, %v7182_v47  }
 0x7eb   : > { %v3873_v16 = vpop.xlane.xlu1 %3872 }
 0x7ec   : > { %v4097_v27 = vadd.f32 %v3873_v16, %v3457_v23  ;;  %v4258_v23 = vld [vmem:[#allocation4 + $0x1b8] sm:$0xff] }
 0x7ee   : > { %4162 = vst.msk [vmem:[#allocation3 + $0xb8] sm:$0xff] %vm382_vm2, %v4097_v27 }
 0x7ef   : > { %v10602_v36 = vpop.permute.xlu1 %4559 }
 0x7f3   : > { %v2595_v37 = vpop.permute.xlu1 %2594 }
 0x7f4   : > { %v2850_v49 = vsub.f32 %v12217_v18, %v2595_v37  ;;  %v2851_v44 = vsub.f32 %v12218_v21, %v2595_v37  ;;  %v2852_v56 = vsub.f32 %v12219_v14, %v2595_v37  ;;  %v2853_v51 = vsub.f32 %v12220_v2, %v2595_v37 }
 0x7f6   : > { %v2982_v0 = vpack.c.bf16 %v2854_v25, %v2850_v49  ;;  %v2983_v13 = vpack.c.bf16 %v2855_v33, %v2851_v44  ;;  %v2984_v54 = vpack.c.bf16 %v2856_v6, %v2852_v56  ;;  %v2985_v15 = vpack.c.bf16 %v2857_v22, %v2853_v51 }
 0x7f7   : > { %v5157_v12 = vpop.f32.mrb[236].mxu0  ;;  %v4642_v33 = vmul.f32 %v10512_v35, %v4258_v23 }
 0x7f8   : > { %v3359_v8 = vmul.bf16 1069105081, %v2982_v0  ;;  %v3362_v47 = vmul.bf16 1069105081, %v2983_v13  ;;  %v3365_v46 = vmul.bf16 1069105081, %v2984_v54 }
 0x7f9   : > { %v3368_v16 = vmul.bf16 1069105081, %v2985_v15  ;;  %v5446_v27 = vpop.f32.mrb[236].mxu1  ;;  %v5159_v40 = vpop.f32.mrb[237].mxu0 }
 0x7fa   : > { %7183 = vpow.bf16 %v3359_v8  ;;  %v5447_v5 = vadd.f32 %v5446_v27, %v5157_v12  ;;  %v5448_v37 = vpop.f32.mrb[237].mxu1  ;;  %v5160_v18 = vpop.f32.mrb[238].mxu0  ;;  %v5748_v27 = vld [vmem:[#allocation3 + $0x18] sm:$0xff] }
 0x7fb   : > { %7185 = vpow.bf16 %v3362_v47  ;;  %v5449_v1 = vpop.f32.mrb[238].mxu1  ;;  %v5162_v25 = vpop.f32.mrb[239].mxu0 }
 0x7fc   : > { %7187 = vpow.bf16 %v3365_v46  ;;  %v5539_v6 = vadd.f32 %v5447_v5, %v4641_v41  ;;  %v5450_v49 = vadd.f32 %v5449_v1, %v5160_v18  ;;  %v5451_v21 = vpop.f32.mrb[239].mxu1  ;;  %v3395_v18 = vld [vmem:[#allocation3 + $0xc8] sm:$0xff]  ;;  %v12224_v1 = vld [vmem:[#allocation37_spill] sm:$0xff] }
 0x7fd   : > { %7189 = vpow.bf16 %v3368_v16  ;;  %v3396_v16 = vld [vmem:[#allocation3 + $0xd0] sm:$0xff]  ;;  %v3459_v25 = vmul.f32 %v12224_v1, %v3395_v18 }
 0x7fe   : > { %5604 = vst.msk [vmem:[#allocation4 + $0x1b0] sm:$0xff] %vm511_vm3, %v5539_v6  ;;  %v5540_v44 = vadd.f32 %v5450_v49, %v4642_v33  ;;  %7191 = vrcp.f32 %v5748_v27  ;;  %v4259_v49 = vld [vmem:[#allocation4 + $0x1c0] sm:$0xff]  ;;  %v5747_v18 = vld [vmem:[#allocation3 + $0x10] sm:$0xff] }
 0x800   : > { %5605 = vst.msk [vmem:[#allocation4 + $0x1b8] sm:$0xff] %vm511_vm3, %v5540_v44  ;;  %v4260_v44 = vld [vmem:[#allocation4 + $0x1c8] sm:$0xff] }
 0x801   : > { %3902 = vadd.xlane.f32.xlu1 %v12222_v24 }
 0x805   : > { %v7184_v14 = vpop.eup %7183  ;;  %3912 = vadd.xlane.f32.xlu1 %v10124_v11 }
 0x806   : > { %v7186_v56 = vpop.eup %7185  ;;  %v3746_v2 = vunpack.c.l.bf16 %v7184_v14  ;;  %v3750_v51 = vunpack.c.h.bf16 %v7184_v14 }
 0x807   : > { %v7188_v42 = vpop.eup %7187  ;;  %5187 = vmatprep.mubr.bf16.mxu0 %v7186_v56  ;;  %v3747_v35 = vunpack.c.l.bf16 %v7186_v56  ;;  %v3751_v22 = vunpack.c.h.bf16 %v7186_v56 }
 0x808   : > { %v7190_v0 = vpop.eup %7189  ;;  %3967 = vadd.xlane.f32.xlu0 %v10224_v30  ;;  %5188 = vmatmul.mubr.bf16.gmra.mrb[252].mxu0 %v7184_v14  ;;  %v3748_v13 = vunpack.c.l.bf16 %v7188_v42  ;;  %v3752_v29 = vunpack.c.h.bf16 %v7188_v42  ;;  %v10625_v30 = vpop.permute.xlu0 %4574 }
 0x809   : > { %5476 = vmatprep.mubr.bf16.mxu1 %v7190_v0  ;;  %3922 = vadd.xlane.f32.xlu1 %v10133_v26  ;;  %v4064_v54 = vadd.f32 %v3747_v35, %v3746_v2  ;;  %v4069_v15 = vadd.f32 %v3751_v22, %v3750_v51  ;;  %v3749_v11 = vunpack.c.l.bf16 %v7190_v0  ;;  %v3753_v8 = vunpack.c.h.bf16 %v7190_v0  ;;  %v12223_v26 = vld [vmem:[#allocation48_spill] sm:$0xff]  ;;  %v7192_v37 = vpop.eup %7191 }
 0x80a   : > { %5477 = vmatmul.mubr.bf16.gmra.mrb[252].mxu1 %v7188_v42  ;;  %v3460_v40 = vmul.f32 %v12223_v26, %v3396_v16  ;;  %v4644_v35 = vmul.f32 %v10551_v48, %v4260_v44  ;;  %v12226_v16 = vld [vmem:[#allocation185_spill] sm:$0xff]  ;;  %v12229_v44 = vld [vmem:[#allocation178_spill] sm:$0xff] }
 0x80b   : > { %v4065_v12 = vadd.f32 %v4064_v54, %v3748_v13  ;;  %v4070_v47 = vadd.f32 %v4069_v15, %v3752_v29  ;;  %v3398_v15 = vld [vmem:[#allocation3 + $0xe0] sm:$0xff] }
 0x80d   : > { %3932 = vadd.xlane.f32.xlu1 %v10135_v9  ;;  %v10621_v46 = vadd.f32 %v4065_v12, %v3749_v11  ;;  %v10623_v23 = vadd.f32 %v4070_v47, %v3753_v8  ;;  %v5745_v9 = vld [vmem:[#allocation3] sm:$0xff]  ;;  %v3400_v47 = vld [vmem:[#allocation3 + $0xf0] sm:$0xff] }
 0x80e   : > { %7193 = vrcp.f32 %v5745_v9  ;;  %v12225_v11 = vld [vmem:[#allocation186_spill] sm:$0xff]  ;;  %v3464_v27 = vmul.f32 %v12226_v16, %v3400_v47  ;;  %v4261_v47 = vld [vmem:[#allocation4 + $0x1d0] sm:$0xff] }
 0x80f   : > { %v3462_v12 = vmul.f32 %v12225_v11, %v3398_v15 }
 0x811   : > { %3942 = vadd.xlane.f32.xlu1 %v10139_v7 }
 0x813   : > { %v3888_v41 = vpop.xlane.xlu0 %3887 }
 0x814   : > { %v4100_v5 = vadd.f32 %v3888_v41, %v3460_v40  ;;  %v3402_v40 = vld [vmem:[#allocation3 + $0x100] sm:$0xff] }
 0x815   : > { %3952 = vadd.xlane.f32.xlu1 %v10150_v60 }
 0x816   : > { %4165 = vst.msk [vmem:[#allocation3 + $0xd0] sm:$0xff] %vm382_vm2, %v4100_v5 }
 0x818   : > { %v7194_v6 = vpop.eup %7193 }
 0x819   : > { %3962 = vadd.xlane.f32.xlu1 %v10188_v28  ;;  %v4643_v28 = vmul.f32 %v10565_v55, %v4259_v49  ;;  %v5750_v55 = vld [vmem:[#allocation3 + $0x28] sm:$0xff]  ;;  %v3406_v49 = vld [vmem:[#allocation3 + $0x120] sm:$0xff] }
 0x81a   : > { %7195 = vrcp.f32 %v5750_v55 }
 0x81b   : > { %v10639_v29 = vpop.permute.xlu0 %4584  ;;  %7197 = vrcp.f32 %v5747_v18 }
 0x81e   : > { %5890 = vperm.xlu0 %6739, %v7192_v37   ;;  %v3404_v37 = vld [vmem:[#allocation3 + $0x110] sm:$0xff] }
 0x824   : > { %v3883_v33 = vpop.xlane.xlu1 %3882 }
 0x825   : > { %v4099_v7 = vadd.f32 %v3883_v33, %v3459_v25  ;;  %v7196_v25 = vpop.eup %7195  ;;  %v12228_v33 = vld [vmem:[#allocation55_spill] sm:$0xff] }
 0x826   : > { %v7198_v55 = vpop.eup %7197 }
 0x827   : > { %4164 = vst.msk [vmem:[#allocation3 + $0xc8] sm:$0xff] %vm382_vm2, %v4099_v7  ;;  %v3468_v7 = vmul.f32 %v12228_v33, %v3404_v37 }
 0x82a   : > { %5875 = vperm.xlu1 %6740, %v7194_v6  }
 0x830   : > { %v5165_v21 = vpop.f32.mrb[240].mxu0 }
 0x831   : > { %v5167_v60 = vpop.f32.mrb[241].mxu0 }
 0x832   : > { %v5454_v24 = vpop.f32.mrb[240].mxu1  ;;  %v5168_v14 = vpop.f32.mrb[242].mxu0  ;;  %v3397_v60 = vld [vmem:[#allocation3 + $0xd8] sm:$0xff] }
 0x833   : > { %v5455_v56 = vadd.f32 %v5454_v24, %v5165_v21  ;;  %v5456_v2 = vpop.f32.mrb[241].mxu1  ;;  %v5170_v51 = vpop.f32.mrb[243].mxu0  ;;  %v3470_v24 = vmul.f32 %v12229_v44, %v3406_v49 }
 0x834   : > { %v5457_v42 = vpop.f32.mrb[242].mxu1  ;;  %v10649_v21 = vpop.permute.xlu1 %4569  ;;  %v3408_v2 = vld [vmem:[#allocation3 + $0x130] sm:$0xff] }
 0x835   : > { %v5541_v22 = vadd.f32 %v5455_v56, %v4643_v28  ;;  %v5458_v0 = vadd.f32 %v5457_v42, %v5168_v14  ;;  %v5459_v13 = vpop.f32.mrb[243].mxu1  ;;  %v12230_v28 = vld [vmem:[#allocation173_spill] sm:$0xff] }
 0x836   : > { %v3461_v56 = vmul.f32 %v12230_v28, %v3397_v60 }
 0x837   : > { %5606 = vst.msk [vmem:[#allocation4 + $0x1c0] sm:$0xff] %vm511_vm3, %v5541_v22  ;;  %v5542_v54 = vadd.f32 %v5458_v0, %v4644_v35  ;;  %v12231_v22 = vld [vmem:[#allocation61_spill] sm:$0xff] }
 0x838   : > { %v3472_v0 = vmul.f32 %v12231_v22, %v3408_v2  ;;  %v3412_v2 = vld [vmem:[#allocation3 + $0x150] sm:$0xff] }
 0x839   : > { %5607 = vst.msk [vmem:[#allocation4 + $0x1c8] sm:$0xff] %vm511_vm3, %v5542_v54  ;;  %v3410_v54 = vld [vmem:[#allocation3 + $0x140] sm:$0xff]  ;;  %v3476_v22 = vmul.f32 %v10197_v61, %v3412_v2 }
 0x83a   : > { %v3474_v11 = vmul.f32 %v10159_v10, %v3410_v54  ;;  %v12236_v61 = vld [vmem:[#allocation54_spill] sm:$0xff] }
 0x83d   : > { %3977 = vadd.xlane.f32.xlu0 %v10262_v52  ;;  %v12227_v52 = vld [vmem:[#allocation316_spill] sm:$0xff] }
 0x83e   : > { %v3466_v5 = vmul.f32 %v12227_v52, %v3402_v40 }
 0x848   : > { %v3898_v8 = vpop.xlane.xlu0 %3897 }
 0x849   : > { %v4102_v48 = vadd.f32 %v3898_v8, %v3462_v12 }
 0x84b   : > { %4167 = vst.msk [vmem:[#allocation3 + $0xe0] sm:$0xff] %vm382_vm2, %v4102_v48 }
 0x84c   : > { %v3908_v26 = vpop.xlane.xlu0 %3907 }
 0x84d   : > { %v4104_v41 = vadd.f32 %v3908_v26, %v3464_v27  ;;  %v4262_v27 = vld [vmem:[#allocation4 + $0x1d8] sm:$0xff] }
 0x84e   : > { %3972 = vadd.xlane.f32.xlu1 %v10226_v59  ;;  %v4646_v18 = vmul.f32 %v10589_v38, %v4262_v27  ;;  %v3399_v38 = vld [vmem:[#allocation3 + $0xe8] sm:$0xff] }
 0x84f   : > { %4169 = vst.msk [vmem:[#allocation3 + $0xf0] sm:$0xff] %vm382_vm2, %v4104_v41  ;;  %v4645_v41 = vmul.f32 %v10602_v36, %v4261_v47  ;;  %v5749_v36 = vld [vmem:[#allocation3 + $0x20] sm:$0xff] }
 0x850   : > { %v3918_v9 = vpop.xlane.xlu0 %3917 }
 0x851   : > { %v4106_v1 = vadd.f32 %v3918_v9, %v3466_v5 }
 0x853   : > { %4171 = vst.msk [vmem:[#allocation3 + $0x100] sm:$0xff] %vm382_vm2, %v4106_v1  ;;  %5900 = vperm.xlu0 %6739, %v7196_v25  }
 0x854   : > { %v3928_v6 = vpop.xlane.xlu0 %3927 }
 0x855   : > { %v4108_v59 = vadd.f32 %v3928_v6, %v3468_v7  ;;  %v5752_v7 = vld [vmem:[#allocation3 + $0x38] sm:$0xff] }
 0x856   : > { %7199 = vrcp.f32 %v5752_v7  ;;  %v4264_v7 = vld [vmem:[#allocation4 + $0x1e8] sm:$0xff] }
 0x857   : > { %4173 = vst.msk [vmem:[#allocation3 + $0x110] sm:$0xff] %vm382_vm2, %v4108_v59  ;;  %7201 = vrcp.f32 %v5749_v36  ;;  %v12232_v59 = vld [vmem:[#allocation172_spill] sm:$0xff]  ;;  %v4648_v2 = vmul.f32 %v10625_v30, %v4264_v7 }
 0x858   : > { %v3938_v14 = vpop.xlane.xlu0 %3937  ;;  %v3463_v60 = vmul.f32 %v12232_v59, %v3399_v38 }
 0x859   : > { %v4110_v51 = vadd.f32 %v3938_v14, %v3470_v24  ;;  %v3893_v42 = vpop.xlane.xlu1 %3892  ;;  %v3401_v24 = vld [vmem:[#allocation3 + $0xf8] sm:$0xff] }
 0x85a   : > { %v4101_v35 = vadd.f32 %v3893_v42, %v3461_v56 }
 0x85b   : > { %4175 = vst.msk [vmem:[#allocation3 + $0x120] sm:$0xff] %vm382_vm2, %v4110_v51  ;;  %v3403_v51 = vld [vmem:[#allocation3 + $0x108] sm:$0xff] }
 0x85c   : > { %4166 = vst.msk [vmem:[#allocation3 + $0xd8] sm:$0xff] %vm382_vm2, %v4101_v35  ;;  %v3948_v13 = vpop.xlane.xlu0 %3947 }
 0x85d   : > { %v4112_v15 = vadd.f32 %v3948_v13, %v3472_v0  ;;  %v10666_v49 = vpop.permute.xlu1 %4579  ;;  %v12234_v13 = vld [vmem:[#allocation46_spill] sm:$0xff] }
 0x85e   : > { %v3467_v54 = vmul.f32 %v12234_v13, %v3403_v51 }
 0x85f   : > { %4177 = vst.msk [vmem:[#allocation3 + $0x130] sm:$0xff] %vm382_vm2, %v4112_v15  ;;  %5885 = vperm.xlu1 %6740, %v7198_v55  }
 0x860   : > { %v3958_v12 = vpop.xlane.xlu0 %3957  ;;  %v7200_v6 = vpop.eup %7199 }
 0x861   : > { %v4114_v8 = vadd.f32 %v3958_v12, %v3474_v11  ;;  %v7202_v42 = vpop.eup %7201  ;;  %v3405_v11 = vld [vmem:[#allocation3 + $0x118] sm:$0xff] }
 0x863   : > { %4179 = vst.msk [vmem:[#allocation3 + $0x140] sm:$0xff] %vm382_vm2, %v4114_v8  ;;  %v12235_v8 = vld [vmem:[#allocation47_spill] sm:$0xff] }
 0x864   : > { %v3469_v47 = vmul.f32 %v12235_v8, %v3405_v11  ;;  %v3413_v8 = vld [vmem:[#allocation3 + $0x158] sm:$0xff] }
 0x868   : > { %v10669_v28 = vpop.permute.xlu0 %5880 }
 0x869   : > { %v5173_v48 = vpop.f32.mrb[244].mxu0 }
 0x86a   : > { %v5175_v16 = vpop.f32.mrb[245].mxu0 }
 0x86b   : > { %v5462_v26 = vpop.f32.mrb[244].mxu1  ;;  %v5176_v40 = vpop.f32.mrb[246].mxu0  ;;  %v3407_v16 = vld [vmem:[#allocation3 + $0x128] sm:$0xff] }
 0x86c   : > { %v5463_v52 = vadd.f32 %v5462_v26, %v5173_v48  ;;  %v5464_v5 = vpop.f32.mrb[245].mxu1  ;;  %v5178_v9 = vpop.f32.mrb[247].mxu0  ;;  %v3471_v26 = vmul.f32 %v12236_v61, %v3407_v16 }
 0x86d   : > { %v5465_v37 = vpop.f32.mrb[246].mxu1  ;;  %v12237_v5 = vld [vmem:[#allocation179_spill] sm:$0xff] }
 0x86e   : > { %v5543_v10 = vadd.f32 %v5463_v52, %v4645_v41  ;;  %v5466_v1 = vadd.f32 %v5465_v37, %v5176_v40  ;;  %v5467_v25 = vpop.f32.mrb[247].mxu1  ;;  %v3409_v41 = vld [vmem:[#allocation3 + $0x138] sm:$0xff]  ;;  %v4263_v37 = vld [vmem:[#allocation4 + $0x1e0] sm:$0xff] }
 0x86f   : > { %v3473_v9 = vmul.f32 %v12237_v5, %v3409_v41  ;;  %v4647_v38 = vmul.f32 %v10649_v21, %v4263_v37 }
 0x870   : > { %5608 = vst.msk [vmem:[#allocation4 + $0x1d0] sm:$0xff] %vm511_vm3, %v5543_v10  ;;  %v5544_v33 = vadd.f32 %v5466_v1, %v4646_v18  ;;  %v3411_v1 = vld [vmem:[#allocation3 + $0x148] sm:$0xff] }
 0x872   : > { %5609 = vst.msk [vmem:[#allocation4 + $0x1d8] sm:$0xff] %vm511_vm3, %v5544_v33  ;;  %3987 = vadd.xlane.f32.xlu0 %v10324_v31  ;;  %v12233_v31 = vld [vmem:[#allocation306_spill] sm:$0xff] }
 0x873   : > { %v3465_v56 = vmul.f32 %v12233_v31, %v3401_v24  ;;  %v12238_v24 = vld [vmem:[#allocation60_spill] sm:$0xff] }
 0x883   : > { %3982 = vadd.xlane.f32.xlu1 %v10264_v50 }
 0x888   : > { %5910 = vperm.xlu0 %6739, %v7200_v6  }
 0x88e   : > { %v3903_v44 = vpop.xlane.xlu1 %3902 }
 0x88f   : > { %v4103_v14 = vadd.f32 %v3903_v44, %v3463_v60 }
 0x891   : > { %4168 = vst.msk [vmem:[#allocation3 + $0xe8] sm:$0xff] %vm382_vm2, %v4103_v14  ;;  %v3475_v14 = vmul.f32 %v12238_v24, %v3411_v1 }
 0x892   : > { %v3913_v50 = vpop.xlane.xlu1 %3912 }
 0x893   : > { %v4105_v35 = vadd.f32 %v3913_v50, %v3465_v56 }
 0x894   : > { %5895 = vperm.xlu1 %6740, %v7202_v42  }
 0x895   : > { %4170 = vst.msk [vmem:[#allocation3 + $0xf8] sm:$0xff] %vm382_vm2, %v4105_v35  ;;  %v3968_v0 = vpop.xlane.xlu0 %3967 }
 0x896   : > { %v4116_v15 = vadd.f32 %v3968_v0, %v3476_v22  ;;  %v3923_v55 = vpop.xlane.xlu1 %3922  ;;  %v5754_v22 = vld [vmem:[#allocation3 + $0x48] sm:$0xff]  ;;  %v5751_v0 = vld [vmem:[#allocation3 + $0x30] sm:$0xff] }
 0x897   : > { %v4107_v12 = vadd.f32 %v3923_v55, %v3467_v54  ;;  %7203 = vrcp.f32 %v5754_v22  ;;  %v3414_v54 = vld [vmem:[#allocation3 + $0x160] sm:$0xff] }
 0x898   : > { %4181 = vst.msk [vmem:[#allocation3 + $0x150] sm:$0xff] %vm382_vm2, %v4116_v15  ;;  %7205 = vrcp.f32 %v5751_v0  ;;  %v3478_v15 = vmul.f32 %v10235_v45, %v3414_v54  ;;  %v3417_v0 = vld [vmem:[#allocation3 + $0x178] sm:$0xff] }
 0x899   : > { %4172 = vst.msk [vmem:[#allocation3 + $0x108] sm:$0xff] %vm382_vm2, %v4107_v12 }
 0x89a   : > { %v3933_v48 = vpop.xlane.xlu1 %3932 }
 0x89b   : > { %v4109_v27 = vadd.f32 %v3933_v48, %v3469_v47  ;;  %v4265_v47 = vld [vmem:[#allocation4 + $0x1f0] sm:$0xff] }
 0x89c   : > { %v4649_v41 = vmul.f32 %v10666_v49, %v4265_v47  ;;  %v5753_v49 = vld [vmem:[#allocation3 + $0x40] sm:$0xff] }
 0x89d   : > { %4174 = vst.msk [vmem:[#allocation3 + $0x118] sm:$0xff] %vm382_vm2, %v4109_v27  ;;  %v10692_v30 = vpop.permute.xlu0 %5890 }
 0x89e   : > { %v3943_v40 = vpop.xlane.xlu1 %3942 }
 0x89f   : > { %v4111_v52 = vadd.f32 %v3943_v40, %v3471_v26  ;;  %v4266_v26 = vld [vmem:[#allocation4 + $0x1f8] sm:$0xff] }
 0x8a1   : > { %4176 = vst.msk [vmem:[#allocation3 + $0x128] sm:$0xff] %vm382_vm2, %v4111_v52  ;;  %v7204_v13 = vpop.eup %7203 }
 0x8a2   : > { %v5181_v18 = vpop.f32.mrb[248].mxu0  ;;  %v3953_v10 = vpop.xlane.xlu1 %3952 }
 0x8a3   : > { %v5183_v25 = vpop.f32.mrb[249].mxu0  ;;  %v4113_v33 = vadd.f32 %v3953_v10, %v3473_v9 }
 0x8a4   : > { %v5470_v36 = vpop.f32.mrb[248].mxu1  ;;  %v5184_v6 = vpop.f32.mrb[250].mxu0  ;;  %v5756_v25 = vld [vmem:[#allocation3 + $0x58] sm:$0xff] }
 0x8a5   : > { %v5471_v59 = vadd.f32 %v5470_v36, %v5181_v18  ;;  %v5472_v60 = vpop.f32.mrb[249].mxu1  ;;  %4178 = vst.msk [vmem:[#allocation3 + $0x138] sm:$0xff] %vm382_vm2, %v4113_v33  ;;  %v5186_v44 = vpop.f32.mrb[251].mxu0  ;;  %7207 = vrcp.f32 %v5756_v25  ;;  %v3416_v36 = vld [vmem:[#allocation3 + $0x170] sm:$0xff] }
 0x8a6   : > { %v5473_v31 = vpop.f32.mrb[250].mxu1  ;;  %v3963_v56 = vpop.xlane.xlu1 %3962  ;;  %7209 = vrcp.f32 %v5753_v49  ;;  %v3415_v44 = vld [vmem:[#allocation3 + $0x168] sm:$0xff]  ;;  %v3422_v49 = vld [vmem:[#allocation3 + $0x1a0] sm:$0xff] }
 0x8a7   : > { %v5545_v50 = vadd.f32 %v5471_v59, %v4647_v38  ;;  %v5474_v51 = vadd.f32 %v5473_v31, %v5184_v6  ;;  %v5475_v42 = vpop.f32.mrb[251].mxu1  ;;  %3997 = vadd.xlane.f32.xlu0 %v10362_v20  ;;  %v4115_v35 = vadd.f32 %v3963_v56, %v3475_v14  ;;  %v7206_v20 = vpop.eup %7205  ;;  %v3480_v6 = vmul.f32 %v10278_v19, %v3416_v36  ;;  %v5758_v31 = vld [vmem:[#allocation3 + $0x68] sm:$0xff]  ;;  %v12239_v56 = vld [vmem:[#allocation69_spill] sm:$0xff]  ;;  %v5755_v19 = vld [vmem:[#allocation3 + $0x50] sm:$0xff] }
 0x8a8   : > { %7211 = vrcp.f32 %v5758_v31  ;;  %v12247_v36 = vld [vmem:[#allocation189_spill] sm:$0xff] }
 0x8a9   : > { %5610 = vst.msk [vmem:[#allocation4 + $0x1e0] sm:$0xff] %vm511_vm3, %v5545_v50  ;;  %v5546_v21 = vadd.f32 %v5474_v51, %v4648_v2  ;;  %7213 = vrcp.f32 %v5755_v19  ;;  %v3418_v51 = vld [vmem:[#allocation3 + $0x180] sm:$0xff]  ;;  %v5764_v31 = vld [vmem:[#allocation3 + $0x98] sm:$0xff] }
 0x8aa   : > { %4180 = vst.msk [vmem:[#allocation3 + $0x148] sm:$0xff] %vm382_vm2, %v4115_v35  ;;  %v10696_v12 = vpop.permute.xlu1 %5875  ;;  %v12240_v35 = vld [vmem:[#allocation74_spill] sm:$0xff] }
 0x8ab   : > { %5611 = vst.msk [vmem:[#allocation4 + $0x1e8] sm:$0xff] %vm511_vm3, %v5546_v21  ;;  %v5761_v19 = vld [vmem:[#allocation3 + $0x80] sm:$0xff] }
 0x8af   : > { %v7208_v33 = vpop.eup %7207 }
 0x8b8   : > { %3992 = vadd.xlane.f32.xlu1 %v10326_v43  ;;  %v3477_v43 = vmul.f32 %v10153_v57, %v3413_v8  ;;  %v4650_v57 = vmul.f32 %v10639_v29, %v4266_v26  ;;  %v7210_v29 = vpop.eup %7209  ;;  %v12243_v8 = vld [vmem:[#allocation201_spill] sm:$0xff] }
 0x8b9   : > { %v7212_v2 = vpop.eup %7211 }
 0x8ba   : > { %v7214_v42 = vpop.eup %7213 }
 0x8bd   : > { %5920 = vperm.xlu0 %6739, %v7204_v13   ;;  %v12241_v13 = vld [vmem:[#allocation70_spill] sm:$0xff] }
 0x8be   : > { %v3481_v54 = vmul.f32 %v12241_v13, %v3417_v0  ;;  %v3423_v13 = vld [vmem:[#allocation3 + $0x1a8] sm:$0xff] }
 0x8c9   : > { %5905 = vperm.xlu1 %6740, %v7206_v20  }
 0x8ca   : > { %v3978_v55 = vpop.xlane.xlu0 %3977 }
 0x8cb   : > { %v4118_v11 = vadd.f32 %v3978_v55, %v3478_v15  ;;  %v12242_v15 = vld [vmem:[#allocation205_spill] sm:$0xff] }
 0x8cd   : > { %4183 = vst.msk [vmem:[#allocation3 + $0x160] sm:$0xff] %vm382_vm2, %v4118_v11  ;;  %v5760_v11 = vld [vmem:[#allocation3 + $0x78] sm:$0xff] }
 0x8ce   : > { %7215 = vrcp.f32 %v5760_v11  ;;  %v5766_v11 = vld [vmem:[#allocation3 + $0xa8] sm:$0xff] }
 0x8d2   : > { %v10706_v7 = vpop.permute.xlu0 %5900 }
 0x8d8   : > { %v7216_v47 = vpop.eup %7215 }
 0x8db   : > { %v5189_v48 = vpop.f32.mrb[252].mxu0  ;;  %v3973_v16 = vpop.xlane.xlu1 %3972 }
 0x8dc   : > { %4007 = vadd.xlane.f32.xlu0 %v10400_v3  ;;  %v5191_v27 = vpop.f32.mrb[253].mxu0  ;;  %v4117_v61 = vadd.f32 %v3973_v16, %v3477_v43  ;;  %v5757_v43 = vld [vmem:[#allocation3 + $0x60] sm:$0xff]  ;;  %v3420_v16 = vld [vmem:[#allocation3 + $0x190] sm:$0xff] }
 0x8dd   : > { %v5478_v40 = vpop.f32.mrb[252].mxu1  ;;  %v5192_v45 = vpop.f32.mrb[254].mxu0  ;;  %7217 = vrcp.f32 %v5757_v43 }
 0x8de   : > { %v5479_v52 = vadd.f32 %v5478_v40, %v5189_v48  ;;  %v5480_v5 = vpop.f32.mrb[253].mxu1  ;;  %4182 = vst.msk [vmem:[#allocation3 + $0x158] sm:$0xff] %vm382_vm2, %v4117_v61  ;;  %v5194_v9 = vpop.f32.mrb[255].mxu0  ;;  %v12244_v61 = vld [vmem:[#allocation68_spill] sm:$0xff] }
 0x8df   : > { %v5481_v37 = vpop.f32.mrb[254].mxu1  ;;  %v10710_v60 = vpop.permute.xlu1 %5885  ;;  %v3484_v26 = vmul.f32 %v12244_v61, %v3420_v16  ;;  %v12245_v5 = vld [vmem:[#allocation71_spill] sm:$0xff]  ;;  %v3426_v16 = vld [vmem:[#allocation3 + $0x1c0] sm:$0xff]  ;;  %v12252_v61 = vld [vmem:[#allocation209_spill] sm:$0xff] }
 0x8e0   : > { %v5547_v18 = vadd.f32 %v5479_v52, %v4649_v41  ;;  %v5482_v10 = vadd.f32 %v5481_v37, %v5192_v45  ;;  %v5483_v1 = vpop.f32.mrb[255].mxu1  ;;  %v3419_v52 = vld [vmem:[#allocation3 + $0x188] sm:$0xff] }
 0x8e1   : > { %v3483_v9 = vmul.f32 %v12245_v5, %v3419_v52  ;;  %v5759_v1 = vld [vmem:[#allocation3 + $0x70] sm:$0xff]  ;;  %v3425_v52 = vld [vmem:[#allocation3 + $0x1b8] sm:$0xff] }
 0x8e2   : > { %5612 = vst.msk [vmem:[#allocation4 + $0x1f0] sm:$0xff] %vm511_vm3, %v5547_v18  ;;  %v5548_v3 = vadd.f32 %v5482_v10, %v4650_v57  ;;  %v5762_v18 = vld [vmem:[#allocation3 + $0x88] sm:$0xff]  ;;  %v12253_v5 = vld [vmem:[#allocation72_spill] sm:$0xff] }
 0x8e3   : > { %7219 = vrcp.f32 %v5762_v18  ;;  %v12246_v10 = vld [vmem:[#allocation311_spill] sm:$0xff] }
 0x8e4   : > { %5613 = vst.msk [vmem:[#allocation4 + $0x1f8] sm:$0xff] %vm511_vm3, %v5548_v3  ;;  %7221 = vrcp.f32 %v5759_v1  ;;  %v5770_v18 = vld [vmem:[#allocation3 + $0xc8] sm:$0xff]  ;;  %v5765_v1 = vld [vmem:[#allocation3 + $0xa0] sm:$0xff] }
 0x8e5   : > { %7223 = vrcp.f32 %v5764_v31  ;;  %v5782_v31 = vld [vmem:[#allocation3 + $0x128] sm:$0xff] }
 0x8e6   : > { %7225 = vrcp.f32 %v5761_v19 }
 0x8e7   : > { %v7218_v27 = vpop.eup %7217  ;;  %7227 = vrcp.f32 %v5766_v11 }
 0x8ed   : > { %4002 = vadd.xlane.f32.xlu1 %v10364_v17  ;;  %v3479_v17 = vmul.f32 %v10191_v32, %v3415_v44  ;;  %v3482_v32 = vmul.f32 %v12240_v35, %v3418_v51  ;;  %v7220_v3 = vpop.eup %7219  ;;  %v12248_v44 = vld [vmem:[#allocation73_spill] sm:$0xff] }
 0x8f2   : > { %5930 = vperm.xlu0 %6739, %v7208_v33   ;;  %v7222_v33 = vpop.eup %7221 }
 0x8fe   : > { %5915 = vperm.xlu1 %6740, %v7210_v29   ;;  %v3486_v29 = vmul.f32 %v12247_v36, %v3422_v49 }
 0x8ff   : > { %v3988_v38 = vpop.xlane.xlu0 %3987 }
 0x900   : > { %v4120_v59 = vadd.f32 %v3988_v38, %v3480_v6 }
 0x902   : > { %4185 = vst.msk [vmem:[#allocation3 + $0x170] sm:$0xff] %vm382_vm2, %v4120_v59  ;;  %v3421_v59 = vld [vmem:[#allocation3 + $0x198] sm:$0xff] }
 0x907   : > { %v10716_v50 = vpop.permute.xlu0 %5910 }
 0x910   : > { %v3983_v24 = vpop.xlane.xlu1 %3982 }
 0x911   : > { %4017 = vadd.xlane.f32.xlu0 %v10438_v34  ;;  %v4119_v14 = vadd.f32 %v3983_v24, %v3479_v17  ;;  %v3485_v17 = vmul.f32 %v12248_v44, %v3421_v59 }
 0x913   : > { %4184 = vst.msk [vmem:[#allocation3 + $0x168] sm:$0xff] %vm382_vm2, %v4119_v14 }
 0x914   : > { %v10720_v22 = vpop.permute.xlu1 %5895 }
 0x922   : > { %4012 = vadd.xlane.f32.xlu1 %v12239_v56  ;;  %v12249_v56 = vld [vmem:[#allocation215_spill] sm:$0xff] }
 0x927   : > { %5940 = vperm.xlu0 %6739, %v7212_v2   ;;  %v7224_v2 = vpop.eup %7223 }
 0x928   : > { %v7226_v35 = vpop.eup %7225 }
 0x929   : > { %v7228_v43 = vpop.eup %7227 }
 0x933   : > { %5925 = vperm.xlu1 %6740, %v7214_v42   ;;  %v3424_v42 = vld [vmem:[#allocation3 + $0x1b0] sm:$0xff] }
 0x934   : > { %v3998_v21 = vpop.xlane.xlu0 %3997 }
 0x935   : > { %v4122_v34 = vadd.f32 %v3998_v21, %v3482_v32  ;;  %v12250_v32 = vld [vmem:[#allocation207_spill] sm:$0xff] }
 0x936   : > { %v3488_v21 = vmul.f32 %v12250_v32, %v3424_v42 }
 0x937   : > { %4187 = vst.msk [vmem:[#allocation3 + $0x180] sm:$0xff] %vm382_vm2, %v4122_v34 }
 0x93c   : > { %v10726_v48 = vpop.permute.xlu0 %5920 }
 0x945   : > { %v3993_v20 = vpop.xlane.xlu1 %3992 }
 0x946   : > { %4027 = vadd.xlane.f32.xlu0 %v12242_v15  ;;  %v4121_v55 = vadd.f32 %v3993_v20, %v3481_v54  ;;  %v12251_v54 = vld [vmem:[#allocation67_spill] sm:$0xff] }
 0x947   : > { %v3487_v20 = vmul.f32 %v12251_v54, %v3423_v13  ;;  %v12255_v54 = vld [vmem:[#allocation188_spill] sm:$0xff] }
 0x948   : > { %4186 = vst.msk [vmem:[#allocation3 + $0x178] sm:$0xff] %vm382_vm2, %v4121_v55 }
 0x949   : > { %v10730_v41 = vpop.permute.xlu1 %5905 }
 0x957   : > { %4022 = vadd.xlane.f32.xlu1 %v12243_v8  ;;  %v5763_v8 = vld [vmem:[#allocation3 + $0x90] sm:$0xff] }
 0x958   : > { %7229 = vrcp.f32 %v5763_v8 }
 0x95c   : > { %5950 = vperm.xlu0 %6739, %v7216_v47  }
 0x968   : > { %5935 = vperm.xlu1 %6740, %v7218_v27   ;;  %v7230_v27 = vpop.eup %7229 }
 0x969   : > { %v4008_v40 = vpop.xlane.xlu0 %4007 }
 0x96a   : > { %v4124_v45 = vadd.f32 %v4008_v40, %v3484_v26  ;;  %v3490_v26 = vmul.f32 %v12252_v61, %v3426_v16 }
 0x96c   : > { %4189 = vst.msk [vmem:[#allocation3 + $0x190] sm:$0xff] %vm382_vm2, %v4124_v45 }
 0x971   : > { %v10736_v25 = vpop.permute.xlu0 %5930 }
 0x97a   : > { %v4003_v37 = vpop.xlane.xlu1 %4002 }
 0x97b   : > { %4037 = vadd.xlane.f32.xlu0 %v10514_v58  ;;  %v4123_v57 = vadd.f32 %v4003_v37, %v3483_v9 }
 0x97d   : > { %4188 = vst.msk [vmem:[#allocation3 + $0x188] sm:$0xff] %vm382_vm2, %v4123_v57  ;;  %v5768_v57 = vld [vmem:[#allocation3 + $0xb8] sm:$0xff] }
 0x97e   : > { %v10740_v38 = vpop.permute.xlu1 %5915  ;;  %7231 = vrcp.f32 %v5768_v57 }
 0x97f   : > { %7233 = vrcp.f32 %v5770_v18  ;;  %v5769_v18 = vld [vmem:[#allocation3 + $0xc0] sm:$0xff] }
 0x988   : > { %v7232_v49 = vpop.eup %7231 }
 0x989   : > { %v7234_v36 = vpop.eup %7233 }
 0x98c   : > { %4032 = vadd.xlane.f32.xlu1 %v12246_v10  ;;  %v5772_v10 = vld [vmem:[#allocation3 + $0xd8] sm:$0xff] }
 0x98d   : > { %7235 = vrcp.f32 %v5772_v10 }
 0x98e   : > { %7237 = vrcp.f32 %v5765_v1  ;;  %v5771_v1 = vld [vmem:[#allocation3 + $0xd0] sm:$0xff] }
 0x991   : > { %5960 = vperm.xlu0 %6739, %v7220_v3   ;;  %v5774_v3 = vld [vmem:[#allocation3 + $0xe8] sm:$0xff] }
 0x992   : > { %7239 = vrcp.f32 %v5774_v3 }
 0x99d   : > { %5945 = vperm.xlu1 %6740, %v7222_v33   ;;  %v5776_v33 = vld [vmem:[#allocation3 + $0xf8] sm:$0xff] }
 0x99e   : > { %v4018_v6 = vpop.xlane.xlu0 %4017  ;;  %7241 = vrcp.f32 %v5776_v33  ;;  %v5773_v33 = vld [vmem:[#allocation3 + $0xe0] sm:$0xff] }
 0x99f   : > { %v4126_v58 = vadd.f32 %v4018_v6, %v3486_v29  ;;  %v7236_v29 = vpop.eup %7235 }
 0x9a0   : > { %v7238_v59 = vpop.eup %7237 }
 0x9a1   : > { %4191 = vst.msk [vmem:[#allocation3 + $0x1a0] sm:$0xff] %vm382_vm2, %v4126_v58  ;;  %v3428_v58 = vld [vmem:[#allocation3 + $0x1d0] sm:$0xff]  ;;  %v7240_v44 = vpop.eup %7239 }
 0x9a6   : > { %v10746_v51 = vpop.permute.xlu0 %5940 }
 0x9a8   : > { %v7242_v19 = vpop.eup %7241 }
 0x9af   : > { %v4013_v24 = vpop.xlane.xlu1 %4012 }
 0x9b0   : > { %4047 = vadd.xlane.f32.xlu0 %v10553_v4  ;;  %v4125_v14 = vadd.f32 %v4013_v24, %v3485_v17  ;;  %v12254_v17 = vld [vmem:[#allocation206_spill] sm:$0xff] }
 0x9b1   : > { %v3492_v24 = vmul.f32 %v12254_v17, %v3428_v58 }
 0x9b2   : > { %4190 = vst.msk [vmem:[#allocation3 + $0x198] sm:$0xff] %vm382_vm2, %v4125_v14 }
 0x9b3   : > { %v10750_v0 = vpop.permute.xlu1 %5925 }
 0x9c1   : > { %4042 = vadd.xlane.f32.xlu1 %v12249_v56 }
 0x9c6   : > { %5970 = vperm.xlu0 %6739, %v7224_v2   ;;  %v5784_v2 = vld [vmem:[#allocation3 + $0x138] sm:$0xff] }
 0x9d2   : > { %5955 = vperm.xlu1 %6740, %v7226_v35   ;;  %v5786_v35 = vld [vmem:[#allocation3 + $0x148] sm:$0xff] }
 0x9d3   : > { %v4028_v34 = vpop.xlane.xlu0 %4027 }
 0x9d4   : > { %v4128_v4 = vadd.f32 %v4028_v34, %v3488_v21  ;;  %v5788_v21 = vld [vmem:[#allocation3 + $0x158] sm:$0xff] }
 0x9d6   : > { %4193 = vst.msk [vmem:[#allocation3 + $0x1b0] sm:$0xff] %vm382_vm2, %v4128_v4  ;;  %v3427_v4 = vld [vmem:[#allocation3 + $0x1c8] sm:$0xff] }
 0x9db   : > { %v10756_v47 = vpop.permute.xlu0 %5950 }
 0x9e4   : > { %v4023_v15 = vpop.xlane.xlu1 %4022 }
 0x9e5   : > { %4057 = vadd.xlane.f32.xlu0 %v10591_v53  ;;  %v4127_v55 = vadd.f32 %v4023_v15, %v3487_v20  ;;  %v3491_v20 = vmul.f32 %v12255_v54, %v3427_v4  ;;  %v5790_v15 = vld [vmem:[#allocation3 + $0x168] sm:$0xff]  ;;  %v5783_v4 = vld [vmem:[#allocation3 + $0x130] sm:$0xff] }
 0x9e7   : > { %4192 = vst.msk [vmem:[#allocation3 + $0x1a8] sm:$0xff] %vm382_vm2, %v4127_v55 }
 0x9e8   : > { %v10760_v45 = vpop.permute.xlu1 %5935 }
 0x9f6   : > { %4052 = vadd.xlane.f32.xlu1 %v10555_v39  ;;  %v3489_v39 = vmul.f32 %v12253_v5, %v3425_v52 }
 0x9fb   : > { %5980 = vperm.xlu0 %6739, %v7228_v43   ;;  %v5792_v43 = vld [vmem:[#allocation3 + $0x178] sm:$0xff] }
 0xa07   : > { %5965 = vperm.xlu1 %6740, %v7230_v27   ;;  %v5794_v27 = vld [vmem:[#allocation3 + $0x188] sm:$0xff] }
 0xa08   : > { %v4038_v40 = vpop.xlane.xlu0 %4037 }
 0xa09   : > { %v4130_v53 = vadd.f32 %v4038_v40, %v3490_v26  ;;  %v5796_v26 = vld [vmem:[#allocation3 + $0x198] sm:$0xff] }
 0xa0b   : > { %4195 = vst.msk [vmem:[#allocation3 + $0x1c0] sm:$0xff] %vm382_vm2, %v4130_v53  ;;  %v5798_v53 = vld [vmem:[#allocation3 + $0x1a8] sm:$0xff] }
 0xa10   : > { %v10766_v6 = vpop.permute.xlu0 %5960 }
 0xa19   : > { %v4033_v9 = vpop.xlane.xlu1 %4032 }
 0xa1a   : > { %4067 = vadd.xlane.f32.xlu0 %v10621_v46  ;;  %v4129_v37 = vadd.f32 %v4033_v9, %v3489_v39  ;;  %v5778_v46 = vld [vmem:[#allocation3 + $0x108] sm:$0xff]  ;;  %v5767_v9 = vld [vmem:[#allocation3 + $0xb0] sm:$0xff] }
 0xa1b   : > { %7243 = vrcp.f32 %v5778_v46  ;;  %v12256_v46 = vld [vmem:[#allocation217_spill] sm:$0xff] }
 0xa1c   : > { %4194 = vst.msk [vmem:[#allocation3 + $0x1b8] sm:$0xff] %vm382_vm2, %v4129_v37 }
 0xa1d   : > { %v10770_v34 = vpop.permute.xlu1 %5945 }
 0xa23   : > { %v5800_v5 = vld [vmem:[#allocation3 + $0x1b8] sm:$0xff] }
 0xa25   : > { %v7244_v42 = vpop.eup %7243 }
 0xa2b   : > { %4062 = vadd.xlane.f32.xlu1 %v10593_v63  ;;  %v5780_v63 = vld [vmem:[#allocation3 + $0x118] sm:$0xff] }
 0xa2c   : > { %7245 = vrcp.f32 %v5780_v63  ;;  %v5775_v63 = vld [vmem:[#allocation3 + $0xf0] sm:$0xff] }
 0xa2d   : > { %7247 = vrcp.f32 %v5782_v31  ;;  %v5779_v31 = vld [vmem:[#allocation3 + $0x110] sm:$0xff] }
 0xa2e   : > { %7249 = vrcp.f32 %v5784_v2 }
 0xa2f   : > { %7251 = vrcp.f32 %v5786_v35 }
 0xa30   : > { %5990 = vperm.xlu0 %6739, %v7232_v49   ;;  %7253 = vrcp.f32 %v5788_v21 }
 0xa31   : > { %7255 = vrcp.f32 %v5790_v15  ;;  %v5785_v15 = vld [vmem:[#allocation3 + $0x140] sm:$0xff] }
 0xa32   : > { %7257 = vrcp.f32 %v5792_v43 }
 0xa33   : > { %7259 = vrcp.f32 %v5794_v27 }
 0xa34   : > { %6000 = vperm.xlu0 %6739, %v7234_v36   ;;  %7261 = vrcp.f32 %v5796_v26 }
 0xa35   : > { %7263 = vrcp.f32 %v5798_v53 }
 0xa36   : > { %v7246_v32 = vpop.eup %7245  ;;  %7265 = vrcp.f32 %v5800_v5 }
 0xa37   : > { %v7248_v13 = vpop.eup %7247  ;;  %7267 = vrcp.f32 %v5767_v9  ;;  %v3432_v9 = vld [vmem:[#allocation3 + $0x1f0] sm:$0xff] }
 0xa38   : > { %6010 = vperm.xlu0 %6739, %v7236_v29   ;;  %v7250_v11 = vpop.eup %7249 }
 0xa39   : > { %v7252_v16 = vpop.eup %7251 }
 0xa3a   : > { %v7254_v61 = vpop.eup %7253 }
 0xa3b   : > { %v7256_v40 = vpop.eup %7255 }
 0xa3c   : > { %6020 = vperm.xlu0 %6739, %v7240_v44   ;;  %5975 = vperm.xlu1 %6740, %v7238_v59   ;;  %v7258_v52 = vpop.eup %7257 }
 0xa3d   : > { %v4048_v14 = vpop.xlane.xlu0 %4047  ;;  %v7260_v39 = vpop.eup %7259 }
 0xa3e   : > { %v4132_v56 = vadd.f32 %v4048_v14, %v3492_v24  ;;  %v7262_v57 = vpop.eup %7261  ;;  %v5777_v24 = vld [vmem:[#allocation3 + $0x100] sm:$0xff] }
 0xa3f   : > { %v7264_v10 = vpop.eup %7263 }
 0xa40   : > { %4197 = vst.msk [vmem:[#allocation3 + $0x1d0] sm:$0xff] %vm382_vm2, %v4132_v56  ;;  %6030 = vperm.xlu0 %6739, %v7242_v19   ;;  %v7266_v49 = vpop.eup %7265  ;;  %v5781_v19 = vld [vmem:[#allocation3 + $0x120] sm:$0xff] }
 0xa41   : > { %v7268_v36 = vpop.eup %7267 }
 0xa44   : > { %6040 = vperm.xlu0 %6739, %v7244_v42   ;;  %v3429_v42 = vld [vmem:[#allocation3 + $0x1d8] sm:$0xff] }
 0xa45   : > { %v10775_v3 = vpop.permute.xlu0 %5970 }
 0xa48   : > { %6050 = vperm.xlu0 %6739, %v7246_v32   ;;  %v12257_v32 = vld [vmem:[#allocation211_spill] sm:$0xff] }
 0xa49   : > { %v3493_v21 = vmul.f32 %v12257_v32, %v3429_v42  ;;  %v5689_v32 = vld [vmem:[#allocation4 + $0x40] sm:$0xff] }
 0xa4c   : > { %6060 = vperm.xlu0 %6739, %v7248_v13  }
 0xa4e   : > { %v4043_v55 = vpop.xlane.xlu1 %4042 }
 0xa4f   : > { %v4131_v8 = vadd.f32 %v4043_v55, %v3491_v20 }
 0xa50   : > { %6070 = vperm.xlu0 %6739, %v7250_v11   ;;  %v5787_v11 = vld [vmem:[#allocation3 + $0x150] sm:$0xff] }
 0xa51   : > { %4196 = vst.msk [vmem:[#allocation3 + $0x1c8] sm:$0xff] %vm382_vm2, %v4131_v8 }
 0xa52   : > { %v10779_v2 = vpop.permute.xlu1 %5955 }
 0xa54   : > { %6080 = vperm.xlu0 %6739, %v7252_v16   ;;  %v5789_v16 = vld [vmem:[#allocation3 + $0x160] sm:$0xff] }
 0xa58   : > { %6090 = vperm.xlu0 %6739, %v7254_v61   ;;  %v5802_v37 = vld [vmem:[#allocation3 + $0x1c8] sm:$0xff]  ;;  %v5791_v61 = vld [vmem:[#allocation3 + $0x170] sm:$0xff] }
 0xa59   : > { %7269 = vrcp.f32 %v5802_v37  ;;  %v3496_v37 = vmul.f32 %v10595_v62, %v3432_v9  ;;  %v5682_v62 = vld [vmem:[#allocation4 + $0x8] sm:$0xff]  ;;  %v5795_v9 = vld [vmem:[#allocation3 + $0x190] sm:$0xff] }
 0xa5a   : > { %7271 = vrcp.f32 %v5769_v18 }
 0xa5b   : > { %7273 = vrcp.f32 %v5771_v1  ;;  %v3431_v1 = vld [vmem:[#allocation3 + $0x1e8] sm:$0xff] }
 0xa5c   : > { %6100 = vperm.xlu0 %6739, %v7256_v40   ;;  %7275 = vrcp.f32 %v5773_v33 }
 0xa5d   : > { %7277 = vrcp.f32 %v5775_v63 }
 0xa5e   : > { %7279 = vrcp.f32 %v5777_v24  ;;  %v5684_v24 = vld [vmem:[#allocation4 + $0x18] sm:$0xff] }
 0xa5f   : > { %7281 = vrcp.f32 %v5779_v31  ;;  %v5685_v31 = vld [vmem:[#allocation4 + $0x20] sm:$0xff] }
 0xa60   : > { %6110 = vperm.xlu0 %6739, %v7258_v52   ;;  %4072 = vadd.xlane.f32.xlu1 %v10623_v23  ;;  %v3430_v23 = vld [vmem:[#allocation3 + $0x1e0] sm:$0xff]  ;;  %7283 = vrcp.f32 %v5781_v19 }
 0xa61   : > { %v3494_v29 = vmul.f32 %v12256_v46, %v3430_v23  ;;  %7285 = vrcp.f32 %v5783_v4  ;;  %v12258_v23 = vld [vmem:[#allocation213_spill] sm:$0xff] }
 0xa62   : > { %7287 = vrcp.f32 %v5785_v15  ;;  %v3433_v4 = vld [vmem:[#allocation3 + $0x1f8] sm:$0xff] }
 0xa63   : > { %v7270_v59 = vpop.eup %7269  ;;  %7289 = vrcp.f32 %v5787_v11  ;;  %v5693_v11 = vld [vmem:[#allocation4 + $0x60] sm:$0xff] }
 0xa64   : > { %6120 = vperm.xlu0 %6739, %v7260_v39   ;;  %v7272_v17 = vpop.eup %7271 }
 0xa65   : > { %v7274_v14 = vpop.eup %7273 }
 0xa66   : > { %v7276_v56 = vpop.eup %7275 }
 0xa67   : > { %v7278_v35 = vpop.eup %7277 }
 0xa68   : > { %6130 = vperm.xlu0 %6739, %v7262_v57   ;;  %v7280_v54 = vpop.eup %7279 }
 0xa69   : > { %v7282_v55 = vpop.eup %7281 }
 0xa6a   : > { %v7284_v8 = vpop.eup %7283 }
 0xa6b   : > { %v7286_v27 = vpop.eup %7285 }
 0xa6c   : > { %6140 = vperm.xlu0 %6739, %v7264_v10   ;;  %v7288_v26 = vpop.eup %7287 }
 0xa6d   : > { %v7290_v40 = vpop.eup %7289 }
 0xa70   : > { %6150 = vperm.xlu0 %6739, %v7266_v49   ;;  %v3495_v49 = vmul.f32 %v12258_v23, %v3431_v1  ;;  %v5698_v1 = vld [vmem:[#allocation4 + $0x88] sm:$0xff] }
 0xa71   : > { %5985 = vperm.xlu1 %6740, %v7268_v36  }
 0xa72   : > { %v4058_v58 = vpop.xlane.xlu0 %4057 }
 0xa73   : > { %v4134_v44 = vadd.f32 %v4058_v58, %v3494_v29  ;;  %v5681_v29 = vld [vmem:[#allocation4] sm:$0xff] }
 0xa74   : > { %6160 = vperm.xlu0 %6739, %v7270_v59   ;;  %v6193_v58 = vmul.f32 %v10696_v12, %v5681_v29  ;;  %v6194_v59 = vmul.f32 %v10669_v28, %v5682_v62  ;;  %v5686_v12 = vld [vmem:[#allocation4 + $0x28] sm:$0xff]  ;;  %v5687_v28 = vld [vmem:[#allocation4 + $0x30] sm:$0xff] }
 0xa75   : > { %4199 = vst.msk [vmem:[#allocation3 + $0x1e0] sm:$0xff] %vm382_vm2, %v4134_v44  ;;  %5995 = vperm.xlu1 %6740, %v7272_v17   ;;  %v5683_v44 = vld [vmem:[#allocation4 + $0x10] sm:$0xff]  ;;  %v6198_v19 = vmul.f32 %v10706_v7, %v5686_v12  ;;  %v6199_v42 = vmul.f32 %v10730_v41, %v5687_v28  ;;  %v12259_v7 = vld [vmem:[#allocation219_spill] sm:$0xff] }
 0xa76   : > { %v6195_v17 = vmul.f32 %v10710_v60, %v5683_v44  ;;  %v5691_v41 = vld [vmem:[#allocation4 + $0x50] sm:$0xff]  ;;  %v5702_v12 = vld [vmem:[#allocation4 + $0xa8] sm:$0xff] }
 0xa79   : > { %6005 = vperm.xlu1 %6740, %v7274_v14   ;;  %v6196_v14 = vmul.f32 %v10692_v30, %v5684_v24  ;;  %v6201_v30 = vmul.f32 %v10740_v38, %v5689_v32  ;;  %v5701_v24 = vld [vmem:[#allocation4 + $0xa0] sm:$0xff] }
 0xa7a   : > { %v10783_v39 = vpop.permute.xlu0 %5980 }
 0xa7d   : > { %6015 = vperm.xlu1 %6740, %v7276_v56   ;;  %v6197_v56 = vmul.f32 %v10720_v22, %v5685_v31  ;;  %v5690_v22 = vld [vmem:[#allocation4 + $0x48] sm:$0xff] }
 0xa81   : > { %6025 = vperm.xlu1 %6740, %v7278_v35   ;;  %v5688_v35 = vld [vmem:[#allocation4 + $0x38] sm:$0xff] }
 0xa82   : > { %v6200_v60 = vmul.f32 %v10716_v50, %v5688_v35  ;;  %v5692_v50 = vld [vmem:[#allocation4 + $0x58] sm:$0xff]  ;;  %v5703_v35 = vld [vmem:[#allocation4 + $0xb0] sm:$0xff] }
 0xa83   : > { %v4053_v13 = vpop.xlane.xlu1 %4052  ;;  %v6204_v38 = vmul.f32 %v10736_v25, %v5692_v50 }
 0xa84   : > { %v4133_v20 = vadd.f32 %v4053_v13, %v3493_v21  ;;  %v6202_v13 = vmul.f32 %v10726_v48, %v5690_v22  ;;  %v5694_v48 = vld [vmem:[#allocation4 + $0x68] sm:$0xff] }
 0xa85   : > { %6035 = vperm.xlu1 %6740, %v7280_v54   ;;  %v3497_v54 = vmul.f32 %v12259_v7, %v3433_v4  ;;  %v5705_v7 = vld [vmem:[#allocation4 + $0xc0] sm:$0xff] }
 0xa86   : > { %4198 = vst.msk [vmem:[#allocation3 + $0x1d8] sm:$0xff] %vm382_vm2, %v4133_v20 }
 0xa87   : > { %v10787_v10 = vpop.permute.xlu1 %5965 }
 0xa89   : > { %6045 = vperm.xlu1 %6740, %v7282_v55   ;;  %v6203_v55 = vmul.f32 %v10750_v0, %v5691_v41  ;;  %v5695_v0 = vld [vmem:[#allocation4 + $0x70] sm:$0xff]  ;;  %v5706_v41 = vld [vmem:[#allocation4 + $0xc8] sm:$0xff] }
 0xa8d   : > { %v5804_v43 = vld [vmem:[#allocation3 + $0x1d8] sm:$0xff]  ;;  %6055 = vperm.xlu1 %6740, %v7284_v8  }
 0xa8e   : > { %7291 = vrcp.f32 %v5804_v43  ;;  %v6205_v43 = vmul.f32 %v10760_v45, %v5693_v11 }
 0xa8f   : > { %7293 = vrcp.f32 %v5789_v16  ;;  %v6206_v16 = vmul.f32 %v10746_v51, %v5694_v48  ;;  %v5793_v51 = vld [vmem:[#allocation3 + $0x180] sm:$0xff] }
 0xa90   : > { %7295 = vrcp.f32 %v5791_v61  ;;  %v6207_v61 = vmul.f32 %v10770_v34, %v5695_v0  ;;  %v5797_v34 = vld [vmem:[#allocation3 + $0x1a0] sm:$0xff] }
 0xa91   : > { %6065 = vperm.xlu1 %6740, %v7286_v27  }
 0xa95   : > { %6075 = vperm.xlu1 %6740, %v7288_v26  }
 0xa98   : > { %v7292_v53 = vpop.eup %7291 }
 0xa99   : > { %6085 = vperm.xlu1 %6740, %v7290_v40   ;;  %6170 = vperm.xlu0 %6739, %v7292_v53   ;;  %v7294_v52 = vpop.eup %7293  ;;  %v5696_v40 = vld [vmem:[#allocation4 + $0x78] sm:$0xff] }
 0xa9a   : > { %v7296_v5 = vpop.eup %7295  ;;  %v6208_v25 = vmul.f32 %v10756_v47, %v5696_v40  ;;  %v5799_v47 = vld [vmem:[#allocation3 + $0x1b0] sm:$0xff] }
 0xa9d   : > { %6095 = vperm.xlu1 %6740, %v7294_v52  }
 0xaa1   : > { %6105 = vperm.xlu1 %6740, %v7296_v5  }
 0xaa7   : > { %v4068_v57 = vpop.xlane.xlu0 %4067 }
 0xaa8   : > { %v4136_v18 = vadd.f32 %v4068_v57, %v3496_v37  ;;  %v5697_v57 = vld [vmem:[#allocation4 + $0x80] sm:$0xff] }
 0xaaa   : > { %4201 = vst.msk [vmem:[#allocation3 + $0x1f0] sm:$0xff] %vm382_vm2, %v4136_v18  ;;  %v6209_v18 = vmul.f32 %v10779_v2, %v5697_v57  ;;  %v5803_v2 = vld [vmem:[#allocation3 + $0x1d0] sm:$0xff] }
 0xab8   : > { %v4063_v33 = vpop.xlane.xlu1 %4062 }
 0xab9   : > { %v4135_v36 = vadd.f32 %v4063_v33, %v3495_v49  ;;  %v6210_v33 = vmul.f32 %v10766_v6, %v5698_v1  ;;  %v5805_v6 = vld [vmem:[#allocation3 + $0x1e0] sm:$0xff] }
 0xabb   : > { %4200 = vst.msk [vmem:[#allocation3 + $0x1e8] sm:$0xff] %vm382_vm2, %v4135_v36  ;;  %v5801_v36 = vld [vmem:[#allocation3 + $0x1c0] sm:$0xff] }
 0xabc   : > { %v10800_v21 = vpop.permute.xlu1 %5975 }
 0xac2   : > { %v5806_v46 = vld [vmem:[#allocation3 + $0x1e8] sm:$0xff] }
 0xac3   : > { %7297 = vrcp.f32 %v5806_v46  ;;  %v5699_v46 = vld [vmem:[#allocation4 + $0x90] sm:$0xff] }
 0xaca   : > { %6257 = vxpose.xlu1.b32.start [1/16] (narrow) %v6193_v58, 16  ;;  %v6211_v58 = vmul.f32 %v10787_v10, %v5699_v46  ;;  %v6213_v10 = vmul.f32 %v10800_v21, %v5701_v24  ;;  %v5704_v21 = vld [vmem:[#allocation4 + $0xb8] sm:$0xff] }
 0xacb   : > { %v5716_v24 = vld [vmem:[#allocation4 + $0x118] sm:$0xff] }
 0xacd   : > { %v7298_v63 = vpop.eup %7297 }
 0xace   : > { %6258 = vxpose.xlu1.b32.cont [2/16] (narrow) %v6194_v59, 16  ;;  %6180 = vperm.xlu0 %6739, %v7298_v63   ;;  %v5700_v59 = vld [vmem:[#allocation4 + $0x98] sm:$0xff] }
 0xacf   : > { %v6212_v44 = vmul.f32 %v10775_v3, %v5700_v59  ;;  %v6214_v3 = vmul.f32 %v10783_v39, %v5702_v12  ;;  %v5714_v59 = vld [vmem:[#allocation4 + $0x108] sm:$0xff] }
 0xad0   : > { %v5718_v12 = vld [vmem:[#allocation4 + $0x128] sm:$0xff] }
 0xad2   : > { %6259 = vxpose.xlu1.b32.cont [3/16] (narrow) %v6195_v17, 16  ;;  %v5991_v17 = vpop.permute.xlu0 %5990 }
 0xad6   : > { %6260 = vxpose.xlu1.b32.cont [4/16] (narrow) %v6196_v14, 16 }
 0xada   : > { %6261 = vxpose.xlu1.b32.cont [5/16] (narrow) %v6197_v56, 16  ;;  %v6001_v56 = vpop.permute.xlu0 %6000 }
 0xade   : > { %6262 = vxpose.xlu1.b32.cont [6/16] (narrow) %v6198_v19, 16  ;;  %v5807_v19 = vld [vmem:[#allocation3 + $0x1f0] sm:$0xff]  ;;  %v6011_v32 = vpop.permute.xlu0 %6010 }
 0xae2   : > { %6263 = vxpose.xlu1.b32.cont [7/16] (narrow) %v6199_v42, 16  ;;  %v6021_v39 = vpop.permute.xlu0 %6020 }
 0xae6   : > { %6264 = vxpose.xlu1.b32.cont [8/16] (narrow) %v6200_v60, 16  ;;  %v6031_v50 = vpop.permute.xlu0 %6030 }
 0xaea   : > { %6265 = vxpose.xlu1.b32.cont [9/16] (narrow) %v6201_v30, 16  ;;  %v6041_v48 = vpop.permute.xlu0 %6040 }
 0xaed   : > { %v4073_v20 = vpop.xlane.xlu1 %4072 }
 0xaee   : > { %v4137_v15 = vadd.f32 %v4073_v20, %v3497_v54  ;;  %6266 = vxpose.xlu1.b32.cont [10/16] (narrow) %v6202_v13, 16  ;;  %v6216_v13 = vmul.f32 %v5991_v17, %v5704_v21 }
 0xaf0   : > { %4202 = vst.msk [vmem:[#allocation3 + $0x1f8] sm:$0xff] %vm382_vm2, %v4137_v15 }
 0xaf1   : > { %v10809_v27 = vpop.permute.xlu1 %5985 }
 0xaf2   : > { %6267 = vxpose.xlu1.b32.cont [11/16] (narrow) %v6203_v55, 16  ;;  %v6215_v30 = vmul.f32 %v10809_v27, %v5703_v35  ;;  %v6218_v55 = vmul.f32 %v6001_v56, %v5706_v41  ;;  %v6395_v27 = vld [vmem:[%s10849_s13] sm:$0xff] }
 0xaf3   : > { %v5725_v41 = vld [vmem:[#allocation4 + $0x160] sm:$0xff] }
 0xaf5   : > { %v10813_v53 = vpop.permute.xlu1 %5995 }
 0xaf6   : > { %6268 = vxpose.xlu1.b32.cont [12/16] (narrow) %v6204_v38, 16  ;;  %v6217_v20 = vmul.f32 %v10813_v53, %v5705_v7  ;;  %v5707_v38 = vld [vmem:[#allocation4 + $0xd0] sm:$0xff]  ;;  %v6399_v53 = vld [vmem:[%s10849_s13 + $0x20] sm:$0xff] }
 0xaf7   : > { %v5808_v8 = vld [vmem:[#allocation3 + $0x1f8] sm:$0xff] }
 0xaf8   : > { %7299 = vrcp.f32 %v5808_v8 }
 0xaf9   : > { %v10815_v45 = vpop.permute.xlu1 %6005  ;;  %7301 = vrcp.f32 %v5793_v51  ;;  %v6051_v51 = vpop.permute.xlu0 %6050 }
 0xafa   : > { %6269 = vxpose.xlu1.b32.cont [13/16] (narrow) %v6205_v43, 16  ;;  %7303 = vrcp.f32 %v5795_v9  ;;  %v6219_v8 = vmul.f32 %v10815_v45, %v5707_v38  ;;  %v10852_v43 = vstv %s6385_s9 }
 0xafb   : > { %7305 = vrcp.f32 %v5797_v34 }
 0xafc   : > { %7307 = vrcp.f32 %v5799_v47 }
 0xafd   : > { %v10817_v52 = vpop.permute.xlu1 %6015  ;;  %7309 = vrcp.f32 %v5801_v36  ;;  %v6061_v1 = vpop.permute.xlu0 %6060  ;;  %v5712_v36 = vld [vmem:[#allocation4 + $0xf8] sm:$0xff] }
 0xafe   : > { %6270 = vxpose.xlu1.b32.cont [14/16] (narrow) %v6206_v16, 16  ;;  %7311 = vrcp.f32 %v5803_v2  ;;  %v5708_v16 = vld [vmem:[#allocation4 + $0xd8] sm:$0xff]  ;;  %v6224_v46 = vmul.f32 %v6031_v50, %v5712_v36 }
 0xaff   : > { %7313 = vrcp.f32 %v5805_v6  ;;  %v5732_v36 = vld [vmem:[#allocation4 + $0x198] sm:$0xff] }
 0xb00   : > { %7315 = vrcp.f32 %v5807_v19 }
 0xb01   : > { %v10819_v5 = vpop.permute.xlu1 %6025 }
 0xb02   : > { %v7300_v26 = vpop.eup %7299  ;;  %6271 = vxpose.xlu1.b32.cont [15/16] (narrow) %v6207_v61, 16  ;;  %v6220_v61 = vmul.f32 %v6011_v32, %v5708_v16  ;;  %v5721_v32 = vld [vmem:[#allocation4 + $0x140] sm:$0xff] }
 0xb03   : > { %6190 = vperm.xlu0 %6739, %v7300_v26   ;;  %v7302_v49 = vpop.eup %7301 }
 0xb04   : > { %v7304_v29 = vpop.eup %7303 }
 0xb05   : > { %v10821_v37 = vpop.permute.xlu1 %6035  ;;  %v7306_v63 = vpop.eup %7305 }
 0xb06   : > { %6272 = vxpose.xlu1.b32.end [16/16] (narrow) %v6208_v25, 16  ;;  %v7308_v31 = vpop.eup %7307  ;;  %v5709_v25 = vld [vmem:[#allocation4 + $0xe0] sm:$0xff] }
 0xb07   : > { %v7310_v28 = vpop.eup %7309  ;;  %v6221_v9 = vmul.f32 %v10817_v52, %v5709_v25  ;;  %v5729_v25 = vld [vmem:[#allocation4 + $0x180] sm:$0xff] }
 0xb08   : > { %v7312_v60 = vpop.eup %7311 }
 0xb09   : > { %v10824_v23 = vpop.permute.xlu1 %6045  ;;  %v7314_v22 = vpop.eup %7313 }
 0xb0a   : > { %v7316_v54 = vpop.eup %7315 }
 0xb0d   : > { %v10828_v62 = vpop.permute.xlu1 %6055 }
 0xb11   : > { %v10831_v14 = vpop.permute.xlu1 %6065 }
 0xb15   : > { %v10835_v42 = vpop.permute.xlu1 %6075 }
 0xb16   : > { %v6233_v21 = vmul.f32 %v10835_v42, %v5721_v32  ;;  %v5726_v42 = vld [vmem:[#allocation4 + $0x168] sm:$0xff] }
 0xb19   : > { %v10838_v4 = vpop.permute.xlu1 %6085 }
 0xb1d   : > { %v10841_v15 = vpop.permute.xlu1 %6095 }
 0xb21   : > { %6289 = vxpose.xlu0.b32.start [1/16] (narrow) %v6209_v18, 16  ;;  %v10844_v11 = vpop.permute.xlu1 %6105  ;;  %v5710_v18 = vld [vmem:[#allocation4 + $0xe8] sm:$0xff] }
 0xb22   : > { %v6222_v47 = vmul.f32 %v6021_v39, %v5710_v18  ;;  %v5723_v39 = vld [vmem:[#allocation4 + $0x150] sm:$0xff] }
 0xb23   : > { %v6235_v7 = vmul.f32 %v10838_v4, %v5723_v39  ;;  %v5744_v39 = vld [vmem:[#allocation4 + $0x1f8] sm:$0xff] }
 0xb24   : > { %6115 = vperm.xlu1 %6740, %v7302_v49   ;;  %v5711_v49 = vld [vmem:[#allocation4 + $0xf0] sm:$0xff] }
 0xb25   : > { %6290 = vxpose.xlu0.b32.cont [2/16] (narrow) %v6210_v33, 16  ;;  %v6223_v33 = vmul.f32 %v10819_v5, %v5711_v49  ;;  %v6228_v5 = vmul.f32 %v6051_v51, %v5716_v24  ;;  %v5731_v49 = vld [vmem:[#allocation4 + $0x190] sm:$0xff] }
 0xb28   : > { %6125 = vperm.xlu1 %6740, %v7304_v29   ;;  %v6071_v29 = vpop.permute.xlu0 %6070 }
 0xb29   : > { %6291 = vxpose.xlu0.b32.cont [3/16] (narrow) %v6211_v58, 16  ;;  %v5713_v58 = vld [vmem:[#allocation4 + $0x100] sm:$0xff] }
 0xb2a   : > { %v6225_v52 = vmul.f32 %v10821_v37, %v5713_v58  ;;  %v6230_v37 = vmul.f32 %v6061_v1, %v5718_v12  ;;  %v5733_v58 = vld [vmem:[#allocation4 + $0x1a0] sm:$0xff] }
 0xb2c   : > { %6135 = vperm.xlu1 %6740, %v7306_v63   ;;  %v6081_v2 = vpop.permute.xlu0 %6080  ;;  %v6226_v63 = vmul.f32 %v6041_v48, %v5714_v59  ;;  %v5727_v48 = vld [vmem:[#allocation4 + $0x170] sm:$0xff] }
 0xb2d   : > { %6292 = vxpose.xlu0.b32.cont [4/16] (narrow) %v6212_v44, 16  ;;  %v5715_v44 = vld [vmem:[#allocation4 + $0x110] sm:$0xff]  ;;  %v6239_v16 = vmul.f32 %v10844_v11, %v5727_v48 }
 0xb2e   : > { %v6227_v6 = vmul.f32 %v10824_v23, %v5715_v44  ;;  %v5735_v44 = vld [vmem:[#allocation4 + $0x1b0] sm:$0xff] }
 0xb30   : > { %6145 = vperm.xlu1 %6740, %v7308_v31   ;;  %v6091_v17 = vpop.permute.xlu0 %6090 }
 0xb31   : > { %6293 = vxpose.xlu0.b32.cont [5/16] (narrow) %v6213_v10, 16  ;;  %v5717_v10 = vld [vmem:[#allocation4 + $0x120] sm:$0xff] }
 0xb32   : > { %v6229_v56 = vmul.f32 %v10828_v62, %v5717_v10 }
 0xb34   : > { %6155 = vperm.xlu1 %6740, %v7310_v28   ;;  %v6101_v31 = vpop.permute.xlu0 %6100  ;;  %v5719_v28 = vld [vmem:[#allocation4 + $0x130] sm:$0xff] }
 0xb35   : > { %6294 = vxpose.xlu0.b32.cont [6/16] (narrow) %v6214_v3, 16  ;;  %v6231_v3 = vmul.f32 %v10831_v14, %v5719_v28  ;;  %v6238_v38 = vmul.f32 %v6101_v31, %v5726_v42  ;;  %v5737_v31 = vld [vmem:[#allocation4 + $0x1c0] sm:$0xff] }
 0xb38   : > { %6165 = vperm.xlu1 %6740, %v7312_v60   ;;  %v6111_v19 = vpop.permute.xlu0 %6110  ;;  %v5720_v60 = vld [vmem:[#allocation4 + $0x138] sm:$0xff] }
 0xb39   : > { %6295 = vxpose.xlu0.b32.cont [7/16] (narrow) %v6215_v30, 16  ;;  %v6232_v23 = vmul.f32 %v6071_v29, %v5720_v60 }
 0xb3c   : > { %6175 = vperm.xlu1 %6740, %v7314_v22   ;;  %v6121_v35 = vpop.permute.xlu0 %6120  ;;  %v5722_v22 = vld [vmem:[#allocation4 + $0x148] sm:$0xff] }
 0xb3d   : > { %6296 = vxpose.xlu0.b32.cont [8/16] (narrow) %v6216_v13, 16  ;;  %v6234_v62 = vmul.f32 %v6081_v2, %v5722_v22  ;;  %v5734_v2 = vld [vmem:[#allocation4 + $0x1a8] sm:$0xff] }
 0xb40   : > { %6185 = vperm.xlu1 %6740, %v7316_v54   ;;  %v6131_v30 = vpop.permute.xlu0 %6130  ;;  %v5724_v54 = vld [vmem:[#allocation4 + $0x158] sm:$0xff] }
 0xb41   : > { %6297 = vxpose.xlu0.b32.cont [9/16] (narrow) %v6217_v20, 16  ;;  %v6236_v14 = vmul.f32 %v6091_v17, %v5724_v54  ;;  %v6397_v54 = vld [vmem:[%s10849_s13 + $0x10] sm:$0xff] }
 0xb44   : > { %v6141_v13 = vpop.permute.xlu0 %6140 }
 0xb45   : > { %6298 = vxpose.xlu0.b32.cont [10/16] (narrow) %v6218_v55, 16  ;;  %v6237_v55 = vmul.f32 %v10841_v15, %v5725_v41  ;;  %v6396_v15 = vld [vmem:[%s10849_s13 + $0x8] sm:$0xff]  ;;  %v6246_v59 = vmul.f32 %v6141_v13, %v5734_v2 }
 0xb48   : > { %v6151_v20 = vpop.permute.xlu0 %6150 }
 0xb49   : > { %6299 = vxpose.xlu0.b32.cont [11/16] (narrow) %v6219_v8, 16 }
 0xb4a   : > { %v6273_v0 = vpop.trf.xlu1 }
 0xb4b   : > { %v6387_v26 = vmul.f32 %v10852_v43, %v6273_v0 }
 0xb4c   : > { %v6161_v50 = vpop.permute.xlu0 %6160 }
 0xb4d   : > { %6300 = vxpose.xlu0.b32.cont [12/16] (narrow) %v6220_v61, 16  ;;  %v6403_v40 = vadd.f32 %v6395_v27, %v6387_v26  ;;  %v5728_v27 = vld [vmem:[#allocation4 + $0x178] sm:$0xff] }
 0xb4e   : > { %v6274_v45 = vpop.trf.xlu1  ;;  %v6240_v0 = vmul.f32 %v6111_v19, %v5728_v27  ;;  %v5739_v19 = vld [vmem:[#allocation4 + $0x1d0] sm:$0xff]  ;;  %v6402_v27 = vld [vmem:[%s10849_s13 + $0x38] sm:$0xff] }
 0xb4f   : > { %6411 = vst [vmem:[%s10859_s16] sm:$0xff] %v6403_v40  ;;  %v6391_v34 = vmul.f32 %v10852_v43, %v6274_v45 }
 0xb50   : > { %v6171_v8 = vpop.permute.xlu0 %6170 }
 0xb51   : > { %6301 = vxpose.xlu0.b32.cont [13/16] (narrow) %v6221_v9, 16  ;;  %v6407_v57 = vadd.f32 %v6399_v53, %v6391_v34  ;;  %v6400_v9 = vld [vmem:[%s10849_s13 + $0x28] sm:$0xff] }
 0xb53   : > { %6415 = vst [vmem:[%s10859_s16 + $0x20] sm:$0xff] %v6407_v57  ;;  %v5730_v57 = vld [vmem:[#allocation4 + $0x188] sm:$0xff] }
 0xb54   : > { %v10875_v4 = vpop.permute.xlu0 %6180  ;;  %v6242_v18 = vmul.f32 %v6121_v35, %v5730_v57 }
 0xb55   : > { %6302 = vxpose.xlu0.b32.cont [14/16] (narrow) %v6222_v47, 16 }
 0xb59   : > { %6303 = vxpose.xlu0.b32.cont [15/16] (narrow) %v6223_v33, 16 }
 0xb5d   : > { %6304 = vxpose.xlu0.b32.end [16/16] (narrow) %v6224_v46, 16  ;;  %v6244_v46 = vmul.f32 %v6131_v30, %v5732_v36  ;;  %v5742_v30 = vld [vmem:[#allocation4 + $0x1e8] sm:$0xff] }
 0xb61   : > { %6321 = vxpose.xlu0.b32.start [1/16] (narrow) %v6225_v52, 16 }
 0xb65   : > { %6322 = vxpose.xlu0.b32.cont [2/16] (narrow) %v6226_v63, 16 }
 0xb69   : > { %6323 = vxpose.xlu0.b32.cont [3/16] (narrow) %v6227_v6, 16  ;;  %v5736_v6 = vld [vmem:[#allocation4 + $0x1b8] sm:$0xff] }
 0xb6a   : > { %v6248_v24 = vmul.f32 %v6151_v20, %v5736_v6 }
 0xb6d   : > { %6324 = vxpose.xlu0.b32.cont [4/16] (narrow) %v6228_v5, 16 }
 0xb71   : > { %6325 = vxpose.xlu0.b32.cont [5/16] (narrow) %v6229_v56, 16  ;;  %v5738_v56 = vld [vmem:[#allocation4 + $0x1c8] sm:$0xff] }
 0xb72   : > { %v6250_v12 = vmul.f32 %v6161_v50, %v5738_v56 }
 0xb75   : > { %6326 = vxpose.xlu0.b32.cont [6/16] (narrow) %v6230_v37, 16 }
 0xb79   : > { %6327 = vxpose.xlu0.b32.cont [7/16] (narrow) %v6231_v3, 16  ;;  %v5740_v3 = vld [vmem:[#allocation4 + $0x1d8] sm:$0xff] }
 0xb7a   : > { %v6252_v35 = vmul.f32 %v6171_v8, %v5740_v3  ;;  %v6398_v8 = vld [vmem:[%s10849_s13 + $0x18] sm:$0xff] }
 0xb7d   : > { %6328 = vxpose.xlu0.b32.cont [8/16] (narrow) %v6232_v23, 16  ;;  %v5741_v23 = vld [vmem:[#allocation4 + $0x1e0] sm:$0xff] }
 0xb81   : > { %6329 = vxpose.xlu0.b32.cont [9/16] (narrow) %v6233_v21, 16  ;;  %v6254_v21 = vmul.f32 %v10875_v4, %v5742_v30 }
 0xb82   : > { %v10877_v61 = vpop.permute.xlu0 %6190 }
 0xb85   : > { %6330 = vxpose.xlu0.b32.cont [10/16] (narrow) %v6234_v62, 16  ;;  %v5743_v62 = vld [vmem:[#allocation4 + $0x1f0] sm:$0xff] }
 0xb89   : > { %6331 = vxpose.xlu0.b32.cont [11/16] (narrow) %v6235_v7, 16  ;;  %v6256_v7 = vmul.f32 %v10877_v61, %v5744_v39 }
 0xb8d   : > { %6332 = vxpose.xlu0.b32.cont [12/16] (narrow) %v6236_v14, 16 }
 0xb91   : > { %6333 = vxpose.xlu0.b32.cont [13/16] (narrow) %v6237_v55, 16  ;;  %v6401_v55 = vld [vmem:[%s10849_s13 + $0x30] sm:$0xff] }
 0xb95   : > { %6334 = vxpose.xlu0.b32.cont [14/16] (narrow) %v6238_v38, 16 }
 0xb99   : > { %6335 = vxpose.xlu0.b32.cont [15/16] (narrow) %v6239_v16, 16 }
 0xb9d   : > { %6336 = vxpose.xlu0.b32.end [16/16] (narrow) %v6240_v0, 16 }
 0xba1   : > { %v6305_v26 = vpop.trf.xlu0 }
 0xba2   : > { %v6388_v40 = vmul.f32 %v10852_v43, %v6305_v26 }
 0xba3   : > { %v6116_v53 = vpop.permute.xlu1 %6115 }
 0xba4   : > { %v6241_v45 = vmul.f32 %v6116_v53, %v5729_v25  ;;  %v6404_v51 = vadd.f32 %v6396_v15, %v6388_v40 }
 0xba5   : > { %v6306_v11 = vpop.trf.xlu0 }
 0xba6   : > { %6353 = vxpose.xlu1.b32.start [1/16] (narrow) %v6241_v45, 16  ;;  %6412 = vst [vmem:[%s10859_s16 + $0x8] sm:$0xff] %v6404_v51  ;;  %v6392_v34 = vmul.f32 %v10852_v43, %v6306_v11 }
 0xba7   : > { %v6126_v1 = vpop.permute.xlu1 %6125 }
 0xba8   : > { %v6408_v47 = vadd.f32 %v6400_v9, %v6392_v34  ;;  %v6243_v33 = vmul.f32 %v6126_v1, %v5731_v49 }
 0xbaa   : > { %6354 = vxpose.xlu1.b32.cont [2/16] (narrow) %v6242_v18, 16  ;;  %6416 = vst [vmem:[%s10859_s16 + $0x28] sm:$0xff] %v6408_v47 }
 0xbab   : > { %v6136_v29 = vpop.permute.xlu1 %6135 }
 0xbac   : > { %v6245_v52 = vmul.f32 %v6136_v29, %v5733_v58 }
 0xbae   : > { %6355 = vxpose.xlu1.b32.cont [3/16] (narrow) %v6243_v33, 16 }
 0xbaf   : > { %v6146_v63 = vpop.permute.xlu1 %6145 }
 0xbb0   : > { %v6247_v17 = vmul.f32 %v6146_v63, %v5735_v44 }
 0xbb2   : > { %6356 = vxpose.xlu1.b32.cont [4/16] (narrow) %v6244_v46, 16 }
 0xbb3   : > { %v6156_v5 = vpop.permute.xlu1 %6155 }
 0xbb4   : > { %v6249_v10 = vmul.f32 %v6156_v5, %v5737_v31 }
 0xbb6   : > { %6357 = vxpose.xlu1.b32.cont [5/16] (narrow) %v6245_v52, 16 }
 0xbb7   : > { %v6166_v37 = vpop.permute.xlu1 %6165 }
 0xbb8   : > { %v6251_v28 = vmul.f32 %v6166_v37, %v5739_v19 }
 0xbba   : > { %6358 = vxpose.xlu1.b32.cont [6/16] (narrow) %v6246_v59, 16 }
 0xbbb   : > { %v6176_v60 = vpop.permute.xlu1 %6175 }
 0xbbc   : > { %v6253_v32 = vmul.f32 %v6176_v60, %v5741_v23 }
 0xbbe   : > { %6359 = vxpose.xlu1.b32.cont [7/16] (narrow) %v6247_v17, 16 }
 0xbbf   : > { %v6186_v22 = vpop.permute.xlu1 %6185 }
 0xbc0   : > { %v6255_v13 = vmul.f32 %v6186_v22, %v5743_v62 }
 0xbc2   : > { %6360 = vxpose.xlu1.b32.cont [8/16] (narrow) %v6248_v24, 16 }
 0xbc6   : > { %6361 = vxpose.xlu1.b32.cont [9/16] (narrow) %v6249_v10, 16 }
 0xbca   : > { %6362 = vxpose.xlu1.b32.cont [10/16] (narrow) %v6250_v12, 16 }
 0xbce   : > { %6363 = vxpose.xlu1.b32.cont [11/16] (narrow) %v6251_v28, 16 }
 0xbd2   : > { %6364 = vxpose.xlu1.b32.cont [12/16] (narrow) %v6252_v35, 16 }
 0xbd6   : > { %6365 = vxpose.xlu1.b32.cont [13/16] (narrow) %v6253_v32, 16 }
 0xbda   : > { %6366 = vxpose.xlu1.b32.cont [14/16] (narrow) %v6254_v21, 16 }
 0xbde   : > { %6367 = vxpose.xlu1.b32.cont [15/16] (narrow) %v6255_v13, 16 }
 0xbe1   : > { %v6337_v14 = vpop.trf.xlu0 }
 0xbe2   : > { %6368 = vxpose.xlu1.b32.end [16/16] (narrow) %v6256_v7, 16  ;;  %v6389_v20 = vmul.f32 %v10852_v43, %v6337_v14 }
 0xbe4   : > { %v6405_v41 = vadd.f32 %v6397_v54, %v6389_v20 }
 0xbe5   : > { %v6338_v50 = vpop.trf.xlu0 }
 0xbe6   : > { %6413 = vst [vmem:[%s10859_s16 + $0x10] sm:$0xff] %v6405_v41  ;;  %v6393_v42 = vmul.f32 %v10852_v43, %v6338_v50 }
 0xbe8   : > { %v6409_v38 = vadd.f32 %v6401_v55, %v6393_v42 }
 0xbea   : > { %6417 = vst [vmem:[%s10859_s16 + $0x30] sm:$0xff] %v6409_v38 }
 0xc26   : > { %v6369_v48 = vpop.trf.xlu1 }
 0xc27   : > { %v6390_v16 = vmul.f32 %v10852_v43, %v6369_v48 }
 0xc29   : > { %v6406_v4 = vadd.f32 %v6398_v8, %v6390_v16 }
 0xc2a   : > { %v6370_v0 = vpop.trf.xlu1 }
 0xc2b   : > { %6414 = vst [vmem:[%s10859_s16 + $0x18] sm:$0xff] %v6406_v4  ;;  %v6394_v61 = vmul.f32 %v10852_v43, %v6370_v0 }
 0xc2d   : > { %v6410_v15 = vadd.f32 %v6402_v27, %v6394_v61 }
 0xc2f   : > { %6418 = vst [vmem:[%s10859_s16 + $0x38] sm:$0xff] %v6410_v15 }
 0xc30 PF: > { %s16_s22 = sadd.s32 1, %s7339_s22   ;;  %s12260_s20 = smov %s7335_s21 }
 0xc31   : > { %p13_p5 = scmp.ge.s32.totalorder %s16_s22, 4   ;;  %s12261_s21 = smov %s12263_s4 }
 0xc33   :  { %15 = sbr.rel (!%p13_p5) target bundleno = 2 (0x2), region = 87 }

</bundles_post_ra>
